<compile_context>
chip_gen: v7x
topology: tpu7x:2x2x1
jax: 0.10.0
libtpu: 0.0.40
codegen_flags: <defaults>
</compile_context>

<pallas_src>
import functools

import jax
import jax.numpy as jnp
from jax import lax
from jax.experimental import pallas as pl
from jax.experimental.pallas import tpu as pltpu


def inception_b_kernel(
    x_ref,
    w_head, b_head,            # fused [1x1_2 | 1x7_reduce | 7x1_reduce]
    w_1x7, b_1x7,
    w_7x1, b_7x1,
    w_7x1_2, b_7x1_2,
    w_1x7_2, b_1x7_2,
    w_7x1_3, b_7x1_3,
    w_1x7_3, b_1x7_3,
    w_pool, b_pool,
    o_ref,
    acc_i, acc_o,              # f32 VMEM accumulators: (M, inter_c), (M, out_c)
    *, H, W,
):
    M, _ = x_ref.shape
    out_c = o_ref.shape[-1] // 4
    inter_c = acc_i.shape[-1]

    # Flat-index helpers for the shifted-tap convs (computed once, hoisted).
    idx = lax.broadcasted_iota(jnp.int32, (M, 1), 0)
    col = idx % W
    # Validity masks: a W-shift by s is valid where 0 <= col+s < W;
    # an H-shift by s is valid where 0 <= m + s*W < M.
    w_ok = {s: (col + s >= 0) & (col + s < W) for s in (-3, -2, -1, 1, 2, 3)}
    h_ok = {s: (idx + s * W >= 0) & (idx + s * W < M) for s in (-3, -2, -1, 1, 2, 3)}

    def shift_w(t, s):         # t[h, w] -> t[h, w + s], zero-padded at W edges
        if s == 0:
            return t
        r = pltpu.roll(t, (-s) % M, 0)
        return jnp.where(w_ok[s], r, 0.0)

    def shift_h(t, s):         # t[h, w] -> t[h + s, w], zero-padded at H edges
        if s == 0:
            return t
        r = pltpu.roll(t, (-s * W) % M, 0)
        return jnp.where(h_ok[s], r, 0.0)

    def bias_relu(y, b_ref):
        return jnp.maximum(y + b_ref[...], 0.0)

    def conv7(t, w_ref, b_ref, shift_fn, acc_ref):
        # 7-tap separable conv = 7 spatially-shifted matmuls accumulated into VMEM f32.
        for k in range(7):
            xs = shift_fn(t, k - 3).astype(jnp.bfloat16)
            d = jnp.dot(xs, w_ref[k], preferred_element_type=jnp.float32)
            if k == 0:
                acc_ref[...] = d
            else:
                acc_ref[...] += d
        return bias_relu(acc_ref[...], b_ref)

    x = x_ref[...]                                 # (M, Cin) f32
    xb = x.astype(jnp.bfloat16)                    # single bf16 cast of the input

    # --- fused head: branch-1 1x1 + branch-2/3 1x1 reduces in one wide matmul ---
    head = jnp.dot(xb, w_head[...], preferred_element_type=jnp.float32)
    head = bias_relu(head, b_head)

    # branch 1: 1x1
    o_ref[:, 0:out_c] = head[:, 0:out_c].astype(o_ref.dtype)

    # branch 2: 1x1 -> 1x7 -> 7x1
    t = head[:, out_c:out_c + inter_c]
    t = conv7(t, w_1x7, b_1x7, shift_w, acc_i)
    t = conv7(t, w_7x1, b_7x1, shift_h, acc_o)
    o_ref[:, out_c:2 * out_c] = t.astype(o_ref.dtype)

    # branch 3: 1x1 -> 7x1 -> 1x7 -> 7x1 -> 1x7
    t = head[:, out_c + inter_c:out_c + 2 * inter_c]
    t = conv7(t, w_7x1_2, b_7x1_2, shift_h, acc_i)
    t = conv7(t, w_1x7_2, b_1x7_2, shift_w, acc_i)
    t = conv7(t, w_7x1_3, b_7x1_3, shift_h, acc_i)
    t = conv7(t, w_1x7_3, b_1x7_3, shift_w, acc_o)
    o_ref[:, 2 * out_c:3 * out_c] = t.astype(o_ref.dtype)

    # branch 4: 3x3 avg-pool (stride 1, pad 1, count_include_pad=True) -> 1x1.
    # Separable *sum* pool in f32; the 1/9 is folded into w_pool host-side.
    rowsum = shift_h(x, -1) + x + shift_h(x, 1)
    pooled = shift_w(rowsum, -1) + rowsum + shift_w(rowsum, 1)
    pb = jnp.dot(pooled.astype(jnp.bfloat16), w_pool[...],
                 preferred_element_type=jnp.float32)
    pb = bias_relu(pb, b_pool)
    o_ref[:, 3 * out_c:4 * out_c] = pb.astype(o_ref.dtype)


def _const_index_map(ndim):
    return lambda n: (0,) * ndim


def inception_b_pallas(x_nhwc, params):
    """params: 10 (bf16 BN-folded weight, f32 bias(1,Cout)) tuples in module order."""
    N, H, W, Cin = x_nhwc.shape
    M = H * W
    (w1, b1), (w2, b2), (w3, b3), (w4, b4), (w5, b5), (w6, b6), (w7, b7), \
        (w8, b8), (w9, b9), (w10, b10) = params
    out_c = w1.shape[-1]
    inter_c = w2.shape[-1]

    # Fuse the three 1x1 convs that all consume x into one wide weight (host-side).
    w_head = jnp.concatenate([w1, w2, w5], axis=-1)       # (Cin, out_c + 2*inter_c)
    b_head = jnp.concatenate([b1, b2, b5], axis=-1)

    kparams = [(w_head, b_head), (w3, b3), (w4, b4), (w6, b6), (w7, b7),
               (w8, b8), (w9, b9), (w10, b10)]

    x_flat = x_nhwc.reshape(N, M, Cin)                    # spatial dims flat end-to-end

    flat_args = [x_flat]
    in_specs = [pl.BlockSpec((None, M, Cin), lambda n: (n, 0, 0))]
    for w, b in kparams:
        flat_args += [w, b]
        in_specs += [pl.BlockSpec(w.shape, _const_index_map(w.ndim)),
                     pl.BlockSpec(b.shape, _const_index_map(b.ndim))]

    grid_spec = pltpu.PrefetchScalarGridSpec(
        num_scalar_prefetch=0,
        grid=(N,),
        in_specs=in_specs,
        out_specs=pl.BlockSpec((None, M, 4 * out_c), lambda n: (n, 0, 0)),
        scratch_shapes=[
            pltpu.VMEM((M, inter_c), jnp.float32),   # 7-tap accumulator (inter_c wide)
            pltpu.VMEM((M, out_c), jnp.float32),     # 7-tap accumulator (out_c wide)
        ],
    )
    out_flat = pl.pallas_call(
        functools.partial(inception_b_kernel, H=H, W=W),
        out_shape=jax.ShapeDtypeStruct((N, M, 4 * out_c), jnp.bfloat16),
        grid_spec=grid_spec,
        compiler_params=pltpu.CompilerParams(
            dimension_semantics=("parallel",),
            vmem_limit_bytes=64 * 1024 * 1024,
        ),
    )(*flat_args)
    return out_flat.reshape(N, H, W, 4 * out_c)


# -------- deterministic parameter construction + pure-JAX reference --------

def _make_conv_params(key, w_shape, extra_scale=1.0):
    """Random conv weight + BatchNorm(eval) folded: returns (bf16 folded weight, f32 bias)."""
    cout = w_shape[-1]
    kw, kg, kb, km, kv = jax.random.split(key, 5)
    w = jax.random.normal(kw, w_shape, jnp.float32) * 0.1
    gamma = jax.random.uniform(kg, (cout,), jnp.float32, 0.5, 1.5)
    beta = jax.random.normal(kb, (cout,), jnp.float32) * 0.1
    mean = jax.random.normal(km, (cout,), jnp.float32) * 0.1
    var = jax.random.uniform(kv, (cout,), jnp.float32, 0.5, 1.5)
    scale = gamma / jnp.sqrt(var + 1e-5)
    bias = (beta - mean * scale).reshape(1, -1)
    w_folded = (w * (scale * extra_scale)).astype(jnp.bfloat16)
    return w_folded, bias


def _q(v):  # bf16 round-trip: mirrors the kernel's bf16 matmul-input precision policy
    return v.astype(jnp.bfloat16).astype(jnp.float32)


def _ref_1x1(x, w, b):
    y = jnp.einsum('nhwc,cd->nhwd', _q(x), w.astype(jnp.float32))
    return jnp.maximum(y + b.reshape(1, 1, 1, -1), 0.0)


def _ref_1x7(x, w, b):
    y = lax.conv_general_dilated(_q(x), w.astype(jnp.float32)[None], (1, 1), ((0, 0), (3, 3)),
                                 dimension_numbers=('NHWC', 'HWIO', 'NHWC'))
    return jnp.maximum(y + b.reshape(1, 1, 1, -1), 0.0)


def _ref_7x1(x, w, b):
    y = lax.conv_general_dilated(_q(x), w.astype(jnp.float32)[:, None], (1, 1), ((3, 3), (0, 0)),
                                 dimension_numbers=('NHWC', 'HWIO', 'NHWC'))
    return jnp.maximum(y + b.reshape(1, 1, 1, -1), 0.0)


def _ref_forward(x, params):
    (w1, b1), (w2, b2), (w3, b3), (w4, b4), (w5, b5), (w6, b6), (w7, b7), \
        (w8, b8), (w9, b9), (w10, b10) = params
    br1 = _ref_1x1(x, w1, b1)
    t = _ref_1x1(x, w2, b2); t = _ref_1x7(t, w3, b3); br2 = _ref_7x1(t, w4, b4)
    t = _ref_1x1(x, w5, b5); t = _ref_7x1(t, w6, b6); t = _ref_1x7(t, w7, b7)
    t = _ref_7x1(t, w8, b8); br3 = _ref_1x7(t, w9, b9)
    summed = lax.reduce_window(x, 0.0, lax.add, (1, 3, 3, 1), (1, 1, 1, 1),
                               ((0, 0), (1, 1), (1, 1), (0, 0)))
    br4 = _ref_1x1(summed, w10, b10)   # 1/9 already folded into w10
    return jnp.concatenate([br1, br2, br3, br4], axis=-1)


if __name__ == "__main__":
    key = jax.random.PRNGKey(0)
    N, H, W = 2, 8, 8
    in_c, inter_c, out_c = 32, 16, 32   # toy sizes; 4*out_c = 128 keeps the output lane-dense

    keys = jax.random.split(key, 11)
    x = jax.random.normal(keys[0], (N, H, W, in_c), jnp.float32)

    # (weight_shape, extra_scale) in module order.
    # weight[k, cin, cout] corresponds to torch weight[cout, cin, *, k] (tap axis first).
    shapes = [
        ((in_c, out_c), 1.0),            # inception_b_1x1_2
        ((in_c, inter_c), 1.0),          # inception_b_1x7_reduce
        ((7, inter_c, inter_c), 1.0),    # inception_b_1x7      (taps along W)
        ((7, inter_c, out_c), 1.0),      # inception_b_7x1      (taps along H)
        ((in_c, inter_c), 1.0),          # inception_b_7x1_reduce
        ((7, inter_c, inter_c), 1.0),    # inception_b_7x1_2
        ((7, inter_c, inter_c), 1.0),    # inception_b_1x7_2
        ((7, inter_c, inter_c), 1.0),    # inception_b_7x1_3
        ((7, inter_c, out_c), 1.0),      # inception_b_1x7_3
        ((in_c, out_c), 1.0 / 9.0),      # inception_b_1x1 (after avg pool; 1/9 folded in)
    ]
    params = [_make_conv_params(keys[i + 1], ws, es) for i, (ws, es) in enumerate(shapes)]

    fn = jax.jit(inception_b_pallas)
    out = jax.block_until_ready(fn(x, params))

    ref = _ref_forward(x, params)
    assert out.shape == (N, H, W, 4 * out_c), out.shape
    out_f32 = out.astype(jnp.float32)
    max_diff = float(jnp.max(jnp.abs(out_f32 - ref)))
    if not bool(jnp.allclose(out_f32, ref, atol=3e-2, rtol=3e-2)):
        raise SystemExit(f"mismatch vs reference: max abs diff {max_diff:e}")
    print("KERNEL_OK")
</pallas_src>

<mosaic_0001>
module attributes {stable_mosaic.version = 11 : i64} {
  func.func @inception_b_kernel(%arg0: i32, %arg1: memref<1x64x32xf32, #tpu.memory_space<vmem>>, %arg2: memref<32x64xbf16, #tpu.memory_space<vmem>>, %arg3: memref<1x64xf32, #tpu.memory_space<vmem>>, %arg4: memref<7x16x16xbf16, #tpu.memory_space<vmem>>, %arg5: memref<1x16xf32, #tpu.memory_space<vmem>>, %arg6: memref<7x16x32xbf16, #tpu.memory_space<vmem>>, %arg7: memref<1x32xf32, #tpu.memory_space<vmem>>, %arg8: memref<7x16x16xbf16, #tpu.memory_space<vmem>>, %arg9: memref<1x16xf32, #tpu.memory_space<vmem>>, %arg10: memref<7x16x16xbf16, #tpu.memory_space<vmem>>, %arg11: memref<1x16xf32, #tpu.memory_space<vmem>>, %arg12: memref<7x16x16xbf16, #tpu.memory_space<vmem>>, %arg13: memref<1x16xf32, #tpu.memory_space<vmem>>, %arg14: memref<7x16x32xbf16, #tpu.memory_space<vmem>>, %arg15: memref<1x32xf32, #tpu.memory_space<vmem>>, %arg16: memref<32x32xbf16, #tpu.memory_space<vmem>>, %arg17: memref<1x32xf32, #tpu.memory_space<vmem>>, %arg18: memref<1x64x128xbf16, #tpu.memory_space<vmem>>, %arg19: memref<64x16xf32, #tpu.memory_space<vmem>>, %arg20: memref<64x32xf32, #tpu.memory_space<vmem>>) attributes {dimension_semantics = [#tpu.dimension_semantics<parallel>], iteration_bounds = array<i64: 2>, scalar_prefetch = 0 : i64, scratch_operands = 2 : i64, tpu.core_type = #tpu.core_type<tc>, window_params = [{transform_indices = @transform_0, window_bounds = array<i64: 1, 64, 32>}, {pipeline_mode = #tpu.pipeline_mode<synchronous>, transform_indices = @transform_1, window_bounds = array<i64: 32, 64>}, {pipeline_mode = #tpu.pipeline_mode<synchronous>, transform_indices = @transform_2, window_bounds = array<i64: 1, 64>}, {pipeline_mode = #tpu.pipeline_mode<synchronous>, transform_indices = @transform_3, window_bounds = array<i64: 7, 16, 16>}, {pipeline_mode = #tpu.pipeline_mode<synchronous>, transform_indices = @transform_4, window_bounds = array<i64: 1, 16>}, {pipeline_mode = #tpu.pipeline_mode<synchronous>, transform_indices = @transform_5, window_bounds = array<i64: 7, 16, 32>}, {pipeline_mode = #tpu.pipeline_mode<synchronous>, transform_indices = @transform_6, window_bounds = array<i64: 1, 32>}, {pipeline_mode = #tpu.pipeline_mode<synchronous>, transform_indices = @transform_7, window_bounds = array<i64: 7, 16, 16>}, {pipeline_mode = #tpu.pipeline_mode<synchronous>, transform_indices = @transform_8, window_bounds = array<i64: 1, 16>}, {pipeline_mode = #tpu.pipeline_mode<synchronous>, transform_indices = @transform_9, window_bounds = array<i64: 7, 16, 16>}, {pipeline_mode = #tpu.pipeline_mode<synchronous>, transform_indices = @transform_10, window_bounds = array<i64: 1, 16>}, {pipeline_mode = #tpu.pipeline_mode<synchronous>, transform_indices = @transform_11, window_bounds = array<i64: 7, 16, 16>}, {pipeline_mode = #tpu.pipeline_mode<synchronous>, transform_indices = @transform_12, window_bounds = array<i64: 1, 16>}, {pipeline_mode = #tpu.pipeline_mode<synchronous>, transform_indices = @transform_13, window_bounds = array<i64: 7, 16, 32>}, {pipeline_mode = #tpu.pipeline_mode<synchronous>, transform_indices = @transform_14, window_bounds = array<i64: 1, 32>}, {pipeline_mode = #tpu.pipeline_mode<synchronous>, transform_indices = @transform_15, window_bounds = array<i64: 32, 32>}, {pipeline_mode = #tpu.pipeline_mode<synchronous>, transform_indices = @transform_16, window_bounds = array<i64: 1, 32>}, {transform_indices = @transform_17, window_bounds = array<i64: 1, 64, 128>}]} {
    %0 = tpu.iota {dimensions = array<i32: 0>} : vector<64x1xi32>
    %c8_i32 = arith.constant 8 : i32
    %c0_i32 = arith.constant 0 : i32
    %1 = arith.cmpi eq, %c8_i32, %c0_i32 : i32
    %c1_i32 = arith.constant 1 : i32
    %2 = arith.select %1, %c1_i32, %c8_i32 : i32
    %3 = vector.broadcast %2 : i32 to vector<64x1xi32>
    %4 = arith.remsi %0, %3 : vector<64x1xi32>
    %c0_i32_0 = arith.constant 0 : i32
    %5 = vector.broadcast %c0_i32_0 : i32 to vector<64x1xi32>
    %6 = arith.cmpi ne, %4, %5 : vector<64x1xi32>
    %c0_i32_1 = arith.constant 0 : i32
    %7 = vector.broadcast %c0_i32_1 : i32 to vector<64x1xi32>
    %8 = arith.cmpi slt, %4, %7 : vector<64x1xi32>
    %c0_i32_2 = arith.constant 0 : i32
    %9 = arith.cmpi slt, %2, %c0_i32_2 : i32
    %10 = vector.broadcast %9 : i1 to vector<64x1xi1>
    %11 = vector.broadcast %10 : vector<64x1xi1> to vector<64x1xi1>
    %12 = arith.xori %8, %11 : vector<64x1xi1>
    %13 = arith.andi %12, %6 : vector<64x1xi1>
    %14 = vector.broadcast %2 : i32 to vector<64x1xi32>
    %15 = arith.addi %4, %14 : vector<64x1xi32>
    %16 = arith.select %13, %15, %4 : vector<64x1xi1>, vector<64x1xi32>
    %c-3_i32 = arith.constant -3 : i32
    %17 = vector.broadcast %c-3_i32 : i32 to vector<64x1xi32>
    %18 = arith.addi %16, %17 : vector<64x1xi32>
    %c0_i32_3 = arith.constant 0 : i32
    %19 = vector.broadcast %c0_i32_3 : i32 to vector<64x1xi32>
    %20 = arith.cmpi sge, %18, %19 : vector<64x1xi32>
    %c-3_i32_4 = arith.constant -3 : i32
    %21 = vector.broadcast %c-3_i32_4 : i32 to vector<64x1xi32>
    %22 = arith.addi %16, %21 : vector<64x1xi32>
    %c8_i32_5 = arith.constant 8 : i32
    %23 = vector.broadcast %c8_i32_5 : i32 to vector<64x1xi32>
    %24 = arith.cmpi slt, %22, %23 : vector<64x1xi32>
    %25 = arith.andi %20, %24 : vector<64x1xi1>
    %c-2_i32 = arith.constant -2 : i32
    %26 = vector.broadcast %c-2_i32 : i32 to vector<64x1xi32>
    %27 = arith.addi %16, %26 : vector<64x1xi32>
    %c0_i32_6 = arith.constant 0 : i32
    %28 = vector.broadcast %c0_i32_6 : i32 to vector<64x1xi32>
    %29 = arith.cmpi sge, %27, %28 : vector<64x1xi32>
    %c-2_i32_7 = arith.constant -2 : i32
    %30 = vector.broadcast %c-2_i32_7 : i32 to vector<64x1xi32>
    %31 = arith.addi %16, %30 : vector<64x1xi32>
    %c8_i32_8 = arith.constant 8 : i32
    %32 = vector.broadcast %c8_i32_8 : i32 to vector<64x1xi32>
    %33 = arith.cmpi slt, %31, %32 : vector<64x1xi32>
    %34 = arith.andi %29, %33 : vector<64x1xi1>
    %c-1_i32 = arith.constant -1 : i32
    %35 = vector.broadcast %c-1_i32 : i32 to vector<64x1xi32>
    %36 = arith.addi %16, %35 : vector<64x1xi32>
    %c0_i32_9 = arith.constant 0 : i32
    %37 = vector.broadcast %c0_i32_9 : i32 to vector<64x1xi32>
    %38 = arith.cmpi sge, %36, %37 : vector<64x1xi32>
    %c-1_i32_10 = arith.constant -1 : i32
    %39 = vector.broadcast %c-1_i32_10 : i32 to vector<64x1xi32>
    %40 = arith.addi %16, %39 : vector<64x1xi32>
    %c8_i32_11 = arith.constant 8 : i32
    %41 = vector.broadcast %c8_i32_11 : i32 to vector<64x1xi32>
    %42 = arith.cmpi slt, %40, %41 : vector<64x1xi32>
    %43 = arith.andi %38, %42 : vector<64x1xi1>
    %c1_i32_12 = arith.constant 1 : i32
    %44 = vector.broadcast %c1_i32_12 : i32 to vector<64x1xi32>
    %45 = arith.addi %16, %44 : vector<64x1xi32>
    %c0_i32_13 = arith.constant 0 : i32
    %46 = vector.broadcast %c0_i32_13 : i32 to vector<64x1xi32>
    %47 = arith.cmpi sge, %45, %46 : vector<64x1xi32>
    %c1_i32_14 = arith.constant 1 : i32
    %48 = vector.broadcast %c1_i32_14 : i32 to vector<64x1xi32>
    %49 = arith.addi %16, %48 : vector<64x1xi32>
    %c8_i32_15 = arith.constant 8 : i32
    %50 = vector.broadcast %c8_i32_15 : i32 to vector<64x1xi32>
    %51 = arith.cmpi slt, %49, %50 : vector<64x1xi32>
    %52 = arith.andi %47, %51 : vector<64x1xi1>
    %c2_i32 = arith.constant 2 : i32
    %53 = vector.broadcast %c2_i32 : i32 to vector<64x1xi32>
    %54 = arith.addi %16, %53 : vector<64x1xi32>
    %c0_i32_16 = arith.constant 0 : i32
    %55 = vector.broadcast %c0_i32_16 : i32 to vector<64x1xi32>
    %56 = arith.cmpi sge, %54, %55 : vector<64x1xi32>
    %c2_i32_17 = arith.constant 2 : i32
    %57 = vector.broadcast %c2_i32_17 : i32 to vector<64x1xi32>
    %58 = arith.addi %16, %57 : vector<64x1xi32>
    %c8_i32_18 = arith.constant 8 : i32
    %59 = vector.broadcast %c8_i32_18 : i32 to vector<64x1xi32>
    %60 = arith.cmpi slt, %58, %59 : vector<64x1xi32>
    %61 = arith.andi %56, %60 : vector<64x1xi1>
    %c3_i32 = arith.constant 3 : i32
    %62 = vector.broadcast %c3_i32 : i32 to vector<64x1xi32>
    %63 = arith.addi %16, %62 : vector<64x1xi32>
    %c0_i32_19 = arith.constant 0 : i32
    %64 = vector.broadcast %c0_i32_19 : i32 to vector<64x1xi32>
    %65 = arith.cmpi sge, %63, %64 : vector<64x1xi32>
    %c3_i32_20 = arith.constant 3 : i32
    %66 = vector.broadcast %c3_i32_20 : i32 to vector<64x1xi32>
    %67 = arith.addi %16, %66 : vector<64x1xi32>
    %c8_i32_21 = arith.constant 8 : i32
    %68 = vector.broadcast %c8_i32_21 : i32 to vector<64x1xi32>
    %69 = arith.cmpi slt, %67, %68 : vector<64x1xi32>
    %70 = arith.andi %65, %69 : vector<64x1xi1>
    %c-24_i32 = arith.constant -24 : i32
    %71 = vector.broadcast %c-24_i32 : i32 to vector<64x1xi32>
    %72 = arith.addi %0, %71 : vector<64x1xi32>
    %c0_i32_22 = arith.constant 0 : i32
    %73 = vector.broadcast %c0_i32_22 : i32 to vector<64x1xi32>
    %74 = arith.cmpi sge, %72, %73 : vector<64x1xi32>
    %c-24_i32_23 = arith.constant -24 : i32
    %75 = vector.broadcast %c-24_i32_23 : i32 to vector<64x1xi32>
    %76 = arith.addi %0, %75 : vector<64x1xi32>
    %c64_i32 = arith.constant 64 : i32
    %77 = vector.broadcast %c64_i32 : i32 to vector<64x1xi32>
    %78 = arith.cmpi slt, %76, %77 : vector<64x1xi32>
    %79 = arith.andi %74, %78 : vector<64x1xi1>
    %c-16_i32 = arith.constant -16 : i32
    %80 = vector.broadcast %c-16_i32 : i32 to vector<64x1xi32>
    %81 = arith.addi %0, %80 : vector<64x1xi32>
    %c0_i32_24 = arith.constant 0 : i32
    %82 = vector.broadcast %c0_i32_24 : i32 to vector<64x1xi32>
    %83 = arith.cmpi sge, %81, %82 : vector<64x1xi32>
    %c-16_i32_25 = arith.constant -16 : i32
    %84 = vector.broadcast %c-16_i32_25 : i32 to vector<64x1xi32>
    %85 = arith.addi %0, %84 : vector<64x1xi32>
    %c64_i32_26 = arith.constant 64 : i32
    %86 = vector.broadcast %c64_i32_26 : i32 to vector<64x1xi32>
    %87 = arith.cmpi slt, %85, %86 : vector<64x1xi32>
    %88 = arith.andi %83, %87 : vector<64x1xi1>
    %c-8_i32 = arith.constant -8 : i32
    %89 = vector.broadcast %c-8_i32 : i32 to vector<64x1xi32>
    %90 = arith.addi %0, %89 : vector<64x1xi32>
    %c0_i32_27 = arith.constant 0 : i32
    %91 = vector.broadcast %c0_i32_27 : i32 to vector<64x1xi32>
    %92 = arith.cmpi sge, %90, %91 : vector<64x1xi32>
    %c-8_i32_28 = arith.constant -8 : i32
    %93 = vector.broadcast %c-8_i32_28 : i32 to vector<64x1xi32>
    %94 = arith.addi %0, %93 : vector<64x1xi32>
    %c64_i32_29 = arith.constant 64 : i32
    %95 = vector.broadcast %c64_i32_29 : i32 to vector<64x1xi32>
    %96 = arith.cmpi slt, %94, %95 : vector<64x1xi32>
    %97 = arith.andi %92, %96 : vector<64x1xi1>
    %c8_i32_30 = arith.constant 8 : i32
    %98 = vector.broadcast %c8_i32_30 : i32 to vector<64x1xi32>
    %99 = arith.addi %0, %98 : vector<64x1xi32>
    %c0_i32_31 = arith.constant 0 : i32
    %100 = vector.broadcast %c0_i32_31 : i32 to vector<64x1xi32>
    %101 = arith.cmpi sge, %99, %100 : vector<64x1xi32>
    %c8_i32_32 = arith.constant 8 : i32
    %102 = vector.broadcast %c8_i32_32 : i32 to vector<64x1xi32>
    %103 = arith.addi %0, %102 : vector<64x1xi32>
    %c64_i32_33 = arith.constant 64 : i32
    %104 = vector.broadcast %c64_i32_33 : i32 to vector<64x1xi32>
    %105 = arith.cmpi slt, %103, %104 : vector<64x1xi32>
    %106 = arith.andi %101, %105 : vector<64x1xi1>
    %c16_i32 = arith.constant 16 : i32
    %107 = vector.broadcast %c16_i32 : i32 to vector<64x1xi32>
    %108 = arith.addi %0, %107 : vector<64x1xi32>
    %c0_i32_34 = arith.constant 0 : i32
    %109 = vector.broadcast %c0_i32_34 : i32 to vector<64x1xi32>
    %110 = arith.cmpi sge, %108, %109 : vector<64x1xi32>
    %c16_i32_35 = arith.constant 16 : i32
    %111 = vector.broadcast %c16_i32_35 : i32 to vector<64x1xi32>
    %112 = arith.addi %0, %111 : vector<64x1xi32>
    %c64_i32_36 = arith.constant 64 : i32
    %113 = vector.broadcast %c64_i32_36 : i32 to vector<64x1xi32>
    %114 = arith.cmpi slt, %112, %113 : vector<64x1xi32>
    %115 = arith.andi %110, %114 : vector<64x1xi1>
    %c24_i32 = arith.constant 24 : i32
    %116 = vector.broadcast %c24_i32 : i32 to vector<64x1xi32>
    %117 = arith.addi %0, %116 : vector<64x1xi32>
    %c0_i32_37 = arith.constant 0 : i32
    %118 = vector.broadcast %c0_i32_37 : i32 to vector<64x1xi32>
    %119 = arith.cmpi sge, %117, %118 : vector<64x1xi32>
    %c24_i32_38 = arith.constant 24 : i32
    %120 = vector.broadcast %c24_i32_38 : i32 to vector<64x1xi32>
    %121 = arith.addi %0, %120 : vector<64x1xi32>
    %c64_i32_39 = arith.constant 64 : i32
    %122 = vector.broadcast %c64_i32_39 : i32 to vector<64x1xi32>
    %123 = arith.cmpi slt, %121, %122 : vector<64x1xi32>
    %124 = arith.andi %119, %123 : vector<64x1xi1>
    %c0 = arith.constant 0 : index
    %c0_40 = arith.constant 0 : index
    %c0_41 = arith.constant 0 : index
    %125 = vector.load %arg1[%c0, %c0_40, %c0_41] : memref<1x64x32xf32, #tpu.memory_space<vmem>>, vector<1x64x32xf32>
    %126 = vector.shape_cast %125 : vector<1x64x32xf32> to vector<64x32xf32>
    %127 = arith.truncf %126 : vector<64x32xf32> to vector<64x32xbf16>
    %c0_42 = arith.constant 0 : index
    %c0_43 = arith.constant 0 : index
    %128 = vector.load %arg2[%c0_42, %c0_43] : memref<32x64xbf16, #tpu.memory_space<vmem>>, vector<32x64xbf16>
    %cst = arith.constant dense<0.000000e+00> : vector<64x64xf32>
    %129 = tpu.matmul %127, %128, %cst {dimension_numbers = #tpu.dot_dimension_numbers<[1], [0], [0], [1], [0, 0, 1, 1], [], []>} : vector<64x32xbf16>, vector<32x64xbf16>, vector<64x64xf32> -> vector<64x64xf32>
    %c0_44 = arith.constant 0 : index
    %c0_45 = arith.constant 0 : index
    %130 = vector.load %arg3[%c0_44, %c0_45] : memref<1x64xf32, #tpu.memory_space<vmem>>, vector<1x64xf32>
    %131 = vector.broadcast %130 : vector<1x64xf32> to vector<64x64xf32>
    %132 = arith.addf %129, %131 : vector<64x64xf32>
    %cst_46 = arith.constant 0.000000e+00 : f32
    %133 = vector.broadcast %cst_46 : f32 to vector<64x64xf32>
    %134 = arith.maximumf %132, %133 : vector<64x64xf32>
    %135 = vector.extract_strided_slice %134 {offsets = [0, 0], sizes = [64, 32], strides = [1, 1]} : vector<64x64xf32> to vector<64x32xf32>
    %136 = arith.truncf %135 : vector<64x32xf32> to vector<64x32xbf16>
    %c0_47 = arith.constant 0 : index
    %c0_48 = arith.constant 0 : index
    %c0_49 = arith.constant 0 : index
    %137 = vector.load %arg18[%c0_47, %c0_48, %c0_49] : memref<1x64x128xbf16, #tpu.memory_space<vmem>>, vector<1x64x32xbf16>
    %138 = vector.shape_cast %137 : vector<1x64x32xbf16> to vector<64x32xbf16>
    %139 = vector.shape_cast %136 : vector<64x32xbf16> to vector<1x64x32xbf16>
    tpu.vector_store %arg18[%c0_47, %c0_48, %c0_49], %139 {strides = array<i32>} : memref<1x64x128xbf16, #tpu.memory_space<vmem>>, vector<1x64x32xbf16>,
    %140 = vector.extract_strided_slice %134 {offsets = [0, 32], sizes = [64, 16], strides = [1, 1]} : vector<64x64xf32> to vector<64x16xf32>
    %c3_i32_50 = arith.constant 3 : i32
    %141 = tpu.dynamic_rotate %140 by %c3_i32_50 dim 0 : vector<64x16xf32>, i32 -> vector<64x16xf32>
    %cst_51 = arith.constant 0.000000e+00 : f32
    %142 = vector.shape_cast %25 : vector<64x1xi1> to vector<64x1xi1>
    %143 = vector.broadcast %142 : vector<64x1xi1> to vector<64x16xi1>
    %144 = vector.broadcast %cst_51 : f32 to vector<64x16xf32>
    %145 = arith.select %143, %141, %144 : vector<64x16xi1>, vector<64x16xf32>
    %146 = arith.truncf %145 : vector<64x16xf32> to vector<64x16xbf16>
    %c0_52 = arith.constant 0 : index
    %c0_53 = arith.constant 0 : index
    %c0_54 = arith.constant 0 : index
    %147 = vector.load %arg4[%c0_52, %c0_53, %c0_54] : memref<7x16x16xbf16, #tpu.memory_space<vmem>>, vector<1x16x16xbf16>
    %148 = vector.shape_cast %147 : vector<1x16x16xbf16> to vector<16x16xbf16>
    %cst_55 = arith.constant dense<0.000000e+00> : vector<64x16xf32>
    %149 = tpu.matmul %146, %148, %cst_55 {dimension_numbers = #tpu.dot_dimension_numbers<[1], [0], [0], [1], [0, 0, 1, 1], [], []>} : vector<64x16xbf16>, vector<16x16xbf16>, vector<64x16xf32> -> vector<64x16xf32>
    %c0_56 = arith.constant 0 : index
    %c0_57 = arith.constant 0 : index
    %150 = vector.load %arg19[%c0_56, %c0_57] : memref<64x16xf32, #tpu.memory_space<vmem>>, vector<64x16xf32>
    tpu.vector_store %arg19[%c0_56, %c0_57], %149 {strides = array<i32>} : memref<64x16xf32, #tpu.memory_space<vmem>>, vector<64x16xf32>,
    %c2_i32_58 = arith.constant 2 : i32
    %151 = tpu.dynamic_rotate %140 by %c2_i32_58 dim 0 : vector<64x16xf32>, i32 -> vector<64x16xf32>
    %cst_59 = arith.constant 0.000000e+00 : f32
    %152 = vector.shape_cast %34 : vector<64x1xi1> to vector<64x1xi1>
    %153 = vector.broadcast %152 : vector<64x1xi1> to vector<64x16xi1>
    %154 = vector.broadcast %cst_59 : f32 to vector<64x16xf32>
    %155 = arith.select %153, %151, %154 : vector<64x16xi1>, vector<64x16xf32>
    %156 = arith.truncf %155 : vector<64x16xf32> to vector<64x16xbf16>
    %c1 = arith.constant 1 : index
    %c0_60 = arith.constant 0 : index
    %c0_61 = arith.constant 0 : index
    %157 = vector.load %arg4[%c1, %c0_60, %c0_61] : memref<7x16x16xbf16, #tpu.memory_space<vmem>>, vector<1x16x16xbf16>
    %158 = vector.shape_cast %157 : vector<1x16x16xbf16> to vector<16x16xbf16>
    %cst_62 = arith.constant dense<0.000000e+00> : vector<64x16xf32>
    %159 = tpu.matmul %156, %158, %cst_62 {dimension_numbers = #tpu.dot_dimension_numbers<[1], [0], [0], [1], [0, 0, 1, 1], [], []>} : vector<64x16xbf16>, vector<16x16xbf16>, vector<64x16xf32> -> vector<64x16xf32>
    %c0_63 = arith.constant 0 : index
    %c0_64 = arith.constant 0 : index
    %160 = vector.load %arg19[%c0_63, %c0_64] : memref<64x16xf32, #tpu.memory_space<vmem>>, vector<64x16xf32>
    %161 = arith.addf %160, %159 : vector<64x16xf32>
    %c0_65 = arith.constant 0 : index
    %c0_66 = arith.constant 0 : index
    %162 = vector.load %arg19[%c0_65, %c0_66] : memref<64x16xf32, #tpu.memory_space<vmem>>, vector<64x16xf32>
    tpu.vector_store %arg19[%c0_65, %c0_66], %161 {strides = array<i32>} : memref<64x16xf32, #tpu.memory_space<vmem>>, vector<64x16xf32>,
    %c1_i32_67 = arith.constant 1 : i32
    %163 = tpu.dynamic_rotate %140 by %c1_i32_67 dim 0 : vector<64x16xf32>, i32 -> vector<64x16xf32>
    %cst_68 = arith.constant 0.000000e+00 : f32
    %164 = vector.shape_cast %43 : vector<64x1xi1> to vector<64x1xi1>
    %165 = vector.broadcast %164 : vector<64x1xi1> to vector<64x16xi1>
    %166 = vector.broadcast %cst_68 : f32 to vector<64x16xf32>
    %167 = arith.select %165, %163, %166 : vector<64x16xi1>, vector<64x16xf32>
    %168 = arith.truncf %167 : vector<64x16xf32> to vector<64x16xbf16>
    %c2 = arith.constant 2 : index
    %c0_69 = arith.constant 0 : index
    %c0_70 = arith.constant 0 : index
    %169 = vector.load %arg4[%c2, %c0_69, %c0_70] : memref<7x16x16xbf16, #tpu.memory_space<vmem>>, vector<1x16x16xbf16>
    %170 = vector.shape_cast %169 : vector<1x16x16xbf16> to vector<16x16xbf16>
    %cst_71 = arith.constant dense<0.000000e+00> : vector<64x16xf32>
    %171 = tpu.matmul %168, %170, %cst_71 {dimension_numbers = #tpu.dot_dimension_numbers<[1], [0], [0], [1], [0, 0, 1, 1], [], []>} : vector<64x16xbf16>, vector<16x16xbf16>, vector<64x16xf32> -> vector<64x16xf32>
    %c0_72 = arith.constant 0 : index
    %c0_73 = arith.constant 0 : index
    %172 = vector.load %arg19[%c0_72, %c0_73] : memref<64x16xf32, #tpu.memory_space<vmem>>, vector<64x16xf32>
    %173 = arith.addf %172, %171 : vector<64x16xf32>
    %c0_74 = arith.constant 0 : index
    %c0_75 = arith.constant 0 : index
    %174 = vector.load %arg19[%c0_74, %c0_75] : memref<64x16xf32, #tpu.memory_space<vmem>>, vector<64x16xf32>
    tpu.vector_store %arg19[%c0_74, %c0_75], %173 {strides = array<i32>} : memref<64x16xf32, #tpu.memory_space<vmem>>, vector<64x16xf32>,
    %175 = arith.truncf %140 : vector<64x16xf32> to vector<64x16xbf16>
    %c3 = arith.constant 3 : index
    %c0_76 = arith.constant 0 : index
    %c0_77 = arith.constant 0 : index
    %176 = vector.load %arg4[%c3, %c0_76, %c0_77] : memref<7x16x16xbf16, #tpu.memory_space<vmem>>, vector<1x16x16xbf16>
    %177 = vector.shape_cast %176 : vector<1x16x16xbf16> to vector<16x16xbf16>
    %cst_78 = arith.constant dense<0.000000e+00> : vector<64x16xf32>
    %178 = tpu.matmul %175, %177, %cst_78 {dimension_numbers = #tpu.dot_dimension_numbers<[1], [0], [0], [1], [0, 0, 1, 1], [], []>} : vector<64x16xbf16>, vector<16x16xbf16>, vector<64x16xf32> -> vector<64x16xf32>
    %c0_79 = arith.constant 0 : index
    %c0_80 = arith.constant 0 : index
    %179 = vector.load %arg19[%c0_79, %c0_80] : memref<64x16xf32, #tpu.memory_space<vmem>>, vector<64x16xf32>
    %180 = arith.addf %179, %178 : vector<64x16xf32>
    %c0_81 = arith.constant 0 : index
    %c0_82 = arith.constant 0 : index
    %181 = vector.load %arg19[%c0_81, %c0_82] : memref<64x16xf32, #tpu.memory_space<vmem>>, vector<64x16xf32>
    tpu.vector_store %arg19[%c0_81, %c0_82], %180 {strides = array<i32>} : memref<64x16xf32, #tpu.memory_space<vmem>>, vector<64x16xf32>,
    %c63_i32 = arith.constant 63 : i32
    %182 = tpu.dynamic_rotate %140 by %c63_i32 dim 0 : vector<64x16xf32>, i32 -> vector<64x16xf32>
    %cst_83 = arith.constant 0.000000e+00 : f32
    %183 = vector.shape_cast %52 : vector<64x1xi1> to vector<64x1xi1>
    %184 = vector.broadcast %183 : vector<64x1xi1> to vector<64x16xi1>
    %185 = vector.broadcast %cst_83 : f32 to vector<64x16xf32>
    %186 = arith.select %184, %182, %185 : vector<64x16xi1>, vector<64x16xf32>
    %187 = arith.truncf %186 : vector<64x16xf32> to vector<64x16xbf16>
    %c4 = arith.constant 4 : index
    %c0_84 = arith.constant 0 : index
    %c0_85 = arith.constant 0 : index
    %188 = vector.load %arg4[%c4, %c0_84, %c0_85] : memref<7x16x16xbf16, #tpu.memory_space<vmem>>, vector<1x16x16xbf16>
    %189 = vector.shape_cast %188 : vector<1x16x16xbf16> to vector<16x16xbf16>
    %cst_86 = arith.constant dense<0.000000e+00> : vector<64x16xf32>
    %190 = tpu.matmul %187, %189, %cst_86 {dimension_numbers = #tpu.dot_dimension_numbers<[1], [0], [0], [1], [0, 0, 1, 1], [], []>} : vector<64x16xbf16>, vector<16x16xbf16>, vector<64x16xf32> -> vector<64x16xf32>
    %c0_87 = arith.constant 0 : index
    %c0_88 = arith.constant 0 : index
    %191 = vector.load %arg19[%c0_87, %c0_88] : memref<64x16xf32, #tpu.memory_space<vmem>>, vector<64x16xf32>
    %192 = arith.addf %191, %190 : vector<64x16xf32>
    %c0_89 = arith.constant 0 : index
    %c0_90 = arith.constant 0 : index
    %193 = vector.load %arg19[%c0_89, %c0_90] : memref<64x16xf32, #tpu.memory_space<vmem>>, vector<64x16xf32>
    tpu.vector_store %arg19[%c0_89, %c0_90], %192 {strides = array<i32>} : memref<64x16xf32, #tpu.memory_space<vmem>>, vector<64x16xf32>,
    %c62_i32 = arith.constant 62 : i32
    %194 = tpu.dynamic_rotate %140 by %c62_i32 dim 0 : vector<64x16xf32>, i32 -> vector<64x16xf32>
    %cst_91 = arith.constant 0.000000e+00 : f32
    %195 = vector.shape_cast %61 : vector<64x1xi1> to vector<64x1xi1>
    %196 = vector.broadcast %195 : vector<64x1xi1> to vector<64x16xi1>
    %197 = vector.broadcast %cst_91 : f32 to vector<64x16xf32>
    %198 = arith.select %196, %194, %197 : vector<64x16xi1>, vector<64x16xf32>
    %199 = arith.truncf %198 : vector<64x16xf32> to vector<64x16xbf16>
    %c5 = arith.constant 5 : index
    %c0_92 = arith.constant 0 : index
    %c0_93 = arith.constant 0 : index
    %200 = vector.load %arg4[%c5, %c0_92, %c0_93] : memref<7x16x16xbf16, #tpu.memory_space<vmem>>, vector<1x16x16xbf16>
    %201 = vector.shape_cast %200 : vector<1x16x16xbf16> to vector<16x16xbf16>
    %cst_94 = arith.constant dense<0.000000e+00> : vector<64x16xf32>
    %202 = tpu.matmul %199, %201, %cst_94 {dimension_numbers = #tpu.dot_dimension_numbers<[1], [0], [0], [1], [0, 0, 1, 1], [], []>} : vector<64x16xbf16>, vector<16x16xbf16>, vector<64x16xf32> -> vector<64x16xf32>
    %c0_95 = arith.constant 0 : index
    %c0_96 = arith.constant 0 : index
    %203 = vector.load %arg19[%c0_95, %c0_96] : memref<64x16xf32, #tpu.memory_space<vmem>>, vector<64x16xf32>
    %204 = arith.addf %203, %202 : vector<64x16xf32>
    %c0_97 = arith.constant 0 : index
    %c0_98 = arith.constant 0 : index
    %205 = vector.load %arg19[%c0_97, %c0_98] : memref<64x16xf32, #tpu.memory_space<vmem>>, vector<64x16xf32>
    tpu.vector_store %arg19[%c0_97, %c0_98], %204 {strides = array<i32>} : memref<64x16xf32, #tpu.memory_space<vmem>>, vector<64x16xf32>,
    %c61_i32 = arith.constant 61 : i32
    %206 = tpu.dynamic_rotate %140 by %c61_i32 dim 0 : vector<64x16xf32>, i32 -> vector<64x16xf32>
    %cst_99 = arith.constant 0.000000e+00 : f32
    %207 = vector.shape_cast %70 : vector<64x1xi1> to vector<64x1xi1>
    %208 = vector.broadcast %207 : vector<64x1xi1> to vector<64x16xi1>
    %209 = vector.broadcast %cst_99 : f32 to vector<64x16xf32>
    %210 = arith.select %208, %206, %209 : vector<64x16xi1>, vector<64x16xf32>
    %211 = arith.truncf %210 : vector<64x16xf32> to vector<64x16xbf16>
    %c6 = arith.constant 6 : index
    %c0_100 = arith.constant 0 : index
    %c0_101 = arith.constant 0 : index
    %212 = vector.load %arg4[%c6, %c0_100, %c0_101] : memref<7x16x16xbf16, #tpu.memory_space<vmem>>, vector<1x16x16xbf16>
    %213 = vector.shape_cast %212 : vector<1x16x16xbf16> to vector<16x16xbf16>
    %cst_102 = arith.constant dense<0.000000e+00> : vector<64x16xf32>
    %214 = tpu.matmul %211, %213, %cst_102 {dimension_numbers = #tpu.dot_dimension_numbers<[1], [0], [0], [1], [0, 0, 1, 1], [], []>} : vector<64x16xbf16>, vector<16x16xbf16>, vector<64x16xf32> -> vector<64x16xf32>
    %c0_103 = arith.constant 0 : index
    %c0_104 = arith.constant 0 : index
    %215 = vector.load %arg19[%c0_103, %c0_104] : memref<64x16xf32, #tpu.memory_space<vmem>>, vector<64x16xf32>
    %216 = arith.addf %215, %214 : vector<64x16xf32>
    %c0_105 = arith.constant 0 : index
    %c0_106 = arith.constant 0 : index
    %217 = vector.load %arg19[%c0_105, %c0_106] : memref<64x16xf32, #tpu.memory_space<vmem>>, vector<64x16xf32>
    tpu.vector_store %arg19[%c0_105, %c0_106], %216 {strides = array<i32>} : memref<64x16xf32, #tpu.memory_space<vmem>>, vector<64x16xf32>,
    %c0_107 = arith.constant 0 : index
    %c0_108 = arith.constant 0 : index
    %218 = vector.load %arg19[%c0_107, %c0_108] : memref<64x16xf32, #tpu.memory_space<vmem>>, vector<64x16xf32>
    %c0_109 = arith.constant 0 : index
    %c0_110 = arith.constant 0 : index
    %219 = vector.load %arg5[%c0_109, %c0_110] : memref<1x16xf32, #tpu.memory_space<vmem>>, vector<1x16xf32>
    %220 = vector.broadcast %219 : vector<1x16xf32> to vector<64x16xf32>
    %221 = arith.addf %218, %220 : vector<64x16xf32>
    %cst_111 = arith.constant 0.000000e+00 : f32
    %222 = vector.broadcast %cst_111 : f32 to vector<64x16xf32>
    %223 = arith.maximumf %221, %222 : vector<64x16xf32>
    %c24_i32_112 = arith.constant 24 : i32
    %224 = tpu.dynamic_rotate %223 by %c24_i32_112 dim 0 : vector<64x16xf32>, i32 -> vector<64x16xf32>
    %cst_113 = arith.constant 0.000000e+00 : f32
    %225 = vector.shape_cast %79 : vector<64x1xi1> to vector<64x1xi1>
    %226 = vector.broadcast %225 : vector<64x1xi1> to vector<64x16xi1>
    %227 = vector.broadcast %cst_113 : f32 to vector<64x16xf32>
    %228 = arith.select %226, %224, %227 : vector<64x16xi1>, vector<64x16xf32>
    %229 = arith.truncf %228 : vector<64x16xf32> to vector<64x16xbf16>
    %c0_114 = arith.constant 0 : index
    %c0_115 = arith.constant 0 : index
    %c0_116 = arith.constant 0 : index
    %230 = vector.load %arg6[%c0_114, %c0_115, %c0_116] : memref<7x16x32xbf16, #tpu.memory_space<vmem>>, vector<1x16x32xbf16>
    %231 = vector.shape_cast %230 : vector<1x16x32xbf16> to vector<16x32xbf16>
    %cst_117 = arith.constant dense<0.000000e+00> : vector<64x32xf32>
    %232 = tpu.matmul %229, %231, %cst_117 {dimension_numbers = #tpu.dot_dimension_numbers<[1], [0], [0], [1], [0, 0, 1, 1], [], []>} : vector<64x16xbf16>, vector<16x32xbf16>, vector<64x32xf32> -> vector<64x32xf32>
    %c0_118 = arith.constant 0 : index
    %c0_119 = arith.constant 0 : index
    %233 = vector.load %arg20[%c0_118, %c0_119] : memref<64x32xf32, #tpu.memory_space<vmem>>, vector<64x32xf32>
    tpu.vector_store %arg20[%c0_118, %c0_119], %232 {strides = array<i32>} : memref<64x32xf32, #tpu.memory_space<vmem>>, vector<64x32xf32>,
    %c16_i32_120 = arith.constant 16 : i32
    %234 = tpu.dynamic_rotate %223 by %c16_i32_120 dim 0 : vector<64x16xf32>, i32 -> vector<64x16xf32>
    %cst_121 = arith.constant 0.000000e+00 : f32
    %235 = vector.shape_cast %88 : vector<64x1xi1> to vector<64x1xi1>
    %236 = vector.broadcast %235 : vector<64x1xi1> to vector<64x16xi1>
    %237 = vector.broadcast %cst_121 : f32 to vector<64x16xf32>
    %238 = arith.select %236, %234, %237 : vector<64x16xi1>, vector<64x16xf32>
    %239 = arith.truncf %238 : vector<64x16xf32> to vector<64x16xbf16>
    %c1_122 = arith.constant 1 : index
    %c0_123 = arith.constant 0 : index
    %c0_124 = arith.constant 0 : index
    %240 = vector.load %arg6[%c1_122, %c0_123, %c0_124] : memref<7x16x32xbf16, #tpu.memory_space<vmem>>, vector<1x16x32xbf16>
    %241 = vector.shape_cast %240 : vector<1x16x32xbf16> to vector<16x32xbf16>
    %cst_125 = arith.constant dense<0.000000e+00> : vector<64x32xf32>
    %242 = tpu.matmul %239, %241, %cst_125 {dimension_numbers = #tpu.dot_dimension_numbers<[1], [0], [0], [1], [0, 0, 1, 1], [], []>} : vector<64x16xbf16>, vector<16x32xbf16>, vector<64x32xf32> -> vector<64x32xf32>
    %c0_126 = arith.constant 0 : index
    %c0_127 = arith.constant 0 : index
    %243 = vector.load %arg20[%c0_126, %c0_127] : memref<64x32xf32, #tpu.memory_space<vmem>>, vector<64x32xf32>
    %244 = arith.addf %243, %242 : vector<64x32xf32>
    %c0_128 = arith.constant 0 : index
    %c0_129 = arith.constant 0 : index
    %245 = vector.load %arg20[%c0_128, %c0_129] : memref<64x32xf32, #tpu.memory_space<vmem>>, vector<64x32xf32>
    tpu.vector_store %arg20[%c0_128, %c0_129], %244 {strides = array<i32>} : memref<64x32xf32, #tpu.memory_space<vmem>>, vector<64x32xf32>,
    %c8_i32_130 = arith.constant 8 : i32
    %246 = tpu.dynamic_rotate %223 by %c8_i32_130 dim 0 : vector<64x16xf32>, i32 -> vector<64x16xf32>
    %cst_131 = arith.constant 0.000000e+00 : f32
    %247 = vector.shape_cast %97 : vector<64x1xi1> to vector<64x1xi1>
    %248 = vector.broadcast %247 : vector<64x1xi1> to vector<64x16xi1>
    %249 = vector.broadcast %cst_131 : f32 to vector<64x16xf32>
    %250 = arith.select %248, %246, %249 : vector<64x16xi1>, vector<64x16xf32>
    %251 = arith.truncf %250 : vector<64x16xf32> to vector<64x16xbf16>
    %c2_132 = arith.constant 2 : index
    %c0_133 = arith.constant 0 : index
    %c0_134 = arith.constant 0 : index
    %252 = vector.load %arg6[%c2_132, %c0_133, %c0_134] : memref<7x16x32xbf16, #tpu.memory_space<vmem>>, vector<1x16x32xbf16>
    %253 = vector.shape_cast %252 : vector<1x16x32xbf16> to vector<16x32xbf16>
    %cst_135 = arith.constant dense<0.000000e+00> : vector<64x32xf32>
    %254 = tpu.matmul %251, %253, %cst_135 {dimension_numbers = #tpu.dot_dimension_numbers<[1], [0], [0], [1], [0, 0, 1, 1], [], []>} : vector<64x16xbf16>, vector<16x32xbf16>, vector<64x32xf32> -> vector<64x32xf32>
    %c0_136 = arith.constant 0 : index
    %c0_137 = arith.constant 0 : index
    %255 = vector.load %arg20[%c0_136, %c0_137] : memref<64x32xf32, #tpu.memory_space<vmem>>, vector<64x32xf32>
    %256 = arith.addf %255, %254 : vector<64x32xf32>
    %c0_138 = arith.constant 0 : index
    %c0_139 = arith.constant 0 : index
    %257 = vector.load %arg20[%c0_138, %c0_139] : memref<64x32xf32, #tpu.memory_space<vmem>>, vector<64x32xf32>
    tpu.vector_store %arg20[%c0_138, %c0_139], %256 {strides = array<i32>} : memref<64x32xf32, #tpu.memory_space<vmem>>, vector<64x32xf32>,
    %258 = arith.truncf %223 : vector<64x16xf32> to vector<64x16xbf16>
    %c3_140 = arith.constant 3 : index
    %c0_141 = arith.constant 0 : index
    %c0_142 = arith.constant 0 : index
    %259 = vector.load %arg6[%c3_140, %c0_141, %c0_142] : memref<7x16x32xbf16, #tpu.memory_space<vmem>>, vector<1x16x32xbf16>
    %260 = vector.shape_cast %259 : vector<1x16x32xbf16> to vector<16x32xbf16>
    %cst_143 = arith.constant dense<0.000000e+00> : vector<64x32xf32>
    %261 = tpu.matmul %258, %260, %cst_143 {dimension_numbers = #tpu.dot_dimension_numbers<[1], [0], [0], [1], [0, 0, 1, 1], [], []>} : vector<64x16xbf16>, vector<16x32xbf16>, vector<64x32xf32> -> vector<64x32xf32>
    %c0_144 = arith.constant 0 : index
    %c0_145 = arith.constant 0 : index
    %262 = vector.load %arg20[%c0_144, %c0_145] : memref<64x32xf32, #tpu.memory_space<vmem>>, vector<64x32xf32>
    %263 = arith.addf %262, %261 : vector<64x32xf32>
    %c0_146 = arith.constant 0 : index
    %c0_147 = arith.constant 0 : index
    %264 = vector.load %arg20[%c0_146, %c0_147] : memref<64x32xf32, #tpu.memory_space<vmem>>, vector<64x32xf32>
    tpu.vector_store %arg20[%c0_146, %c0_147], %263 {strides = array<i32>} : memref<64x32xf32, #tpu.memory_space<vmem>>, vector<64x32xf32>,
    %c56_i32 = arith.constant 56 : i32
    %265 = tpu.dynamic_rotate %223 by %c56_i32 dim 0 : vector<64x16xf32>, i32 -> vector<64x16xf32>
    %cst_148 = arith.constant 0.000000e+00 : f32
    %266 = vector.shape_cast %106 : vector<64x1xi1> to vector<64x1xi1>
    %267 = vector.broadcast %266 : vector<64x1xi1> to vector<64x16xi1>
    %268 = vector.broadcast %cst_148 : f32 to vector<64x16xf32>
    %269 = arith.select %267, %265, %268 : vector<64x16xi1>, vector<64x16xf32>
    %270 = arith.truncf %269 : vector<64x16xf32> to vector<64x16xbf16>
    %c4_149 = arith.constant 4 : index
    %c0_150 = arith.constant 0 : index
    %c0_151 = arith.constant 0 : index
    %271 = vector.load %arg6[%c4_149, %c0_150, %c0_151] : memref<7x16x32xbf16, #tpu.memory_space<vmem>>, vector<1x16x32xbf16>
    %272 = vector.shape_cast %271 : vector<1x16x32xbf16> to vector<16x32xbf16>
    %cst_152 = arith.constant dense<0.000000e+00> : vector<64x32xf32>
    %273 = tpu.matmul %270, %272, %cst_152 {dimension_numbers = #tpu.dot_dimension_numbers<[1], [0], [0], [1], [0, 0, 1, 1], [], []>} : vector<64x16xbf16>, vector<16x32xbf16>, vector<64x32xf32> -> vector<64x32xf32>
    %c0_153 = arith.constant 0 : index
    %c0_154 = arith.constant 0 : index
    %274 = vector.load %arg20[%c0_153, %c0_154] : memref<64x32xf32, #tpu.memory_space<vmem>>, vector<64x32xf32>
    %275 = arith.addf %274, %273 : vector<64x32xf32>
    %c0_155 = arith.constant 0 : index
    %c0_156 = arith.constant 0 : index
    %276 = vector.load %arg20[%c0_155, %c0_156] : memref<64x32xf32, #tpu.memory_space<vmem>>, vector<64x32xf32>
    tpu.vector_store %arg20[%c0_155, %c0_156], %275 {strides = array<i32>} : memref<64x32xf32, #tpu.memory_space<vmem>>, vector<64x32xf32>,
    %c48_i32 = arith.constant 48 : i32
    %277 = tpu.dynamic_rotate %223 by %c48_i32 dim 0 : vector<64x16xf32>, i32 -> vector<64x16xf32>
    %cst_157 = arith.constant 0.000000e+00 : f32
    %278 = vector.shape_cast %115 : vector<64x1xi1> to vector<64x1xi1>
    %279 = vector.broadcast %278 : vector<64x1xi1> to vector<64x16xi1>
    %280 = vector.broadcast %cst_157 : f32 to vector<64x16xf32>
    %281 = arith.select %279, %277, %280 : vector<64x16xi1>, vector<64x16xf32>
    %282 = arith.truncf %281 : vector<64x16xf32> to vector<64x16xbf16>
    %c5_158 = arith.constant 5 : index
    %c0_159 = arith.constant 0 : index
    %c0_160 = arith.constant 0 : index
    %283 = vector.load %arg6[%c5_158, %c0_159, %c0_160] : memref<7x16x32xbf16, #tpu.memory_space<vmem>>, vector<1x16x32xbf16>
    %284 = vector.shape_cast %283 : vector<1x16x32xbf16> to vector<16x32xbf16>
    %cst_161 = arith.constant dense<0.000000e+00> : vector<64x32xf32>
    %285 = tpu.matmul %282, %284, %cst_161 {dimension_numbers = #tpu.dot_dimension_numbers<[1], [0], [0], [1], [0, 0, 1, 1], [], []>} : vector<64x16xbf16>, vector<16x32xbf16>, vector<64x32xf32> -> vector<64x32xf32>
    %c0_162 = arith.constant 0 : index
    %c0_163 = arith.constant 0 : index
    %286 = vector.load %arg20[%c0_162, %c0_163] : memref<64x32xf32, #tpu.memory_space<vmem>>, vector<64x32xf32>
    %287 = arith.addf %286, %285 : vector<64x32xf32>
    %c0_164 = arith.constant 0 : index
    %c0_165 = arith.constant 0 : index
    %288 = vector.load %arg20[%c0_164, %c0_165] : memref<64x32xf32, #tpu.memory_space<vmem>>, vector<64x32xf32>
    tpu.vector_store %arg20[%c0_164, %c0_165], %287 {strides = array<i32>} : memref<64x32xf32, #tpu.memory_space<vmem>>, vector<64x32xf32>,
    %c40_i32 = arith.constant 40 : i32
    %289 = tpu.dynamic_rotate %223 by %c40_i32 dim 0 : vector<64x16xf32>, i32 -> vector<64x16xf32>
    %cst_166 = arith.constant 0.000000e+00 : f32
    %290 = vector.shape_cast %124 : vector<64x1xi1> to vector<64x1xi1>
    %291 = vector.broadcast %290 : vector<64x1xi1> to vector<64x16xi1>
    %292 = vector.broadcast %cst_166 : f32 to vector<64x16xf32>
    %293 = arith.select %291, %289, %292 : vector<64x16xi1>, vector<64x16xf32>
    %294 = arith.truncf %293 : vector<64x16xf32> to vector<64x16xbf16>
    %c6_167 = arith.constant 6 : index
    %c0_168 = arith.constant 0 : index
    %c0_169 = arith.constant 0 : index
    %295 = vector.load %arg6[%c6_167, %c0_168, %c0_169] : memref<7x16x32xbf16, #tpu.memory_space<vmem>>, vector<1x16x32xbf16>
    %296 = vector.shape_cast %295 : vector<1x16x32xbf16> to vector<16x32xbf16>
    %cst_170 = arith.constant dense<0.000000e+00> : vector<64x32xf32>
    %297 = tpu.matmul %294, %296, %cst_170 {dimension_numbers = #tpu.dot_dimension_numbers<[1], [0], [0], [1], [0, 0, 1, 1], [], []>} : vector<64x16xbf16>, vector<16x32xbf16>, vector<64x32xf32> -> vector<64x32xf32>
    %c0_171 = arith.constant 0 : index
    %c0_172 = arith.constant 0 : index
    %298 = vector.load %arg20[%c0_171, %c0_172] : memref<64x32xf32, #tpu.memory_space<vmem>>, vector<64x32xf32>
    %299 = arith.addf %298, %297 : vector<64x32xf32>
    %c0_173 = arith.constant 0 : index
    %c0_174 = arith.constant 0 : index
    %300 = vector.load %arg20[%c0_173, %c0_174] : memref<64x32xf32, #tpu.memory_space<vmem>>, vector<64x32xf32>
    tpu.vector_store %arg20[%c0_173, %c0_174], %299 {strides = array<i32>} : memref<64x32xf32, #tpu.memory_space<vmem>>, vector<64x32xf32>,
    %c0_175 = arith.constant 0 : index
    %c0_176 = arith.constant 0 : index
    %301 = vector.load %arg20[%c0_175, %c0_176] : memref<64x32xf32, #tpu.memory_space<vmem>>, vector<64x32xf32>
    %c0_177 = arith.constant 0 : index
    %c0_178 = arith.constant 0 : index
    %302 = vector.load %arg7[%c0_177, %c0_178] : memref<1x32xf32, #tpu.memory_space<vmem>>, vector<1x32xf32>
    %303 = vector.broadcast %302 : vector<1x32xf32> to vector<64x32xf32>
    %304 = arith.addf %301, %303 : vector<64x32xf32>
    %cst_179 = arith.constant 0.000000e+00 : f32
    %305 = vector.broadcast %cst_179 : f32 to vector<64x32xf32>
    %306 = arith.maximumf %304, %305 : vector<64x32xf32>
    %307 = arith.truncf %306 : vector<64x32xf32> to vector<64x32xbf16>
    %c0_180 = arith.constant 0 : index
    %c0_181 = arith.constant 0 : index
    %c32 = arith.constant 32 : index
    %308 = vector.load %arg18[%c0_180, %c0_181, %c32] : memref<1x64x128xbf16, #tpu.memory_space<vmem>>, vector<1x64x32xbf16>
    %309 = vector.shape_cast %308 : vector<1x64x32xbf16> to vector<64x32xbf16>
    %310 = vector.shape_cast %307 : vector<64x32xbf16> to vector<1x64x32xbf16>
    tpu.vector_store %arg18[%c0_180, %c0_181, %c32], %310 {strides = array<i32>} : memref<1x64x128xbf16, #tpu.memory_space<vmem>>, vector<1x64x32xbf16>,
    %311 = vector.extract_strided_slice %134 {offsets = [0, 48], sizes = [64, 16], strides = [1, 1]} : vector<64x64xf32> to vector<64x16xf32>
    %c24_i32_182 = arith.constant 24 : i32
    %312 = tpu.dynamic_rotate %311 by %c24_i32_182 dim 0 : vector<64x16xf32>, i32 -> vector<64x16xf32>
    %cst_183 = arith.constant 0.000000e+00 : f32
    %313 = vector.shape_cast %79 : vector<64x1xi1> to vector<64x1xi1>
    %314 = vector.broadcast %313 : vector<64x1xi1> to vector<64x16xi1>
    %315 = vector.broadcast %cst_183 : f32 to vector<64x16xf32>
    %316 = arith.select %314, %312, %315 : vector<64x16xi1>, vector<64x16xf32>
    %317 = arith.truncf %316 : vector<64x16xf32> to vector<64x16xbf16>
    %c0_184 = arith.constant 0 : index
    %c0_185 = arith.constant 0 : index
    %c0_186 = arith.constant 0 : index
    %318 = vector.load %arg8[%c0_184, %c0_185, %c0_186] : memref<7x16x16xbf16, #tpu.memory_space<vmem>>, vector<1x16x16xbf16>
    %319 = vector.shape_cast %318 : vector<1x16x16xbf16> to vector<16x16xbf16>
    %cst_187 = arith.constant dense<0.000000e+00> : vector<64x16xf32>
    %320 = tpu.matmul %317, %319, %cst_187 {dimension_numbers = #tpu.dot_dimension_numbers<[1], [0], [0], [1], [0, 0, 1, 1], [], []>} : vector<64x16xbf16>, vector<16x16xbf16>, vector<64x16xf32> -> vector<64x16xf32>
    %c0_188 = arith.constant 0 : index
    %c0_189 = arith.constant 0 : index
    %321 = vector.load %arg19[%c0_188, %c0_189] : memref<64x16xf32, #tpu.memory_space<vmem>>, vector<64x16xf32>
    tpu.vector_store %arg19[%c0_188, %c0_189], %320 {strides = array<i32>} : memref<64x16xf32, #tpu.memory_space<vmem>>, vector<64x16xf32>,
    %c16_i32_190 = arith.constant 16 : i32
    %322 = tpu.dynamic_rotate %311 by %c16_i32_190 dim 0 : vector<64x16xf32>, i32 -> vector<64x16xf32>
    %cst_191 = arith.constant 0.000000e+00 : f32
    %323 = vector.shape_cast %88 : vector<64x1xi1> to vector<64x1xi1>
    %324 = vector.broadcast %323 : vector<64x1xi1> to vector<64x16xi1>
    %325 = vector.broadcast %cst_191 : f32 to vector<64x16xf32>
    %326 = arith.select %324, %322, %325 : vector<64x16xi1>, vector<64x16xf32>
    %327 = arith.truncf %326 : vector<64x16xf32> to vector<64x16xbf16>
    %c1_192 = arith.constant 1 : index
    %c0_193 = arith.constant 0 : index
    %c0_194 = arith.constant 0 : index
    %328 = vector.load %arg8[%c1_192, %c0_193, %c0_194] : memref<7x16x16xbf16, #tpu.memory_space<vmem>>, vector<1x16x16xbf16>
    %329 = vector.shape_cast %328 : vector<1x16x16xbf16> to vector<16x16xbf16>
    %cst_195 = arith.constant dense<0.000000e+00> : vector<64x16xf32>
    %330 = tpu.matmul %327, %329, %cst_195 {dimension_numbers = #tpu.dot_dimension_numbers<[1], [0], [0], [1], [0, 0, 1, 1], [], []>} : vector<64x16xbf16>, vector<16x16xbf16>, vector<64x16xf32> -> vector<64x16xf32>
    %c0_196 = arith.constant 0 : index
    %c0_197 = arith.constant 0 : index
    %331 = vector.load %arg19[%c0_196, %c0_197] : memref<64x16xf32, #tpu.memory_space<vmem>>, vector<64x16xf32>
    %332 = arith.addf %331, %330 : vector<64x16xf32>
    %c0_198 = arith.constant 0 : index
    %c0_199 = arith.constant 0 : index
    %333 = vector.load %arg19[%c0_198, %c0_199] : memref<64x16xf32, #tpu.memory_space<vmem>>, vector<64x16xf32>
    tpu.vector_store %arg19[%c0_198, %c0_199], %332 {strides = array<i32>} : memref<64x16xf32, #tpu.memory_space<vmem>>, vector<64x16xf32>,
    %c8_i32_200 = arith.constant 8 : i32
    %334 = tpu.dynamic_rotate %311 by %c8_i32_200 dim 0 : vector<64x16xf32>, i32 -> vector<64x16xf32>
    %cst_201 = arith.constant 0.000000e+00 : f32
    %335 = vector.shape_cast %97 : vector<64x1xi1> to vector<64x1xi1>
    %336 = vector.broadcast %335 : vector<64x1xi1> to vector<64x16xi1>
    %337 = vector.broadcast %cst_201 : f32 to vector<64x16xf32>
    %338 = arith.select %336, %334, %337 : vector<64x16xi1>, vector<64x16xf32>
    %339 = arith.truncf %338 : vector<64x16xf32> to vector<64x16xbf16>
    %c2_202 = arith.constant 2 : index
    %c0_203 = arith.constant 0 : index
    %c0_204 = arith.constant 0 : index
    %340 = vector.load %arg8[%c2_202, %c0_203, %c0_204] : memref<7x16x16xbf16, #tpu.memory_space<vmem>>, vector<1x16x16xbf16>
    %341 = vector.shape_cast %340 : vector<1x16x16xbf16> to vector<16x16xbf16>
    %cst_205 = arith.constant dense<0.000000e+00> : vector<64x16xf32>
    %342 = tpu.matmul %339, %341, %cst_205 {dimension_numbers = #tpu.dot_dimension_numbers<[1], [0], [0], [1], [0, 0, 1, 1], [], []>} : vector<64x16xbf16>, vector<16x16xbf16>, vector<64x16xf32> -> vector<64x16xf32>
    %c0_206 = arith.constant 0 : index
    %c0_207 = arith.constant 0 : index
    %343 = vector.load %arg19[%c0_206, %c0_207] : memref<64x16xf32, #tpu.memory_space<vmem>>, vector<64x16xf32>
    %344 = arith.addf %343, %342 : vector<64x16xf32>
    %c0_208 = arith.constant 0 : index
    %c0_209 = arith.constant 0 : index
    %345 = vector.load %arg19[%c0_208, %c0_209] : memref<64x16xf32, #tpu.memory_space<vmem>>, vector<64x16xf32>
    tpu.vector_store %arg19[%c0_208, %c0_209], %344 {strides = array<i32>} : memref<64x16xf32, #tpu.memory_space<vmem>>, vector<64x16xf32>,
    %346 = arith.truncf %311 : vector<64x16xf32> to vector<64x16xbf16>
    %c3_210 = arith.constant 3 : index
    %c0_211 = arith.constant 0 : index
    %c0_212 = arith.constant 0 : index
    %347 = vector.load %arg8[%c3_210, %c0_211, %c0_212] : memref<7x16x16xbf16, #tpu.memory_space<vmem>>, vector<1x16x16xbf16>
    %348 = vector.shape_cast %347 : vector<1x16x16xbf16> to vector<16x16xbf16>
    %cst_213 = arith.constant dense<0.000000e+00> : vector<64x16xf32>
    %349 = tpu.matmul %346, %348, %cst_213 {dimension_numbers = #tpu.dot_dimension_numbers<[1], [0], [0], [1], [0, 0, 1, 1], [], []>} : vector<64x16xbf16>, vector<16x16xbf16>, vector<64x16xf32> -> vector<64x16xf32>
    %c0_214 = arith.constant 0 : index
    %c0_215 = arith.constant 0 : index
    %350 = vector.load %arg19[%c0_214, %c0_215] : memref<64x16xf32, #tpu.memory_space<vmem>>, vector<64x16xf32>
    %351 = arith.addf %350, %349 : vector<64x16xf32>
    %c0_216 = arith.constant 0 : index
    %c0_217 = arith.constant 0 : index
    %352 = vector.load %arg19[%c0_216, %c0_217] : memref<64x16xf32, #tpu.memory_space<vmem>>, vector<64x16xf32>
    tpu.vector_store %arg19[%c0_216, %c0_217], %351 {strides = array<i32>} : memref<64x16xf32, #tpu.memory_space<vmem>>, vector<64x16xf32>,
    %c56_i32_218 = arith.constant 56 : i32
    %353 = tpu.dynamic_rotate %311 by %c56_i32_218 dim 0 : vector<64x16xf32>, i32 -> vector<64x16xf32>
    %cst_219 = arith.constant 0.000000e+00 : f32
    %354 = vector.shape_cast %106 : vector<64x1xi1> to vector<64x1xi1>
    %355 = vector.broadcast %354 : vector<64x1xi1> to vector<64x16xi1>
    %356 = vector.broadcast %cst_219 : f32 to vector<64x16xf32>
    %357 = arith.select %355, %353, %356 : vector<64x16xi1>, vector<64x16xf32>
    %358 = arith.truncf %357 : vector<64x16xf32> to vector<64x16xbf16>
    %c4_220 = arith.constant 4 : index
    %c0_221 = arith.constant 0 : index
    %c0_222 = arith.constant 0 : index
    %359 = vector.load %arg8[%c4_220, %c0_221, %c0_222] : memref<7x16x16xbf16, #tpu.memory_space<vmem>>, vector<1x16x16xbf16>
    %360 = vector.shape_cast %359 : vector<1x16x16xbf16> to vector<16x16xbf16>
    %cst_223 = arith.constant dense<0.000000e+00> : vector<64x16xf32>
    %361 = tpu.matmul %358, %360, %cst_223 {dimension_numbers = #tpu.dot_dimension_numbers<[1], [0], [0], [1], [0, 0, 1, 1], [], []>} : vector<64x16xbf16>, vector<16x16xbf16>, vector<64x16xf32> -> vector<64x16xf32>
    %c0_224 = arith.constant 0 : index
    %c0_225 = arith.constant 0 : index
    %362 = vector.load %arg19[%c0_224, %c0_225] : memref<64x16xf32, #tpu.memory_space<vmem>>, vector<64x16xf32>
    %363 = arith.addf %362, %361 : vector<64x16xf32>
    %c0_226 = arith.constant 0 : index
    %c0_227 = arith.constant 0 : index
    %364 = vector.load %arg19[%c0_226, %c0_227] : memref<64x16xf32, #tpu.memory_space<vmem>>, vector<64x16xf32>
    tpu.vector_store %arg19[%c0_226, %c0_227], %363 {strides = array<i32>} : memref<64x16xf32, #tpu.memory_space<vmem>>, vector<64x16xf32>,
    %c48_i32_228 = arith.constant 48 : i32
    %365 = tpu.dynamic_rotate %311 by %c48_i32_228 dim 0 : vector<64x16xf32>, i32 -> vector<64x16xf32>
    %cst_229 = arith.constant 0.000000e+00 : f32
    %366 = vector.shape_cast %115 : vector<64x1xi1> to vector<64x1xi1>
    %367 = vector.broadcast %366 : vector<64x1xi1> to vector<64x16xi1>
    %368 = vector.broadcast %cst_229 : f32 to vector<64x16xf32>
    %369 = arith.select %367, %365, %368 : vector<64x16xi1>, vector<64x16xf32>
    %370 = arith.truncf %369 : vector<64x16xf32> to vector<64x16xbf16>
    %c5_230 = arith.constant 5 : index
    %c0_231 = arith.constant 0 : index
    %c0_232 = arith.constant 0 : index
    %371 = vector.load %arg8[%c5_230, %c0_231, %c0_232] : memref<7x16x16xbf16, #tpu.memory_space<vmem>>, vector<1x16x16xbf16>
    %372 = vector.shape_cast %371 : vector<1x16x16xbf16> to vector<16x16xbf16>
    %cst_233 = arith.constant dense<0.000000e+00> : vector<64x16xf32>
    %373 = tpu.matmul %370, %372, %cst_233 {dimension_numbers = #tpu.dot_dimension_numbers<[1], [0], [0], [1], [0, 0, 1, 1], [], []>} : vector<64x16xbf16>, vector<16x16xbf16>, vector<64x16xf32> -> vector<64x16xf32>
    %c0_234 = arith.constant 0 : index
    %c0_235 = arith.constant 0 : index
    %374 = vector.load %arg19[%c0_234, %c0_235] : memref<64x16xf32, #tpu.memory_space<vmem>>, vector<64x16xf32>
    %375 = arith.addf %374, %373 : vector<64x16xf32>
    %c0_236 = arith.constant 0 : index
    %c0_237 = arith.constant 0 : index
    %376 = vector.load %arg19[%c0_236, %c0_237] : memref<64x16xf32, #tpu.memory_space<vmem>>, vector<64x16xf32>
    tpu.vector_store %arg19[%c0_236, %c0_237], %375 {strides = array<i32>} : memref<64x16xf32, #tpu.memory_space<vmem>>, vector<64x16xf32>,
    %c40_i32_238 = arith.constant 40 : i32
    %377 = tpu.dynamic_rotate %311 by %c40_i32_238 dim 0 : vector<64x16xf32>, i32 -> vector<64x16xf32>
    %cst_239 = arith.constant 0.000000e+00 : f32
    %378 = vector.shape_cast %124 : vector<64x1xi1> to vector<64x1xi1>
    %379 = vector.broadcast %378 : vector<64x1xi1> to vector<64x16xi1>
    %380 = vector.broadcast %cst_239 : f32 to vector<64x16xf32>
    %381 = arith.select %379, %377, %380 : vector<64x16xi1>, vector<64x16xf32>
    %382 = arith.truncf %381 : vector<64x16xf32> to vector<64x16xbf16>
    %c6_240 = arith.constant 6 : index
    %c0_241 = arith.constant 0 : index
    %c0_242 = arith.constant 0 : index
    %383 = vector.load %arg8[%c6_240, %c0_241, %c0_242] : memref<7x16x16xbf16, #tpu.memory_space<vmem>>, vector<1x16x16xbf16>
    %384 = vector.shape_cast %383 : vector<1x16x16xbf16> to vector<16x16xbf16>
    %cst_243 = arith.constant dense<0.000000e+00> : vector<64x16xf32>
    %385 = tpu.matmul %382, %384, %cst_243 {dimension_numbers = #tpu.dot_dimension_numbers<[1], [0], [0], [1], [0, 0, 1, 1], [], []>} : vector<64x16xbf16>, vector<16x16xbf16>, vector<64x16xf32> -> vector<64x16xf32>
    %c0_244 = arith.constant 0 : index
    %c0_245 = arith.constant 0 : index
    %386 = vector.load %arg19[%c0_244, %c0_245] : memref<64x16xf32, #tpu.memory_space<vmem>>, vector<64x16xf32>
    %387 = arith.addf %386, %385 : vector<64x16xf32>
    %c0_246 = arith.constant 0 : index
    %c0_247 = arith.constant 0 : index
    %388 = vector.load %arg19[%c0_246, %c0_247] : memref<64x16xf32, #tpu.memory_space<vmem>>, vector<64x16xf32>
    tpu.vector_store %arg19[%c0_246, %c0_247], %387 {strides = array<i32>} : memref<64x16xf32, #tpu.memory_space<vmem>>, vector<64x16xf32>,
    %c0_248 = arith.constant 0 : index
    %c0_249 = arith.constant 0 : index
    %389 = vector.load %arg19[%c0_248, %c0_249] : memref<64x16xf32, #tpu.memory_space<vmem>>, vector<64x16xf32>
    %c0_250 = arith.constant 0 : index
    %c0_251 = arith.constant 0 : index
    %390 = vector.load %arg9[%c0_250, %c0_251] : memref<1x16xf32, #tpu.memory_space<vmem>>, vector<1x16xf32>
    %391 = vector.broadcast %390 : vector<1x16xf32> to vector<64x16xf32>
    %392 = arith.addf %389, %391 : vector<64x16xf32>
    %cst_252 = arith.constant 0.000000e+00 : f32
    %393 = vector.broadcast %cst_252 : f32 to vector<64x16xf32>
    %394 = arith.maximumf %392, %393 : vector<64x16xf32>
    %c3_i32_253 = arith.constant 3 : i32
    %395 = tpu.dynamic_rotate %394 by %c3_i32_253 dim 0 : vector<64x16xf32>, i32 -> vector<64x16xf32>
    %cst_254 = arith.constant 0.000000e+00 : f32
    %396 = vector.shape_cast %25 : vector<64x1xi1> to vector<64x1xi1>
    %397 = vector.broadcast %396 : vector<64x1xi1> to vector<64x16xi1>
    %398 = vector.broadcast %cst_254 : f32 to vector<64x16xf32>
    %399 = arith.select %397, %395, %398 : vector<64x16xi1>, vector<64x16xf32>
    %400 = arith.truncf %399 : vector<64x16xf32> to vector<64x16xbf16>
    %c0_255 = arith.constant 0 : index
    %c0_256 = arith.constant 0 : index
    %c0_257 = arith.constant 0 : index
    %401 = vector.load %arg10[%c0_255, %c0_256, %c0_257] : memref<7x16x16xbf16, #tpu.memory_space<vmem>>, vector<1x16x16xbf16>
    %402 = vector.shape_cast %401 : vector<1x16x16xbf16> to vector<16x16xbf16>
    %cst_258 = arith.constant dense<0.000000e+00> : vector<64x16xf32>
    %403 = tpu.matmul %400, %402, %cst_258 {dimension_numbers = #tpu.dot_dimension_numbers<[1], [0], [0], [1], [0, 0, 1, 1], [], []>} : vector<64x16xbf16>, vector<16x16xbf16>, vector<64x16xf32> -> vector<64x16xf32>
    %c0_259 = arith.constant 0 : index
    %c0_260 = arith.constant 0 : index
    %404 = vector.load %arg19[%c0_259, %c0_260] : memref<64x16xf32, #tpu.memory_space<vmem>>, vector<64x16xf32>
    tpu.vector_store %arg19[%c0_259, %c0_260], %403 {strides = array<i32>} : memref<64x16xf32, #tpu.memory_space<vmem>>, vector<64x16xf32>,
    %c2_i32_261 = arith.constant 2 : i32
    %405 = tpu.dynamic_rotate %394 by %c2_i32_261 dim 0 : vector<64x16xf32>, i32 -> vector<64x16xf32>
    %cst_262 = arith.constant 0.000000e+00 : f32
    %406 = vector.shape_cast %34 : vector<64x1xi1> to vector<64x1xi1>
    %407 = vector.broadcast %406 : vector<64x1xi1> to vector<64x16xi1>
    %408 = vector.broadcast %cst_262 : f32 to vector<64x16xf32>
    %409 = arith.select %407, %405, %408 : vector<64x16xi1>, vector<64x16xf32>
    %410 = arith.truncf %409 : vector<64x16xf32> to vector<64x16xbf16>
    %c1_263 = arith.constant 1 : index
    %c0_264 = arith.constant 0 : index
    %c0_265 = arith.constant 0 : index
    %411 = vector.load %arg10[%c1_263, %c0_264, %c0_265] : memref<7x16x16xbf16, #tpu.memory_space<vmem>>, vector<1x16x16xbf16>
    %412 = vector.shape_cast %411 : vector<1x16x16xbf16> to vector<16x16xbf16>
    %cst_266 = arith.constant dense<0.000000e+00> : vector<64x16xf32>
    %413 = tpu.matmul %410, %412, %cst_266 {dimension_numbers = #tpu.dot_dimension_numbers<[1], [0], [0], [1], [0, 0, 1, 1], [], []>} : vector<64x16xbf16>, vector<16x16xbf16>, vector<64x16xf32> -> vector<64x16xf32>
    %c0_267 = arith.constant 0 : index
    %c0_268 = arith.constant 0 : index
    %414 = vector.load %arg19[%c0_267, %c0_268] : memref<64x16xf32, #tpu.memory_space<vmem>>, vector<64x16xf32>
    %415 = arith.addf %414, %413 : vector<64x16xf32>
    %c0_269 = arith.constant 0 : index
    %c0_270 = arith.constant 0 : index
    %416 = vector.load %arg19[%c0_269, %c0_270] : memref<64x16xf32, #tpu.memory_space<vmem>>, vector<64x16xf32>
    tpu.vector_store %arg19[%c0_269, %c0_270], %415 {strides = array<i32>} : memref<64x16xf32, #tpu.memory_space<vmem>>, vector<64x16xf32>,
    %c1_i32_271 = arith.constant 1 : i32
    %417 = tpu.dynamic_rotate %394 by %c1_i32_271 dim 0 : vector<64x16xf32>, i32 -> vector<64x16xf32>
    %cst_272 = arith.constant 0.000000e+00 : f32
    %418 = vector.shape_cast %43 : vector<64x1xi1> to vector<64x1xi1>
    %419 = vector.broadcast %418 : vector<64x1xi1> to vector<64x16xi1>
    %420 = vector.broadcast %cst_272 : f32 to vector<64x16xf32>
    %421 = arith.select %419, %417, %420 : vector<64x16xi1>, vector<64x16xf32>
    %422 = arith.truncf %421 : vector<64x16xf32> to vector<64x16xbf16>
    %c2_273 = arith.constant 2 : index
    %c0_274 = arith.constant 0 : index
    %c0_275 = arith.constant 0 : index
    %423 = vector.load %arg10[%c2_273, %c0_274, %c0_275] : memref<7x16x16xbf16, #tpu.memory_space<vmem>>, vector<1x16x16xbf16>
    %424 = vector.shape_cast %423 : vector<1x16x16xbf16> to vector<16x16xbf16>
    %cst_276 = arith.constant dense<0.000000e+00> : vector<64x16xf32>
    %425 = tpu.matmul %422, %424, %cst_276 {dimension_numbers = #tpu.dot_dimension_numbers<[1], [0], [0], [1], [0, 0, 1, 1], [], []>} : vector<64x16xbf16>, vector<16x16xbf16>, vector<64x16xf32> -> vector<64x16xf32>
    %c0_277 = arith.constant 0 : index
    %c0_278 = arith.constant 0 : index
    %426 = vector.load %arg19[%c0_277, %c0_278] : memref<64x16xf32, #tpu.memory_space<vmem>>, vector<64x16xf32>
    %427 = arith.addf %426, %425 : vector<64x16xf32>
    %c0_279 = arith.constant 0 : index
    %c0_280 = arith.constant 0 : index
    %428 = vector.load %arg19[%c0_279, %c0_280] : memref<64x16xf32, #tpu.memory_space<vmem>>, vector<64x16xf32>
    tpu.vector_store %arg19[%c0_279, %c0_280], %427 {strides = array<i32>} : memref<64x16xf32, #tpu.memory_space<vmem>>, vector<64x16xf32>,
    %429 = arith.truncf %394 : vector<64x16xf32> to vector<64x16xbf16>
    %c3_281 = arith.constant 3 : index
    %c0_282 = arith.constant 0 : index
    %c0_283 = arith.constant 0 : index
    %430 = vector.load %arg10[%c3_281, %c0_282, %c0_283] : memref<7x16x16xbf16, #tpu.memory_space<vmem>>, vector<1x16x16xbf16>
    %431 = vector.shape_cast %430 : vector<1x16x16xbf16> to vector<16x16xbf16>
    %cst_284 = arith.constant dense<0.000000e+00> : vector<64x16xf32>
    %432 = tpu.matmul %429, %431, %cst_284 {dimension_numbers = #tpu.dot_dimension_numbers<[1], [0], [0], [1], [0, 0, 1, 1], [], []>} : vector<64x16xbf16>, vector<16x16xbf16>, vector<64x16xf32> -> vector<64x16xf32>
    %c0_285 = arith.constant 0 : index
    %c0_286 = arith.constant 0 : index
    %433 = vector.load %arg19[%c0_285, %c0_286] : memref<64x16xf32, #tpu.memory_space<vmem>>, vector<64x16xf32>
    %434 = arith.addf %433, %432 : vector<64x16xf32>
    %c0_287 = arith.constant 0 : index
    %c0_288 = arith.constant 0 : index
    %435 = vector.load %arg19[%c0_287, %c0_288] : memref<64x16xf32, #tpu.memory_space<vmem>>, vector<64x16xf32>
    tpu.vector_store %arg19[%c0_287, %c0_288], %434 {strides = array<i32>} : memref<64x16xf32, #tpu.memory_space<vmem>>, vector<64x16xf32>,
    %c63_i32_289 = arith.constant 63 : i32
    %436 = tpu.dynamic_rotate %394 by %c63_i32_289 dim 0 : vector<64x16xf32>, i32 -> vector<64x16xf32>
    %cst_290 = arith.constant 0.000000e+00 : f32
    %437 = vector.shape_cast %52 : vector<64x1xi1> to vector<64x1xi1>
    %438 = vector.broadcast %437 : vector<64x1xi1> to vector<64x16xi1>
    %439 = vector.broadcast %cst_290 : f32 to vector<64x16xf32>
    %440 = arith.select %438, %436, %439 : vector<64x16xi1>, vector<64x16xf32>
    %441 = arith.truncf %440 : vector<64x16xf32> to vector<64x16xbf16>
    %c4_291 = arith.constant 4 : index
    %c0_292 = arith.constant 0 : index
    %c0_293 = arith.constant 0 : index
    %442 = vector.load %arg10[%c4_291, %c0_292, %c0_293] : memref<7x16x16xbf16, #tpu.memory_space<vmem>>, vector<1x16x16xbf16>
    %443 = vector.shape_cast %442 : vector<1x16x16xbf16> to vector<16x16xbf16>
    %cst_294 = arith.constant dense<0.000000e+00> : vector<64x16xf32>
    %444 = tpu.matmul %441, %443, %cst_294 {dimension_numbers = #tpu.dot_dimension_numbers<[1], [0], [0], [1], [0, 0, 1, 1], [], []>} : vector<64x16xbf16>, vector<16x16xbf16>, vector<64x16xf32> -> vector<64x16xf32>
    %c0_295 = arith.constant 0 : index
    %c0_296 = arith.constant 0 : index
    %445 = vector.load %arg19[%c0_295, %c0_296] : memref<64x16xf32, #tpu.memory_space<vmem>>, vector<64x16xf32>
    %446 = arith.addf %445, %444 : vector<64x16xf32>
    %c0_297 = arith.constant 0 : index
    %c0_298 = arith.constant 0 : index
    %447 = vector.load %arg19[%c0_297, %c0_298] : memref<64x16xf32, #tpu.memory_space<vmem>>, vector<64x16xf32>
    tpu.vector_store %arg19[%c0_297, %c0_298], %446 {strides = array<i32>} : memref<64x16xf32, #tpu.memory_space<vmem>>, vector<64x16xf32>,
    %c62_i32_299 = arith.constant 62 : i32
    %448 = tpu.dynamic_rotate %394 by %c62_i32_299 dim 0 : vector<64x16xf32>, i32 -> vector<64x16xf32>
    %cst_300 = arith.constant 0.000000e+00 : f32
    %449 = vector.shape_cast %61 : vector<64x1xi1> to vector<64x1xi1>
    %450 = vector.broadcast %449 : vector<64x1xi1> to vector<64x16xi1>
    %451 = vector.broadcast %cst_300 : f32 to vector<64x16xf32>
    %452 = arith.select %450, %448, %451 : vector<64x16xi1>, vector<64x16xf32>
    %453 = arith.truncf %452 : vector<64x16xf32> to vector<64x16xbf16>
    %c5_301 = arith.constant 5 : index
    %c0_302 = arith.constant 0 : index
    %c0_303 = arith.constant 0 : index
    %454 = vector.load %arg10[%c5_301, %c0_302, %c0_303] : memref<7x16x16xbf16, #tpu.memory_space<vmem>>, vector<1x16x16xbf16>
    %455 = vector.shape_cast %454 : vector<1x16x16xbf16> to vector<16x16xbf16>
    %cst_304 = arith.constant dense<0.000000e+00> : vector<64x16xf32>
    %456 = tpu.matmul %453, %455, %cst_304 {dimension_numbers = #tpu.dot_dimension_numbers<[1], [0], [0], [1], [0, 0, 1, 1], [], []>} : vector<64x16xbf16>, vector<16x16xbf16>, vector<64x16xf32> -> vector<64x16xf32>
    %c0_305 = arith.constant 0 : index
    %c0_306 = arith.constant 0 : index
    %457 = vector.load %arg19[%c0_305, %c0_306] : memref<64x16xf32, #tpu.memory_space<vmem>>, vector<64x16xf32>
    %458 = arith.addf %457, %456 : vector<64x16xf32>
    %c0_307 = arith.constant 0 : index
    %c0_308 = arith.constant 0 : index
    %459 = vector.load %arg19[%c0_307, %c0_308] : memref<64x16xf32, #tpu.memory_space<vmem>>, vector<64x16xf32>
    tpu.vector_store %arg19[%c0_307, %c0_308], %458 {strides = array<i32>} : memref<64x16xf32, #tpu.memory_space<vmem>>, vector<64x16xf32>,
    %c61_i32_309 = arith.constant 61 : i32
    %460 = tpu.dynamic_rotate %394 by %c61_i32_309 dim 0 : vector<64x16xf32>, i32 -> vector<64x16xf32>
    %cst_310 = arith.constant 0.000000e+00 : f32
    %461 = vector.shape_cast %70 : vector<64x1xi1> to vector<64x1xi1>
    %462 = vector.broadcast %461 : vector<64x1xi1> to vector<64x16xi1>
    %463 = vector.broadcast %cst_310 : f32 to vector<64x16xf32>
    %464 = arith.select %462, %460, %463 : vector<64x16xi1>, vector<64x16xf32>
    %465 = arith.truncf %464 : vector<64x16xf32> to vector<64x16xbf16>
    %c6_311 = arith.constant 6 : index
    %c0_312 = arith.constant 0 : index
    %c0_313 = arith.constant 0 : index
    %466 = vector.load %arg10[%c6_311, %c0_312, %c0_313] : memref<7x16x16xbf16, #tpu.memory_space<vmem>>, vector<1x16x16xbf16>
    %467 = vector.shape_cast %466 : vector<1x16x16xbf16> to vector<16x16xbf16>
    %cst_314 = arith.constant dense<0.000000e+00> : vector<64x16xf32>
    %468 = tpu.matmul %465, %467, %cst_314 {dimension_numbers = #tpu.dot_dimension_numbers<[1], [0], [0], [1], [0, 0, 1, 1], [], []>} : vector<64x16xbf16>, vector<16x16xbf16>, vector<64x16xf32> -> vector<64x16xf32>
    %c0_315 = arith.constant 0 : index
    %c0_316 = arith.constant 0 : index
    %469 = vector.load %arg19[%c0_315, %c0_316] : memref<64x16xf32, #tpu.memory_space<vmem>>, vector<64x16xf32>
    %470 = arith.addf %469, %468 : vector<64x16xf32>
    %c0_317 = arith.constant 0 : index
    %c0_318 = arith.constant 0 : index
    %471 = vector.load %arg19[%c0_317, %c0_318] : memref<64x16xf32, #tpu.memory_space<vmem>>, vector<64x16xf32>
    tpu.vector_store %arg19[%c0_317, %c0_318], %470 {strides = array<i32>} : memref<64x16xf32, #tpu.memory_space<vmem>>, vector<64x16xf32>,
    %c0_319 = arith.constant 0 : index
    %c0_320 = arith.constant 0 : index
    %472 = vector.load %arg19[%c0_319, %c0_320] : memref<64x16xf32, #tpu.memory_space<vmem>>, vector<64x16xf32>
    %c0_321 = arith.constant 0 : index
    %c0_322 = arith.constant 0 : index
    %473 = vector.load %arg11[%c0_321, %c0_322] : memref<1x16xf32, #tpu.memory_space<vmem>>, vector<1x16xf32>
    %474 = vector.broadcast %473 : vector<1x16xf32> to vector<64x16xf32>
    %475 = arith.addf %472, %474 : vector<64x16xf32>
    %cst_323 = arith.constant 0.000000e+00 : f32
    %476 = vector.broadcast %cst_323 : f32 to vector<64x16xf32>
    %477 = arith.maximumf %475, %476 : vector<64x16xf32>
    %c24_i32_324 = arith.constant 24 : i32
    %478 = tpu.dynamic_rotate %477 by %c24_i32_324 dim 0 : vector<64x16xf32>, i32 -> vector<64x16xf32>
    %cst_325 = arith.constant 0.000000e+00 : f32
    %479 = vector.shape_cast %79 : vector<64x1xi1> to vector<64x1xi1>
    %480 = vector.broadcast %479 : vector<64x1xi1> to vector<64x16xi1>
    %481 = vector.broadcast %cst_325 : f32 to vector<64x16xf32>
    %482 = arith.select %480, %478, %481 : vector<64x16xi1>, vector<64x16xf32>
    %483 = arith.truncf %482 : vector<64x16xf32> to vector<64x16xbf16>
    %c0_326 = arith.constant 0 : index
    %c0_327 = arith.constant 0 : index
    %c0_328 = arith.constant 0 : index
    %484 = vector.load %arg12[%c0_326, %c0_327, %c0_328] : memref<7x16x16xbf16, #tpu.memory_space<vmem>>, vector<1x16x16xbf16>
    %485 = vector.shape_cast %484 : vector<1x16x16xbf16> to vector<16x16xbf16>
    %cst_329 = arith.constant dense<0.000000e+00> : vector<64x16xf32>
    %486 = tpu.matmul %483, %485, %cst_329 {dimension_numbers = #tpu.dot_dimension_numbers<[1], [0], [0], [1], [0, 0, 1, 1], [], []>} : vector<64x16xbf16>, vector<16x16xbf16>, vector<64x16xf32> -> vector<64x16xf32>
    %c0_330 = arith.constant 0 : index
    %c0_331 = arith.constant 0 : index
    %487 = vector.load %arg19[%c0_330, %c0_331] : memref<64x16xf32, #tpu.memory_space<vmem>>, vector<64x16xf32>
    tpu.vector_store %arg19[%c0_330, %c0_331], %486 {strides = array<i32>} : memref<64x16xf32, #tpu.memory_space<vmem>>, vector<64x16xf32>,
    %c16_i32_332 = arith.constant 16 : i32
    %488 = tpu.dynamic_rotate %477 by %c16_i32_332 dim 0 : vector<64x16xf32>, i32 -> vector<64x16xf32>
    %cst_333 = arith.constant 0.000000e+00 : f32
    %489 = vector.shape_cast %88 : vector<64x1xi1> to vector<64x1xi1>
    %490 = vector.broadcast %489 : vector<64x1xi1> to vector<64x16xi1>
    %491 = vector.broadcast %cst_333 : f32 to vector<64x16xf32>
    %492 = arith.select %490, %488, %491 : vector<64x16xi1>, vector<64x16xf32>
    %493 = arith.truncf %492 : vector<64x16xf32> to vector<64x16xbf16>
    %c1_334 = arith.constant 1 : index
    %c0_335 = arith.constant 0 : index
    %c0_336 = arith.constant 0 : index
    %494 = vector.load %arg12[%c1_334, %c0_335, %c0_336] : memref<7x16x16xbf16, #tpu.memory_space<vmem>>, vector<1x16x16xbf16>
    %495 = vector.shape_cast %494 : vector<1x16x16xbf16> to vector<16x16xbf16>
    %cst_337 = arith.constant dense<0.000000e+00> : vector<64x16xf32>
    %496 = tpu.matmul %493, %495, %cst_337 {dimension_numbers = #tpu.dot_dimension_numbers<[1], [0], [0], [1], [0, 0, 1, 1], [], []>} : vector<64x16xbf16>, vector<16x16xbf16>, vector<64x16xf32> -> vector<64x16xf32>
    %c0_338 = arith.constant 0 : index
    %c0_339 = arith.constant 0 : index
    %497 = vector.load %arg19[%c0_338, %c0_339] : memref<64x16xf32, #tpu.memory_space<vmem>>, vector<64x16xf32>
    %498 = arith.addf %497, %496 : vector<64x16xf32>
    %c0_340 = arith.constant 0 : index
    %c0_341 = arith.constant 0 : index
    %499 = vector.load %arg19[%c0_340, %c0_341] : memref<64x16xf32, #tpu.memory_space<vmem>>, vector<64x16xf32>
    tpu.vector_store %arg19[%c0_340, %c0_341], %498 {strides = array<i32>} : memref<64x16xf32, #tpu.memory_space<vmem>>, vector<64x16xf32>,
    %c8_i32_342 = arith.constant 8 : i32
    %500 = tpu.dynamic_rotate %477 by %c8_i32_342 dim 0 : vector<64x16xf32>, i32 -> vector<64x16xf32>
    %cst_343 = arith.constant 0.000000e+00 : f32
    %501 = vector.shape_cast %97 : vector<64x1xi1> to vector<64x1xi1>
    %502 = vector.broadcast %501 : vector<64x1xi1> to vector<64x16xi1>
    %503 = vector.broadcast %cst_343 : f32 to vector<64x16xf32>
    %504 = arith.select %502, %500, %503 : vector<64x16xi1>, vector<64x16xf32>
    %505 = arith.truncf %504 : vector<64x16xf32> to vector<64x16xbf16>
    %c2_344 = arith.constant 2 : index
    %c0_345 = arith.constant 0 : index
    %c0_346 = arith.constant 0 : index
    %506 = vector.load %arg12[%c2_344, %c0_345, %c0_346] : memref<7x16x16xbf16, #tpu.memory_space<vmem>>, vector<1x16x16xbf16>
    %507 = vector.shape_cast %506 : vector<1x16x16xbf16> to vector<16x16xbf16>
    %cst_347 = arith.constant dense<0.000000e+00> : vector<64x16xf32>
    %508 = tpu.matmul %505, %507, %cst_347 {dimension_numbers = #tpu.dot_dimension_numbers<[1], [0], [0], [1], [0, 0, 1, 1], [], []>} : vector<64x16xbf16>, vector<16x16xbf16>, vector<64x16xf32> -> vector<64x16xf32>
    %c0_348 = arith.constant 0 : index
    %c0_349 = arith.constant 0 : index
    %509 = vector.load %arg19[%c0_348, %c0_349] : memref<64x16xf32, #tpu.memory_space<vmem>>, vector<64x16xf32>
    %510 = arith.addf %509, %508 : vector<64x16xf32>
    %c0_350 = arith.constant 0 : index
    %c0_351 = arith.constant 0 : index
    %511 = vector.load %arg19[%c0_350, %c0_351] : memref<64x16xf32, #tpu.memory_space<vmem>>, vector<64x16xf32>
    tpu.vector_store %arg19[%c0_350, %c0_351], %510 {strides = array<i32>} : memref<64x16xf32, #tpu.memory_space<vmem>>, vector<64x16xf32>,
    %512 = arith.truncf %477 : vector<64x16xf32> to vector<64x16xbf16>
    %c3_352 = arith.constant 3 : index
    %c0_353 = arith.constant 0 : index
    %c0_354 = arith.constant 0 : index
    %513 = vector.load %arg12[%c3_352, %c0_353, %c0_354] : memref<7x16x16xbf16, #tpu.memory_space<vmem>>, vector<1x16x16xbf16>
    %514 = vector.shape_cast %513 : vector<1x16x16xbf16> to vector<16x16xbf16>
    %cst_355 = arith.constant dense<0.000000e+00> : vector<64x16xf32>
    %515 = tpu.matmul %512, %514, %cst_355 {dimension_numbers = #tpu.dot_dimension_numbers<[1], [0], [0], [1], [0, 0, 1, 1], [], []>} : vector<64x16xbf16>, vector<16x16xbf16>, vector<64x16xf32> -> vector<64x16xf32>
    %c0_356 = arith.constant 0 : index
    %c0_357 = arith.constant 0 : index
    %516 = vector.load %arg19[%c0_356, %c0_357] : memref<64x16xf32, #tpu.memory_space<vmem>>, vector<64x16xf32>
    %517 = arith.addf %516, %515 : vector<64x16xf32>
    %c0_358 = arith.constant 0 : index
    %c0_359 = arith.constant 0 : index
    %518 = vector.load %arg19[%c0_358, %c0_359] : memref<64x16xf32, #tpu.memory_space<vmem>>, vector<64x16xf32>
    tpu.vector_store %arg19[%c0_358, %c0_359], %517 {strides = array<i32>} : memref<64x16xf32, #tpu.memory_space<vmem>>, vector<64x16xf32>,
    %c56_i32_360 = arith.constant 56 : i32
    %519 = tpu.dynamic_rotate %477 by %c56_i32_360 dim 0 : vector<64x16xf32>, i32 -> vector<64x16xf32>
    %cst_361 = arith.constant 0.000000e+00 : f32
    %520 = vector.shape_cast %106 : vector<64x1xi1> to vector<64x1xi1>
    %521 = vector.broadcast %520 : vector<64x1xi1> to vector<64x16xi1>
    %522 = vector.broadcast %cst_361 : f32 to vector<64x16xf32>
    %523 = arith.select %521, %519, %522 : vector<64x16xi1>, vector<64x16xf32>
    %524 = arith.truncf %523 : vector<64x16xf32> to vector<64x16xbf16>
    %c4_362 = arith.constant 4 : index
    %c0_363 = arith.constant 0 : index
    %c0_364 = arith.constant 0 : index
    %525 = vector.load %arg12[%c4_362, %c0_363, %c0_364] : memref<7x16x16xbf16, #tpu.memory_space<vmem>>, vector<1x16x16xbf16>
    %526 = vector.shape_cast %525 : vector<1x16x16xbf16> to vector<16x16xbf16>
    %cst_365 = arith.constant dense<0.000000e+00> : vector<64x16xf32>
    %527 = tpu.matmul %524, %526, %cst_365 {dimension_numbers = #tpu.dot_dimension_numbers<[1], [0], [0], [1], [0, 0, 1, 1], [], []>} : vector<64x16xbf16>, vector<16x16xbf16>, vector<64x16xf32> -> vector<64x16xf32>
    %c0_366 = arith.constant 0 : index
    %c0_367 = arith.constant 0 : index
    %528 = vector.load %arg19[%c0_366, %c0_367] : memref<64x16xf32, #tpu.memory_space<vmem>>, vector<64x16xf32>
    %529 = arith.addf %528, %527 : vector<64x16xf32>
    %c0_368 = arith.constant 0 : index
    %c0_369 = arith.constant 0 : index
    %530 = vector.load %arg19[%c0_368, %c0_369] : memref<64x16xf32, #tpu.memory_space<vmem>>, vector<64x16xf32>
    tpu.vector_store %arg19[%c0_368, %c0_369], %529 {strides = array<i32>} : memref<64x16xf32, #tpu.memory_space<vmem>>, vector<64x16xf32>,
    %c48_i32_370 = arith.constant 48 : i32
    %531 = tpu.dynamic_rotate %477 by %c48_i32_370 dim 0 : vector<64x16xf32>, i32 -> vector<64x16xf32>
    %cst_371 = arith.constant 0.000000e+00 : f32
    %532 = vector.shape_cast %115 : vector<64x1xi1> to vector<64x1xi1>
    %533 = vector.broadcast %532 : vector<64x1xi1> to vector<64x16xi1>
    %534 = vector.broadcast %cst_371 : f32 to vector<64x16xf32>
    %535 = arith.select %533, %531, %534 : vector<64x16xi1>, vector<64x16xf32>
    %536 = arith.truncf %535 : vector<64x16xf32> to vector<64x16xbf16>
    %c5_372 = arith.constant 5 : index
    %c0_373 = arith.constant 0 : index
    %c0_374 = arith.constant 0 : index
    %537 = vector.load %arg12[%c5_372, %c0_373, %c0_374] : memref<7x16x16xbf16, #tpu.memory_space<vmem>>, vector<1x16x16xbf16>
    %538 = vector.shape_cast %537 : vector<1x16x16xbf16> to vector<16x16xbf16>
    %cst_375 = arith.constant dense<0.000000e+00> : vector<64x16xf32>
    %539 = tpu.matmul %536, %538, %cst_375 {dimension_numbers = #tpu.dot_dimension_numbers<[1], [0], [0], [1], [0, 0, 1, 1], [], []>} : vector<64x16xbf16>, vector<16x16xbf16>, vector<64x16xf32> -> vector<64x16xf32>
    %c0_376 = arith.constant 0 : index
    %c0_377 = arith.constant 0 : index
    %540 = vector.load %arg19[%c0_376, %c0_377] : memref<64x16xf32, #tpu.memory_space<vmem>>, vector<64x16xf32>
    %541 = arith.addf %540, %539 : vector<64x16xf32>
    %c0_378 = arith.constant 0 : index
    %c0_379 = arith.constant 0 : index
    %542 = vector.load %arg19[%c0_378, %c0_379] : memref<64x16xf32, #tpu.memory_space<vmem>>, vector<64x16xf32>
    tpu.vector_store %arg19[%c0_378, %c0_379], %541 {strides = array<i32>} : memref<64x16xf32, #tpu.memory_space<vmem>>, vector<64x16xf32>,
    %c40_i32_380 = arith.constant 40 : i32
    %543 = tpu.dynamic_rotate %477 by %c40_i32_380 dim 0 : vector<64x16xf32>, i32 -> vector<64x16xf32>
    %cst_381 = arith.constant 0.000000e+00 : f32
    %544 = vector.shape_cast %124 : vector<64x1xi1> to vector<64x1xi1>
    %545 = vector.broadcast %544 : vector<64x1xi1> to vector<64x16xi1>
    %546 = vector.broadcast %cst_381 : f32 to vector<64x16xf32>
    %547 = arith.select %545, %543, %546 : vector<64x16xi1>, vector<64x16xf32>
    %548 = arith.truncf %547 : vector<64x16xf32> to vector<64x16xbf16>
    %c6_382 = arith.constant 6 : index
    %c0_383 = arith.constant 0 : index
    %c0_384 = arith.constant 0 : index
    %549 = vector.load %arg12[%c6_382, %c0_383, %c0_384] : memref<7x16x16xbf16, #tpu.memory_space<vmem>>, vector<1x16x16xbf16>
    %550 = vector.shape_cast %549 : vector<1x16x16xbf16> to vector<16x16xbf16>
    %cst_385 = arith.constant dense<0.000000e+00> : vector<64x16xf32>
    %551 = tpu.matmul %548, %550, %cst_385 {dimension_numbers = #tpu.dot_dimension_numbers<[1], [0], [0], [1], [0, 0, 1, 1], [], []>} : vector<64x16xbf16>, vector<16x16xbf16>, vector<64x16xf32> -> vector<64x16xf32>
    %c0_386 = arith.constant 0 : index
    %c0_387 = arith.constant 0 : index
    %552 = vector.load %arg19[%c0_386, %c0_387] : memref<64x16xf32, #tpu.memory_space<vmem>>, vector<64x16xf32>
    %553 = arith.addf %552, %551 : vector<64x16xf32>
    %c0_388 = arith.constant 0 : index
    %c0_389 = arith.constant 0 : index
    %554 = vector.load %arg19[%c0_388, %c0_389] : memref<64x16xf32, #tpu.memory_space<vmem>>, vector<64x16xf32>
    tpu.vector_store %arg19[%c0_388, %c0_389], %553 {strides = array<i32>} : memref<64x16xf32, #tpu.memory_space<vmem>>, vector<64x16xf32>,
    %c0_390 = arith.constant 0 : index
    %c0_391 = arith.constant 0 : index
    %555 = vector.load %arg19[%c0_390, %c0_391] : memref<64x16xf32, #tpu.memory_space<vmem>>, vector<64x16xf32>
    %c0_392 = arith.constant 0 : index
    %c0_393 = arith.constant 0 : index
    %556 = vector.load %arg13[%c0_392, %c0_393] : memref<1x16xf32, #tpu.memory_space<vmem>>, vector<1x16xf32>
    %557 = vector.broadcast %556 : vector<1x16xf32> to vector<64x16xf32>
    %558 = arith.addf %555, %557 : vector<64x16xf32>
    %cst_394 = arith.constant 0.000000e+00 : f32
    %559 = vector.broadcast %cst_394 : f32 to vector<64x16xf32>
    %560 = arith.maximumf %558, %559 : vector<64x16xf32>
    %c3_i32_395 = arith.constant 3 : i32
    %561 = tpu.dynamic_rotate %560 by %c3_i32_395 dim 0 : vector<64x16xf32>, i32 -> vector<64x16xf32>
    %cst_396 = arith.constant 0.000000e+00 : f32
    %562 = vector.shape_cast %25 : vector<64x1xi1> to vector<64x1xi1>
    %563 = vector.broadcast %562 : vector<64x1xi1> to vector<64x16xi1>
    %564 = vector.broadcast %cst_396 : f32 to vector<64x16xf32>
    %565 = arith.select %563, %561, %564 : vector<64x16xi1>, vector<64x16xf32>
    %566 = arith.truncf %565 : vector<64x16xf32> to vector<64x16xbf16>
    %c0_397 = arith.constant 0 : index
    %c0_398 = arith.constant 0 : index
    %c0_399 = arith.constant 0 : index
    %567 = vector.load %arg14[%c0_397, %c0_398, %c0_399] : memref<7x16x32xbf16, #tpu.memory_space<vmem>>, vector<1x16x32xbf16>
    %568 = vector.shape_cast %567 : vector<1x16x32xbf16> to vector<16x32xbf16>
    %cst_400 = arith.constant dense<0.000000e+00> : vector<64x32xf32>
    %569 = tpu.matmul %566, %568, %cst_400 {dimension_numbers = #tpu.dot_dimension_numbers<[1], [0], [0], [1], [0, 0, 1, 1], [], []>} : vector<64x16xbf16>, vector<16x32xbf16>, vector<64x32xf32> -> vector<64x32xf32>
    %c0_401 = arith.constant 0 : index
    %c0_402 = arith.constant 0 : index
    %570 = vector.load %arg20[%c0_401, %c0_402] : memref<64x32xf32, #tpu.memory_space<vmem>>, vector<64x32xf32>
    tpu.vector_store %arg20[%c0_401, %c0_402], %569 {strides = array<i32>} : memref<64x32xf32, #tpu.memory_space<vmem>>, vector<64x32xf32>,
    %c2_i32_403 = arith.constant 2 : i32
    %571 = tpu.dynamic_rotate %560 by %c2_i32_403 dim 0 : vector<64x16xf32>, i32 -> vector<64x16xf32>
    %cst_404 = arith.constant 0.000000e+00 : f32
    %572 = vector.shape_cast %34 : vector<64x1xi1> to vector<64x1xi1>
    %573 = vector.broadcast %572 : vector<64x1xi1> to vector<64x16xi1>
    %574 = vector.broadcast %cst_404 : f32 to vector<64x16xf32>
    %575 = arith.select %573, %571, %574 : vector<64x16xi1>, vector<64x16xf32>
    %576 = arith.truncf %575 : vector<64x16xf32> to vector<64x16xbf16>
    %c1_405 = arith.constant 1 : index
    %c0_406 = arith.constant 0 : index
    %c0_407 = arith.constant 0 : index
    %577 = vector.load %arg14[%c1_405, %c0_406, %c0_407] : memref<7x16x32xbf16, #tpu.memory_space<vmem>>, vector<1x16x32xbf16>
    %578 = vector.shape_cast %577 : vector<1x16x32xbf16> to vector<16x32xbf16>
    %cst_408 = arith.constant dense<0.000000e+00> : vector<64x32xf32>
    %579 = tpu.matmul %576, %578, %cst_408 {dimension_numbers = #tpu.dot_dimension_numbers<[1], [0], [0], [1], [0, 0, 1, 1], [], []>} : vector<64x16xbf16>, vector<16x32xbf16>, vector<64x32xf32> -> vector<64x32xf32>
    %c0_409 = arith.constant 0 : index
    %c0_410 = arith.constant 0 : index
    %580 = vector.load %arg20[%c0_409, %c0_410] : memref<64x32xf32, #tpu.memory_space<vmem>>, vector<64x32xf32>
    %581 = arith.addf %580, %579 : vector<64x32xf32>
    %c0_411 = arith.constant 0 : index
    %c0_412 = arith.constant 0 : index
    %582 = vector.load %arg20[%c0_411, %c0_412] : memref<64x32xf32, #tpu.memory_space<vmem>>, vector<64x32xf32>
    tpu.vector_store %arg20[%c0_411, %c0_412], %581 {strides = array<i32>} : memref<64x32xf32, #tpu.memory_space<vmem>>, vector<64x32xf32>,
    %c1_i32_413 = arith.constant 1 : i32
    %583 = tpu.dynamic_rotate %560 by %c1_i32_413 dim 0 : vector<64x16xf32>, i32 -> vector<64x16xf32>
    %cst_414 = arith.constant 0.000000e+00 : f32
    %584 = vector.shape_cast %43 : vector<64x1xi1> to vector<64x1xi1>
    %585 = vector.broadcast %584 : vector<64x1xi1> to vector<64x16xi1>
    %586 = vector.broadcast %cst_414 : f32 to vector<64x16xf32>
    %587 = arith.select %585, %583, %586 : vector<64x16xi1>, vector<64x16xf32>
    %588 = arith.truncf %587 : vector<64x16xf32> to vector<64x16xbf16>
    %c2_415 = arith.constant 2 : index
    %c0_416 = arith.constant 0 : index
    %c0_417 = arith.constant 0 : index
    %589 = vector.load %arg14[%c2_415, %c0_416, %c0_417] : memref<7x16x32xbf16, #tpu.memory_space<vmem>>, vector<1x16x32xbf16>
    %590 = vector.shape_cast %589 : vector<1x16x32xbf16> to vector<16x32xbf16>
    %cst_418 = arith.constant dense<0.000000e+00> : vector<64x32xf32>
    %591 = tpu.matmul %588, %590, %cst_418 {dimension_numbers = #tpu.dot_dimension_numbers<[1], [0], [0], [1], [0, 0, 1, 1], [], []>} : vector<64x16xbf16>, vector<16x32xbf16>, vector<64x32xf32> -> vector<64x32xf32>
    %c0_419 = arith.constant 0 : index
    %c0_420 = arith.constant 0 : index
    %592 = vector.load %arg20[%c0_419, %c0_420] : memref<64x32xf32, #tpu.memory_space<vmem>>, vector<64x32xf32>
    %593 = arith.addf %592, %591 : vector<64x32xf32>
    %c0_421 = arith.constant 0 : index
    %c0_422 = arith.constant 0 : index
    %594 = vector.load %arg20[%c0_421, %c0_422] : memref<64x32xf32, #tpu.memory_space<vmem>>, vector<64x32xf32>
    tpu.vector_store %arg20[%c0_421, %c0_422], %593 {strides = array<i32>} : memref<64x32xf32, #tpu.memory_space<vmem>>, vector<64x32xf32>,
    %595 = arith.truncf %560 : vector<64x16xf32> to vector<64x16xbf16>
    %c3_423 = arith.constant 3 : index
    %c0_424 = arith.constant 0 : index
    %c0_425 = arith.constant 0 : index
    %596 = vector.load %arg14[%c3_423, %c0_424, %c0_425] : memref<7x16x32xbf16, #tpu.memory_space<vmem>>, vector<1x16x32xbf16>
    %597 = vector.shape_cast %596 : vector<1x16x32xbf16> to vector<16x32xbf16>
    %cst_426 = arith.constant dense<0.000000e+00> : vector<64x32xf32>
    %598 = tpu.matmul %595, %597, %cst_426 {dimension_numbers = #tpu.dot_dimension_numbers<[1], [0], [0], [1], [0, 0, 1, 1], [], []>} : vector<64x16xbf16>, vector<16x32xbf16>, vector<64x32xf32> -> vector<64x32xf32>
    %c0_427 = arith.constant 0 : index
    %c0_428 = arith.constant 0 : index
    %599 = vector.load %arg20[%c0_427, %c0_428] : memref<64x32xf32, #tpu.memory_space<vmem>>, vector<64x32xf32>
    %600 = arith.addf %599, %598 : vector<64x32xf32>
    %c0_429 = arith.constant 0 : index
    %c0_430 = arith.constant 0 : index
    %601 = vector.load %arg20[%c0_429, %c0_430] : memref<64x32xf32, #tpu.memory_space<vmem>>, vector<64x32xf32>
    tpu.vector_store %arg20[%c0_429, %c0_430], %600 {strides = array<i32>} : memref<64x32xf32, #tpu.memory_space<vmem>>, vector<64x32xf32>,
    %c63_i32_431 = arith.constant 63 : i32
    %602 = tpu.dynamic_rotate %560 by %c63_i32_431 dim 0 : vector<64x16xf32>, i32 -> vector<64x16xf32>
    %cst_432 = arith.constant 0.000000e+00 : f32
    %603 = vector.shape_cast %52 : vector<64x1xi1> to vector<64x1xi1>
    %604 = vector.broadcast %603 : vector<64x1xi1> to vector<64x16xi1>
    %605 = vector.broadcast %cst_432 : f32 to vector<64x16xf32>
    %606 = arith.select %604, %602, %605 : vector<64x16xi1>, vector<64x16xf32>
    %607 = arith.truncf %606 : vector<64x16xf32> to vector<64x16xbf16>
    %c4_433 = arith.constant 4 : index
    %c0_434 = arith.constant 0 : index
    %c0_435 = arith.constant 0 : index
    %608 = vector.load %arg14[%c4_433, %c0_434, %c0_435] : memref<7x16x32xbf16, #tpu.memory_space<vmem>>, vector<1x16x32xbf16>
    %609 = vector.shape_cast %608 : vector<1x16x32xbf16> to vector<16x32xbf16>
    %cst_436 = arith.constant dense<0.000000e+00> : vector<64x32xf32>
    %610 = tpu.matmul %607, %609, %cst_436 {dimension_numbers = #tpu.dot_dimension_numbers<[1], [0], [0], [1], [0, 0, 1, 1], [], []>} : vector<64x16xbf16>, vector<16x32xbf16>, vector<64x32xf32> -> vector<64x32xf32>
    %c0_437 = arith.constant 0 : index
    %c0_438 = arith.constant 0 : index
    %611 = vector.load %arg20[%c0_437, %c0_438] : memref<64x32xf32, #tpu.memory_space<vmem>>, vector<64x32xf32>
    %612 = arith.addf %611, %610 : vector<64x32xf32>
    %c0_439 = arith.constant 0 : index
    %c0_440 = arith.constant 0 : index
    %613 = vector.load %arg20[%c0_439, %c0_440] : memref<64x32xf32, #tpu.memory_space<vmem>>, vector<64x32xf32>
    tpu.vector_store %arg20[%c0_439, %c0_440], %612 {strides = array<i32>} : memref<64x32xf32, #tpu.memory_space<vmem>>, vector<64x32xf32>,
    %c62_i32_441 = arith.constant 62 : i32
    %614 = tpu.dynamic_rotate %560 by %c62_i32_441 dim 0 : vector<64x16xf32>, i32 -> vector<64x16xf32>
    %cst_442 = arith.constant 0.000000e+00 : f32
    %615 = vector.shape_cast %61 : vector<64x1xi1> to vector<64x1xi1>
    %616 = vector.broadcast %615 : vector<64x1xi1> to vector<64x16xi1>
    %617 = vector.broadcast %cst_442 : f32 to vector<64x16xf32>
    %618 = arith.select %616, %614, %617 : vector<64x16xi1>, vector<64x16xf32>
    %619 = arith.truncf %618 : vector<64x16xf32> to vector<64x16xbf16>
    %c5_443 = arith.constant 5 : index
    %c0_444 = arith.constant 0 : index
    %c0_445 = arith.constant 0 : index
    %620 = vector.load %arg14[%c5_443, %c0_444, %c0_445] : memref<7x16x32xbf16, #tpu.memory_space<vmem>>, vector<1x16x32xbf16>
    %621 = vector.shape_cast %620 : vector<1x16x32xbf16> to vector<16x32xbf16>
    %cst_446 = arith.constant dense<0.000000e+00> : vector<64x32xf32>
    %622 = tpu.matmul %619, %621, %cst_446 {dimension_numbers = #tpu.dot_dimension_numbers<[1], [0], [0], [1], [0, 0, 1, 1], [], []>} : vector<64x16xbf16>, vector<16x32xbf16>, vector<64x32xf32> -> vector<64x32xf32>
    %c0_447 = arith.constant 0 : index
    %c0_448 = arith.constant 0 : index
    %623 = vector.load %arg20[%c0_447, %c0_448] : memref<64x32xf32, #tpu.memory_space<vmem>>, vector<64x32xf32>
    %624 = arith.addf %623, %622 : vector<64x32xf32>
    %c0_449 = arith.constant 0 : index
    %c0_450 = arith.constant 0 : index
    %625 = vector.load %arg20[%c0_449, %c0_450] : memref<64x32xf32, #tpu.memory_space<vmem>>, vector<64x32xf32>
    tpu.vector_store %arg20[%c0_449, %c0_450], %624 {strides = array<i32>} : memref<64x32xf32, #tpu.memory_space<vmem>>, vector<64x32xf32>,
    %c61_i32_451 = arith.constant 61 : i32
    %626 = tpu.dynamic_rotate %560 by %c61_i32_451 dim 0 : vector<64x16xf32>, i32 -> vector<64x16xf32>
    %cst_452 = arith.constant 0.000000e+00 : f32
    %627 = vector.shape_cast %70 : vector<64x1xi1> to vector<64x1xi1>
    %628 = vector.broadcast %627 : vector<64x1xi1> to vector<64x16xi1>
    %629 = vector.broadcast %cst_452 : f32 to vector<64x16xf32>
    %630 = arith.select %628, %626, %629 : vector<64x16xi1>, vector<64x16xf32>
    %631 = arith.truncf %630 : vector<64x16xf32> to vector<64x16xbf16>
    %c6_453 = arith.constant 6 : index
    %c0_454 = arith.constant 0 : index
    %c0_455 = arith.constant 0 : index
    %632 = vector.load %arg14[%c6_453, %c0_454, %c0_455] : memref<7x16x32xbf16, #tpu.memory_space<vmem>>, vector<1x16x32xbf16>
    %633 = vector.shape_cast %632 : vector<1x16x32xbf16> to vector<16x32xbf16>
    %cst_456 = arith.constant dense<0.000000e+00> : vector<64x32xf32>
    %634 = tpu.matmul %631, %633, %cst_456 {dimension_numbers = #tpu.dot_dimension_numbers<[1], [0], [0], [1], [0, 0, 1, 1], [], []>} : vector<64x16xbf16>, vector<16x32xbf16>, vector<64x32xf32> -> vector<64x32xf32>
    %c0_457 = arith.constant 0 : index
    %c0_458 = arith.constant 0 : index
    %635 = vector.load %arg20[%c0_457, %c0_458] : memref<64x32xf32, #tpu.memory_space<vmem>>, vector<64x32xf32>
    %636 = arith.addf %635, %634 : vector<64x32xf32>
    %c0_459 = arith.constant 0 : index
    %c0_460 = arith.constant 0 : index
    %637 = vector.load %arg20[%c0_459, %c0_460] : memref<64x32xf32, #tpu.memory_space<vmem>>, vector<64x32xf32>
    tpu.vector_store %arg20[%c0_459, %c0_460], %636 {strides = array<i32>} : memref<64x32xf32, #tpu.memory_space<vmem>>, vector<64x32xf32>,
    %c0_461 = arith.constant 0 : index
    %c0_462 = arith.constant 0 : index
    %638 = vector.load %arg20[%c0_461, %c0_462] : memref<64x32xf32, #tpu.memory_space<vmem>>, vector<64x32xf32>
    %c0_463 = arith.constant 0 : index
    %c0_464 = arith.constant 0 : index
    %639 = vector.load %arg15[%c0_463, %c0_464] : memref<1x32xf32, #tpu.memory_space<vmem>>, vector<1x32xf32>
    %640 = vector.broadcast %639 : vector<1x32xf32> to vector<64x32xf32>
    %641 = arith.addf %638, %640 : vector<64x32xf32>
    %cst_465 = arith.constant 0.000000e+00 : f32
    %642 = vector.broadcast %cst_465 : f32 to vector<64x32xf32>
    %643 = arith.maximumf %641, %642 : vector<64x32xf32>
    %644 = arith.truncf %643 : vector<64x32xf32> to vector<64x32xbf16>
    %c0_466 = arith.constant 0 : index
    %c0_467 = arith.constant 0 : index
    %c64 = arith.constant 64 : index
    %645 = vector.load %arg18[%c0_466, %c0_467, %c64] : memref<1x64x128xbf16, #tpu.memory_space<vmem>>, vector<1x64x32xbf16>
    %646 = vector.shape_cast %645 : vector<1x64x32xbf16> to vector<64x32xbf16>
    %647 = vector.shape_cast %644 : vector<64x32xbf16> to vector<1x64x32xbf16>
    tpu.vector_store %arg18[%c0_466, %c0_467, %c64], %647 {strides = array<i32>} : memref<1x64x128xbf16, #tpu.memory_space<vmem>>, vector<1x64x32xbf16>,
    %c8_i32_468 = arith.constant 8 : i32
    %648 = tpu.dynamic_rotate %126 by %c8_i32_468 dim 0 : vector<64x32xf32>, i32 -> vector<64x32xf32>
    %cst_469 = arith.constant 0.000000e+00 : f32
    %649 = vector.shape_cast %97 : vector<64x1xi1> to vector<64x1xi1>
    %650 = vector.broadcast %649 : vector<64x1xi1> to vector<64x32xi1>
    %651 = vector.broadcast %cst_469 : f32 to vector<64x32xf32>
    %652 = arith.select %650, %648, %651 : vector<64x32xi1>, vector<64x32xf32>
    %653 = arith.addf %652, %126 : vector<64x32xf32>
    %c56_i32_470 = arith.constant 56 : i32
    %654 = tpu.dynamic_rotate %126 by %c56_i32_470 dim 0 : vector<64x32xf32>, i32 -> vector<64x32xf32>
    %cst_471 = arith.constant 0.000000e+00 : f32
    %655 = vector.shape_cast %106 : vector<64x1xi1> to vector<64x1xi1>
    %656 = vector.broadcast %655 : vector<64x1xi1> to vector<64x32xi1>
    %657 = vector.broadcast %cst_471 : f32 to vector<64x32xf32>
    %658 = arith.select %656, %654, %657 : vector<64x32xi1>, vector<64x32xf32>
    %659 = arith.addf %653, %658 : vector<64x32xf32>
    %c1_i32_472 = arith.constant 1 : i32
    %660 = tpu.dynamic_rotate %659 by %c1_i32_472 dim 0 : vector<64x32xf32>, i32 -> vector<64x32xf32>
    %cst_473 = arith.constant 0.000000e+00 : f32
    %661 = vector.shape_cast %43 : vector<64x1xi1> to vector<64x1xi1>
    %662 = vector.broadcast %661 : vector<64x1xi1> to vector<64x32xi1>
    %663 = vector.broadcast %cst_473 : f32 to vector<64x32xf32>
    %664 = arith.select %662, %660, %663 : vector<64x32xi1>, vector<64x32xf32>
    %665 = arith.addf %664, %659 : vector<64x32xf32>
    %c63_i32_474 = arith.constant 63 : i32
    %666 = tpu.dynamic_rotate %659 by %c63_i32_474 dim 0 : vector<64x32xf32>, i32 -> vector<64x32xf32>
    %cst_475 = arith.constant 0.000000e+00 : f32
    %667 = vector.shape_cast %52 : vector<64x1xi1> to vector<64x1xi1>
    %668 = vector.broadcast %667 : vector<64x1xi1> to vector<64x32xi1>
    %669 = vector.broadcast %cst_475 : f32 to vector<64x32xf32>
    %670 = arith.select %668, %666, %669 : vector<64x32xi1>, vector<64x32xf32>
    %671 = arith.addf %665, %670 : vector<64x32xf32>
    %672 = arith.truncf %671 : vector<64x32xf32> to vector<64x32xbf16>
    %c0_476 = arith.constant 0 : index
    %c0_477 = arith.constant 0 : index
    %673 = vector.load %arg16[%c0_476, %c0_477] : memref<32x32xbf16, #tpu.memory_space<vmem>>, vector<32x32xbf16>
    %cst_478 = arith.constant dense<0.000000e+00> : vector<64x32xf32>
    %674 = tpu.matmul %672, %673, %cst_478 {dimension_numbers = #tpu.dot_dimension_numbers<[1], [0], [0], [1], [0, 0, 1, 1], [], []>} : vector<64x32xbf16>, vector<32x32xbf16>, vector<64x32xf32> -> vector<64x32xf32>
    %c0_479 = arith.constant 0 : index
    %c0_480 = arith.constant 0 : index
    %675 = vector.load %arg17[%c0_479, %c0_480] : memref<1x32xf32, #tpu.memory_space<vmem>>, vector<1x32xf32>
    %676 = vector.broadcast %675 : vector<1x32xf32> to vector<64x32xf32>
    %677 = arith.addf %674, %676 : vector<64x32xf32>
    %cst_481 = arith.constant 0.000000e+00 : f32
    %678 = vector.broadcast %cst_481 : f32 to vector<64x32xf32>
    %679 = arith.maximumf %677, %678 : vector<64x32xf32>
    %680 = arith.truncf %679 : vector<64x32xf32> to vector<64x32xbf16>
    %c0_482 = arith.constant 0 : index
    %c0_483 = arith.constant 0 : index
    %c96 = arith.constant 96 : index
    %681 = vector.load %arg18[%c0_482, %c0_483, %c96] : memref<1x64x128xbf16, #tpu.memory_space<vmem>>, vector<1x64x32xbf16>
    %682 = vector.shape_cast %681 : vector<1x64x32xbf16> to vector<64x32xbf16>
    %683 = vector.shape_cast %680 : vector<64x32xbf16> to vector<1x64x32xbf16>
    tpu.vector_store %arg18[%c0_482, %c0_483, %c96], %683 {strides = array<i32>} : memref<1x64x128xbf16, #tpu.memory_space<vmem>>, vector<1x64x32xbf16>,
    return
  }
  func.func @transform_0(%arg0: i32) -> (i32, i32, i32) {
    %c0_i32 = arith.constant 0 : i32
    %c0_i32_0 = arith.constant 0 : i32
    %c0_i32_1 = arith.constant 0 : i32
    return %arg0, %c0_i32, %c0_i32_0 : i32, i32, i32
  }
  func.func @transform_1(%arg0: i32) -> (i32, i32) {
    %c0_i32 = arith.constant 0 : i32
    %c0_i32_0 = arith.constant 0 : i32
    %c0_i32_1 = arith.constant 0 : i32
    return %c0_i32, %c0_i32_0 : i32, i32
  }
  func.func @transform_2(%arg0: i32) -> (i32, i32) {
    %c0_i32 = arith.constant 0 : i32
    %c0_i32_0 = arith.constant 0 : i32
    %c0_i32_1 = arith.constant 0 : i32
    return %c0_i32, %c0_i32_0 : i32, i32
  }
  func.func @transform_3(%arg0: i32) -> (i32, i32, i32) {
    %c0_i32 = arith.constant 0 : i32
    %c0_i32_0 = arith.constant 0 : i32
    %c0_i32_1 = arith.constant 0 : i32
    %c0_i32_2 = arith.constant 0 : i32
    return %c0_i32, %c0_i32_0, %c0_i32_1 : i32, i32, i32
  }
  func.func @transform_4(%arg0: i32) -> (i32, i32) {
    %c0_i32 = arith.constant 0 : i32
    %c0_i32_0 = arith.constant 0 : i32
    %c0_i32_1 = arith.constant 0 : i32
    return %c0_i32, %c0_i32_0 : i32, i32
  }
  func.func @transform_5(%arg0: i32) -> (i32, i32, i32) {
    %c0_i32 = arith.constant 0 : i32
    %c0_i32_0 = arith.constant 0 : i32
    %c0_i32_1 = arith.constant 0 : i32
    %c0_i32_2 = arith.constant 0 : i32
    return %c0_i32, %c0_i32_0, %c0_i32_1 : i32, i32, i32
  }
  func.func @transform_6(%arg0: i32) -> (i32, i32) {
    %c0_i32 = arith.constant 0 : i32
    %c0_i32_0 = arith.constant 0 : i32
    %c0_i32_1 = arith.constant 0 : i32
    return %c0_i32, %c0_i32_0 : i32, i32
  }
  func.func @transform_7(%arg0: i32) -> (i32, i32, i32) {
    %c0_i32 = arith.constant 0 : i32
    %c0_i32_0 = arith.constant 0 : i32
    %c0_i32_1 = arith.constant 0 : i32
    %c0_i32_2 = arith.constant 0 : i32
    return %c0_i32, %c0_i32_0, %c0_i32_1 : i32, i32, i32
  }
  func.func @transform_8(%arg0: i32) -> (i32, i32) {
    %c0_i32 = arith.constant 0 : i32
    %c0_i32_0 = arith.constant 0 : i32
    %c0_i32_1 = arith.constant 0 : i32
    return %c0_i32, %c0_i32_0 : i32, i32
  }
  func.func @transform_9(%arg0: i32) -> (i32, i32, i32) {
    %c0_i32 = arith.constant 0 : i32
    %c0_i32_0 = arith.constant 0 : i32
    %c0_i32_1 = arith.constant 0 : i32
    %c0_i32_2 = arith.constant 0 : i32
    return %c0_i32, %c0_i32_0, %c0_i32_1 : i32, i32, i32
  }
  func.func @transform_10(%arg0: i32) -> (i32, i32) {
    %c0_i32 = arith.constant 0 : i32
    %c0_i32_0 = arith.constant 0 : i32
    %c0_i32_1 = arith.constant 0 : i32
    return %c0_i32, %c0_i32_0 : i32, i32
  }
  func.func @transform_11(%arg0: i32) -> (i32, i32, i32) {
    %c0_i32 = arith.constant 0 : i32
    %c0_i32_0 = arith.constant 0 : i32
    %c0_i32_1 = arith.constant 0 : i32
    %c0_i32_2 = arith.constant 0 : i32
    return %c0_i32, %c0_i32_0, %c0_i32_1 : i32, i32, i32
  }
  func.func @transform_12(%arg0: i32) -> (i32, i32) {
    %c0_i32 = arith.constant 0 : i32
    %c0_i32_0 = arith.constant 0 : i32
    %c0_i32_1 = arith.constant 0 : i32
    return %c0_i32, %c0_i32_0 : i32, i32
  }
  func.func @transform_13(%arg0: i32) -> (i32, i32, i32) {
    %c0_i32 = arith.constant 0 : i32
    %c0_i32_0 = arith.constant 0 : i32
    %c0_i32_1 = arith.constant 0 : i32
    %c0_i32_2 = arith.constant 0 : i32
    return %c0_i32, %c0_i32_0, %c0_i32_1 : i32, i32, i32
  }
  func.func @transform_14(%arg0: i32) -> (i32, i32) {
    %c0_i32 = arith.constant 0 : i32
    %c0_i32_0 = arith.constant 0 : i32
    %c0_i32_1 = arith.constant 0 : i32
    return %c0_i32, %c0_i32_0 : i32, i32
  }
  func.func @transform_15(%arg0: i32) -> (i32, i32) {
    %c0_i32 = arith.constant 0 : i32
    %c0_i32_0 = arith.constant 0 : i32
    %c0_i32_1 = arith.constant 0 : i32
    return %c0_i32, %c0_i32_0 : i32, i32
  }
  func.func @transform_16(%arg0: i32) -> (i32, i32) {
    %c0_i32 = arith.constant 0 : i32
    %c0_i32_0 = arith.constant 0 : i32
    %c0_i32_1 = arith.constant 0 : i32
    return %c0_i32, %c0_i32_0 : i32, i32
  }
  func.func @transform_17(%arg0: i32) -> (i32, i32, i32) {
    %c0_i32 = arith.constant 0 : i32
    %c0_i32_0 = arith.constant 0 : i32
    %c0_i32_1 = arith.constant 0 : i32
    return %arg0, %c0_i32, %c0_i32_0 : i32, i32, i32
  }
}

</mosaic_0001>

<bundles_post_ra>
// kernel: inception_b_pallas.1
= control target key start
LH: loop header
LB: loop body
LE: loop exit
PB: predicated region body
PF: predicated region fallthrough
CT: control target
= control target key end

     0   :  { %s12360_s0 = inlined_call_operand.hbm [shape: f32[2,64,32], index: 0, kind: input, shape index: {}]   ;;  %s12361_s1 = inlined_call_operand.hbm [shape: bf16[32,64], index: 1, kind: input, shape index: {}]   ;;  %s12362_s2 = inlined_call_operand.hbm [shape: f32[1,64], index: 2, kind: input, shape index: {}]   ;;  %s12363_s3 = inlined_call_operand.hbm [shape: bf16[7,16,16], index: 3, kind: input, shape index: {}]   ;;  %s12364_s4 = inlined_call_operand.hbm [shape: f32[1,16], index: 4, kind: input, shape index: {}]   ;;  %s12365_s5 = inlined_call_operand.hbm [shape: bf16[7,16,32], index: 5, kind: input, shape index: {}]   ;;  %s12366_s6 = inlined_call_operand.hbm [shape: f32[1,32], index: 6, kind: input, shape index: {}]   ;;  %s12367_s7 = inlined_call_operand.hbm [shape: bf16[7,16,16], index: 7, kind: input, shape index: {}]   ;;  %s12368_s8 = inlined_call_operand.hbm [shape: f32[1,16], index: 8, kind: input, shape index: {}]   ;;  %s12369_s9 = inlined_call_operand.hbm [shape: bf16[7,16,16], index: 9, kind: input, shape index: {}]   ;;  %s12370_s10 = inlined_call_operand.hbm [shape: f32[1,16], index: 10, kind: input, shape index: {}]   ;;  %s12371_s11 = inlined_call_operand.hbm [shape: bf16[7,16,16], index: 11, kind: input, shape index: {}]   ;;  %s12372_s12 = inlined_call_operand.hbm [shape: f32[1,16], index: 12, kind: input, shape index: {}]   ;;  %s12373_s13 = inlined_call_operand.hbm [shape: bf16[7,16,32], index: 13, kind: input, shape index: {}]   ;;  %s12374_s14 = inlined_call_operand.hbm [shape: f32[1,32], index: 14, kind: input, shape index: {}]   ;;  %s12375_s15 = inlined_call_operand.hbm [shape: bf16[32,32], index: 15, kind: input, shape index: {}]   ;;  %s12376_s16 = inlined_call_operand.hbm [shape: f32[1,32], index: 16, kind: input, shape index: {}]   ;;  %s12377_s17 = inlined_call_operand.hbm [shape: bf16[2,64,128], index: 17, kind: output, shape index: {}]  }
   0x1   :  { %12517 = sst [smem:[#allocation80_spill]] %s12360_s0 }
   0x2   :  { %12518 = sst [smem:[#allocation81_spill]] %s12361_s1 }
   0x3   :  { %12519 = sst [smem:[#allocation82_spill]] %s12362_s2 }
   0x4   :  { %12520 = sst [smem:[#allocation83_spill]] %s12363_s3 }
   0x5   :  { %12521 = sst [smem:[#allocation84_spill]] %s12364_s4 }
   0x6   :  { %12522 = sst [smem:[#allocation85_spill]] %s12376_s16 }
   0x7   :  { %12523 = sst [smem:[#allocation86_spill]] %s12377_s17 }
   0x8   :  { %22 = vsyncpa [#allocation5], 0 }
   0x9   :  { %24 = vsyncpa [#allocation5 + $0x1], 0 }
   0xa   :  { %25 = vsyncpa [#allocation8], 0 }
   0xb   :  { %26 = vsyncpa [#allocation11], 0 }
   0xc   :  { %27 = vsyncpa [#allocation14], 0 }
   0xd   :  { %28 = vsyncpa [#allocation17], 0 }
   0xe   :  { %29 = vsyncpa [#allocation20], 0 }
   0xf   :  { %30 = vsyncpa [#allocation23], 0 }
  0x10   :  { %31 = vsyncpa [#allocation26], 0 }
  0x11   :  { %32 = vsyncpa [#allocation29], 0 }
  0x12   :  { %33 = vsyncpa [#allocation6], 0 }
  0x13   :  { %35 = vsyncpa [#allocation6 + $0x1], 0  ;;  %s9743_s24 = smov 0   ;;  %s9745_s25 = smov 0  }
  0x14   :  { %s9747_s26 = smov 0   ;;  %s9749_s27 = smov 0  }
  0x15 LB: > { %12524 = sst [smem:[#allocation42_spill]] %s9610_s24  ;;  %s9624_s28 = smov [#allocation7]   ;;  %s9622_s27 = sphi %s9749_s27, %s12996_s27   ;;  %s9618_s26 = sphi %s9747_s26, %s12995_s26   ;;  %s9614_s25 = sphi %s9745_s25, %s12994_s25   ;;  %s9610_s24 = sphi %s9743_s24, %s12993_s24  }
  0x16   : > { %12525 = sst [smem:[#allocation43_spill]] %s9614_s25  ;;  %s446_s29 = sshll.u32 %s9624_s28, 4  ;;  %s9769_s29 = int_to_ptr.vmem [resolvable:$true] %s446_s29 }
  0x17   : > { %12526 = sst [smem:[#allocation44_spill]] %s9618_s26  ;;  %s9764_s0 = sadd.s32 4294967295, %s9622_s27  }
  0x18   : > { %12527 = sst [smem:[#allocation45_spill]] %s9622_s27  ;;  %p7762_p0 = scmp.ge.s32.totalorder %s9622_s27, 1 }
  0x19   : > { %12528 = sst [smem:[#allocation46_spill]] %s9764_s0  ;;  %p12390_p1 = scmp.eq.s32.totalorder %s9764_s0, 0 }
  0x1a   : > { %p434_p2 = scmp.lt.s32.totalorder %s9622_s27, 3  ;;  %s9625_s18 = smov [#allocation10]  }
  0x1b   : > { %s470_s19 = sshll.u32 %s9625_s18, 4  ;;  %s9626_s20 = smov [#allocation13]   ;;  %s9784_s19 = int_to_ptr.vmem [resolvable:$true] %s470_s19 }
  0x1c   : > { %p9771_p3 = pnand %p7762_p0, %p434_p2  ;;  %s494_s21 = sshll.u32 %s9626_s20, 4  ;;  %s9786_s21 = int_to_ptr.vmem [resolvable:$true] %s494_s21 }
  0x1d   : > { %s12532_s28 = sld [smem:[#allocation81_spill]] }
  0x1e   : > { %s12529_s30 = scalar_select %p9771_p3, 1, 0 }
  0x1f   : > { %p8825_p5 = pneg %p9771_p3 }
  0x20   : > { %12530 = sst [smem:[#allocation47_spill]] %s12529_s30 }
  0x21   : > { %p9780_p6 = pnand %p8825_p5, %p12390_p1 }
  0x23   : > { %s9046_s17 = scalar_lea.hbm %s12532_s28, 256  ;;  %p9796_p8 = pneg %p9780_p6 }
  0x24   : > { %p9047_p7 = scmp.ne.s32.totalorder %s12532_s28, %s9046_s17  ;;  %p9053_p11 = scmp.lt.u32.totalorder %s9046_s17, %s12532_s28 }
  0x26   : > { %p9049_p9 = pnand %p9796_p8, %p9047_p7 }
  0x28   : > { %p9050_p10 = pneg %p9049_p9 }
  0x2a   : > { %p9055_p12 = pnand %p9053_p11, %p9050_p10 }
  0x2c   : > { %9058 = shalt.err (!%p9055_p12)
}
  0x2d   : > { %s9059_s24 = scalar_lea.vmem %s9769_s29, 256  ;;  %p9067_p5 = scmp.lt.s32.totalorder %s9769_s29, %s9769_s29 }
  0x2e   : > { %p9060_p13 = scmp.ne.s32.totalorder %s9769_s29, %s9059_s24  ;;  %p9068_p4 = scmp.lt.s32.totalorder %s9059_s24, %s9059_s24 }
  0x30   : > { %p9062_p0 = pnand %p9060_p13, %p9796_p8  ;;  %p9069_p7 = por %p9068_p4, %p9067_p5 }
  0x32   : > { %p9063_p2 = pneg %p9062_p0 }
  0x34   : > { %p9070_p9 = pnand %p9069_p7, %p9063_p2 }
  0x36   : > { %9073 = shalt.err (!%p9070_p9)
}
  0x37   : > { %s9627_s30 = smov 64   ;;  %s9628_s17 = smov 4  }
  0x38   : > { %8828 = dma.hbm_to_vmem [thread:$0]  (!%p9780_p6), %s12532_s28, 256, %s9769_s29, [#allocation8], %s9627_s30, %s9627_s30, %s9628_s17  }
  0x39   : > { %s12534_s3 = sld [smem:[#allocation83_spill]] }
  0x3f   : > { %s9074_s24 = scalar_lea.hbm %s12534_s3, 896 }
  0x40   : > { %p9075_p4 = scmp.ne.s32.totalorder %s12534_s3, %s9074_s24  ;;  %p9081_p12 = scmp.lt.u32.totalorder %s9074_s24, %s12534_s3 }
  0x42   : > { %p9077_p10 = pnand %p9075_p4, %p9796_p8 }
  0x44   : > { %p9078_p11 = pneg %p9077_p10 }
  0x46   : > { %p9083_p13 = pnand %p9081_p12, %p9078_p11 }
  0x48   : > { %9086 = shalt.err (!%p9083_p13)
}
  0x49   : > { %s9087_s29 = scalar_lea.vmem %s9784_s19, 896  ;;  %p9095_p7 = scmp.lt.s32.totalorder %s9784_s19, %s9784_s19 }
  0x4a   : > { %p9088_p0 = scmp.ne.s32.totalorder %s9784_s19, %s9087_s29  ;;  %p9096_p9 = scmp.lt.s32.totalorder %s9087_s29, %s9087_s29 }
  0x4c   : > { %p9090_p2 = pnand %p9088_p0, %p9796_p8  ;;  %p9097_p4 = por %p9096_p9, %p9095_p7 }
  0x4e   : > { %p9091_p5 = pneg %p9090_p2 }
  0x50   : > { %p9098_p10 = pnand %p9097_p4, %p9091_p5 }
  0x52   : > { %9101 = shalt.err (!%p9098_p10)
}
  0x53   : > { %8834 = dma.hbm_to_vmem [thread:$0]  (!%p9780_p6), %s12534_s3, 896, %s9784_s19, [#allocation11], %s9627_s30, %s9627_s30, %s9628_s17  }
  0x54   : > { %s9102_s0 = scalar_lea.hbm %s12365_s5, 896 }
  0x55   : > { %p9103_p11 = scmp.ne.s32.totalorder %s12365_s5, %s9102_s0  ;;  %p9109_p0 = scmp.lt.u32.totalorder %s9102_s0, %s12365_s5 }
  0x57   : > { %p9105_p12 = pnand %p9103_p11, %p9796_p8 }
  0x59   : > { %p9106_p13 = pneg %p9105_p12 }
  0x5b   : > { %p9111_p2 = pnand %p9109_p0, %p9106_p13 }
  0x5d   : > { %9114 = shalt.err (!%p9111_p2)
}
  0x5e   : > { %s9115_s19 = scalar_lea.vmem %s9786_s21, 896  ;;  %p9123_p4 = scmp.lt.s32.totalorder %s9786_s21, %s9786_s21 }
  0x5f   : > { %p9116_p5 = scmp.ne.s32.totalorder %s9786_s21, %s9115_s19  ;;  %p9124_p10 = scmp.lt.s32.totalorder %s9115_s19, %s9115_s19 }
  0x61   : > { %p9118_p7 = pnand %p9116_p5, %p9796_p8  ;;  %p9125_p11 = por %p9124_p10, %p9123_p4 }
  0x63   : > { %p9119_p9 = pneg %p9118_p7 }
  0x65   : > { %p9126_p12 = pnand %p9125_p11, %p9119_p9 }
  0x67   : > { %9129 = shalt.err (!%p9126_p12)
}
  0x68   : > { %8840 = dma.hbm_to_vmem [thread:$0]  (!%p9780_p6), %s12365_s5, 896, %s9786_s21, [#allocation14], %s9627_s30, %s9627_s30, %s9628_s17  }
  0x69   : > { %s9629_s25 = smov [#allocation16]   ;;  %s9630_s27 = smov [#allocation19]  }
  0x6a   : > { %s518_s26 = sshll.u32 %s9629_s25, 4  ;;  %s542_s0 = sshll.u32 %s9630_s27, 4  ;;  %s519_s26 = int_to_ptr.vmem [resolvable:$true] %s518_s26  ;;  %s543_s0 = int_to_ptr.vmem [resolvable:$true] %s542_s0 }
  0x6b   : > { %s9130_s20 = scalar_lea.hbm %s12367_s7, 896 }
  0x6c   : > { %p9131_p13 = scmp.ne.s32.totalorder %s12367_s7, %s9130_s20  ;;  %p9137_p5 = scmp.lt.u32.totalorder %s9130_s20, %s12367_s7 }
  0x6e   : > { %p9133_p0 = pnand %p9131_p13, %p9796_p8 }
  0x70   : > { %p9134_p2 = pneg %p9133_p0 }
  0x72   : > { %p9139_p7 = pnand %p9137_p5, %p9134_p2 }
  0x74   : > { %9142 = shalt.err (!%p9139_p7)
}
  0x75   : > { %s9143_s21 = scalar_lea.vmem %s519_s26, 896  ;;  %p9151_p11 = scmp.lt.s32.totalorder %s519_s26, %s519_s26 }
  0x76   : > { %p9144_p9 = scmp.ne.s32.totalorder %s519_s26, %s9143_s21  ;;  %p9152_p12 = scmp.lt.s32.totalorder %s9143_s21, %s9143_s21 }
  0x78   : > { %p9146_p4 = pnand %p9144_p9, %p9796_p8  ;;  %p9153_p1 = por %p9152_p12, %p9151_p11 }
  0x7a   : > { %p9147_p10 = pneg %p9146_p4 }
  0x7c   : > { %p9154_p3 = pnand %p9153_p1, %p9147_p10 }
  0x7e   : > { %9157 = shalt.err (!%p9154_p3)
}
  0x7f   : > { %8846 = dma.hbm_to_vmem [thread:$0]  (!%p9780_p6), %s12367_s7, 896, %s519_s26, [#allocation17], %s9627_s30, %s9627_s30, %s9628_s17  }
  0x80   : > { %s9158_s22 = scalar_lea.hbm %s12369_s9, 896 }
  0x81   : > { %p9159_p1 = scmp.ne.s32.totalorder %s12369_s9, %s9158_s22  ;;  %p9165_p0 = scmp.lt.u32.totalorder %s9158_s22, %s12369_s9 }
  0x83   : > { %p9161_p3 = pnand %p9159_p1, %p9796_p8 }
  0x85   : > { %p9162_p13 = pneg %p9161_p3 }
  0x87   : > { %p9167_p2 = pnand %p9165_p0, %p9162_p13 }
  0x89   : > { %9170 = shalt.err (!%p9167_p2)
}
  0x8a   : > { %s9171_s29 = scalar_lea.vmem %s543_s0, 896  ;;  %p9179_p4 = scmp.lt.s32.totalorder %s543_s0, %s543_s0 }
  0x8b   : > { %p9172_p5 = scmp.ne.s32.totalorder %s543_s0, %s9171_s29  ;;  %p9180_p10 = scmp.lt.s32.totalorder %s9171_s29, %s9171_s29 }
  0x8d   : > { %p9174_p7 = pnand %p9172_p5, %p9796_p8  ;;  %p9181_p11 = por %p9180_p10, %p9179_p4 }
  0x8f   : > { %p9175_p9 = pneg %p9174_p7 }
  0x91   : > { %p9182_p12 = pnand %p9181_p11, %p9175_p9 }
  0x93   : > { %9185 = shalt.err (!%p9182_p12)
}
  0x94   : > { %8852 = dma.hbm_to_vmem [thread:$0]  (!%p9780_p6), %s12369_s9, 896, %s543_s0, [#allocation20], %s9627_s30, %s9627_s30, %s9628_s17  }
  0x95   : > { %s9631_s3 = smov [#allocation22]   ;;  %s9632_s25 = smov [#allocation25]  }
  0x96   : > { %s566_s16 = sshll.u32 %s9631_s3, 4  ;;  %s590_s27 = sshll.u32 %s9632_s25, 4  ;;  %s567_s16 = int_to_ptr.vmem [resolvable:$true] %s566_s16  ;;  %s591_s27 = int_to_ptr.vmem [resolvable:$true] %s590_s27 }
  0x97   : > { %s9186_s20 = scalar_lea.hbm %s12371_s11, 896 }
  0x98   : > { %p9187_p1 = scmp.ne.s32.totalorder %s12371_s11, %s9186_s20  ;;  %p9193_p0 = scmp.lt.u32.totalorder %s9186_s20, %s12371_s11 }
  0x9a   : > { %p9189_p3 = pnand %p9187_p1, %p9796_p8 }
  0x9c   : > { %p9190_p13 = pneg %p9189_p3 }
  0x9e   : > { %p9195_p2 = pnand %p9193_p0, %p9190_p13 }
  0xa0   : > { %9198 = shalt.err (!%p9195_p2)
}
  0xa1   : > { %s9199_s0 = scalar_lea.vmem %s567_s16, 896  ;;  %p9207_p4 = scmp.lt.s32.totalorder %s567_s16, %s567_s16 }
  0xa2   : > { %p9200_p5 = scmp.ne.s32.totalorder %s567_s16, %s9199_s0  ;;  %p9208_p10 = scmp.lt.s32.totalorder %s9199_s0, %s9199_s0 }
  0xa4   : > { %p9202_p7 = pnand %p9200_p5, %p9796_p8  ;;  %p9209_p11 = por %p9208_p10, %p9207_p4 }
  0xa6   : > { %p9203_p9 = pneg %p9202_p7 }
  0xa8   : > { %p9210_p12 = pnand %p9209_p11, %p9203_p9 }
  0xaa   : > { %9213 = shalt.err (!%p9210_p12)
}
  0xab   : > { %8858 = dma.hbm_to_vmem [thread:$0]  (!%p9780_p6), %s12371_s11, 896, %s567_s16, [#allocation23], %s9627_s30, %s9627_s30, %s9628_s17  }
  0xac   : > { %s9214_s23 = scalar_lea.hbm %s12373_s13, 896 }
  0xad   : > { %p9215_p1 = scmp.ne.s32.totalorder %s12373_s13, %s9214_s23  ;;  %p9221_p0 = scmp.lt.u32.totalorder %s9214_s23, %s12373_s13 }
  0xaf   : > { %p9217_p3 = pnand %p9215_p1, %p9796_p8 }
  0xb1   : > { %p9218_p13 = pneg %p9217_p3 }
  0xb3   : > { %p9223_p2 = pnand %p9221_p0, %p9218_p13 }
  0xb5   : > { %9226 = shalt.err (!%p9223_p2)
}
  0xb6   : > { %s9227_s26 = scalar_lea.vmem %s591_s27, 896  ;;  %p9235_p4 = scmp.lt.s32.totalorder %s591_s27, %s591_s27 }
  0xb7   : > { %p9228_p5 = scmp.ne.s32.totalorder %s591_s27, %s9227_s26  ;;  %p9236_p10 = scmp.lt.s32.totalorder %s9227_s26, %s9227_s26 }
  0xb9   : > { %p9230_p7 = pnand %p9228_p5, %p9796_p8  ;;  %p9237_p11 = por %p9236_p10, %p9235_p4 }
  0xbb   : > { %p9231_p9 = pneg %p9230_p7 }
  0xbd   : > { %p9238_p12 = pnand %p9237_p11, %p9231_p9 }
  0xbf   : > { %9241 = shalt.err (!%p9238_p12)
}
  0xc0   : > { %8864 = dma.hbm_to_vmem [thread:$0]  (!%p9780_p6), %s12373_s13, 896, %s591_s27, [#allocation26], %s9627_s30, %s9627_s30, %s9628_s17  }
  0xc1   : > { %s9633_s21 = smov [#allocation28]   ;;  %s9634_s25 = smov [#allocation9]  }
  0xc2   : > { %s614_s3 = sshll.u32 %s9633_s21, 4  ;;  %s460_s22 = sshll.u32 %s9634_s25, 4  ;;  %s615_s3 = int_to_ptr.vmem [resolvable:$true] %s614_s3  ;;  %s461_s22 = int_to_ptr.vmem [resolvable:$true] %s460_s22 }
  0xc3   : > { %s9242_s24 = scalar_lea.hbm %s12375_s15, 256 }
  0xc4   : > { %p9243_p1 = scmp.ne.s32.totalorder %s12375_s15, %s9242_s24  ;;  %p9249_p0 = scmp.lt.u32.totalorder %s9242_s24, %s12375_s15 }
  0xc6   : > { %p9245_p3 = pnand %p9243_p1, %p9796_p8 }
  0xc8   : > { %p9246_p13 = pneg %p9245_p3 }
  0xca   : > { %p9251_p2 = pnand %p9249_p0, %p9246_p13 }
  0xcc   : > { %9254 = shalt.err (!%p9251_p2)
}
  0xcd   : > { %s9255_s27 = scalar_lea.vmem %s615_s3, 256  ;;  %p9263_p4 = scmp.lt.s32.totalorder %s615_s3, %s615_s3 }
  0xce   : > { %p9256_p5 = scmp.ne.s32.totalorder %s615_s3, %s9255_s27  ;;  %p9264_p10 = scmp.lt.s32.totalorder %s9255_s27, %s9255_s27 }
  0xd0   : > { %p9258_p7 = pnand %p9256_p5, %p9796_p8  ;;  %p9265_p11 = por %p9264_p10, %p9263_p4 }
  0xd2   : > { %p9259_p9 = pneg %p9258_p7 }
  0xd4   : > { %p9266_p12 = pnand %p9265_p11, %p9259_p9 }
  0xd6   : > { %9269 = shalt.err (!%p9266_p12)
}
  0xd7   : > { %8870 = dma.hbm_to_vmem [thread:$0]  (!%p9780_p6), %s12375_s15, 256, %s615_s3, [#allocation29], %s9627_s30, %s9627_s30, %s9628_s17  }
  0xd8   : > { %s12535_s2 = sld [smem:[#allocation82_spill]] }
  0xde   : > { %s9270_s20 = scalar_lea.hbm %s12535_s2, 16 }
  0xdf   : > { %p9271_p1 = scmp.ne.s32.totalorder %s12535_s2, %s9270_s20  ;;  %p9277_p0 = scmp.lt.u32.totalorder %s9270_s20, %s12535_s2 }
  0xe1   : > { %p9273_p3 = pnand %p9271_p1, %p9796_p8 }
  0xe3   : > { %p9274_p13 = pneg %p9273_p3 }
  0xe5   : > { %p9279_p2 = pnand %p9277_p0, %p9274_p13 }
  0xe7   : > { %9282 = shalt.err (!%p9279_p2)
}
  0xe8   : > { %s9283_s16 = scalar_lea.vmem %s461_s22, 16  ;;  %s9290_s30 = scalar_lea.vmem %s461_s22, 32 }
  0xe9   : > { %p9284_p5 = scmp.ne.s32.totalorder %s461_s22, %s9283_s16  ;;  %p9291_p4 = scmp.lt.s32.totalorder %s461_s22, %s461_s22 }
  0xea   : > { %p9292_p10 = scmp.lt.s32.totalorder %s9290_s30, %s9283_s16 }
  0xeb   : > { %p9286_p7 = pnand %p9284_p5, %p9796_p8 }
  0xec   : > { %p9293_p11 = por %p9292_p10, %p9291_p4 }
  0xed   : > { %p9287_p9 = pneg %p9286_p7 }
  0xef   : > { %p9294_p12 = pnand %p9293_p11, %p9287_p9 }
  0xf1   : > { %9297 = shalt.err (!%p9294_p12)
}
  0xf2   : > { %8831 = dma.hbm_to_vmem [thread:$0]  (!%p9780_p6), %s12535_s2, 16, %s461_s22, [#allocation8]  }
  0xf3   : > { %s9635_s27 = smov [#allocation12]   ;;  %s9636_s21 = smov [#allocation15]  }
  0xf4   : > { %s484_s0 = sshll.u32 %s9635_s27, 4  ;;  %s508_s25 = sshll.u32 %s9636_s21, 4  ;;  %s485_s0 = int_to_ptr.vmem [resolvable:$true] %s484_s0  ;;  %s509_s25 = int_to_ptr.vmem [resolvable:$true] %s508_s25 }
  0xf5   : > { %s12536_s4 = sld [smem:[#allocation84_spill]] }
  0xfb   : > { %s9298_s24 = scalar_lea.hbm %s12536_s4, 16 }
  0xfc   : > { %p9299_p1 = scmp.ne.s32.totalorder %s12536_s4, %s9298_s24  ;;  %p9305_p0 = scmp.lt.u32.totalorder %s9298_s24, %s12536_s4 }
  0xfe   : > { %p9301_p3 = pnand %p9299_p1, %p9796_p8 }
 0x100   : > { %p9302_p13 = pneg %p9301_p3 }
 0x102   : > { %p9307_p2 = pnand %p9305_p0, %p9302_p13 }
 0x104   : > { %9310 = shalt.err (!%p9307_p2)
}
 0x105   : > { %s9311_s22 = scalar_lea.vmem %s485_s0, 16  ;;  %s9318_s30 = scalar_lea.vmem %s485_s0, 32 }
 0x106   : > { %p9312_p5 = scmp.ne.s32.totalorder %s485_s0, %s9311_s22  ;;  %p9319_p4 = scmp.lt.s32.totalorder %s485_s0, %s485_s0 }
 0x107   : > { %p9320_p10 = scmp.lt.s32.totalorder %s9318_s30, %s9311_s22 }
 0x108   : > { %p9314_p7 = pnand %p9312_p5, %p9796_p8 }
 0x109   : > { %p9321_p11 = por %p9320_p10, %p9319_p4 }
 0x10a   : > { %p9315_p9 = pneg %p9314_p7 }
 0x10c   : > { %p9322_p12 = pnand %p9321_p11, %p9315_p9 }
 0x10e   : > { %9325 = shalt.err (!%p9322_p12)
}
 0x10f   : > { %8837 = dma.hbm_to_vmem [thread:$0]  (!%p9780_p6), %s12536_s4, 16, %s485_s0, [#allocation11]  }
 0x110   : > { %s9326_s23 = scalar_lea.hbm %s12366_s6, 16 }
 0x111   : > { %p9327_p1 = scmp.ne.s32.totalorder %s12366_s6, %s9326_s23  ;;  %p9333_p0 = scmp.lt.u32.totalorder %s9326_s23, %s12366_s6 }
 0x113   : > { %p9329_p3 = pnand %p9327_p1, %p9796_p8 }
 0x115   : > { %p9330_p13 = pneg %p9329_p3 }
 0x117   : > { %p9335_p2 = pnand %p9333_p0, %p9330_p13 }
 0x119   : > { %9338 = shalt.err (!%p9335_p2)
}
 0x11a   : > { %s9339_s26 = scalar_lea.vmem %s509_s25, 16  ;;  %s9346_s0 = scalar_lea.vmem %s509_s25, 32 }
 0x11b   : > { %p9340_p5 = scmp.ne.s32.totalorder %s509_s25, %s9339_s26  ;;  %p9347_p4 = scmp.lt.s32.totalorder %s509_s25, %s509_s25 }
 0x11c   : > { %p9348_p10 = scmp.lt.s32.totalorder %s9346_s0, %s9339_s26 }
 0x11d   : > { %p9342_p7 = pnand %p9340_p5, %p9796_p8 }
 0x11e   : > { %p9349_p11 = por %p9348_p10, %p9347_p4 }
 0x11f   : > { %p9343_p9 = pneg %p9342_p7 }
 0x121   : > { %p9350_p12 = pnand %p9349_p11, %p9343_p9 }
 0x123   : > { %9353 = shalt.err (!%p9350_p12)
}
 0x124   : > { %8843 = dma.hbm_to_vmem [thread:$0]  (!%p9780_p6), %s12366_s6, 16, %s509_s25, [#allocation14]  }
 0x125   : > { %s9637_s30 = smov [#allocation18]   ;;  %s9638_s3 = smov [#allocation21]  }
 0x126   : > { %s532_s17 = sshll.u32 %s9637_s30, 4  ;;  %s556_s27 = sshll.u32 %s9638_s3, 4  ;;  %s533_s17 = int_to_ptr.vmem [resolvable:$true] %s532_s17  ;;  %s557_s27 = int_to_ptr.vmem [resolvable:$true] %s556_s27 }
 0x127   : > { %s9354_s20 = scalar_lea.hbm %s12368_s8, 16 }
 0x128   : > { %p9355_p1 = scmp.ne.s32.totalorder %s12368_s8, %s9354_s20  ;;  %p9361_p0 = scmp.lt.u32.totalorder %s9354_s20, %s12368_s8 }
 0x12a   : > { %p9357_p3 = pnand %p9355_p1, %p9796_p8 }
 0x12c   : > { %p9358_p13 = pneg %p9357_p3 }
 0x12e   : > { %p9363_p2 = pnand %p9361_p0, %p9358_p13 }
 0x130   : > { %9366 = shalt.err (!%p9363_p2)
}
 0x131   : > { %s9367_s25 = scalar_lea.vmem %s533_s17, 16  ;;  %s9374_s0 = scalar_lea.vmem %s533_s17, 32 }
 0x132   : > { %p9368_p5 = scmp.ne.s32.totalorder %s533_s17, %s9367_s25  ;;  %p9375_p4 = scmp.lt.s32.totalorder %s533_s17, %s533_s17 }
 0x133   : > { %p9376_p10 = scmp.lt.s32.totalorder %s9374_s0, %s9367_s25 }
 0x134   : > { %p9370_p7 = pnand %p9368_p5, %p9796_p8 }
 0x135   : > { %p9377_p11 = por %p9376_p10, %p9375_p4 }
 0x136   : > { %p9371_p9 = pneg %p9370_p7 }
 0x138   : > { %p9378_p12 = pnand %p9377_p11, %p9371_p9 }
 0x13a   : > { %9381 = shalt.err (!%p9378_p12)
}
 0x13b   : > { %8849 = dma.hbm_to_vmem [thread:$0]  (!%p9780_p6), %s12368_s8, 16, %s533_s17, [#allocation17]  }
 0x13c   : > { %s9382_s21 = scalar_lea.hbm %s12370_s10, 16 }
 0x13d   : > { %p9383_p1 = scmp.ne.s32.totalorder %s12370_s10, %s9382_s21  ;;  %p9389_p0 = scmp.lt.u32.totalorder %s9382_s21, %s12370_s10 }
 0x13f   : > { %p9385_p3 = pnand %p9383_p1, %p9796_p8 }
 0x141   : > { %p9386_p13 = pneg %p9385_p3 }
 0x143   : > { %p9391_p2 = pnand %p9389_p0, %p9386_p13 }
 0x145   : > { %9394 = shalt.err (!%p9391_p2)
}
 0x146   : > { %s9395_s29 = scalar_lea.vmem %s557_s27, 16  ;;  %s9402_s17 = scalar_lea.vmem %s557_s27, 32 }
 0x147   : > { %p9396_p5 = scmp.ne.s32.totalorder %s557_s27, %s9395_s29  ;;  %p9403_p4 = scmp.lt.s32.totalorder %s557_s27, %s557_s27 }
 0x148   : > { %p9404_p10 = scmp.lt.s32.totalorder %s9402_s17, %s9395_s29 }
 0x149   : > { %p9398_p7 = pnand %p9396_p5, %p9796_p8 }
 0x14a   : > { %p9405_p11 = por %p9404_p10, %p9403_p4 }
 0x14b   : > { %p9399_p9 = pneg %p9398_p7 }
 0x14d   : > { %p9406_p12 = pnand %p9405_p11, %p9399_p9 }
 0x14f   : > { %9409 = shalt.err (!%p9406_p12)
}
 0x150   : > { %8855 = dma.hbm_to_vmem [thread:$0]  (!%p9780_p6), %s12370_s10, 16, %s557_s27, [#allocation20]  }
 0x151   : > { %s9639_s0 = smov [#allocation24]   ;;  %s9640_s22 = smov [#allocation27]  }
 0x152   : > { %s580_s16 = sshll.u32 %s9639_s0, 4  ;;  %s604_s30 = sshll.u32 %s9640_s22, 4  ;;  %s581_s16 = int_to_ptr.vmem [resolvable:$true] %s580_s16  ;;  %s605_s30 = int_to_ptr.vmem [resolvable:$true] %s604_s30 }
 0x153   : > { %s9410_s23 = scalar_lea.hbm %s12372_s12, 16 }
 0x154   : > { %p9411_p1 = scmp.ne.s32.totalorder %s12372_s12, %s9410_s23  ;;  %p9417_p0 = scmp.lt.u32.totalorder %s9410_s23, %s12372_s12 }
 0x156   : > { %p9413_p3 = pnand %p9411_p1, %p9796_p8 }
 0x158   : > { %p9414_p13 = pneg %p9413_p3 }
 0x15a   : > { %p9419_p2 = pnand %p9417_p0, %p9414_p13 }
 0x15c   : > { %9422 = shalt.err (!%p9419_p2)
}
 0x15d   : > { %s9423_s27 = scalar_lea.vmem %s581_s16, 16  ;;  %s9430_s17 = scalar_lea.vmem %s581_s16, 32 }
 0x15e   : > { %p9424_p5 = scmp.ne.s32.totalorder %s581_s16, %s9423_s27  ;;  %p9431_p4 = scmp.lt.s32.totalorder %s581_s16, %s581_s16 }
 0x15f   : > { %p9432_p10 = scmp.lt.s32.totalorder %s9430_s17, %s9423_s27 }
 0x160   : > { %p9426_p7 = pnand %p9424_p5, %p9796_p8 }
 0x161   : > { %p9433_p11 = por %p9432_p10, %p9431_p4 }
 0x162   : > { %p9427_p9 = pneg %p9426_p7 }
 0x164   : > { %p9434_p12 = pnand %p9433_p11, %p9427_p9 }
 0x166   : > { %9437 = shalt.err (!%p9434_p12)
}
 0x167   : > { %8861 = dma.hbm_to_vmem [thread:$0]  (!%p9780_p6), %s12372_s12, 16, %s581_s16, [#allocation23]  }
 0x168   : > { %s9438_s3 = scalar_lea.hbm %s12374_s14, 16 }
 0x169   : > { %p9439_p1 = scmp.ne.s32.totalorder %s12374_s14, %s9438_s3  ;;  %p9445_p0 = scmp.lt.u32.totalorder %s9438_s3, %s12374_s14 }
 0x16b   : > { %p9441_p3 = pnand %p9439_p1, %p9796_p8 }
 0x16d   : > { %p9442_p13 = pneg %p9441_p3 }
 0x16f   : > { %p9447_p2 = pnand %p9445_p0, %p9442_p13 }
 0x171   : > { %9450 = shalt.err (!%p9447_p2)
}
 0x172   : > { %s9451_s19 = scalar_lea.vmem %s605_s30, 16  ;;  %s9458_s16 = scalar_lea.vmem %s605_s30, 32 }
 0x173   : > { %p9452_p5 = scmp.ne.s32.totalorder %s605_s30, %s9451_s19  ;;  %p9459_p4 = scmp.lt.s32.totalorder %s605_s30, %s605_s30 }
 0x174   : > { %p9460_p10 = scmp.lt.s32.totalorder %s9458_s16, %s9451_s19 }
 0x175   : > { %p9454_p7 = pnand %p9452_p5, %p9796_p8 }
 0x176   : > { %p9461_p11 = por %p9460_p10, %p9459_p4 }
 0x177   : > { %p9455_p9 = pneg %p9454_p7 }
 0x179   : > { %p9462_p12 = pnand %p9461_p11, %p9455_p9 }
 0x17b   : > { %9465 = shalt.err (!%p9462_p12)
}
 0x17c   : > { %8867 = dma.hbm_to_vmem [thread:$0]  (!%p9780_p6), %s12374_s14, 16, %s605_s30, [#allocation26]  }
 0x17d   : > { %s9641_s17 = smov [#allocation30]   ;;  %s12537_s22 = sld [smem:[#allocation85_spill]] }
 0x17e   : > { %s628_s26 = sshll.u32 %s9641_s17, 4  ;;  %s629_s26 = int_to_ptr.vmem [resolvable:$true] %s628_s26 }
 0x183   : > { %s9466_s3 = scalar_lea.hbm %s12537_s22, 16 }
 0x184   : > { %p9467_p1 = scmp.ne.s32.totalorder %s12537_s22, %s9466_s3  ;;  %p9473_p0 = scmp.lt.u32.totalorder %s9466_s3, %s12537_s22 }
 0x186   : > { %p9469_p3 = pnand %p9467_p1, %p9796_p8 }
 0x188   : > { %p9470_p13 = pneg %p9469_p3 }
 0x18a   : > { %p9475_p2 = pnand %p9473_p0, %p9470_p13 }
 0x18c   : > { %9478 = shalt.err (!%p9475_p2)
}
 0x18d   : > { %s9479_s30 = scalar_lea.vmem %s629_s26, 16  ;;  %s9486_s19 = scalar_lea.vmem %s629_s26, 32 }
 0x18e   : > { %p9480_p5 = scmp.ne.s32.totalorder %s629_s26, %s9479_s30  ;;  %p9487_p4 = scmp.lt.s32.totalorder %s629_s26, %s629_s26 }
 0x18f   : > { %p9488_p10 = scmp.lt.s32.totalorder %s9486_s19, %s9479_s30 }
 0x190   : > { %p9482_p7 = pnand %p9480_p5, %p9796_p8 }
 0x191   : > { %p9489_p11 = por %p9488_p10, %p9487_p4 }
 0x192   : > { %p9483_p9 = pneg %p9482_p7 }
 0x194   : > { %p9490_p12 = pnand %p9489_p11, %p9483_p9 }
 0x196   : > { %9493 = shalt.err (!%p9490_p12)
}
 0x197   : > { %s12538_s27 = sld [smem:[#allocation45_spill]]  ;;  %s12539_s17 = sld [smem:[#allocation44_spill]] }
 0x198   : > { %s12540_s25 = sld [smem:[#allocation43_spill]]  ;;  %s12541_s18 = sld [smem:[#allocation42_spill]] }
 0x199   : > { %s12542_s0 = sld [smem:[#allocation46_spill]] }
 0x19a   : > { %8873 = dma.hbm_to_vmem [thread:$0]  (!%p9780_p6), %s12537_s22, 16, %s629_s26, [#allocation29]  }
 0x19d   : > { %s7761_s3 = sadd.s32 4294967294, %s12538_s27   ;;  %s10123_s1 = sadd.s32 1, %s12538_s27  }
 0x19e   : > { %s45_s21 = ssub.s32 %s12538_s27, %s10123_s1  ;;  %s48_s23 = sadd.s32 1, %s12539_s17 }
 0x19f   : > { %p46_p8 = scmp.eq.s32.totalorder %s45_s21, 0  ;;  %p55_p1 = scmp.ne.s32.totalorder %s12539_s17, %s12540_s25 }
 0x1a0   : > { %p56_p3 = scmp.eq.s32.totalorder %s12538_s27, 0  ;;  %p61_p13 = scmp.ne.s32.totalorder %s12540_s25, %s12541_s18 }
 0x1a1   : > { %s10134_s20 = scalar_select %p46_p8, %s12539_s17, %s48_s23  }
 0x1a2   : > { %p10136_p0 = por %p56_p3, %p55_p1  ;;  %p12544_p2 = scmp.eq.s32.totalorder %s12542_s0, 0 }
 0x1a3   : > { %p421_p5 = scmp.eq.s32.totalorder %s12542_s0, 1  ;;  %p427_p7 = scmp.eq.s32.totalorder %s7761_s3, 1 }
 0x1a4   : > { %p10142_p6 = por %p12544_p2, %p61_p13  ;;  %p8898_p9 = scmp.lt.s32.totalorder %s12538_s27, 2 }
 0x1a5   : > { %s639_s30 = sand.u32 1, %s12539_s17   ;;  %p10149_p4 = por %p421_p5, %p55_p1 }
 0x1a6   : > { %p10153_p10 = por %p427_p7, %p61_p13  ;;  %s7780_s29 = sshll.u32 %s639_s30, 6 }
 0x1a7   : > { %s12546_s19 = scalar_select %p10149_p4, 1, 0 }
 0x1a8   : > { %s12547_s16 = scalar_select %p10153_p10, 1, 0 }
 0x1a9   : > { %s8057_s25 = sshll.u32 %s12538_s27, 10  ;;  %s12548_s23 = sld [smem:[#allocation80_spill]] }
 0x1aa   : > { %s643_s17 = scalar_lea.vmem [#allocation4], %s7780_s29  ;;  %p10167_p11 = pnand %p8898_p9, %p10136_p0 }
 0x1ab   : > { %s650_s0 = sshll.u32 %s643_s17, 4  ;;  %s10171_s27 = scalar_lea.sflag [#allocation5], %s639_s30  ;;  %s10163_s0 = int_to_ptr.vmem [resolvable:$true] %s650_s0 }
 0x1ac   : > { %p9496_p8 = pneg %p10167_p11 }
 0x1af   : > { %s10161_s2 = scalar_lea.hbm %s12548_s23, %s8057_s25  ;;  %s9499_s24 = scalar_lea.hbm %s12548_s23, 2048 }
 0x1b0   : > { %s9494_s18 = scalar_lea.hbm %s10161_s2, 1024  ;;  %p9500_p13 = scmp.lt.u32.totalorder %s10161_s2, %s12548_s23 }
 0x1b1   : > { %p9495_p12 = scmp.ne.s32.totalorder %s10161_s2, %s9494_s18  ;;  %p9501_p0 = scmp.lt.u32.totalorder %s9499_s24, %s9494_s18 }
 0x1b2   : > { %p9503_p5 = scmp.lt.u32.totalorder %s9494_s18, %s10161_s2 }
 0x1b3   : > { %p9497_p1 = pnand %p9496_p8, %p9495_p12  ;;  %p9502_p2 = por %p9501_p0, %p9500_p13 }
 0x1b5   : > { %p9498_p3 = pneg %p9497_p1  ;;  %p9504_p7 = por %p9503_p5, %p9502_p2 }
 0x1b7   : > { %p9505_p9 = pnand %p9504_p7, %p9498_p3 }
 0x1b9   : > { %9508 = shalt.err (!%p9505_p9)
}
 0x1ba   : > { %s9509_s30 = scalar_lea.vmem %s10163_s0, 1024  ;;  %s9642_s29 = smov [#allocation4]  }
 0x1bb   : > { %p9510_p12 = scmp.ne.s32.totalorder %s10163_s0, %s9509_s30  ;;  %s9514_s25 = sshll.u32 %s9642_s29, 4  ;;  %s9515_s25 = int_to_ptr.vmem [resolvable:$false] %s9514_s25 }
 0x1bc   : > { %s9516_s21 = scalar_lea.vmem %s9515_s25, 2048  ;;  %p9517_p4 = scmp.lt.s32.totalorder %s10163_s0, %s9515_s25 }
 0x1bd   : > { %p9512_p1 = pnand %p9510_p12, %p9496_p8  ;;  %p9518_p13 = scmp.lt.s32.totalorder %s9516_s21, %s9509_s30 }
 0x1bf   : > { %p9513_p10 = pneg %p9512_p1  ;;  %p9519_p0 = por %p9518_p13, %p9517_p4 }
 0x1c1   : > { %p9520_p2 = pnand %p9519_p0, %p9513_p10 }
 0x1c3   : > { %9523 = shalt.err (!%p9520_p2)
}
 0x1c4   : > { %s9643_s18 = smov 128   ;;  %s9644_s24 = smov 8  }
 0x1c5   : > { %8877 = dma.hbm_to_vmem [thread:$0]  (!%p10167_p11), %s10161_s2, 1024, %s10163_s0, %s10171_s27, %s9643_s18, %s9643_s18, %s9644_s24  }
 0x1c6   : > { %s12550_s17 = sld [smem:[#allocation47_spill]] }
 0x1cc   : > { %p12551_p8 = scmp.ne.s32.totalorder %s12550_s17, 0 }
 0x1ce   : > { %662 = sbr.rel (%p12551_p8) target bundleno = 2554 (0x9fa), region = 88 }
 0x1d5   : > { %s12552_s4 = sld [smem:[#allocation43_spill]] }
 0x1db   : > { %s10202_s29 = sand.u32 1, %s12552_s4  }
 0x1dc   : > { %s7784_s30 = sshll.u32 %s10202_s29, 6  ;;  %s665_s25 = scalar_lea.sflag [#allocation5], %s10202_s29 }
 0x1dd   : > { %s10206_s21 = scalar_lea.vmem [#allocation4], %s7784_s30 }
 0x1de   : > { %9569 = dma.done.wait (%p10142_p6), %s665_s25, 1024  }
 0x1df   : > { %9571 = vsyncadd (%p10142_p6), %s665_s25, 4294966272  ;;  %s12553_s3 = sld [smem:[#allocation46_spill]] }
 0x1e5   : > { %p12554_p4 = scmp.eq.s32.totalorder %s12553_s3, 0 }
 0x1e7   : > { %9573 = dma.done.wait (%p12554_p4), [#allocation8], 272   ;;  %p12555_p10 = pmov %p12554_p4 }
 0x1e8   : > { %p12556_p11 = pmov %p12554_p4 }
 0x1e9   : > { %9575 = vsyncadd (%p12555_p10), [#allocation8], 4294967024 }
 0x1ea   : > { %9577 = dma.done.wait (%p12556_p11), [#allocation11], 912   ;;  %p12557_p3 = pmov %p12554_p4 }
 0x1ec   : > { %9579 = vsyncadd (%p12557_p3), [#allocation11], 4294966384  ;;  %p12558_p5 = pmov %p12557_p3 }
 0x1ed   : > { %p12559_p7 = pmov %p12557_p3 }
 0x1ee   : > { %9581 = dma.done.wait (%p12558_p5), [#allocation14], 912  }
 0x1ef   : > { %9583 = vsyncadd (%p12559_p7), [#allocation14], 4294966384  ;;  %p12560_p6 = pmov %p12557_p3 }
 0x1f0   : > { %p12561_p9 = pmov %p12557_p3 }
 0x1f1   : > { %9585 = dma.done.wait (%p12560_p6), [#allocation17], 912  }
 0x1f2   : > { %9587 = vsyncadd (%p12561_p9), [#allocation17], 4294966384  ;;  %p12562_p12 = pmov %p12557_p3 }
 0x1f3   : > { %p12563_p1 = pmov %p12557_p3 }
 0x1f4   : > { %9589 = dma.done.wait (%p12562_p12), [#allocation20], 912  }
 0x1f5   : > { %9591 = vsyncadd (%p12563_p1), [#allocation20], 4294966384  ;;  %p12564_p13 = pmov %p12563_p1 }
 0x1f6   : > { %p12565_p0 = pmov %p12563_p1 }
 0x1f7   : > { %9593 = dma.done.wait (%p12564_p13), [#allocation23], 912  }
 0x1f8   : > { %9595 = vsyncadd (%p12565_p0), [#allocation23], 4294966384  ;;  %p12566_p2 = pmov %p12565_p0 }
 0x1f9   : > { %p12567_p8 = pmov %p12565_p0 }
 0x1fa   : > { %9597 = dma.done.wait (%p12566_p2), [#allocation26], 912  }
 0x1fb   : > { %9599 = vsyncadd (%p12567_p8), [#allocation26], 4294966384  ;;  %p12568_p4 = pmov %p12565_p0 }
 0x1fc   : > { %p12569_p10 = pmov %p12565_p0 }
 0x1fd   : > { %9601 = dma.done.wait (%p12568_p4), [#allocation29], 272  }
 0x1fe   : > { %9603 = vsyncadd (%p12569_p10), [#allocation29], 4294967024  ;;  %v784_v0 = vlaneseq  ;;  %v9000_v3 = vld [vmem:[#allocation7] sm:$0xff]   ;;  %v9001_v5 = vld [vmem:[#allocation7 + $0x8] sm:$0xff]   ;;  %vm12400_vm0 = vcmask 261120   ;;  %s7801_s2 = sshll.u32 %s10202_s29, 5 }
 0x1ff   : > { %8313 = vmatprep.subr.bf16.mxu0 %v9000_v3  ;;  %v1270_v6 = vld [vmem:[%s10206_s21] sm:$0xff]  ;;  %v1271_v7 = vld [vmem:[%s10206_s21 + $0x8] sm:$0xff]  ;;  %v1272_v8 = vld [vmem:[%s10206_s21 + $0x10] sm:$0xff]  ;;  %vm1423_vm3 = vcmask 257024   ;;  %s9645_s4 = smov 96   ;;  %s10307_s26 = scalar_lea.vmem [#allocation31], %s7801_s2 }
 0x200   : > { %v10244_v1 = vshrl.u32 %v784_v0, 7  ;;  %8314 = vmatpush3.bf16.msra.mxu0 %v9000_v3  ;;  %v1273_v9 = vld [vmem:[%s10206_s21 + $0x18] sm:$0xff]  ;;  %v1278_v10 = vpack.c.bf16 %v1271_v7, %v1270_v6  ;;  %v10253_v11 = vadd.f32 %v1271_v7, %v1270_v6  ;;  %v7267_v12 = vadd.f32 %v1272_v8, %v1271_v7  ;;  %v1274_v13 = vld [vmem:[%s10206_s21 + $0x20] sm:$0xff]  ;;  %v1275_v16 = vld [vmem:[%s10206_s21 + $0x28] sm:$0xff]  ;;  %s9646_s0 = smov 80   ;;  %s9649_s27 = smov 32  }
 0x201   : > { %8315 = vmatprep.subr.bf16.mxu0 %v9001_v5  ;;  %v7268_v15 = vadd.f32 %v1273_v9, %v1272_v8  ;;  %v7269_v17 = vadd.f32 %v1274_v13, %v1273_v9  ;;  %v1276_v20 = vld [vmem:[%s10206_s21 + $0x30] sm:$0xff]  ;;  %v1279_v21 = vpack.c.bf16 %v1273_v9, %v1272_v8  ;;  %v7270_v22 = vadd.f32 %v1275_v16, %v1274_v13  ;;  %v1277_v28 = vld [vmem:[%s10206_s21 + $0x38] sm:$0xff]  ;;  %v9003_v60 = vld [vmem:[#allocation10 + $0x10] sm:$0xff]   ;;  %s9650_s18 = smov 64   ;;  %s8090_s24 = sshll.u32 %s12553_s3, 9 }
 0x202   : > { %v787_v2 = vadd.s32 16, %v10244_v1  ;;  %12570 = vst [vmem:[#allocation48_spill] sm:$0xff] %v10253_v11  ;;  %8317 = vmatprep.mubr.msk.bf16.mxu0 %vm12400_vm0, %v1278_v10  ;;  %v10262_v18 = vadd.f32 %v10253_v11, %v1272_v8  ;;  %v10264_v19 = vadd.f32 %v7267_v12, %v1273_v9  ;;  %v1280_v27 = vpack.c.bf16 %v1275_v16, %v1274_v13  ;;  %v7802_v37 = vld [vmem:[#allocation9] ss:$0 sm:$0xff]  ;;  %v9002_v59 = vld [vmem:[#allocation10] sm:$0xff]   ;;  %v10321_v10 = vld [vmem:[#allocation10 + $0x8] sm:$0xff]  }
 0x203   : > { %v10267_v23 = vadd.f32 %v7268_v15, %v1274_v13  ;;  %v10269_v24 = vadd.f32 %v7269_v17, %v1275_v16  ;;  %v7271_v29 = vadd.f32 %v1276_v20, %v1275_v16  ;;  %vm1766_vm2 = vcmp.lt.s32.totalorder %v10244_v1, 1  ;;  %8325 = vmatprep.subr.bf16.mxu1 %v9002_v59  ;;  %s7536_s17 = sshll.u32 %s10307_s26, 4  ;;  %s12986_s21 = sld [smem:[#allocation86_spill]]  ;;  %s12312_s17 = int_to_ptr.vmem [resolvable:$true] %s7536_s17 }
 0x204   : > { %v10247_v4 = vand.u32 7, %v787_v2  ;;  %12571 = vst [vmem:[#allocation49_spill] sm:$0xff] %v10262_v18  ;;  %12572 = vst [vmem:[#allocation50_spill] sm:$0xff] %v10264_v19  ;;  %8316 = vmatpush3.bf16.msra.mxu0 %v9001_v5  ;;  %v12394_v25 = vrot.slane %v10262_v18, 7  ;;  %v12393_v26 = vrot.slane %v10264_v19, 7  ;;  %v10276_v30 = vadd.f32 %v1277_v28, %v1276_v20  ;;  %8326 = vmatpush3.bf16.msra.mxu1 %v9002_v59  ;;  %p12987_p3 = scmp.ne.s32.totalorder %s12546_s19, 0 }
 0x205   : > { %12573 = vst [vmem:[#allocation51_spill] sm:$0xff] %v10267_v23  ;;  %12574 = vst [vmem:[#allocation52_spill] sm:$0xff] %v10269_v24  ;;  %v10284_v32 = vadd.f32 %v7270_v22, %v1276_v20  ;;  %v10286_v33 = vadd.f32 %v7271_v29, %v1277_v28  ;;  %v1281_v36 = vpack.c.bf16 %v1277_v28, %v1276_v20  ;;  %8345 = vmatprep.subr.bf16.mxu0 %v9003_v60  ;;  %v10339_v28 = vld [vmem:[#allocation10 + $0x20] sm:$0xff]   ;;  %vm1517_vm11 = vcmask 130048  }
 0x206   : > { %v10257_v14 = vadd.s32 4294967295, %v10247_v4  ;;  %12575 = vst [vmem:[#allocation53_spill] sm:$0xff] %v10276_v30  ;;  %v7302_v31 = vsel %vm1766_vm2, %v12394_v25, %v12393_v26  ;;  %8335 = vmatprep.subr.bf16.mxu1 %v10321_v10  ;;  %v786_v29 = vadd.s32 8, %v10244_v1  ;;  %vm12432_vm4 = vcmp.lt.s32.totalorder %v10244_v1, 3 }
 0x207   : > { %12576 = vst [vmem:[#allocation54_spill] sm:$0xff] %v10284_v32  ;;  %12577 = vst [vmem:[#allocation55_spill] sm:$0xff] %v10286_v33  ;;  %8318 = vmatmul.mubr.msk.bf16.vlgmr.msra.gmra.mrb[0].mxu0 %vm12400_vm0, %v1279_v21  ;;  %vm12498_vm15 = vcmp.lt.s32.totalorder %v10244_v1, 7 }
 0x208   : > { %vm12429_vm1 = vcmp.ge.s32.totalorder %v10257_v14, 0  ;;  %8321 = vmatprep.mubr.msk.bf16.mxu0 %vm12400_vm0, %v1280_v27  ;;  %8346 = vmatpush3.bf16.msra.mxu0 %v9003_v60 }
 0x209   : > { %v7307_v34 = vsel %vm12429_vm1, %v7302_v31, 0.0  ;;  %8365 = vmatprep.subr.bf16.mxu0 %v10339_v28  ;;  %v788_v31 = vadd.s32 24, %v10244_v1  ;;  %s12308_s2 = scalar_lea.hbm %s12986_s21, %s8090_s24 }
 0x20a   : > { %v10292_v35 = vadd.f32 %v7307_v34, %v10264_v19  ;;  %v789_v34 = vadd.s32 32, %v10244_v1 }
 0x20c   : > { %12578 = vst [vmem:[#allocation56_spill] sm:$0xff] %v10292_v35 }
 0x20f   : > { %8322 = vmatmul.mubr.msk.bf16.gmra.mrb[4].mxu0 %vm12400_vm0, %v1281_v36  ;;  %v790_v36 = vadd.s32 40, %v10244_v1 }
 0x2da   : > { %v8319_v38 = vpop.f32.mrb[0].mxu0 }
 0x2db   : > { %v1361_v39 = vadd.f32 %v8319_v38, %v7802_v37  ;;  %v1352_v40 = vpop.f32.mrb[1].mxu0  ;;  %v791_v38 = vadd.s32 48, %v10244_v1 }
 0x2dc   : > { %v1353_v41 = vadd.f32 %v7802_v37, %v1352_v40  ;;  %v8320_v42 = vpop.f32.mrb[2].mxu0  ;;  %v10353_v40 = vand.u32 7, %v789_v34 }
 0x2dd   : > { %v10297_v43 = vmax.f32 %v1361_v39, 0.0  ;;  %v1364_v44 = vadd.f32 %v8320_v42, %v7802_v37  ;;  %v1355_v45 = vpop.f32.mrb[3].mxu0  ;;  %v10351_v39 = vand.u32 7, %v788_v31  ;;  %v10358_v42 = vand.u32 7, %v10244_v1 }
 0x2de   : > { %v10299_v46 = vmax.f32 %v1353_v41, 0.0  ;;  %v1356_v47 = vadd.f32 %v7802_v37, %v1355_v45  ;;  %12580 = vst [vmem:[#allocation58_spill] sm:$0xff] %v10353_v40  ;;  %v10355_v41 = vand.u32 7, %v790_v36  ;;  %v792_v45 = vadd.s32 56, %v10244_v1 }
 0x2df   : > { %v8060_v48 = vpack.c.bf16 %v10297_v43, %v10297_v43  ;;  %v1386_v49 = vmax.f32 %v1364_v44, 0.0  ;;  %12579 = vst [vmem:[#allocation57_spill] sm:$0xff] %v10351_v39  ;;  %12582 = vst [vmem:[#allocation60_spill] sm:$0xff] %v10358_v42  ;;  %v10471_v36 = vadd.s32 3, %v10358_v42 }
 0x2e0   : > { %v8058_v50 = vpack.c.bf16 %v10299_v46, %v10299_v46  ;;  %v1384_v51 = vmax.f32 %v1356_v47, 0.0  ;;  %12581 = vst [vmem:[#allocation59_spill] sm:$0xff] %v10355_v41  ;;  %v10370_v47 = vadd.s32 4294967293, %v10358_v42  ;;  %v10403_v59 = vadd.s32 4294967295, %v10355_v41 }
 0x2e1   : > { %v8061_v52 = vpack.c.bf16 %v1386_v49, %v1386_v49  ;;  %1446 = vrot.lane.b32.xlu1 %v1386_v49, %s9645_s4  ;;  %v1392_v53 = vpack.c.bf16 %v1386_v49, %v10297_v43  ;;  %1426 = vst.msk [vmem:[%s10307_s26 + $0x8] sm:$0xf] %vm1423_vm3, %v8060_v48  ;;  %v10374_v48 = vadd.s32 4294967295, %v10358_v42  ;;  %12593 = vst [vmem:[#allocation71_spill] sm:$0xff] %v10471_v36 }
 0x2e2   : > { %v8059_v54 = vpack.c.bf16 %v1384_v51, %v1384_v51  ;;  %v8323_v55 = vpop.f32.mrb[4].mxu0  ;;  %v8975_v56 = vpack.i.bf16 %v1384_v51, %v10299_v46  ;;  %v1391_v57 = vpack.c.bf16 %v1384_v51, %v10299_v46  ;;  %v8990_v58 = vpack.i.bf16 %v10297_v43, %v1384_v51  ;;  %1424 = vst.msk [vmem:[%s10307_s26] sm:$0xf] %vm1423_vm3, %v8058_v50 }
 0x2e3   : > { %v1377_v61 = vadd.f32 %v8323_v55, %v7802_v37  ;;  %v1368_v62 = vpop.f32.mrb[5].mxu0  ;;  %1427 = vst.msk [vmem:[%s10307_s26 + $0xc] sm:$0xf] %vm1423_vm3, %v8061_v52  ;;  %12586 = vst [vmem:[#allocation64_spill] sm:$0xff] %v10370_v47  ;;  %v10380_v51 = vadd.s32 4294967293, %v10351_v39  ;;  %v10383_v52 = vadd.s32 4294967295, %v10351_v39 }
 0x2e4   : > { %v1369_v63 = vadd.f32 %v7802_v37, %v1368_v62  ;;  %v8324_v0 = vpop.f32.mrb[6].mxu0  ;;  %8976 = vrot.lane.b32.xlu0 %v8975_v56, %s9645_s4  ;;  %1425 = vst.msk [vmem:[%s10307_s26 + $0x4] sm:$0xf] %vm1423_vm3, %v8059_v54  ;;  %v10389_v54 = vadd.s32 4294967293, %v10355_v41  ;;  %vm12423_vm7 = vcmp.ge.s32.totalorder %v10370_v47, 0  ;;  %vm12426_vm8 = vcmp.ge.s32.totalorder %v10374_v48, 0 }
 0x2e5   : > { %v1389_v2 = vmax.f32 %v1377_v61, 0.0  ;;  %v1380_v3 = vadd.f32 %v8324_v0, %v7802_v37  ;;  %v1371_v5 = vpop.f32.mrb[7].mxu0  ;;  %v10409_v61 = vadd.s32 4294967294, %v10358_v42  ;;  %vm12428_vm10 = vcmp.ge.s32.totalorder %v10380_v51, 0 }
 0x2e6   : > { %v1387_v6 = vmax.f32 %v1369_v63, 0.0  ;;  %v1372_v7 = vadd.f32 %v7802_v37, %v1371_v5  ;;  %v10348_v37 = vand.u32 7, %v786_v29  ;;  %vm12430_vm12 = vcmp.ge.s32.totalorder %v10383_v52, 0 }
 0x2e7   : > { %v8064_v8 = vpack.c.bf16 %v1389_v2, %v1389_v2  ;;  %v1390_v9 = vmax.f32 %v1380_v3, 0.0  ;;  %v10425_v3 = vadd.s32 1, %v10358_v42  ;;  %v10462_v29 = vadd.s32 1, %v10355_v41 }
 0x2e8   : > { %v8062_v12 = vpack.c.bf16 %v1387_v6, %v1387_v6  ;;  %v1388_v13 = vmax.f32 %v1372_v7, 0.0  ;;  %v8995_v15 = vpack.i.bf16 %v1387_v6, %v1386_v49  ;;  %v10364_v44 = vadd.s32 4294967295, %v10348_v37 }
 0x2e9   : > { %v8065_v16 = vpack.c.bf16 %v1390_v9, %v1390_v9  ;;  %v8980_v17 = vpack.i.bf16 %v10297_v43, %v1390_v9  ;;  %v1394_v20 = vpack.c.bf16 %v1390_v9, %v1389_v2  ;;  %1430 = vst.msk [vmem:[%s10307_s26 + $0x18] sm:$0xf] %vm1423_vm3, %v8064_v8  ;;  %v10361_v43 = vadd.s32 4294967293, %v10348_v37  ;;  %12591 = vst [vmem:[#allocation69_spill] sm:$0xff] %v10462_v29 }
 0x2ea   : > { %v8063_v21 = vpack.c.bf16 %v1388_v13, %v1388_v13  ;;  %v8985_v22 = vpack.i.bf16 %v1388_v13, %v1387_v6  ;;  %v1393_v27 = vpack.c.bf16 %v1388_v13, %v1387_v6  ;;  %1428 = vst.msk [vmem:[%s10307_s26 + $0x10] sm:$0xf] %vm1423_vm3, %v8062_v12  ;;  %12584 = vst [vmem:[#allocation62_spill] sm:$0xff] %v10364_v44  ;;  %v10377_v49 = vadd.s32 4294967293, %v10247_v4 }
 0x2eb   : > { %8981 = vrot.lane.b32.xlu0 %v8980_v17, %s9645_s4  ;;  %1431 = vst.msk [vmem:[%s10307_s26 + $0x1c] sm:$0xf] %vm1423_vm3, %v8065_v16  ;;  %12583 = vst [vmem:[#allocation61_spill] sm:$0xff] %v10361_v43  ;;  %vm12427_vm5 = vcmp.ge.s32.totalorder %v10361_v43, 0  ;;  %vm12422_vm6 = vcmp.ge.s32.totalorder %v10364_v44, 0  ;;  %v10412_v62 = vadd.s32 4294967294, %v10348_v37 }
 0x2ec   : > { %8986 = vrot.lane.b32.xlu1 %v8985_v22, %s9645_s4  ;;  %1429 = vst.msk [vmem:[%s10307_s26 + $0x14] sm:$0xf] %vm1423_vm3, %v8063_v21  ;;  %vm12431_vm9 = vcmp.ge.s32.totalorder %v10377_v49, 0  ;;  %v10431_v5 = vadd.s32 1, %v10348_v37  ;;  %v10434_v6 = vadd.s32 4294967294, %v10247_v4  ;;  %v10437_v7 = vadd.s32 4294967294, %v10351_v39 }
 0x2ed   : > { %12588 = vst [vmem:[#allocation66_spill] sm:$0xff] %v10412_v62  ;;  %v10440_v8 = vadd.s32 1, %v10247_v4  ;;  %v10450_v17 = vadd.s32 1, %v10351_v39  ;;  %v10456_v21 = vadd.s32 4294967294, %v10355_v41  ;;  %v10459_v22 = vadd.s32 1, %v10353_v40 }
 0x2ee   : > { %vm1611_vm3 = vcmp.lt.s32.totalorder %v10244_v1, 2 }
 0x2ef   : > { %1452 = vrot.lane.b32.xlu0 %v1389_v2, %s9645_s4  ;;  %12589 = vst [vmem:[#allocation67_spill] sm:$0xff] %v10440_v8  ;;  %12590 = vst [vmem:[#allocation68_spill] sm:$0xff] %v10450_v17 }
 0x2f0   : > { %1916 = vrot.lane.b32.xlu1 %v1391_v57, %s9645_s4 }
 0x2f3   : > { %1918 = vrot.lane.b32.xlu0 %v1392_v53, %s9645_s4 }
 0x2f4   : > { %1920 = vrot.lane.b32.xlu1 %v1393_v27, %s9645_s4 }
 0x2f7   : > { %1922 = vrot.lane.b32.xlu0 %v1394_v20, %s9645_s4 }
 0x2f8   : > { %3540 = vrot.lane.b32.xlu1 %v10299_v46, %s9646_s0  ;;  %v10367_v46 = vand.u32 7, %v791_v38 }
 0x2fa   : > { %12585 = vst [vmem:[#allocation63_spill] sm:$0xff] %v10367_v46  ;;  %v10406_v60 = vadd.s32 4294967293, %v10367_v46  ;;  %v10419_v0 = vadd.s32 4294967295, %v10367_v46  ;;  %v10465_v31 = vadd.s32 4294967294, %v10367_v46  ;;  %v10481_v26 = vadd.s32 1, %v10367_v46 }
 0x2fb   : > { %8991 = vrot.lane.b32.xlu0 %v8990_v58, %s9646_s0  ;;  %v10400_v58 = vand.u32 7, %v792_v45 }
 0x2fc   : > { %8996 = vrot.lane.b32.xlu1 %v8995_v15, %s9646_s0  ;;  %12594 = vst [vmem:[#allocation72_spill] sm:$0xff] %v10481_v26  ;;  %vm12457_vm0 = vcmp.ge.s32.totalorder %v10419_v0, 0 }
 0x2fd   : > { %12587 = vst [vmem:[#allocation65_spill] sm:$0xff] %v10400_v58  ;;  %v10416_v63 = vadd.s32 4294967293, %v10400_v58  ;;  %v10468_v34 = vadd.s32 1, %v10400_v58 }
 0x2ff   : > { %3550 = vrot.lane.b32.xlu0 %v1388_v13, %s9646_s0  ;;  %12592 = vst [vmem:[#allocation70_spill] sm:$0xff] %v10468_v34 }
 0x300   : > { %3552 = vrot.lane.b32.xlu1 %v1389_v2, %s9646_s0  ;;  %v10422_v2 = vadd.s32 4294967295, %v10400_v58 }
 0x302   : > { %vm12434_vm14 = vcmp.ge.s32.totalorder %v10422_v2, 0 }
 0x303   : > { %3916 = vrot.lane.b32.xlu0 %v1391_v57, %s9646_s0  ;;  %v10398_v57 = vadd.s32 4294967295, %v10353_v40 }
 0x304   : > { %3918 = vrot.lane.b32.xlu1 %v1392_v53, %s9646_s0  ;;  %v10386_v53 = vadd.s32 4294967293, %v10353_v40 }
 0x306   : > { %vm12433_vm13 = vcmp.ge.s32.totalorder %v10386_v53, 0 }
 0x307   : > { %3920 = vrot.lane.b32.xlu0 %v1393_v27, %s9646_s0 }
 0x308   : > { %3922 = vrot.lane.b32.xlu1 %v1394_v20, %s9646_s0  ;;  %v10453_v20 = vadd.s32 4294967294, %v10353_v40 }
 0x30b   : > { %3554 = vrot.lane.b32.xlu0 %v1390_v9, %s9646_s0  ;;  %s9651_s0 = smov [#allocation31]  }
 0x353   : > { %v10442_v9 = vpop.permute.xlu1 %1446 }
 0x354   : > { %v12595_v44 = vrot.slane %v10442_v9, 5 }
 0x356   : > { %v8977_v50 = vpop.permute.xlu0 %8976 }
 0x357   : > { %v10391_v55 = vunpack.i.h.bf16 %v8977_v50  ;;  %v10393_v56 = vunpack.i.l.bf16 %v8977_v50  ;;  %v10478_v50 = vadd.s32 4294967294, %v10400_v58 }
 0x359   : > { %v1464_v12 = vrot.slane %v10393_v56, 5  ;;  %v1465_v13 = vrot.slane %v10391_v55, 5  ;;  %v1758_v15 = vrot.slane %v10393_v56, 7  ;;  %v1759_v16 = vrot.slane %v10391_v55, 7 }
 0x35b   : > { %v1479_v35 = vsel %vm12432_vm4, %v1464_v12, %v1465_v13  ;;  %v1773_v18 = vsel %vm1766_vm2, %v1758_v15, %v1759_v16 }
 0x35c   : > { %v1498_v41 = vsel %vm12427_vm5, %v1479_v35, 0.0  ;;  %v1792_v32 = vsel %vm12422_vm6, %v1773_v18, 0.0  ;;  %vm929_vm6 = vcmp.ge.s32.totalorder %v10409_v61, 0  ;;  %vm12436_vm5 = vcmp.lt.s32.totalorder %v10431_v5, 8 }
 0x35d   : > { %v8982_v27 = vpop.permute.xlu0 %8981 }
 0x35e   : > { %v10473_v38 = vunpack.i.h.bf16 %v8982_v27  ;;  %v10475_v45 = vunpack.i.l.bf16 %v8982_v27  ;;  %v8987_v33 = vpop.permute.xlu1 %8986 }
 0x35f   : > { %v10505_v42 = vunpack.i.h.bf16 %v8987_v33  ;;  %v10507_v46 = vunpack.i.l.bf16 %v8987_v33 }
 0x360   : > { %v1760_v27 = vrot.slane %v10473_v38, 7  ;;  %v1471_v24 = vrot.slane %v10475_v45, 5  ;;  %v1765_v25 = vrot.slane %v10475_v45, 7  ;;  %v1466_v23 = vrot.slane %v10473_v38, 5 }
 0x361   : > { %v10498_v19 = vpop.permute.xlu0 %1452 }
 0x362   : > { %v1470_v11 = vrot.slane %v10498_v19, 5  ;;  %v1764_v58 = vrot.slane %v10498_v19, 7  ;;  %v1480_v33 = vsel %vm12432_vm4, %v1471_v24, %v1464_v12  ;;  %v1772_v35 = vsel %vm1766_vm2, %v1759_v16, %v1760_v27 }
 0x363   : > { %v1497_v18 = vsel %vm12423_vm7, %v1480_v33, 0.0  ;;  %v1774_v30 = vsel %vm1766_vm2, %v1765_v25, %v1758_v15  ;;  %v1477_v43 = vsel %vm12432_vm4, %v1466_v23, %v12595_v44  ;;  %v1478_v40 = vsel %vm12432_vm4, %v1465_v13, %v1466_v23 }
 0x364   : > { %v1505_v39 = vpack.c.bf16 %v1498_v41, %v1497_v18  ;;  %v1791_v12 = vsel %vm12426_vm8, %v1774_v30, 0.0  ;;  %v1499_v16 = vsel %vm12431_vm9, %v1478_v40, 0.0  ;;  %v1500_v33 = vsel %vm12428_vm10, %v1477_v43, 0.0  ;;  %v10548_v40 = vld [vmem:[#allocation10 + $0x18] sm:$0xff]  }
 0x365   : > { %vm930_vm7 = vcmp.ge.s32.totalorder %v10412_v62, 0  ;;  %v1799_v15 = vpack.c.bf16 %v1792_v32, %v1791_v12  ;;  %v1506_v47 = vpack.c.bf16 %v1500_v33, %v1499_v16  ;;  %v12596_v44 = vrot.slane %v10442_v9, 7  ;;  %v10566_v12 = vld [vmem:[#allocation10 + $0x30] sm:$0xff]  }
 0x366   : > { %v1793_v30 = vsel %vm12429_vm1, %v1772_v35, 0.0  ;;  %vm12435_vm8 = vcmp.lt.s32.totalorder %v10425_v3, 8  ;;  %8327 = vmatprep.mubr.msk.bf16.mxu1 %vm1517_vm11, %v1505_v39  ;;  %v1468_v32 = vrot.slane %v10507_v46, 5  ;;  %v1469_v43 = vrot.slane %v10505_v42, 5 }
 0x367   : > { %v1771_v23 = vsel %vm1766_vm2, %v1760_v27, %v12596_v44  ;;  %v1762_v13 = vrot.slane %v10507_v46, 7  ;;  %8347 = vmatprep.mubr.msk.bf16.mxu0 %vm1517_vm11, %v1799_v15  ;;  %8328 = vmatmul.mubr.msk.bf16.vlgmr.msra.gmra.mrb[0].mxu1 %vm1517_vm11, %v1506_v47  ;;  %v1763_v27 = vrot.slane %v10505_v42, 7  ;;  %v1473_v35 = vsel %vm12432_vm4, %v1470_v11, %v1471_v24 }
 0x368   : > { %v1794_v41 = vsel %vm12430_vm12, %v1771_v23, 0.0  ;;  %v1767_v18 = vsel %vm1766_vm2, %v1764_v58, %v1765_v25  ;;  %8336 = vmatpush3.bf16.msra.mxu1 %v10321_v10  ;;  %v1475_v16 = vsel %vm12432_vm4, %v1468_v32, %v1469_v43  ;;  %v12597_v33 = vrot.slane %v10442_v9, 5 }
 0x369   : > { %v1800_v39 = vpack.c.bf16 %v1794_v41, %v1793_v30  ;;  %v12598_v15 = vmov %v12596_v44  ;;  %v1474_v25 = vsel %vm12432_vm4, %v1469_v43, %v1470_v11  ;;  %vm12437_vm12 = vcmp.lt.s32.totalorder %v10440_v8, 8  ;;  %8355 = vmatprep.subr.bf16.mxu1 %v10548_v40 }
 0x36a   : > { %v1476_v47 = vsel %vm12432_vm4, %v12597_v33, %v1468_v32  ;;  %v1770_v24 = vsel %vm1766_vm2, %v12598_v15, %v1762_v13  ;;  %vm12599_vm1 = vcmp.ge.s32.totalorder %v10389_v54, 0  ;;  %v1769_v23 = vsel %vm1766_vm2, %v1762_v13, %v1763_v27 }
 0x36b   : > { %8348 = vmatmul.mubr.msk.bf16.vlgmr.msra.gmra.mrb[8].mxu0 %vm1517_vm11, %v1800_v39  ;;  %v1501_v10 = vsel %vm12433_vm13, %v1476_v47, 0.0  ;;  %v1502_v44 = vsel %vm12599_vm1, %v1475_v16, 0.0  ;;  %vm12600_vm10 = vcmp.ge.s32.totalorder %v10398_v57, 0  ;;  %v1605_v11 = vrot.slane %v10473_v38, 6 }
 0x36c   : > { %v1795_v30 = vsel %vm12600_vm10, %v1770_v24, 0.0  ;;  %v1507_v41 = vpack.c.bf16 %v1502_v44, %v1501_v10  ;;  %vm12601_vm4 = vcmp.ge.s32.totalorder %v10403_v59, 0  ;;  %vm12602_vm9 = vcmp.ge.s32.totalorder %v10406_v60, 0  ;;  %8366 = vmatpush3.bf16.msra.mxu0 %v10339_v28 }
 0x36d   : > { %v1796_v32 = vsel %vm12601_vm4, %v1769_v23, 0.0  ;;  %v1503_v43 = vsel %vm12602_vm9, %v1474_v25, 0.0  ;;  %v1606_v39 = vrot.slane %v10442_v9, 6  ;;  %vm12603_vm1 = vcmp.ge.s32.totalorder %v10416_v63, 0  ;;  %8385 = vmatprep.subr.bf16.mxu0 %v10566_v12 }
 0x36e   : > { %v1801_v16 = vpack.c.bf16 %v1796_v32, %v1795_v30  ;;  %v1504_v13 = vsel %vm12603_vm1, %v1473_v35, 0.0  ;;  %v1768_v33 = vsel %vm1766_vm2, %v1763_v27, %v1764_v58  ;;  %vm933_vm10 = vcmp.ge.s32.totalorder %v10453_v20, 0  ;;  %8331 = vmatprep.mubr.msk.bf16.mxu1 %vm1517_vm11, %v1507_v41 }
 0x36f   : > { %vm934_vm13 = vcmp.ge.s32.totalorder %v10456_v21, 0  ;;  %v1797_v28 = vsel %vm12457_vm0, %v1768_v33, 0.0  ;;  %v1798_v47 = vsel %vm12434_vm14, %v1767_v18, 0.0  ;;  %v1610_v15 = vrot.slane %v10475_v45, 6 }
 0x370   : > { %v12604_v35 = vrot.slane %v10391_v55, 6  ;;  %v12605_v58 = vrot.slane %v10393_v56, 6  ;;  %vm12439_vm4 = vcmp.lt.s32.totalorder %v10459_v22, 8  ;;  %vm12438_vm9 = vcmp.lt.s32.totalorder %v10462_v29, 8  ;;  %8351 = vmatprep.mubr.msk.bf16.mxu0 %vm1517_vm11, %v1801_v16 }
 0x371   : > { %v2034_v24 = vrot.slane %v10442_v9, 1  ;;  %v1508_v25 = vpack.c.bf16 %v1504_v13, %v1503_v43  ;;  %v2033_v18 = vrot.slane %v10473_v38, 1  ;;  %v12606_v10 = vrot.slane %v10391_v55, 1 }
 0x372   : > { %v1618_v27 = vsel %vm1611_vm3, %v12605_v58, %v12604_v35  ;;  %v12607_v44 = vrot.slane %v10393_v56, 1  ;;  %v2035_v30 = vrot.slane %v10507_v46, 1  ;;  %v12608_v41 = vmov %v12604_v35 }
 0x373   : > { %v1617_v32 = vsel %vm1611_vm3, %v12608_v41, %v1605_v11  ;;  %v12609_v33 = vmov %v12605_v58  ;;  %v1616_v16 = vsel %vm1611_vm3, %v1605_v11, %v1606_v39  ;;  %8332 = vmatmul.mubr.msk.bf16.gmra.mrb[4].mxu1 %vm1517_vm11, %v1508_v25  ;;  %v1802_v13 = vpack.c.bf16 %v1798_v47, %v1797_v28 }
 0x374   : > { %v2046_v23 = vsel %vm12498_vm15, %v12607_v44, %v12606_v10  ;;  %v1619_v43 = vsel %vm1611_vm3, %v1610_v15, %v12609_v33  ;;  %v1637_v58 = vsel %vm930_vm7, %v1618_v27, 0.0  ;;  %v10647_v10 = vadd.s32 3, %v10348_v37 }
 0x375   : > { %v1636_v35 = vsel %vm929_vm6, %v1619_v43, 0.0  ;;  %v2044_v41 = vsel %vm12498_vm15, %v2033_v18, %v2034_v24  ;;  %v12611_v33 = vrot.slane %v10391_v55, 1  ;;  %v2064_v28 = vsel %vm12435_vm8, %v2046_v23, 0.0  ;;  %8352 = vmatmul.mubr.msk.bf16.gmra.mrb[12].mxu0 %vm1517_vm11, %v1802_v13 }
 0x376   : > { %12610 = vst [vmem:[#allocation73_spill] sm:$0xff] %v10647_v10  ;;  %v1644_v44 = vpack.c.bf16 %v1637_v58, %v1636_v35  ;;  %v1609_v47 = vrot.slane %v10498_v19, 6  ;;  %vm12612_vm1 = vcmp.ge.s32.totalorder %v10434_v6, 0  ;;  %vm12613_vm14 = vcmp.ge.s32.totalorder %v10437_v7, 0 }
 0x377   : > { %v2045_v11 = vsel %vm12498_vm15, %v12611_v33, %v2033_v18  ;;  %v1638_v25 = vsel %vm12612_vm1, %v1617_v32, 0.0  ;;  %v1639_v43 = vsel %vm12613_vm14, %v1616_v16, 0.0  ;;  %v2037_v35 = vrot.slane %v10498_v19, 1 }
 0x378   : > { %v2065_v27 = vsel %vm12436_vm5, %v2045_v11, 0.0  ;;  %8337 = vmatprep.mubr.msk.bf16.mxu1 %vm1517_vm11, %v1644_v44  ;;  %v2043_v23 = vsel %vm12498_vm15, %v2034_v24, %v2035_v30  ;;  %vm935_vm8 = vcmp.ge.s32.totalorder %v10465_v31, 0  ;;  %v2066_v13 = vsel %vm12437_vm12, %v2044_v41, 0.0 }
 0x379   : > { %v2072_v18 = vpack.c.bf16 %v2065_v27, %v2064_v28  ;;  %vm12614_vm5 = vcmp.lt.s32.totalorder %v10450_v17, 8  ;;  %v1607_v32 = vrot.slane %v10507_v46, 6  ;;  %v1608_v16 = vrot.slane %v10505_v42, 6 }
 0x37a   : > { %v2067_v58 = vsel %vm12614_vm5, %v2043_v23, 0.0  ;;  %v1645_v33 = vpack.c.bf16 %v1639_v43, %v1638_v25  ;;  %v2036_v11 = vrot.slane %v10505_v42, 1  ;;  %vm936_vm14 = vcmp.ge.s32.totalorder %v10478_v50, 0 }
 0x37b   : > { %8367 = vmatprep.mubr.msk.bf16.mxu0 %vm1517_vm11, %v2072_v18  ;;  %v2073_v44 = vpack.c.bf16 %v2067_v58, %v2066_v13  ;;  %v1614_v24 = vsel %vm1611_vm3, %v1607_v32, %v1608_v16  ;;  %v1615_v41 = vsel %vm1611_vm3, %v1606_v39, %v1607_v32  ;;  %v1612_v28 = vsel %vm1611_vm3, %v1609_v47, %v1610_v15  ;;  %v10701_v32 = vld [vmem:[#allocation10 + $0x28] sm:$0xff]  }
 0x37c   : > { %v2038_v27 = vrot.slane %v10475_v45, 1  ;;  %v1640_v18 = vsel %vm933_vm10, %v1615_v41, 0.0  ;;  %v1641_v25 = vsel %vm934_vm13, %v1614_v24, 0.0  ;;  %v2041_v43 = vsel %vm12498_vm15, %v2036_v11, %v2037_v35  ;;  %8338 = vmatmul.mubr.msk.bf16.vlgmr.msra.gmra.mrb[8].mxu1 %vm1517_vm11, %v1645_v33 }
 0x37d   : > { %v2042_v23 = vsel %vm12498_vm15, %v2035_v30, %v2036_v11  ;;  %v1646_v39 = vpack.c.bf16 %v1641_v25, %v1640_v18  ;;  %v2069_v13 = vsel %vm12438_vm9, %v2041_v43, 0.0  ;;  %v1613_v58 = vsel %vm1611_vm3, %v1608_v16, %v1609_v47  ;;  %8356 = vmatpush3.bf16.msra.mxu1 %v10548_v40  ;;  %8368 = vmatmul.mubr.msk.bf16.vlgmr.msra.gmra.mrb[16].mxu0 %vm1517_vm11, %v2073_v44  ;;  %v12617_v25 = vld [vmem:[#allocation57_spill] sm:$0xff] }
 0x37e   : > { %v2068_v15 = vsel %vm12439_vm4, %v2042_v23, 0.0  ;;  %v12440_v41 = vrot.slane %v10393_v56, 3  ;;  %v2342_v30 = vrot.slane %v10391_v55, 3  ;;  %vm12447_vm5 = vcmp.lt.s32.totalorder %v10481_v26, 8  ;;  %8386 = vmatpush3.bf16.msra.mxu0 %v10566_v12  ;;  %8375 = vmatprep.subr.bf16.mxu1 %v10701_v32  ;;  %v1917_v26 = vpop.permute.xlu1 %1916 }
 0x37f   : > { %v2074_v24 = vpack.c.bf16 %v2069_v13, %v2068_v15  ;;  %8341 = vmatprep.mubr.msk.bf16.mxu1 %vm1517_vm11, %v1646_v39  ;;  %v2040_v33 = vsel %vm12498_vm15, %v2037_v35, %v2038_v27  ;;  %v2343_v47 = vrot.slane %v10473_v38, 3  ;;  %vm12458_vm1 = vcmp.lt.s32.totalorder %v10244_v1, 5  ;;  %v12619_v15 = vld [vmem:[#allocation58_spill] sm:$0xff] }
 0x380   : > { %v1642_v40 = vsel %vm935_vm8, %v1613_v58, 0.0  ;;  %v1643_v16 = vsel %vm936_vm14, %v1612_v28, 0.0  ;;  %vm12443_vm12 = vcmp.lt.s32.totalorder %v10647_v10, 8  ;;  %vm12444_vm9 = vcmp.lt.s32.totalorder %v10468_v34, 8 }
 0x381   : > { %8371 = vmatprep.mubr.msk.bf16.mxu0 %vm1517_vm11, %v2074_v24  ;;  %v12615_v35 = vrot.slane %v10393_v56, 1  ;;  %vm12448_vm4 = vcmp.lt.s32.totalorder %v10471_v36, 8  ;;  %v2355_v11 = vsel %vm12458_vm1, %v2342_v30, %v2343_v47  ;;  %v2070_v28 = vsel %vm12447_vm5, %v2040_v33, 0.0 }
 0x382   : > { %v2356_v12 = vsel %vm12458_vm1, %v12440_v41, %v2342_v30  ;;  %v10736_v18 = vadd.s32 3, %v10247_v4  ;;  %v2345_v43 = vrot.slane %v10507_v46, 3  ;;  %v1647_v23 = vpack.c.bf16 %v1643_v16, %v1642_v40  ;;  %v12621_v30 = vld [vmem:[#allocation59_spill] sm:$0xff] }
 0x383   : > { %v2047_v44 = vsel %vm12498_vm15, %v2038_v27, %v12615_v35  ;;  %v10739_v27 = vadd.s32 3, %v12617_v25  ;;  %v2375_v39 = vsel %vm12443_vm12, %v2355_v11, 0.0  ;;  %v10745_v13 = vadd.s32 3, %v12619_v15 }
 0x384   : > { %12616 = vst [vmem:[#allocation74_spill] sm:$0xff] %v10736_v18  ;;  %v2347_v58 = vrot.slane %v10498_v19, 3  ;;  %v2071_v24 = vsel %vm12444_vm9, %v2047_v44, 0.0  ;;  %v10751_v33 = vadd.s32 3, %v12621_v30  ;;  %v2346_v35 = vrot.slane %v10505_v42, 3  ;;  %8342 = vmatmul.mubr.msk.bf16.gmra.mrb[12].mxu1 %vm1517_vm11, %v1647_v23 }
 0x385   : > { %12618 = vst [vmem:[#allocation57_spill] sm:$0xff] %v10739_v27  ;;  %12620 = vst [vmem:[#allocation58_spill] sm:$0xff] %v10745_v13  ;;  %v2344_v41 = vrot.slane %v10442_v9, 3  ;;  %v2075_v40 = vpack.c.bf16 %v2071_v24, %v2070_v28  ;;  %v2374_v16 = vsel %vm12448_vm4, %v2356_v12, 0.0  ;;  %8357 = vmatprep.mubr.msk.bf16.mxu1 %vm1517_vm11, %v1917_v26  ;;  %vm12451_vm12 = vcmp.lt.s32.totalorder %v10736_v18, 8  ;;  %v1921_v18 = vpop.permute.xlu1 %1920 }
 0x386   : > { %12622 = vst [vmem:[#allocation59_spill] sm:$0xff] %v10751_v33  ;;  %v2382_v11 = vpack.c.bf16 %v2375_v39, %v2374_v16  ;;  %vm12456_vm9 = vcmp.lt.s32.totalorder %v10739_v27, 8  ;;  %vm12455_vm5 = vcmp.lt.s32.totalorder %v10745_v13, 8  ;;  %vm12452_vm4 = vcmp.lt.s32.totalorder %v10751_v33, 8 }
 0x387   : > { %8372 = vmatmul.mubr.msk.bf16.gmra.mrb[20].mxu0 %vm1517_vm11, %v2075_v40  ;;  %v2354_v44 = vsel %vm12458_vm1, %v2343_v47, %v2344_v41  ;;  %v2353_v10 = vsel %vm12458_vm1, %v2344_v41, %v2345_v43  ;;  %v2351_v26 = vsel %vm12458_vm1, %v2346_v35, %v2347_v58  ;;  %v2352_v28 = vsel %vm12458_vm1, %v2345_v43, %v2346_v35  ;;  %v12623_v40 = vld [vmem:[#allocation63_spill] sm:$0xff]  ;;  %v12625_v43 = vld [vmem:[#allocation60_spill] sm:$0xff] }
 0x388   : > { %8387 = vmatprep.mubr.msk.bf16.mxu0 %vm1517_vm11, %v2382_v11  ;;  %v2376_v47 = vsel %vm12451_vm12, %v2354_v44, 0.0  ;;  %v2377_v12 = vsel %vm12456_vm9, %v2353_v10, 0.0  ;;  %v10778_v41 = vadd.s32 2, %v10348_v37  ;;  %v2188_v23 = vrot.slane %v10473_v38, 2  ;;  %v1919_v11 = vpop.permute.xlu0 %1918  ;;  %v12626_v44 = vld [vmem:[#allocation65_spill] sm:$0xff] }
 0x389   : > { %v2378_v39 = vsel %vm12455_vm5, %v2352_v28, 0.0  ;;  %v2379_v24 = vsel %vm12452_vm4, %v2351_v26, 0.0  ;;  %v10786_v16 = vadd.s32 3, %v12623_v40  ;;  %v10789_v35 = vadd.s32 2, %v12625_v43 }
 0x38a   : > { %v10792_v10 = vadd.s32 3, %v12626_v44  ;;  %v2186_v37 = vrot.slane %v10393_v56, 2  ;;  %v2187_v38 = vrot.slane %v10391_v55, 2  ;;  %v2383_v28 = vpack.c.bf16 %v2377_v12, %v2376_v47 }
 0x38b   : > { %12624 = vst [vmem:[#allocation63_spill] sm:$0xff] %v10786_v16  ;;  %v2348_v26 = vrot.slane %v10475_v45, 3  ;;  %vm12497_vm12 = vcmp.lt.s32.totalorder %v10244_v1, 6  ;;  %v2384_v43 = vpack.c.bf16 %v2379_v24, %v2378_v39  ;;  %vm12460_vm4 = vcmp.lt.s32.totalorder %v10778_v41, 8 }
 0x38c   : > { %12627 = vst [vmem:[#allocation60_spill] sm:$0xff] %v10792_v10  ;;  %8358 = vmatmul.mubr.msk.bf16.vlgmr.msra.gmra.mrb[16].mxu1 %vm1517_vm11, %v1919_v11  ;;  %v2200_v33 = vsel %vm12497_vm12, %v2187_v38, %v2188_v23  ;;  %vm12459_vm5 = vcmp.lt.s32.totalorder %v10786_v16, 8  ;;  %vm12496_vm9 = vcmp.lt.s32.totalorder %v10789_v35, 8  ;;  %vm12461_vm0 = vcmp.lt.s32.totalorder %v10792_v10, 8 }
 0x38d   : > { %8361 = vmatprep.mubr.msk.bf16.mxu1 %vm1517_vm11, %v1921_v18  ;;  %8376 = vmatpush3.bf16.msra.mxu1 %v10701_v32  ;;  %v2350_v55 = vsel %vm12458_vm1, %v2347_v58, %v2348_v26  ;;  %v2201_v32 = vsel %vm12497_vm12, %v2186_v37, %v2187_v38  ;;  %v10814_v18 = vadd.s32 2, %v10247_v4  ;;  %v10817_v47 = vadd.s32 2, %v12617_v25 }
 0x38e   : > { %v2190_v12 = vrot.slane %v10507_v46, 2  ;;  %v12630_v39 = vrot.slane %v10393_v56, 3  ;;  %v2220_v24 = vsel %vm12460_vm4, %v2200_v33, 0.0  ;;  %v10827_v11 = vadd.s32 2, %v12619_v15 }
 0x38f   : > { %8388 = vmatmul.mubr.msk.bf16.vlgmr.msra.gmra.mrb[24].mxu0 %vm1517_vm11, %v2383_v28  ;;  %12628 = vst [vmem:[#allocation65_spill] sm:$0xff] %v10814_v18  ;;  %12629 = vst [vmem:[#allocation75_spill] sm:$0xff] %v10817_v47  ;;  %v2192_v38 = vrot.slane %v10498_v19, 2  ;;  %v2380_v4 = vsel %vm12459_vm5, %v2350_v55, 0.0  ;;  %v10833_v25 = vadd.s32 2, %v12621_v30  ;;  %v2191_v46 = vrot.slane %v10505_v42, 2 }
 0x390   : > { %8391 = vmatprep.mubr.msk.bf16.mxu0 %vm1517_vm11, %v2384_v43  ;;  %v2357_v58 = vsel %vm12458_vm1, %v2348_v26, %v12630_v39  ;;  %12631 = vst [vmem:[#allocation76_spill] sm:$0xff] %v10827_v11  ;;  %v2189_v56 = vrot.slane %v10442_v9, 2  ;;  %v2219_v28 = vsel %vm12496_vm9, %v2201_v32, 0.0  ;;  %v1923_v26 = vpop.permute.xlu0 %1922  ;;  %vm12462_vm1 = vcmp.lt.s32.totalorder %v10814_v18, 8 }
 0x391   : > { %12632 = vst [vmem:[#allocation77_spill] sm:$0xff] %v10833_v25  ;;  %v2381_v15 = vsel %vm12461_vm0, %v2357_v58, 0.0  ;;  %v2227_v33 = vpack.c.bf16 %v2220_v24, %v2219_v28  ;;  %vm12495_vm5 = vcmp.lt.s32.totalorder %v10817_v47, 8  ;;  %vm12494_vm4 = vcmp.lt.s32.totalorder %v10827_v11, 8 }
 0x392   : > { %v2385_v19 = vpack.c.bf16 %v2381_v15, %v2380_v4  ;;  %v2199_v30 = vsel %vm12497_vm12, %v2188_v23, %v2189_v56  ;;  %v2198_v42 = vsel %vm12497_vm12, %v2189_v56, %v2190_v12  ;;  %vm12463_vm0 = vcmp.lt.s32.totalorder %v10833_v25, 8  ;;  %v9010_v15 = vld [vmem:[#allocation13 + $0x8] sm:$0xff]  }
 0x393   : > { %v2196_v9 = vsel %vm12497_vm12, %v2191_v46, %v2192_v38  ;;  %v2197_v43 = vsel %vm12497_vm12, %v2190_v12, %v2191_v46  ;;  %v2221_v23 = vsel %vm12462_vm1, %v2199_v30, 0.0  ;;  %v2222_v55 = vsel %vm12495_vm5, %v2198_v42, 0.0  ;;  %8405 = vmatprep.subr.bf16.mxu0 %v9010_v15 }
 0x394   : > { %8362 = vmatmul.mubr.msk.bf16.gmra.mrb[20].mxu1 %vm1517_vm11, %v1923_v26  ;;  %v2223_v32 = vsel %vm12494_vm4, %v2197_v43, 0.0  ;;  %v2224_v39 = vsel %vm12463_vm0, %v2196_v9, 0.0  ;;  %v10865_v58 = vadd.s32 2, %v12623_v40  ;;  %v2228_v24 = vpack.c.bf16 %v2222_v55, %v2221_v23  ;;  %v9009_v26 = vld [vmem:[#allocation13] sm:$0xff]   ;;  %8406 = vmatpush3.bf16.msra.mxu0 %v9010_v15 }
 0x395   : > { %8377 = vmatprep.mubr.msk.bf16.mxu1 %vm1517_vm11, %v2227_v33  ;;  %v10868_v12 = vadd.s32 2, %v12626_v44  ;;  %v2193_v4 = vrot.slane %v10475_v45, 2  ;;  %v2229_v46 = vpack.c.bf16 %v2224_v39, %v2223_v32  ;;  %v10884_v33 = vld [vmem:[#allocation13 + $0x10] sm:$0xff]   ;;  %8395 = vmatprep.subr.bf16.mxu1 %v9009_v26 }
 0x396   : > { %12633 = vst [vmem:[#allocation78_spill] sm:$0xff] %v10865_v58  ;;  %vm12493_vm1 = vcmp.lt.s32.totalorder %v10865_v58, 8 }
 0x397   : > { %8392 = vmatmul.mubr.msk.bf16.gmra.mrb[28].mxu0 %vm1517_vm11, %v2385_v19  ;;  %12634 = vst [vmem:[#allocation79_spill] sm:$0xff] %v10868_v12  ;;  %v2195_v56 = vsel %vm12497_vm12, %v2192_v38, %v2193_v4  ;;  %vm12492_vm0 = vcmp.lt.s32.totalorder %v10868_v12, 8  ;;  %v2202_v40 = vsel %vm12497_vm12, %v2193_v4, %v2186_v37  ;;  %v12464_v38 = vmov 0.0|0.0   ;;  %v10889_v37 = vld [vmem:[#allocation13 + $0x18] sm:$0xff]  }
 0x398   : > { %v2225_v44 = vsel %vm12493_vm1, %v2195_v56, 0.0  ;;  %v2226_v45 = vsel %vm12492_vm0, %v2202_v40, 0.0  ;;  %8407 = vmatprep.mubr.bf16.mxu0 %v12464_v38  ;;  %8425 = vmatprep.subr.bf16.mxu0 %v10889_v37  ;;  %vm12636_vm0 = vcmask 261120  }
 0x399   : > { %v2230_v28 = vpack.c.bf16 %v2226_v45, %v2225_v44  ;;  %vm12637_vm1 = vmmov %vm12636_vm0 }
 0x39a   : > { %vm12638_vm4 = vmmov %vm12636_vm0 }
 0x39b   : > { %vm12639_vm5 = vmmov %vm12636_vm0 }
 0x39c   : > { %8378 = vmatmul.mubr.msk.bf16.vlgmr.msra.gmra.mrb[24].mxu1 %vm1517_vm11, %v2228_v24  ;;  %vm12643_vm9 = vmmov %vm12636_vm0 }
 0x39d   : > { %8381 = vmatprep.mubr.msk.bf16.mxu1 %vm1517_vm11, %v2229_v46  ;;  %8396 = vmatpush3.bf16.msra.mxu1 %v9009_v26  ;;  %vm12644_vm12 = vmmov %vm12636_vm0 }
 0x39e   : > { %8415 = vmatprep.subr.bf16.mxu1 %v10884_v33  ;;  %vm12659_vm15 = vmmov %vm12636_vm0 }
 0x3a4   : > { %8382 = vmatmul.mubr.msk.bf16.gmra.mrb[28].mxu1 %vm1517_vm11, %v2230_v28 }
 0x3a5   : > { %8397 = vmatprep.mubr.bf16.mxu1 %v12464_v38 }
 0x43a   : > { %v8329_v19 = vpop.f32.mrb[0].mxu1 }
 0x43b   : > { %1597 = vst.msk [vmem:[#allocation2 + $0x10] sm:$0xff] %vm1517_vm11, %v8329_v19  ;;  %v1564_v30 = vpop.f32.mrb[1].mxu1 }
 0x43c   : > { %1595 = vst.msk [vmem:[#allocation2] sm:$0xff] %vm1517_vm11, %v1564_v30  ;;  %v8330_v9 = vpop.f32.mrb[2].mxu1 }
 0x43d   : > { %1598 = vst.msk [vmem:[#allocation2 + $0x18] sm:$0xff] %vm1517_vm11, %v8330_v9  ;;  %v1567_v23 = vpop.f32.mrb[3].mxu1 }
 0x43e   : > { %v8349_v42 = vpop.f32.mrb[8].mxu0  ;;  %1596 = vst.msk [vmem:[#allocation2 + $0x8] sm:$0xff] %vm1517_vm11, %v1567_v23 }
 0x43f   : > { %v1858_v43 = vpop.f32.mrb[9].mxu0 }
 0x440   : > { %v8350_v55 = vpop.f32.mrb[10].mxu0 }
 0x441   : > { %v1861_v32 = vpop.f32.mrb[11].mxu0 }
 0x442   : > { %v1736_v26 = vld [vmem:[#allocation2 + $0x10] sm:$0xff] }
 0x443   : > { %v1734_v30 = vld [vmem:[#allocation2] sm:$0xff] }
 0x445   : > { %v1735_v16 = vld [vmem:[#allocation2 + $0x8] sm:$0xff] }
 0x446   : > { %v8333_v39 = vpop.f32.mrb[4].mxu1 }
 0x447   : > { %1601 = vst.msk [vmem:[#allocation2 + $0x30] sm:$0xff] %vm1517_vm11, %v8333_v39  ;;  %v1580_v24 = vpop.f32.mrb[5].mxu1 }
 0x448   : > { %v10897_v4 = vpop.f32.mrb[12].mxu0  ;;  %1599 = vst.msk [vmem:[#allocation2 + $0x20] sm:$0xff] %vm1517_vm11, %v1580_v24  ;;  %v8334_v46 = vpop.f32.mrb[6].mxu1  ;;  %v1737_v24 = vld [vmem:[#allocation2 + $0x18] sm:$0xff] }
 0x449   : > { %v10900_v56 = vpop.f32.mrb[13].mxu0  ;;  %1602 = vst.msk [vmem:[#allocation2 + $0x38] sm:$0xff] %vm1517_vm11, %v8334_v46  ;;  %v1583_v40 = vpop.f32.mrb[7].mxu1 }
 0x44a   : > { %v10903_v44 = vpop.f32.mrb[14].mxu0  ;;  %1600 = vst.msk [vmem:[#allocation2 + $0x28] sm:$0xff] %vm1517_vm11, %v1583_v40 }
 0x44b   : > { %v10906_v45 = vpop.f32.mrb[15].mxu0 }
 0x44f   : > { %v8339_v28 = vpop.f32.mrb[8].mxu1  ;;  %v1738_v27 = vld [vmem:[#allocation2 + $0x20] sm:$0xff] }
 0x450   : > { %v1744_v15 = vadd.f32 %v8339_v28, %v1736_v26  ;;  %v1703_v19 = vpop.f32.mrb[9].mxu1  ;;  %v10908_v9 = vpop.f32.mrb[16].mxu0  ;;  %v1741_v12 = vld [vmem:[#allocation2 + $0x38] sm:$0xff] }
 0x451   : > { %v1742_v23 = vadd.f32 %v1734_v30, %v1703_v19  ;;  %v8340_v39 = vpop.f32.mrb[10].mxu1  ;;  %v10911_v46 = vpop.f32.mrb[17].mxu0  ;;  %v1740_v19 = vld [vmem:[#allocation2 + $0x30] sm:$0xff]  ;;  %v1739_v58 = vld [vmem:[#allocation2 + $0x28] sm:$0xff] }
 0x452   : > { %1752 = vst.msk [vmem:[#allocation2 + $0x10] sm:$0xff] %vm1517_vm11, %v1744_v15  ;;  %v1745_v38 = vadd.f32 %v8340_v39, %v1737_v24  ;;  %v1706_v10 = vpop.f32.mrb[11].mxu1  ;;  %v10914_v40 = vpop.f32.mrb[18].mxu0 }
 0x453   : > { %1750 = vst.msk [vmem:[#allocation2] sm:$0xff] %vm1517_vm11, %v1742_v23  ;;  %v1743_v13 = vadd.f32 %v1735_v16, %v1706_v10  ;;  %v10917_v28 = vpop.f32.mrb[19].mxu0 }
 0x454   : > { %1753 = vst.msk [vmem:[#allocation2 + $0x18] sm:$0xff] %vm1517_vm11, %v1745_v38 }
 0x455   : > { %1751 = vst.msk [vmem:[#allocation2 + $0x8] sm:$0xff] %vm1517_vm11, %v1743_v13 }
 0x457   : > { %v8343_v26 = vpop.f32.mrb[12].mxu1 }
 0x458   : > { %v1748_v30 = vadd.f32 %v8343_v26, %v1740_v19  ;;  %v1719_v15 = vpop.f32.mrb[13].mxu1 }
 0x459   : > { %v1746_v39 = vadd.f32 %v1738_v27, %v1719_v15  ;;  %v8344_v24 = vpop.f32.mrb[14].mxu1  ;;  %v1891_v23 = vld [vmem:[#allocation2 + $0x10] sm:$0xff] }
 0x45a   : > { %v10920_v36 = vpop.f32.mrb[20].mxu0  ;;  %1756 = vst.msk [vmem:[#allocation2 + $0x30] sm:$0xff] %vm1517_vm11, %v1748_v30  ;;  %v1749_v10 = vadd.f32 %v8344_v24, %v1741_v12  ;;  %v1722_v38 = vpop.f32.mrb[15].mxu1  ;;  %v1899_v34 = vadd.f32 %v8349_v42, %v1891_v23  ;;  %v1889_v13 = vld [vmem:[#allocation2] sm:$0xff] }
 0x45b   : > { %v10923_v16 = vpop.f32.mrb[21].mxu0  ;;  %1754 = vst.msk [vmem:[#allocation2 + $0x20] sm:$0xff] %vm1517_vm11, %v1746_v39  ;;  %v1747_v19 = vadd.f32 %v1739_v58, %v1722_v38  ;;  %v1897_v18 = vadd.f32 %v1889_v13, %v1858_v43  ;;  %v1892_v8 = vld [vmem:[#allocation2 + $0x18] sm:$0xff] }
 0x45c   : > { %v10926_v26 = vpop.f32.mrb[22].mxu0  ;;  %1757 = vst.msk [vmem:[#allocation2 + $0x38] sm:$0xff] %vm1517_vm11, %v1749_v10  ;;  %1907 = vst.msk [vmem:[#allocation2 + $0x10] sm:$0xff] %vm1517_vm11, %v1899_v34  ;;  %v1900_v30 = vadd.f32 %v8350_v55, %v1892_v8  ;;  %v1890_v15 = vld [vmem:[#allocation2 + $0x8] sm:$0xff] }
 0x45d   : > { %v10929_v27 = vpop.f32.mrb[23].mxu0  ;;  %1755 = vst.msk [vmem:[#allocation2 + $0x28] sm:$0xff] %vm1517_vm11, %v1747_v19  ;;  %1905 = vst.msk [vmem:[#allocation2] sm:$0xff] %vm1517_vm11, %v1897_v18  ;;  %v1898_v12 = vadd.f32 %v1890_v15, %v1861_v32 }
 0x45e   : > { %1908 = vst.msk [vmem:[#allocation2 + $0x18] sm:$0xff] %vm1517_vm11, %v1900_v30 }
 0x45f   : > { %v8359_v42 = vpop.f32.mrb[16].mxu1  ;;  %1906 = vst.msk [vmem:[#allocation2 + $0x8] sm:$0xff] %vm1517_vm11, %v1898_v12 }
 0x460   : > { %v1976_v58 = vpop.f32.mrb[17].mxu1 }
 0x461   : > { %v8360_v39 = vpop.f32.mrb[18].mxu1  ;;  %v1895_v24 = vld [vmem:[#allocation2 + $0x30] sm:$0xff] }
 0x462   : > { %v10936_v43 = vpop.f32.mrb[24].mxu0  ;;  %v1979_v34 = vpop.f32.mrb[19].mxu1  ;;  %v1903_v8 = vadd.f32 %v10897_v4, %v1895_v24  ;;  %v1893_v55 = vld [vmem:[#allocation2 + $0x20] sm:$0xff] }
 0x463   : > { %v10938_v23 = vpop.f32.mrb[25].mxu0  ;;  %v2009_v10 = vld [vmem:[#allocation2 + $0x10] sm:$0xff]  ;;  %v1901_v18 = vadd.f32 %v1893_v55, %v10900_v56  ;;  %v1896_v32 = vld [vmem:[#allocation2 + $0x38] sm:$0xff] }
 0x464   : > { %v10941_v38 = vpop.f32.mrb[26].mxu0  ;;  %v2017_v13 = vadd.f32 %v8359_v42, %v2009_v10  ;;  %v2007_v19 = vld [vmem:[#allocation2] sm:$0xff]  ;;  %1911 = vst.msk [vmem:[#allocation2 + $0x30] sm:$0xff] %vm1517_vm11, %v1903_v8  ;;  %v1904_v15 = vadd.f32 %v10903_v44, %v1896_v32  ;;  %v1894_v12 = vld [vmem:[#allocation2 + $0x28] sm:$0xff] }
 0x465   : > { %v10944_v30 = vpop.f32.mrb[27].mxu0  ;;  %v2015_v25 = vadd.f32 %v2007_v19, %v1976_v58  ;;  %v2010_v11 = vld [vmem:[#allocation2 + $0x18] sm:$0xff]  ;;  %1909 = vst.msk [vmem:[#allocation2 + $0x20] sm:$0xff] %vm1517_vm11, %v1901_v18  ;;  %v1902_v4 = vadd.f32 %v1894_v12, %v10906_v45 }
 0x466   : > { %2025 = vst.msk [vmem:[#allocation2 + $0x10] sm:$0xff] %vm1517_vm11, %v2017_v13  ;;  %v2018_v24 = vadd.f32 %v8360_v39, %v2010_v11  ;;  %v2008_v56 = vld [vmem:[#allocation2 + $0x8] sm:$0xff]  ;;  %1912 = vst.msk [vmem:[#allocation2 + $0x38] sm:$0xff] %vm1517_vm11, %v1904_v15 }
 0x467   : > { %2023 = vst.msk [vmem:[#allocation2] sm:$0xff] %vm1517_vm11, %v2015_v25  ;;  %v2016_v42 = vadd.f32 %v2008_v56, %v1979_v34  ;;  %v8363_v55 = vpop.f32.mrb[20].mxu1  ;;  %1910 = vst.msk [vmem:[#allocation2 + $0x28] sm:$0xff] %vm1517_vm11, %v1902_v4 }
 0x468   : > { %2026 = vst.msk [vmem:[#allocation2 + $0x18] sm:$0xff] %vm1517_vm11, %v2018_v24  ;;  %v1992_v44 = vpop.f32.mrb[21].mxu1 }
 0x469   : > { %2024 = vst.msk [vmem:[#allocation2 + $0x8] sm:$0xff] %vm1517_vm11, %v2016_v42  ;;  %v8364_v45 = vpop.f32.mrb[22].mxu1 }
 0x46a   : > { %v10956_v58 = vpop.f32.mrb[28].mxu0  ;;  %v1995_v11 = vpop.f32.mrb[23].mxu1 }
 0x46b   : > { %v10958_v8 = vpop.f32.mrb[29].mxu0  ;;  %v2013_v39 = vld [vmem:[#allocation2 + $0x30] sm:$0xff] }
 0x46c   : > { %v10960_v10 = vpop.f32.mrb[30].mxu0  ;;  %v2021_v18 = vadd.f32 %v8363_v55, %v2013_v39  ;;  %v2011_v25 = vld [vmem:[#allocation2 + $0x20] sm:$0xff] }
 0x46d   : > { %v10962_v34 = vpop.f32.mrb[31].mxu0  ;;  %v2019_v32 = vadd.f32 %v2011_v25, %v1992_v44  ;;  %v2014_v13 = vld [vmem:[#allocation2 + $0x38] sm:$0xff]  ;;  %v2164_v19 = vld [vmem:[#allocation2 + $0x10] sm:$0xff] }
 0x46e   : > { %2029 = vst.msk [vmem:[#allocation2 + $0x30] sm:$0xff] %vm1517_vm11, %v2021_v18  ;;  %v2022_v15 = vadd.f32 %v8364_v45, %v2014_v13  ;;  %v2012_v12 = vld [vmem:[#allocation2 + $0x28] sm:$0xff]  ;;  %v2172_v4 = vadd.f32 %v10908_v9, %v2164_v19  ;;  %v2162_v24 = vld [vmem:[#allocation2] sm:$0xff] }
 0x46f   : > { %2027 = vst.msk [vmem:[#allocation2 + $0x20] sm:$0xff] %vm1517_vm11, %v2019_v32  ;;  %v2020_v56 = vadd.f32 %v2012_v12, %v1995_v11  ;;  %v8379_v42 = vpop.f32.mrb[24].mxu1  ;;  %v2170_v29 = vadd.f32 %v2162_v24, %v10911_v46  ;;  %v2165_v55 = vld [vmem:[#allocation2 + $0x18] sm:$0xff] }
 0x470   : > { %2030 = vst.msk [vmem:[#allocation2 + $0x38] sm:$0xff] %vm1517_vm11, %v2022_v15  ;;  %2180 = vst.msk [vmem:[#allocation2 + $0x10] sm:$0xff] %vm1517_vm11, %v2172_v4  ;;  %v2286_v44 = vpop.f32.mrb[25].mxu1  ;;  %v2173_v39 = vadd.f32 %v10914_v40, %v2165_v55  ;;  %v2163_v18 = vld [vmem:[#allocation2 + $0x8] sm:$0xff] }
 0x471   : > { %2028 = vst.msk [vmem:[#allocation2 + $0x28] sm:$0xff] %vm1517_vm11, %v2020_v56  ;;  %2178 = vst.msk [vmem:[#allocation2] sm:$0xff] %vm1517_vm11, %v2170_v29  ;;  %v8380_v9 = vpop.f32.mrb[26].mxu1  ;;  %v2171_v45 = vadd.f32 %v2163_v18, %v10917_v28 }
 0x472   : > { %2181 = vst.msk [vmem:[#allocation2 + $0x18] sm:$0xff] %vm1517_vm11, %v2173_v39  ;;  %v2289_v11 = vpop.f32.mrb[27].mxu1 }
 0x473   : > { %2179 = vst.msk [vmem:[#allocation2 + $0x8] sm:$0xff] %vm1517_vm11, %v2171_v45 }
 0x475   : > { %v2168_v46 = vld [vmem:[#allocation2 + $0x30] sm:$0xff] }
 0x476   : > { %v2176_v25 = vadd.f32 %v10920_v36, %v2168_v46  ;;  %v2166_v32 = vld [vmem:[#allocation2 + $0x20] sm:$0xff] }
 0x477   : > { %v2319_v13 = vld [vmem:[#allocation2 + $0x10] sm:$0xff]  ;;  %v8383_v19 = vpop.f32.mrb[28].mxu1  ;;  %v2174_v40 = vadd.f32 %v2166_v32, %v10923_v16  ;;  %v2169_v15 = vld [vmem:[#allocation2 + $0x38] sm:$0xff] }
 0x478   : > { %v2327_v12 = vadd.f32 %v8379_v42, %v2319_v13  ;;  %v2317_v4 = vld [vmem:[#allocation2] sm:$0xff]  ;;  %2184 = vst.msk [vmem:[#allocation2 + $0x30] sm:$0xff] %vm1517_vm11, %v2176_v25  ;;  %v2302_v29 = vpop.f32.mrb[29].mxu1  ;;  %v2177_v28 = vadd.f32 %v10926_v26, %v2169_v15  ;;  %v2167_v24 = vld [vmem:[#allocation2 + $0x28] sm:$0xff] }
 0x479   : > { %v2325_v56 = vadd.f32 %v2317_v4, %v2286_v44  ;;  %v2320_v55 = vld [vmem:[#allocation2 + $0x18] sm:$0xff]  ;;  %2182 = vst.msk [vmem:[#allocation2 + $0x20] sm:$0xff] %vm1517_vm11, %v2174_v40  ;;  %v8384_v39 = vpop.f32.mrb[30].mxu1  ;;  %v2175_v36 = vadd.f32 %v2167_v24, %v10929_v27 }
 0x47a   : > { %2335 = vst.msk [vmem:[#allocation2 + $0x10] sm:$0xff] %vm1517_vm11, %v2327_v12  ;;  %v2328_v18 = vadd.f32 %v8380_v9, %v2320_v55  ;;  %v2318_v16 = vld [vmem:[#allocation2 + $0x8] sm:$0xff]  ;;  %2185 = vst.msk [vmem:[#allocation2 + $0x38] sm:$0xff] %vm1517_vm11, %v2177_v28  ;;  %v2305_v42 = vpop.f32.mrb[31].mxu1 }
 0x47b   : > { %2333 = vst.msk [vmem:[#allocation2] sm:$0xff] %vm1517_vm11, %v2325_v56  ;;  %v2326_v45 = vadd.f32 %v2318_v16, %v2289_v11  ;;  %2183 = vst.msk [vmem:[#allocation2 + $0x28] sm:$0xff] %vm1517_vm11, %v2175_v36  ;;  %v7852_v56 = vld [vmem:[#allocation12] ss:$0 sm:$0xff] }
 0x47c   : > { %2336 = vst.msk [vmem:[#allocation2 + $0x18] sm:$0xff] %vm1517_vm11, %v2328_v18 }
 0x47d   : > { %2334 = vst.msk [vmem:[#allocation2 + $0x8] sm:$0xff] %vm1517_vm11, %v2326_v45 }
 0x47f   : > { %v2323_v26 = vld [vmem:[#allocation2 + $0x30] sm:$0xff] }
 0x480   : > { %v2331_v44 = vadd.f32 %v8383_v19, %v2323_v26  ;;  %v2321_v46 = vld [vmem:[#allocation2 + $0x20] sm:$0xff] }
 0x481   : > { %v2474_v27 = vld [vmem:[#allocation2 + $0x10] sm:$0xff]  ;;  %v2329_v25 = vadd.f32 %v2321_v46, %v2302_v29  ;;  %v2324_v32 = vld [vmem:[#allocation2 + $0x38] sm:$0xff] }
 0x482   : > { %v2482_v9 = vadd.f32 %v10936_v43, %v2474_v27  ;;  %v2472_v13 = vld [vmem:[#allocation2] sm:$0xff]  ;;  %2339 = vst.msk [vmem:[#allocation2 + $0x30] sm:$0xff] %vm1517_vm11, %v2331_v44  ;;  %v2332_v40 = vadd.f32 %v8384_v39, %v2324_v32  ;;  %v2322_v15 = vld [vmem:[#allocation2 + $0x28] sm:$0xff] }
 0x483   : > { %v2480_v11 = vadd.f32 %v2472_v13, %v10938_v23  ;;  %v2475_v12 = vld [vmem:[#allocation2 + $0x18] sm:$0xff]  ;;  %2337 = vst.msk [vmem:[#allocation2 + $0x20] sm:$0xff] %vm1517_vm11, %v2329_v25  ;;  %v2330_v4 = vadd.f32 %v2322_v15, %v2305_v42  ;;  %v12499_v25 = vmov 0.0  }
 0x484   : > { %2490 = vst.msk [vmem:[#allocation2 + $0x10] sm:$0xff] %vm1517_vm11, %v2482_v9  ;;  %v2483_v19 = vadd.f32 %v10941_v38, %v2475_v12  ;;  %v2473_v28 = vld [vmem:[#allocation2 + $0x8] sm:$0xff]  ;;  %2340 = vst.msk [vmem:[#allocation2 + $0x38] sm:$0xff] %vm1517_vm11, %v2332_v40  ;;  %v9014_v15 = vld [vmem:[#allocation13 + $0x28] sm:$0xff]  }
 0x485   : > { %2488 = vst.msk [vmem:[#allocation2] sm:$0xff] %vm1517_vm11, %v2480_v11  ;;  %v2481_v43 = vadd.f32 %v2473_v28, %v10944_v30  ;;  %2338 = vst.msk [vmem:[#allocation2 + $0x28] sm:$0xff] %vm1517_vm11, %v2330_v4  ;;  %v9013_v40 = vld [vmem:[#allocation13 + $0x20] sm:$0xff]  }
 0x486   : > { %2491 = vst.msk [vmem:[#allocation2 + $0x18] sm:$0xff] %vm1517_vm11, %v2483_v19 }
 0x487   : > { %2489 = vst.msk [vmem:[#allocation2 + $0x8] sm:$0xff] %vm1517_vm11, %v2481_v43 }
 0x489   : > { %v2478_v23 = vld [vmem:[#allocation2 + $0x30] sm:$0xff] }
 0x48a   : > { %v2486_v29 = vadd.f32 %v10956_v58, %v2478_v23  ;;  %v2476_v24 = vld [vmem:[#allocation2 + $0x20] sm:$0xff] }
 0x48b   : > { %v2484_v38 = vadd.f32 %v2476_v24, %v10958_v8  ;;  %v2479_v55 = vld [vmem:[#allocation2 + $0x38] sm:$0xff]  ;;  %v2498_v39 = vld [vmem:[#allocation2 + $0x10] sm:$0xff] }
 0x48c   : > { %2494 = vst.msk [vmem:[#allocation2 + $0x30] sm:$0xff] %vm1517_vm11, %v2486_v29  ;;  %v2487_v36 = vadd.f32 %v10960_v10, %v2479_v55  ;;  %v2477_v30 = vld [vmem:[#allocation2 + $0x28] sm:$0xff]  ;;  %v2496_v18 = vld [vmem:[#allocation2] sm:$0xff]  ;;  %v2513_v45 = vadd.f32 %v7852_v56, %v2498_v39 }
 0x48d   : > { %2492 = vst.msk [vmem:[#allocation2 + $0x20] sm:$0xff] %vm1517_vm11, %v2484_v38  ;;  %v2485_v16 = vadd.f32 %v2477_v30, %v10962_v34  ;;  %v2511_v42 = vadd.f32 %v7852_v56, %v2496_v18  ;;  %v2499_v26 = vld [vmem:[#allocation2 + $0x18] sm:$0xff] }
 0x48e   : > { %2495 = vst.msk [vmem:[#allocation2 + $0x38] sm:$0xff] %vm1517_vm11, %v2487_v36  ;;  %v2497_v58 = vld [vmem:[#allocation2 + $0x8] sm:$0xff]  ;;  %v2514_v44 = vadd.f32 %v7852_v56, %v2499_v26  ;;  %v2521_v9 = vmax.f32 %v2513_v45, 0.0  ;;  %v9015_v55 = vld [vmem:[#allocation13 + $0x30] sm:$0xff]  }
 0x48f   : > { %2493 = vst.msk [vmem:[#allocation2 + $0x28] sm:$0xff] %vm1517_vm11, %v2485_v16  ;;  %v2519_v8 = vmax.f32 %v2511_v42, 0.0  ;;  %v2512_v46 = vadd.f32 %v7852_v56, %v2497_v58  ;;  %v9016_v36 = vld [vmem:[#allocation16] sm:$0xff]   ;;  %v9018_v45 = vld [vmem:[#allocation16 + $0x10] sm:$0xff]   ;;  %v8992_v58 = vpop.permute.xlu0 %8991 }
 0x490   : > { %v2522_v27 = vmax.f32 %v2514_v44, 0.0  ;;  %v12635_v44 = vmov 0.0|0.0  }
 0x491   : > { %v2552_v10 = vpack.c.bf16 %v2519_v8, %v12499_v25  ;;  %v2520_v32 = vmax.f32 %v2512_v46, 0.0  ;;  %v8994_v46 = vunpack.i.h.bf16 %v8992_v58 }
 0x492   : > { %v2674_v11 = vpack.c.bf16 %v2522_v27, %v2521_v9 }
 0x493   : > { %8398 = vmatmul.mubr.msk.bf16.vlgmr.msra.gmra.mrb[32].mxu1 %vm1517_vm11, %v2552_v10  ;;  %v2553_v34 = vpack.c.bf16 %v2521_v9, %v2520_v32  ;;  %v2673_v13 = vpack.c.bf16 %v2520_v32, %v2519_v8  ;;  %v2502_v24 = vld [vmem:[#allocation2 + $0x30] sm:$0xff]  ;;  %v3541_v8 = vpop.permute.xlu1 %3540  ;;  %v9020_v9 = vld [vmem:[#allocation16 + $0x20] sm:$0xff]  }
 0x494   : > { %8416 = vmatpush3.bf16.msra.mxu1 %v10884_v33  ;;  %v2500_v12 = vld [vmem:[#allocation2 + $0x20] sm:$0xff]  ;;  %v3573_v32 = vpack.c.bf16 %v3541_v8, %v12499_v25 }
 0x495   : > { %8401 = vmatprep.mubr.msk.bf16.mxu1 %vm1517_vm11, %v2553_v34  ;;  %8408 = vmatmul.mubr.msk.bf16.vlgmr.msra.gmra.mrb[32].mxu0 %vm1517_vm11, %v2673_v13  ;;  %v2515_v4 = vadd.f32 %v7852_v56, %v2500_v12  ;;  %v2503_v38 = vld [vmem:[#allocation2 + $0x38] sm:$0xff] }
 0x496   : > { %8411 = vmatprep.mubr.msk.bf16.mxu0 %vm1517_vm11, %v2674_v11  ;;  %8426 = vmatpush3.bf16.msra.mxu0 %v10889_v37  ;;  %v2501_v19 = vld [vmem:[#allocation2 + $0x28] sm:$0xff]  ;;  %v2517_v37 = vadd.f32 %v7852_v56, %v2502_v24  ;;  %v2518_v39 = vadd.f32 %v7852_v56, %v2503_v38 }
 0x497   : > { %v2523_v28 = vmax.f32 %v2515_v4, 0.0  ;;  %v2516_v43 = vadd.f32 %v7852_v56, %v2501_v19  ;;  %8435 = vmatprep.subr.bf16.mxu1 %v9013_v40  ;;  %8445 = vmatprep.subr.bf16.mxu0 %v9014_v15  ;;  %v9017_v56 = vld [vmem:[#allocation16 + $0x8] sm:$0xff]  }
 0x498   : > { %v2525_v30 = vmax.f32 %v2517_v37, 0.0  ;;  %v2526_v18 = vmax.f32 %v2518_v39, 0.0  ;;  %v9021_v4 = vld [vmem:[#allocation16 + $0x28] sm:$0xff]  }
 0x499   : > { %v2554_v23 = vpack.c.bf16 %v2523_v28, %v2522_v27  ;;  %v2524_v29 = vmax.f32 %v2516_v43, 0.0  ;;  %v8993_v27 = vunpack.i.l.bf16 %v8992_v58  ;;  %v3551_v43 = vpop.permute.xlu0 %3550 }
 0x49a   : > { %v2927_v42 = vpack.c.bf16 %v2526_v18, %v2525_v30  ;;  %v3065_v26 = vpack.c.bf16 %v12499_v25, %v2526_v18 }
 0x49b   : > { %8402 = vmatmul.mubr.msk.bf16.gmra.mrb[36].mxu1 %vm1517_vm11, %v2554_v23  ;;  %v2675_v33 = vpack.c.bf16 %v2524_v29, %v2523_v28  ;;  %v2813_v16 = vpack.c.bf16 %v2525_v30, %v2524_v29  ;;  %v3678_v12 = vpack.c.bf16 %v8993_v27, %v3541_v8  ;;  %v9022_v28 = vld [vmem:[#allocation16 + $0x30] sm:$0xff]  }
 0x49c   : > { %8417 = vmatprep.mubr.msk.bf16.mxu1 %vm1517_vm11, %v2552_v10  ;;  %v9019_v10 = vld [vmem:[#allocation16 + $0x18] sm:$0xff]  }
 0x49d   : > { %8412 = vmatmul.mubr.msk.bf16.gmra.mrb[36].mxu0 %vm1517_vm11, %v2675_v33  ;;  %v3917_v24 = vpop.permute.xlu0 %3916 }
 0x49e   : > { %8427 = vmatprep.mubr.msk.bf16.mxu0 %vm1517_vm11, %v2673_v13  ;;  %v8997_v13 = vpop.permute.xlu1 %8996 }
 0x4a3   : > { %8418 = vmatmul.mubr.msk.bf16.vlgmr.msra.gmra.mrb[40].mxu1 %vm1517_vm11, %v2553_v34 }
 0x4a4   : > { %8436 = vmatpush3.bf16.msra.mxu1 %v9013_v40  ;;  %8421 = vmatprep.mubr.msk.bf16.mxu1 %vm1517_vm11, %v2554_v23  ;;  %v8999_v40 = vunpack.i.h.bf16 %v8997_v13 }
 0x4a5   : > { %8428 = vmatmul.mubr.msk.bf16.vlgmr.msra.gmra.mrb[40].mxu0 %vm1517_vm11, %v2674_v11  ;;  %8455 = vmatprep.subr.bf16.mxu1 %v9015_v55 }
 0x4a6   : > { %8431 = vmatprep.mubr.msk.bf16.mxu0 %vm1517_vm11, %v2675_v33  ;;  %8446 = vmatpush3.bf16.msra.mxu0 %v9014_v15  ;;  %v8998_v15 = vunpack.i.l.bf16 %v8997_v13  ;;  %v3680_v29 = vpack.c.bf16 %v3551_v43, %v8999_v40 }
 0x4a7   : > { %8465 = vmatprep.subr.bf16.mxu0 %v9016_v36 }
 0x4a8   : > { %v3679_v19 = vpack.c.bf16 %v8998_v15, %v8994_v46 }
 0x4ab   : > { %8422 = vmatmul.mubr.msk.bf16.gmra.mrb[44].mxu1 %vm1517_vm11, %v2813_v16 }
 0x4ac   : > { %8437 = vmatprep.mubr.msk.bf16.mxu1 %vm1517_vm11, %v2553_v34  ;;  %v3574_v34 = vpack.c.bf16 %v8994_v46, %v8993_v27  ;;  %v9023_v46 = vld [vmem:[#allocation19] sm:$0xff]   ;;  %v9024_v27 = vld [vmem:[#allocation19 + $0x8] sm:$0xff]  }
 0x4ad   : > { %8432 = vmatmul.mubr.msk.bf16.gmra.mrb[44].mxu0 %vm1517_vm11, %v2927_v42 }
 0x4ae   : > { %8447 = vmatprep.mubr.msk.bf16.mxu0 %vm1517_vm11, %v2674_v11  ;;  %v3575_v11 = vpack.c.bf16 %v8999_v40, %v8998_v15 }
 0x4b3   : > { %8438 = vmatmul.mubr.msk.bf16.vlgmr.msra.gmra.mrb[48].mxu1 %vm1517_vm11, %v2554_v23 }
 0x4b4   : > { %8456 = vmatpush3.bf16.msra.mxu1 %v9015_v55  ;;  %8441 = vmatprep.mubr.msk.bf16.mxu1 %vm1517_vm11, %v2813_v16  ;;  %v3921_v55 = vpop.permute.xlu0 %3920 }
 0x4b5   : > { %8448 = vmatmul.mubr.msk.bf16.vlgmr.msra.gmra.mrb[48].mxu0 %vm1517_vm11, %v2675_v33  ;;  %8475 = vmatprep.subr.bf16.mxu1 %v9017_v56 }
 0x4b6   : > { %8451 = vmatprep.mubr.msk.bf16.mxu0 %vm1517_vm11, %v2927_v42  ;;  %8466 = vmatpush3.bf16.msra.mxu0 %v9016_v36 }
 0x4b7   : > { %8485 = vmatprep.subr.bf16.mxu0 %v9018_v45 }
 0x4b8   : > { %v3555_v37 = vpop.permute.xlu0 %3554 }
 0x4b9   : > { %v4042_v36 = vpack.c.bf16 %v12499_v25, %v3555_v37 }
 0x4bb   : > { %8442 = vmatmul.mubr.msk.bf16.gmra.mrb[52].mxu1 %vm1517_vm11, %v3065_v26 }
 0x4bc   : > { %8457 = vmatprep.mubr.msk.bf16.mxu1 %vm1517_vm11, %v2554_v23  ;;  %v3553_v23 = vpop.permute.xlu1 %3552 }
 0x4bd   : > { %8452 = vmatmul.mubr.bf16.gmra.mrb[52].mxu0 %v12635_v44  ;;  %v3802_v33 = vpack.c.bf16 %v3553_v23, %v3551_v43  ;;  %v4163_v30 = vpack.c.bf16 %v3555_v37, %v3553_v23 }
 0x4be   : > { %8467 = vmatprep.mubr.bf16.mxu0 %v12635_v44 }
 0x4c0   : > { %v3919_v38 = vpop.permute.xlu1 %3918 }
 0x4c3   : > { %8458 = vmatmul.mubr.msk.bf16.vlgmr.msra.gmra.mrb[56].mxu1 %vm1517_vm11, %v2813_v16 }
 0x4c4   : > { %8476 = vmatpush3.bf16.msra.mxu1 %v9017_v56  ;;  %8461 = vmatprep.mubr.msk.bf16.mxu1 %vm1517_vm11, %v3065_v26  ;;  %v3923_v39 = vpop.permute.xlu1 %3922 }
 0x4c5   : > { %8468 = vmatmul.mubr.msk.bf16.vlgmr.msra.gmra.mrb[56].mxu0 %vm1517_vm11, %v3573_v32  ;;  %8495 = vmatprep.subr.bf16.mxu1 %v9019_v10 }
 0x4c6   : > { %8471 = vmatprep.mubr.msk.bf16.mxu0 %vm1517_vm11, %v3574_v34  ;;  %8486 = vmatpush3.bf16.msra.mxu0 %v9018_v45 }
 0x4c7   : > { %8505 = vmatprep.subr.bf16.mxu0 %v9020_v9 }
 0x4cb   : > { %8462 = vmatmul.mubr.bf16.gmra.mrb[60].mxu1 %v12635_v44 }
 0x4cc   : > { %8477 = vmatprep.mubr.bf16.mxu1 %v12635_v44 }
 0x4cd   : > { %8472 = vmatmul.mubr.msk.bf16.gmra.mrb[60].mxu0 %vm1517_vm11, %v3575_v11 }
 0x4ce   : > { %8487 = vmatprep.mubr.msk.bf16.mxu0 %vm1517_vm11, %v3573_v32 }
 0x4d3   : > { %8478 = vmatmul.mubr.msk.bf16.vlgmr.msra.gmra.mrb[64].mxu1 %vm1517_vm11, %v3678_v12 }
 0x4d4   : > { %8481 = vmatprep.mubr.msk.bf16.mxu1 %vm1517_vm11, %v3679_v19  ;;  %8496 = vmatpush3.bf16.msra.mxu1 %v9019_v10 }
 0x4d5   : > { %8488 = vmatmul.mubr.msk.bf16.vlgmr.msra.gmra.mrb[64].mxu0 %vm1517_vm11, %v3574_v34  ;;  %8515 = vmatprep.subr.bf16.mxu1 %v9021_v4 }
 0x4d6   : > { %8491 = vmatprep.mubr.msk.bf16.mxu0 %vm1517_vm11, %v3575_v11  ;;  %8506 = vmatpush3.bf16.msra.mxu0 %v9020_v9 }
 0x4d7   : > { %8525 = vmatprep.subr.bf16.mxu0 %v9022_v28 }
 0x4db   : > { %8482 = vmatmul.mubr.msk.bf16.gmra.mrb[68].mxu1 %vm1517_vm11, %v3680_v29 }
 0x4dc   : > { %8497 = vmatprep.mubr.msk.bf16.mxu1 %vm1517_vm11, %v3917_v24 }
 0x4dd   : > { %8492 = vmatmul.mubr.msk.bf16.gmra.mrb[68].mxu0 %vm1517_vm11, %v3802_v33 }
 0x4de   : > { %8507 = vmatprep.mubr.msk.bf16.mxu0 %vm1517_vm11, %v3574_v34 }
 0x4e3   : > { %8498 = vmatmul.mubr.msk.bf16.vlgmr.msra.gmra.mrb[72].mxu1 %vm1517_vm11, %v3919_v38 }
 0x4e4   : > { %8501 = vmatprep.mubr.msk.bf16.mxu1 %vm1517_vm11, %v3921_v55  ;;  %8516 = vmatpush3.bf16.msra.mxu1 %v9021_v4 }
 0x4e5   : > { %8508 = vmatmul.mubr.msk.bf16.vlgmr.msra.gmra.mrb[72].mxu0 %vm1517_vm11, %v3575_v11  ;;  %8535 = vmatprep.subr.bf16.mxu1 %v9023_v46 }
 0x4e6   : > { %8511 = vmatprep.mubr.msk.bf16.mxu0 %vm1517_vm11, %v3802_v33  ;;  %8526 = vmatpush3.bf16.msra.mxu0 %v9022_v28 }
 0x4e7   : > { %8545 = vmatprep.subr.bf16.mxu0 %v9024_v27 }
 0x4eb   : > { %8502 = vmatmul.mubr.msk.bf16.gmra.mrb[76].mxu1 %vm1517_vm11, %v3923_v39 }
 0x4ec   : > { %8517 = vmatprep.mubr.msk.bf16.mxu1 %vm1517_vm11, %v3679_v19 }
 0x4ed   : > { %8512 = vmatmul.mubr.msk.bf16.gmra.mrb[76].mxu0 %vm1517_vm11, %v4042_v36 }
 0x4ee   : > { %8527 = vmatprep.mubr.msk.bf16.mxu0 %vm1517_vm11, %v3575_v11 }
 0x4f3   : > { %8518 = vmatmul.mubr.msk.bf16.vlgmr.msra.gmra.mrb[80].mxu1 %vm1517_vm11, %v3680_v29 }
 0x4f4   : > { %8521 = vmatprep.mubr.msk.bf16.mxu1 %vm1517_vm11, %v4163_v30  ;;  %8536 = vmatpush3.bf16.msra.mxu1 %v9023_v46 }
 0x4f5   : > { %8528 = vmatmul.mubr.msk.bf16.vlgmr.msra.gmra.mrb[80].mxu0 %vm1517_vm11, %v3802_v33 }
 0x4f6   : > { %8531 = vmatprep.mubr.msk.bf16.mxu0 %vm1517_vm11, %v4042_v36  ;;  %8546 = vmatpush3.bf16.msra.mxu0 %v9024_v27 }
 0x4fb   : > { %8522 = vmatmul.mubr.bf16.gmra.mrb[84].mxu1 %v12635_v44 }
 0x4fd   : > { %8532 = vmatmul.mubr.bf16.gmra.mrb[84].mxu0 %v12635_v44 }
 0x566   : > { %v8399_v18 = vpop.f32.mrb[32].mxu1 }
 0x567   : > { %2642 = vst.msk [vmem:[#allocation3 + $0x10] sm:$0xff] %vm12636_vm0, %v8399_v18  ;;  %v2609_v16 = vpop.f32.mrb[33].mxu1 }
 0x568   : > { %2640 = vst.msk [vmem:[#allocation3] sm:$0xff] %vm12637_vm1, %v2609_v16  ;;  %v8400_v42 = vpop.f32.mrb[34].mxu1  ;;  %v8409_v56 = vpop.f32.mrb[32].mxu0  ;;  %vm12642_vm1 = vmmov %vm12636_vm0 }
 0x569   : > { %2643 = vst.msk [vmem:[#allocation3 + $0x18] sm:$0xff] %vm12638_vm4, %v8400_v42  ;;  %v2612_v45 = vpop.f32.mrb[35].mxu1  ;;  %v2731_v26 = vpop.f32.mrb[33].mxu0  ;;  %vm12640_vm4 = vmmov %vm12636_vm0 }
 0x56a   : > { %2641 = vst.msk [vmem:[#allocation3 + $0x8] sm:$0xff] %vm12639_vm5, %v2612_v45  ;;  %v8410_v58 = vpop.f32.mrb[34].mxu0  ;;  %vm12641_vm5 = vmmov %vm12636_vm0 }
 0x56b   : > { %v2734_v8 = vpop.f32.mrb[35].mxu0 }
 0x56e   : > { %v2764_v10 = vld [vmem:[#allocation3 + $0x10] sm:$0xff]  ;;  %v8403_v32 = vpop.f32.mrb[36].mxu1 }
 0x56f   : > { %v2772_v9 = vadd.f32 %v8409_v56, %v2764_v10  ;;  %v2762_v34 = vld [vmem:[#allocation3] sm:$0xff]  ;;  %2646 = vst.msk [vmem:[#allocation3 + $0x30] sm:$0xff] %vm12636_vm0, %v8403_v32  ;;  %v2625_v13 = vpop.f32.mrb[37].mxu1 }
 0x570   : > { %v2770_v40 = vadd.f32 %v2762_v34, %v2731_v26  ;;  %v2765_v15 = vld [vmem:[#allocation3 + $0x18] sm:$0xff]  ;;  %2644 = vst.msk [vmem:[#allocation3 + $0x20] sm:$0xff] %vm12640_vm4, %v2625_v13  ;;  %v8404_v11 = vpop.f32.mrb[38].mxu1  ;;  %v8413_v12 = vpop.f32.mrb[36].mxu0  ;;  %vm12645_vm4 = vmmov %vm12636_vm0  ;;  %v11082_v34 = vld [vmem:[#allocation19 + $0x10] sm:$0xff]  }
 0x571   : > { %2780 = vst.msk [vmem:[#allocation3 + $0x10] sm:$0xff] %vm12641_vm5, %v2772_v9  ;;  %v2773_v4 = vadd.f32 %v8410_v58, %v2765_v15  ;;  %v2763_v19 = vld [vmem:[#allocation3 + $0x8] sm:$0xff]  ;;  %v2628_v28 = vpop.f32.mrb[39].mxu1  ;;  %v2747_v43 = vpop.f32.mrb[37].mxu0  ;;  %vm12646_vm5 = vmmov %vm12636_vm0  ;;  %8555 = vmatprep.subr.bf16.mxu1 %v11082_v34 }
 0x572   : > { %2647 = vst.msk [vmem:[#allocation3 + $0x38] sm:$0xff] %vm12642_vm1, %v8404_v11  ;;  %v2771_v23 = vadd.f32 %v2763_v19, %v2734_v8  ;;  %v8414_v29 = vpop.f32.mrb[38].mxu0  ;;  %vm12649_vm1 = vmmov %vm12636_vm0 }
 0x573   : > { %2778 = vst.msk [vmem:[#allocation3] sm:$0xff] %vm12636_vm0, %v2770_v40  ;;  %v2750_v33 = vpop.f32.mrb[39].mxu0 }
 0x574   : > { %2645 = vst.msk [vmem:[#allocation3 + $0x28] sm:$0xff] %vm12643_vm9, %v2628_v28  ;;  %vm12648_vm9 = vmmov %vm12636_vm0 }
 0x575   : > { %2781 = vst.msk [vmem:[#allocation3 + $0x18] sm:$0xff] %vm12644_vm12, %v2773_v4  ;;  %vm12647_vm12 = vmmov %vm12636_vm0 }
 0x576   : > { %2779 = vst.msk [vmem:[#allocation3 + $0x8] sm:$0xff] %vm12645_vm4, %v2771_v23  ;;  %v2768_v24 = vld [vmem:[#allocation3 + $0x30] sm:$0xff]  ;;  %v8419_v38 = vpop.f32.mrb[40].mxu1  ;;  %vm12650_vm4 = vmmov %vm12636_vm0 }
 0x577   : > { %v2776_v55 = vadd.f32 %v8413_v12, %v2768_v24  ;;  %v2766_v37 = vld [vmem:[#allocation3 + $0x20] sm:$0xff]  ;;  %v2869_v39 = vpop.f32.mrb[41].mxu1 }
 0x578   : > { %v2774_v36 = vadd.f32 %v2766_v37, %v2747_v43  ;;  %v2902_v18 = vld [vmem:[#allocation3 + $0x10] sm:$0xff]  ;;  %v8420_v16 = vpop.f32.mrb[42].mxu1  ;;  %v8429_v42 = vpop.f32.mrb[40].mxu0 }
 0x579   : > { %v2769_v30 = vld [vmem:[#allocation3 + $0x38] sm:$0xff]  ;;  %2784 = vst.msk [vmem:[#allocation3 + $0x30] sm:$0xff] %vm12646_vm5, %v2776_v55  ;;  %v2910_v26 = vadd.f32 %v8419_v38, %v2902_v18  ;;  %v2872_v8 = vpop.f32.mrb[43].mxu1  ;;  %v2983_v46 = vpop.f32.mrb[41].mxu0  ;;  %vm12651_vm5 = vmmov %vm12636_vm0 }
 0x57a   : > { %v2777_v56 = vadd.f32 %v8414_v29, %v2769_v30  ;;  %v2900_v58 = vld [vmem:[#allocation3] sm:$0xff]  ;;  %2782 = vst.msk [vmem:[#allocation3 + $0x20] sm:$0xff] %vm12647_vm12, %v2774_v36  ;;  %v8430_v9 = vpop.f32.mrb[42].mxu0  ;;  %vm12652_vm12 = vmmov %vm12636_vm0  ;;  %v11091_v38 = vld [vmem:[#allocation19 + $0x18] sm:$0xff]  }
 0x57b   : > { %v2767_v45 = vld [vmem:[#allocation3 + $0x28] sm:$0xff]  ;;  %v2908_v10 = vadd.f32 %v2900_v58, %v2869_v39  ;;  %2918 = vst.msk [vmem:[#allocation3 + $0x10] sm:$0xff] %vm12649_vm1, %v2910_v26  ;;  %v2986_v15 = vpop.f32.mrb[43].mxu0  ;;  %8565 = vmatprep.subr.bf16.mxu0 %v11091_v38  ;;  %vm12654_vm1 = vmmov %vm12636_vm0 }
 0x57c   : > { %v2775_v27 = vadd.f32 %v2767_v45, %v2750_v33  ;;  %v2903_v32 = vld [vmem:[#allocation3 + $0x18] sm:$0xff]  ;;  %2785 = vst.msk [vmem:[#allocation3 + $0x38] sm:$0xff] %vm12648_vm9, %v2777_v56  ;;  %vm12653_vm9 = vmmov %vm12636_vm0 }
 0x57d   : > { %v2911_v13 = vadd.f32 %v8420_v16, %v2903_v32  ;;  %v2901_v40 = vld [vmem:[#allocation3 + $0x8] sm:$0xff]  ;;  %2916 = vst.msk [vmem:[#allocation3] sm:$0xff] %vm12650_vm4, %v2908_v10  ;;  %vm12655_vm4 = vmmov %vm12636_vm0 }
 0x57e   : > { %2783 = vst.msk [vmem:[#allocation3 + $0x28] sm:$0xff] %vm12636_vm0, %v2775_v27  ;;  %v2909_v11 = vadd.f32 %v2901_v40, %v2872_v8  ;;  %v8423_v12 = vpop.f32.mrb[44].mxu1 }
 0x57f   : > { %2919 = vst.msk [vmem:[#allocation3 + $0x18] sm:$0xff] %vm12651_vm5, %v2911_v13  ;;  %v2885_v4 = vpop.f32.mrb[45].mxu1  ;;  %vm12656_vm5 = vmmov %vm12636_vm0 }
 0x580   : > { %2917 = vst.msk [vmem:[#allocation3 + $0x8] sm:$0xff] %vm12652_vm12, %v2909_v11  ;;  %v2906_v19 = vld [vmem:[#allocation3 + $0x30] sm:$0xff]  ;;  %v8424_v28 = vpop.f32.mrb[46].mxu1  ;;  %v8433_v43 = vpop.f32.mrb[44].mxu0  ;;  %vm12657_vm12 = vmmov %vm12636_vm0 }
 0x581   : > { %v2914_v23 = vadd.f32 %v8423_v12, %v2906_v19  ;;  %v2904_v29 = vld [vmem:[#allocation3 + $0x20] sm:$0xff]  ;;  %v2888_v33 = vpop.f32.mrb[47].mxu1  ;;  %v2999_v24 = vpop.f32.mrb[45].mxu0 }
 0x582   : > { %v3016_v55 = vld [vmem:[#allocation3 + $0x10] sm:$0xff]  ;;  %v2912_v37 = vadd.f32 %v2904_v29, %v2885_v4  ;;  %v8434_v36 = vpop.f32.mrb[46].mxu0 }
 0x583   : > { %v2907_v39 = vld [vmem:[#allocation3 + $0x38] sm:$0xff]  ;;  %v3024_v30 = vadd.f32 %v8429_v42, %v3016_v55  ;;  %2922 = vst.msk [vmem:[#allocation3 + $0x30] sm:$0xff] %vm12653_vm9, %v2914_v23  ;;  %v3002_v45 = vpop.f32.mrb[47].mxu0  ;;  %vm12658_vm9 = vmmov %vm12636_vm0 }
 0x584   : > { %v3014_v18 = vld [vmem:[#allocation3] sm:$0xff]  ;;  %v2915_v16 = vadd.f32 %v8424_v28, %v2907_v39  ;;  %2920 = vst.msk [vmem:[#allocation3 + $0x20] sm:$0xff] %vm12654_vm1, %v2912_v37  ;;  %vm12660_vm1 = vmmov %vm12636_vm0 }
 0x585   : > { %v2905_v56 = vld [vmem:[#allocation3 + $0x28] sm:$0xff]  ;;  %v3022_v26 = vadd.f32 %v3014_v18, %v2983_v46  ;;  %3032 = vst.msk [vmem:[#allocation3 + $0x10] sm:$0xff] %vm12636_vm0, %v3024_v30 }
 0x586   : > { %v3017_v58 = vld [vmem:[#allocation3 + $0x18] sm:$0xff]  ;;  %v2913_v8 = vadd.f32 %v2905_v56, %v2888_v33  ;;  %2923 = vst.msk [vmem:[#allocation3 + $0x38] sm:$0xff] %vm12655_vm4, %v2915_v16  ;;  %v8439_v32 = vpop.f32.mrb[48].mxu1  ;;  %vm12662_vm4 = vmmov %vm12636_vm0 }
 0x587   : > { %v3025_v27 = vadd.f32 %v8430_v9, %v3017_v58  ;;  %v3015_v10 = vld [vmem:[#allocation3 + $0x8] sm:$0xff]  ;;  %3030 = vst.msk [vmem:[#allocation3] sm:$0xff] %vm12656_vm5, %v3022_v26  ;;  %v3121_v13 = vpop.f32.mrb[49].mxu1  ;;  %vm12663_vm5 = vmmov %vm12636_vm0 }
 0x588   : > { %v3023_v42 = vadd.f32 %v3015_v10, %v2986_v15  ;;  %2921 = vst.msk [vmem:[#allocation3 + $0x28] sm:$0xff] %vm12657_vm12, %v2913_v8  ;;  %v8440_v46 = vpop.f32.mrb[50].mxu1  ;;  %v8449_v40 = vpop.f32.mrb[48].mxu0  ;;  %vm12664_vm12 = vmmov %vm12636_vm0 }
 0x589   : > { %3033 = vst.msk [vmem:[#allocation3 + $0x18] sm:$0xff] %vm12658_vm9, %v3025_v27  ;;  %v3124_v11 = vpop.f32.mrb[51].mxu1  ;;  %v3259_v12 = vpop.f32.mrb[49].mxu0  ;;  %vm12665_vm9 = vmmov %vm12636_vm0 }
 0x58a   : > { %3031 = vst.msk [vmem:[#allocation3 + $0x8] sm:$0xff] %vm12659_vm15, %v3023_v42  ;;  %v3020_v4 = vld [vmem:[#allocation3 + $0x30] sm:$0xff]  ;;  %v8450_v9 = vpop.f32.mrb[50].mxu0  ;;  %vm12661_vm15 = vmmov %vm12636_vm0 }
 0x58b   : > { %v3028_v19 = vadd.f32 %v8433_v43, %v3020_v4  ;;  %v3018_v28 = vld [vmem:[#allocation3 + $0x20] sm:$0xff]  ;;  %v3262_v23 = vpop.f32.mrb[51].mxu0 }
 0x58c   : > { %v3026_v29 = vadd.f32 %v3018_v28, %v2999_v24  ;;  %v3154_v15 = vld [vmem:[#allocation3 + $0x10] sm:$0xff] }
 0x58d   : > { %v3021_v33 = vld [vmem:[#allocation3 + $0x38] sm:$0xff]  ;;  %3036 = vst.msk [vmem:[#allocation3 + $0x30] sm:$0xff] %vm12660_vm1, %v3028_v19  ;;  %v3162_v39 = vadd.f32 %v8439_v32, %v3154_v15  ;;  %vm12666_vm1 = vmmov %vm12636_vm0 }
 0x58e   : > { %v3029_v55 = vadd.f32 %v8434_v36, %v3021_v33  ;;  %v3152_v30 = vld [vmem:[#allocation3] sm:$0xff]  ;;  %3034 = vst.msk [vmem:[#allocation3 + $0x20] sm:$0xff] %vm12636_vm0, %v3026_v29  ;;  %v8443_v26 = vpop.f32.mrb[52].mxu1 }
 0x58f   : > { %v3019_v37 = vld [vmem:[#allocation3 + $0x28] sm:$0xff]  ;;  %v3160_v16 = vadd.f32 %v3152_v30, %v3121_v13  ;;  %3170 = vst.msk [vmem:[#allocation3 + $0x10] sm:$0xff] %vm12662_vm4, %v3162_v39  ;;  %v3137_v58 = vpop.f32.mrb[53].mxu1  ;;  %vm12668_vm4 = vmmov %vm12636_vm0 }
 0x590   : > { %v3027_v18 = vadd.f32 %v3019_v37, %v3002_v45  ;;  %v3155_v56 = vld [vmem:[#allocation3 + $0x18] sm:$0xff]  ;;  %3037 = vst.msk [vmem:[#allocation3 + $0x38] sm:$0xff] %vm12661_vm15, %v3029_v55  ;;  %v8444_v8 = vpop.f32.mrb[54].mxu1  ;;  %v8453_v27 = vpop.f32.mrb[52].mxu0  ;;  %vm12667_vm15 = vmmov %vm12636_vm0 }
 0x591   : > { %v3163_v43 = vadd.f32 %v8440_v46, %v3155_v56  ;;  %v3153_v24 = vld [vmem:[#allocation3 + $0x8] sm:$0xff]  ;;  %3168 = vst.msk [vmem:[#allocation3] sm:$0xff] %vm12664_vm12, %v3160_v16  ;;  %v3140_v45 = vpop.f32.mrb[55].mxu1  ;;  %v3275_v10 = vpop.f32.mrb[53].mxu0  ;;  %vm12670_vm12 = vmmov %vm12636_vm0 }
 0x592   : > { %3035 = vst.msk [vmem:[#allocation3 + $0x28] sm:$0xff] %vm12663_vm5, %v3027_v18  ;;  %v3161_v36 = vadd.f32 %v3153_v24, %v3124_v11  ;;  %v8454_v42 = vpop.f32.mrb[54].mxu0  ;;  %vm12669_vm5 = vmmov %vm12636_vm0 }
 0x593   : > { %3171 = vst.msk [vmem:[#allocation3 + $0x18] sm:$0xff] %vm12665_vm9, %v3163_v43  ;;  %v3278_v32 = vpop.f32.mrb[55].mxu0  ;;  %vm12671_vm9 = vmmov %vm12636_vm0 }
 0x594   : > { %3169 = vst.msk [vmem:[#allocation3 + $0x8] sm:$0xff] %vm12666_vm1, %v3161_v36  ;;  %v3158_v13 = vld [vmem:[#allocation3 + $0x30] sm:$0xff]  ;;  %vm12672_vm1 = vmmov %vm12636_vm0 }
 0x595   : > { %v3166_v4 = vadd.f32 %v8443_v26, %v3158_v13  ;;  %v3156_v46 = vld [vmem:[#allocation3 + $0x20] sm:$0xff] }
 0x596   : > { %v3292_v19 = vld [vmem:[#allocation3 + $0x10] sm:$0xff]  ;;  %v3164_v28 = vadd.f32 %v3156_v46, %v3137_v58  ;;  %v8459_v33 = vpop.f32.mrb[56].mxu1 }
 0x597   : > { %v3159_v29 = vld [vmem:[#allocation3 + $0x38] sm:$0xff]  ;;  %v3300_v15 = vadd.f32 %v8449_v40, %v3292_v19  ;;  %3174 = vst.msk [vmem:[#allocation3 + $0x30] sm:$0xff] %vm12636_vm0, %v3166_v4  ;;  %v3397_v39 = vpop.f32.mrb[57].mxu1 }
 0x598   : > { %v3290_v55 = vld [vmem:[#allocation3] sm:$0xff]  ;;  %v3167_v11 = vadd.f32 %v8444_v8, %v3159_v29  ;;  %3172 = vst.msk [vmem:[#allocation3 + $0x20] sm:$0xff] %vm12667_vm15, %v3164_v28  ;;  %v8460_v56 = vpop.f32.mrb[58].mxu1  ;;  %v8469_v43 = vpop.f32.mrb[56].mxu0  ;;  %vm12673_vm15 = vmmov %vm12636_vm0 }
 0x599   : > { %v3157_v37 = vld [vmem:[#allocation3 + $0x28] sm:$0xff]  ;;  %v3298_v30 = vadd.f32 %v3290_v55, %v3259_v12  ;;  %3308 = vst.msk [vmem:[#allocation3 + $0x10] sm:$0xff] %vm12668_vm4, %v3300_v15  ;;  %v3400_v40 = vpop.f32.mrb[59].mxu1  ;;  %v3630_v58 = vpop.f32.mrb[57].mxu0  ;;  %vm12674_vm4 = vmmov %vm12636_vm0 }
 0x59a   : > { %v3293_v18 = vld [vmem:[#allocation3 + $0x18] sm:$0xff]  ;;  %v3165_v16 = vadd.f32 %v3157_v37, %v3140_v45  ;;  %3175 = vst.msk [vmem:[#allocation3 + $0x38] sm:$0xff] %vm12669_vm5, %v3167_v11  ;;  %v8470_v12 = vpop.f32.mrb[58].mxu0  ;;  %vm12675_vm5 = vmmov %vm12636_vm0 }
 0x59b   : > { %v3301_v26 = vadd.f32 %v8450_v9, %v3293_v18  ;;  %v3291_v24 = vld [vmem:[#allocation3 + $0x8] sm:$0xff]  ;;  %3663 = vst.msk [vmem:[#allocation2 + $0x10] sm:$0xff] %vm1517_vm11, %v8469_v43  ;;  %3661 = vst.msk [vmem:[#allocation2] sm:$0xff] %vm1517_vm11, %v3630_v58  ;;  %v3633_v9 = vpop.f32.mrb[59].mxu0 }
 0x59c   : > { %3306 = vst.msk [vmem:[#allocation3] sm:$0xff] %vm12670_vm12, %v3298_v30  ;;  %v3299_v36 = vadd.f32 %v3291_v24, %v3262_v23  ;;  %vm12676_vm12 = vmmov %vm12636_vm0 }
 0x59d   : > { %3173 = vst.msk [vmem:[#allocation3 + $0x28] sm:$0xff] %vm12671_vm9, %v3165_v16  ;;  %vm12677_vm9 = vmmov %vm12636_vm0 }
 0x59e   : > { %3309 = vst.msk [vmem:[#allocation3 + $0x18] sm:$0xff] %vm12672_vm1, %v3301_v26  ;;  %v3296_v8 = vld [vmem:[#allocation3 + $0x30] sm:$0xff]  ;;  %v8463_v45 = vpop.f32.mrb[60].mxu1  ;;  %vm12678_vm1 = vmmov %vm12636_vm0 }
 0x59f   : > { %3664 = vst.msk [vmem:[#allocation2 + $0x18] sm:$0xff] %vm1517_vm11, %v8470_v12  ;;  %3662 = vst.msk [vmem:[#allocation2 + $0x8] sm:$0xff] %vm1517_vm11, %v3633_v9  ;;  %v3304_v13 = vadd.f32 %v8453_v27, %v3296_v8  ;;  %v3294_v4 = vld [vmem:[#allocation3 + $0x20] sm:$0xff]  ;;  %v3413_v46 = vpop.f32.mrb[61].mxu1 }
 0x5a0   : > { %3307 = vst.msk [vmem:[#allocation3 + $0x8] sm:$0xff] %vm12636_vm0, %v3299_v36  ;;  %v3302_v23 = vadd.f32 %v3294_v4, %v3275_v10  ;;  %v3430_v28 = vld [vmem:[#allocation3 + $0x10] sm:$0xff]  ;;  %v8464_v29 = vpop.f32.mrb[62].mxu1  ;;  %v8473_v15 = vpop.f32.mrb[60].mxu0 }
 0x5a1   : > { %v3297_v19 = vld [vmem:[#allocation3 + $0x38] sm:$0xff]  ;;  %3312 = vst.msk [vmem:[#allocation3 + $0x30] sm:$0xff] %vm12673_vm15, %v3304_v13  ;;  %v3438_v37 = vadd.f32 %v8459_v33, %v3430_v28  ;;  %v3416_v18 = vpop.f32.mrb[63].mxu1  ;;  %v3646_v16 = vpop.f32.mrb[61].mxu0  ;;  %vm12679_vm15 = vmmov %vm12636_vm0 }
 0x5a2   : > { %v3305_v55 = vadd.f32 %v8454_v42, %v3297_v19  ;;  %3667 = vst.msk [vmem:[#allocation2 + $0x30] sm:$0xff] %vm1517_vm11, %v8473_v15  ;;  %3665 = vst.msk [vmem:[#allocation2 + $0x20] sm:$0xff] %vm1517_vm11, %v3646_v16  ;;  %v8474_v10 = vpop.f32.mrb[62].mxu0  ;;  %v11134_v19 = vld [vmem:[#allocation15] ss:$0 sm:$0xff] }
 0x5a3   : > { %v3428_v30 = vld [vmem:[#allocation3] sm:$0xff]  ;;  %3310 = vst.msk [vmem:[#allocation3 + $0x20] sm:$0xff] %vm12674_vm4, %v3302_v23  ;;  %v3649_v33 = vpop.f32.mrb[63].mxu0  ;;  %vm12680_vm4 = vmmov %vm12636_vm0 }
 0x5a4   : > { %v3295_v11 = vld [vmem:[#allocation3 + $0x28] sm:$0xff]  ;;  %v3436_v43 = vadd.f32 %v3428_v30, %v3397_v39  ;;  %3313 = vst.msk [vmem:[#allocation3 + $0x38] sm:$0xff] %vm12675_vm5, %v3305_v55  ;;  %v3769_v39 = vld [vmem:[#allocation2 + $0x10] sm:$0xff]  ;;  %vm12681_vm5 = vmmov %vm12636_vm0 }
 0x5a5   : > { %v3303_v27 = vadd.f32 %v3295_v11, %v3278_v32  ;;  %v3431_v26 = vld [vmem:[#allocation3 + $0x18] sm:$0xff]  ;;  %3446 = vst.msk [vmem:[#allocation3 + $0x10] sm:$0xff] %vm12676_vm12, %v3438_v37  ;;  %vm12682_vm12 = vmmov %vm12636_vm0 }
 0x5a6   : > { %v3439_v42 = vadd.f32 %v8460_v56, %v3431_v26  ;;  %3668 = vst.msk [vmem:[#allocation2 + $0x38] sm:$0xff] %vm1517_vm11, %v8474_v10  ;;  %3666 = vst.msk [vmem:[#allocation2 + $0x28] sm:$0xff] %vm1517_vm11, %v3649_v33  ;;  %v8479_v32 = vpop.f32.mrb[64].mxu1  ;;  %v3767_v56 = vld [vmem:[#allocation2] sm:$0xff]  ;;  %v3770_v4 = vld [vmem:[#allocation2 + $0x18] sm:$0xff] }
 0x5a7   : > { %v3429_v24 = vld [vmem:[#allocation3 + $0x8] sm:$0xff]  ;;  %3311 = vst.msk [vmem:[#allocation3 + $0x28] sm:$0xff] %vm12677_vm9, %v3303_v27  ;;  %v3777_v36 = vadd.f32 %v8479_v32, %v3769_v39  ;;  %v3736_v12 = vpop.f32.mrb[65].mxu1  ;;  %vm12683_vm9 = vmmov %vm12636_vm0 }
 0x5a8   : > { %3444 = vst.msk [vmem:[#allocation3] sm:$0xff] %vm12678_vm1, %v3436_v43  ;;  %v3437_v58 = vadd.f32 %v3429_v24, %v3400_v40  ;;  %v3434_v9 = vld [vmem:[#allocation3 + $0x30] sm:$0xff]  ;;  %v3775_v8 = vadd.f32 %v3767_v56, %v3736_v12  ;;  %v8480_v13 = vpop.f32.mrb[66].mxu1  ;;  %v8489_v23 = vpop.f32.mrb[64].mxu0  ;;  %v3768_v11 = vld [vmem:[#allocation2 + $0x8] sm:$0xff]  ;;  %vm12684_vm1 = vcmp.lt.s32.totalorder %v10244_v1, 3 }
 0x5a9   : > { %3447 = vst.msk [vmem:[#allocation3 + $0x18] sm:$0xff] %vm12636_vm0, %v3439_v42  ;;  %v3442_v28 = vadd.f32 %v8463_v45, %v3434_v9  ;;  %v3778_v15 = vadd.f32 %v8480_v13, %v3770_v4  ;;  %v3739_v55 = vpop.f32.mrb[67].mxu1  ;;  %v3858_v37 = vpop.f32.mrb[65].mxu0  ;;  %v3773_v56 = vld [vmem:[#allocation2 + $0x30] sm:$0xff]  ;;  %vm12685_vm0 = vmmov %vm12684_vm1 }
 0x5aa   : > { %3445 = vst.msk [vmem:[#allocation3 + $0x8] sm:$0xff] %vm12679_vm15, %v3437_v58  ;;  %v3432_v40 = vld [vmem:[#allocation3 + $0x20] sm:$0xff]  ;;  %v3776_v27 = vadd.f32 %v3768_v11, %v3739_v55  ;;  %v8490_v43 = vpop.f32.mrb[66].mxu0  ;;  %vm12686_vm15 = vmmov %vm12685_vm0 }
 0x5ab   : > { %3785 = vst.msk [vmem:[#allocation2 + $0x10] sm:$0xff] %vm1517_vm11, %v3777_v36  ;;  %v3440_v30 = vadd.f32 %v3432_v40, %v3413_v46  ;;  %v3435_v16 = vld [vmem:[#allocation3 + $0x38] sm:$0xff]  ;;  %3783 = vst.msk [vmem:[#allocation2] sm:$0xff] %vm1517_vm11, %v3775_v8  ;;  %v3861_v45 = vpop.f32.mrb[67].mxu0 }
 0x5ac   : > { %v3454_v26 = vld [vmem:[#allocation3 + $0x10] sm:$0xff]  ;;  %3450 = vst.msk [vmem:[#allocation3 + $0x30] sm:$0xff] %vm12680_vm4, %v3442_v28  ;;  %v3443_v10 = vadd.f32 %v8464_v29, %v3435_v16  ;;  %vm12687_vm4 = vcmp.ge.s32.totalorder %v10377_v49, 0 }
 0x5ad   : > { %3786 = vst.msk [vmem:[#allocation2 + $0x18] sm:$0xff] %vm1517_vm11, %v3778_v15  ;;  %v3469_v24 = vadd.f32 %v11134_v19, %v3454_v26  ;;  %3784 = vst.msk [vmem:[#allocation2 + $0x8] sm:$0xff] %vm1517_vm11, %v3776_v27 }
 0x5ae   : > { %v3433_v42 = vld [vmem:[#allocation3 + $0x28] sm:$0xff]  ;;  %3448 = vst.msk [vmem:[#allocation3 + $0x20] sm:$0xff] %vm12681_vm5, %v3440_v30  ;;  %v8483_v12 = vpop.f32.mrb[68].mxu1  ;;  %v3774_v30 = vld [vmem:[#allocation2 + $0x38] sm:$0xff]  ;;  %vm12688_vm5 = vcmp.ge.s32.totalorder %v10380_v51, 0 }
 0x5af   : > { %v3452_v33 = vld [vmem:[#allocation3] sm:$0xff]  ;;  %v3441_v58 = vadd.f32 %v3433_v42, %v3416_v18  ;;  %3451 = vst.msk [vmem:[#allocation3 + $0x38] sm:$0xff] %vm12682_vm12, %v3443_v10  ;;  %v3477_v39 = vmax.f32 %v3469_v24, 0.0  ;;  %v3781_v8 = vadd.f32 %v8483_v12, %v3773_v56  ;;  %v3752_v13 = vpop.f32.mrb[69].mxu1  ;;  %v3772_v24 = vld [vmem:[#allocation2 + $0x28] sm:$0xff]  ;;  %vm12689_vm12 = vcmp.ge.s32.totalorder %v10434_v6, 0 }
 0x5b0   : > { %v3455_v46 = vld [vmem:[#allocation3 + $0x18] sm:$0xff]  ;;  %v3467_v32 = vadd.f32 %v11134_v19, %v3452_v33  ;;  %v3771_v18 = vld [vmem:[#allocation2 + $0x20] sm:$0xff]  ;;  %v8484_v11 = vpop.f32.mrb[70].mxu1  ;;  %v8493_v16 = vpop.f32.mrb[68].mxu0 }
 0x5b1   : > { %v3470_v29 = vadd.f32 %v11134_v19, %v3455_v46  ;;  %v3453_v36 = vld [vmem:[#allocation3 + $0x8] sm:$0xff]  ;;  %3449 = vst.msk [vmem:[#allocation3 + $0x28] sm:$0xff] %vm12683_vm9, %v3441_v58  ;;  %v8068_v4 = vpack.c.bf16 %v3477_v39, %v3477_v39  ;;  %v3779_v55 = vadd.f32 %v3771_v18, %v3752_v13  ;;  %v3782_v10 = vadd.f32 %v8484_v11, %v3774_v30  ;;  %v3755_v42 = vpop.f32.mrb[71].mxu1  ;;  %v3874_v33 = vpop.f32.mrb[69].mxu0 }
 0x5b2   : > { %v3468_v9 = vadd.f32 %v11134_v19, %v3453_v36  ;;  %v3475_v40 = vmax.f32 %v3467_v32, 0.0  ;;  %v3891_v15 = vld [vmem:[#allocation2 + $0x10] sm:$0xff]  ;;  %v3889_v26 = vld [vmem:[#allocation2] sm:$0xff]  ;;  %3789 = vst.msk [vmem:[#allocation2 + $0x30] sm:$0xff] %vm1517_vm11, %v3781_v8  ;;  %v8494_v36 = vpop.f32.mrb[70].mxu0  ;;  %vm12690_vm9 = vcmp.ge.s32.totalorder %v10437_v7, 0 }
 0x5b3   : > { %v3478_v28 = vmax.f32 %v3470_v29, 0.0  ;;  %v3899_v27 = vadd.f32 %v8489_v23, %v3891_v15  ;;  %3511 = vrot.lane.b32.xlu1 %v8068_v4, %s9649_s27  ;;  %v3897_v39 = vadd.f32 %v3889_v26, %v3858_v37  ;;  %3787 = vst.msk [vmem:[#allocation2 + $0x20] sm:$0xff] %vm1517_vm11, %v3779_v55  ;;  %v3780_v29 = vadd.f32 %v3772_v24, %v3755_v42  ;;  %v3458_v12 = vld [vmem:[#allocation3 + $0x30] sm:$0xff]  ;;  %v3877_v8 = vpop.f32.mrb[71].mxu0 }
 0x5b4   : > { %v3476_v46 = vmax.f32 %v3468_v9, 0.0  ;;  %v3892_v32 = vld [vmem:[#allocation2 + $0x18] sm:$0xff]  ;;  %v3890_v56 = vld [vmem:[#allocation2 + $0x8] sm:$0xff]  ;;  %3790 = vst.msk [vmem:[#allocation2 + $0x38] sm:$0xff] %vm1517_vm11, %v3782_v10  ;;  %v8066_v13 = vpack.c.bf16 %v3475_v40, %v3475_v40  ;;  %v3473_v18 = vadd.f32 %v11134_v19, %v3458_v12 }
 0x5b5   : > { %v8069_v58 = vpack.c.bf16 %v3478_v28, %v3478_v28  ;;  %3907 = vst.msk [vmem:[#allocation2 + $0x10] sm:$0xff] %vm1517_vm11, %v3899_v27  ;;  %v3900_v23 = vadd.f32 %v8490_v43, %v3892_v32  ;;  %v3456_v9 = vld [vmem:[#allocation3 + $0x20] sm:$0xff]  ;;  %3905 = vst.msk [vmem:[#allocation2] sm:$0xff] %vm1517_vm11, %v3897_v39  ;;  %v3898_v37 = vadd.f32 %v3890_v56, %v3861_v45 }
 0x5b6   : > { %3788 = vst.msk [vmem:[#allocation2 + $0x28] sm:$0xff] %vm1517_vm11, %v3780_v29  ;;  %v3459_v4 = vld [vmem:[#allocation3 + $0x38] sm:$0xff]  ;;  %v3471_v28 = vadd.f32 %v11134_v19, %v3456_v9  ;;  %v8067_v43 = vpack.c.bf16 %v3476_v46, %v3476_v46  ;;  %v3481_v15 = vmax.f32 %v3473_v18, 0.0  ;;  %v8499_v11 = vpop.f32.mrb[72].mxu1 }
 0x5b7   : > { %3513 = vrot.lane.b32.xlu0 %v8069_v58, %s9649_s27  ;;  %3908 = vst.msk [vmem:[#allocation2 + $0x18] sm:$0xff] %vm1517_vm11, %v3900_v23  ;;  %3507 = vrot.lane.b32.xlu1 %v8066_v13, %s9649_s27  ;;  %v3474_v55 = vadd.f32 %v11134_v19, %v3459_v4  ;;  %3906 = vst.msk [vmem:[#allocation2 + $0x8] sm:$0xff] %vm1517_vm11, %v3898_v37  ;;  %v3976_v45 = vpop.f32.mrb[73].mxu1 }
 0x5b8   : > { %v3457_v40 = vld [vmem:[#allocation3 + $0x28] sm:$0xff]  ;;  %v8072_v27 = vpack.c.bf16 %v3481_v15, %v3481_v15  ;;  %v3479_v10 = vmax.f32 %v3471_v28, 0.0  ;;  %v8500_v24 = vpop.f32.mrb[74].mxu1  ;;  %v8509_v58 = vpop.f32.mrb[72].mxu0 }
 0x5b9   : > { %v3472_v30 = vadd.f32 %v11134_v19, %v3457_v40  ;;  %v3482_v26 = vmax.f32 %v3474_v55, 0.0  ;;  %v3895_v42 = vld [vmem:[#allocation2 + $0x30] sm:$0xff]  ;;  %v3979_v32 = vpop.f32.mrb[75].mxu1  ;;  %v4098_v29 = vpop.f32.mrb[73].mxu0 }
 0x5ba   : > { %v3903_v39 = vadd.f32 %v8493_v16, %v3895_v42  ;;  %v3893_v46 = vld [vmem:[#allocation2 + $0x20] sm:$0xff]  ;;  %v8510_v18 = vpop.f32.mrb[74].mxu0 }
 0x5bb   : > { %3509 = vrot.lane.b32.xlu0 %v8067_v43, %s9649_s27  ;;  %3519 = vrot.lane.b32.xlu1 %v8072_v27, %s9649_s27  ;;  %v8073_v12 = vpack.c.bf16 %v3482_v26, %v3482_v26  ;;  %v3480_v23 = vmax.f32 %v3472_v30, 0.0  ;;  %v3901_v56 = vadd.f32 %v3893_v46, %v3874_v33  ;;  %v3896_v13 = vld [vmem:[#allocation2 + $0x38] sm:$0xff]  ;;  %v4101_v16 = vpop.f32.mrb[75].mxu0  ;;  %v8070_v43 = vpack.c.bf16 %v3479_v10, %v3479_v10 }
 0x5bc   : > { %v4009_v19 = vld [vmem:[#allocation2 + $0x10] sm:$0xff]  ;;  %3911 = vst.msk [vmem:[#allocation2 + $0x30] sm:$0xff] %vm1517_vm11, %v3903_v39  ;;  %v3904_v9 = vadd.f32 %v8494_v36, %v3896_v13  ;;  %v4007_v28 = vld [vmem:[#allocation2] sm:$0xff] }
 0x5bd   : > { %v3894_v37 = vld [vmem:[#allocation2 + $0x28] sm:$0xff]  ;;  %v4017_v4 = vadd.f32 %v8499_v11, %v4009_v19  ;;  %3909 = vst.msk [vmem:[#allocation2 + $0x20] sm:$0xff] %vm1517_vm11, %v3901_v56  ;;  %v4015_v55 = vadd.f32 %v4007_v28, %v3976_v45  ;;  %v8071_v36 = vpack.c.bf16 %v3480_v23, %v3480_v23 }
 0x5be   : > { %v3902_v15 = vadd.f32 %v3894_v37, %v3877_v8  ;;  %v4010_v40 = vld [vmem:[#allocation2 + $0x18] sm:$0xff]  ;;  %3912 = vst.msk [vmem:[#allocation2 + $0x38] sm:$0xff] %vm1517_vm11, %v3904_v9  ;;  %v4008_v30 = vld [vmem:[#allocation2 + $0x8] sm:$0xff]  ;;  %v8503_v27 = vpop.f32.mrb[76].mxu1 }
 0x5bf   : > { %3521 = vrot.lane.b32.xlu0 %v8073_v12, %s9649_s27  ;;  %4025 = vst.msk [vmem:[#allocation2 + $0x10] sm:$0xff] %vm1517_vm11, %v4017_v4  ;;  %v4018_v33 = vadd.f32 %v8500_v24, %v4010_v40  ;;  %3515 = vrot.lane.b32.xlu1 %v8070_v43, %s9649_s27  ;;  %4023 = vst.msk [vmem:[#allocation2] sm:$0xff] %vm1517_vm11, %v4015_v55  ;;  %v4016_v11 = vadd.f32 %v4008_v30, %v3979_v32  ;;  %v3992_v8 = vpop.f32.mrb[77].mxu1 }
 0x5c0   : > { %3910 = vst.msk [vmem:[#allocation2 + $0x28] sm:$0xff] %vm1517_vm11, %v3902_v15  ;;  %v8504_v45 = vpop.f32.mrb[78].mxu1  ;;  %v8513_v26 = vpop.f32.mrb[76].mxu0 }
 0x5c1   : > { %4026 = vst.msk [vmem:[#allocation2 + $0x18] sm:$0xff] %vm1517_vm11, %v4018_v33  ;;  %4024 = vst.msk [vmem:[#allocation2 + $0x8] sm:$0xff] %vm1517_vm11, %v4016_v11  ;;  %v3995_v10 = vpop.f32.mrb[79].mxu1  ;;  %v4114_v42 = vpop.f32.mrb[77].mxu0 }
 0x5c2   : > { %v8514_v39 = vpop.f32.mrb[78].mxu0 }
 0x5c3   : > { %3517 = vrot.lane.b32.xlu0 %v8071_v36, %s9649_s27  ;;  %v4013_v24 = vld [vmem:[#allocation2 + $0x30] sm:$0xff]  ;;  %v4117_v23 = vpop.f32.mrb[79].mxu0  ;;  %s9528_s27 = sshll.u32 %s9651_s0, 4  ;;  %s9529_s27 = int_to_ptr.vmem [resolvable:$false] %s9528_s27 }
 0x5c4   : > { %v4021_v46 = vadd.f32 %v8503_v27, %v4013_v24  ;;  %v4011_v12 = vld [vmem:[#allocation2 + $0x20] sm:$0xff]  ;;  %s9530_s24 = scalar_lea.vmem %s9529_s27, 1024  ;;  %p9531_p6 = scmp.lt.s32.totalorder %s12312_s17, %s9529_s27 }
 0x5c5   : > { %v4019_v13 = vadd.f32 %v4011_v12, %v3992_v8  ;;  %v4014_v32 = vld [vmem:[#allocation2 + $0x38] sm:$0xff] }
 0x5c6   : > { %v4131_v56 = vld [vmem:[#allocation2 + $0x10] sm:$0xff]  ;;  %v4129_v9 = vld [vmem:[#allocation2] sm:$0xff]  ;;  %4029 = vst.msk [vmem:[#allocation2 + $0x30] sm:$0xff] %vm1517_vm11, %v4021_v46  ;;  %v4022_v37 = vadd.f32 %v8504_v45, %v4014_v32  ;;  %v8519_v55 = vpop.f32.mrb[80].mxu1 }
 0x5c7   : > { %v4139_v19 = vadd.f32 %v8509_v58, %v4131_v56  ;;  %v4012_v4 = vld [vmem:[#allocation2 + $0x28] sm:$0xff]  ;;  %v4137_v28 = vadd.f32 %v4129_v9, %v4098_v29  ;;  %4027 = vst.msk [vmem:[#allocation2 + $0x20] sm:$0xff] %vm1517_vm11, %v4019_v13  ;;  %v4220_v30 = vpop.f32.mrb[81].mxu1 }
 0x5c8   : > { %v4132_v43 = vld [vmem:[#allocation2 + $0x18] sm:$0xff]  ;;  %v4020_v15 = vadd.f32 %v4012_v4, %v3995_v10  ;;  %v4130_v33 = vld [vmem:[#allocation2 + $0x8] sm:$0xff]  ;;  %4030 = vst.msk [vmem:[#allocation2 + $0x38] sm:$0xff] %vm1517_vm11, %v4022_v37  ;;  %v8520_v36 = vpop.f32.mrb[82].mxu1  ;;  %v8529_v11 = vpop.f32.mrb[80].mxu0 }
 0x5c9   : > { %4147 = vst.msk [vmem:[#allocation2 + $0x10] sm:$0xff] %vm1517_vm11, %v4139_v19  ;;  %v4140_v40 = vadd.f32 %v8510_v18, %v4132_v43  ;;  %4145 = vst.msk [vmem:[#allocation2] sm:$0xff] %vm1517_vm11, %v4137_v28  ;;  %v4138_v58 = vadd.f32 %v4130_v33, %v4101_v16  ;;  %v4223_v29 = vpop.f32.mrb[83].mxu1  ;;  %v4342_v27 = vpop.f32.mrb[81].mxu0 }
 0x5ca   : > { %4028 = vst.msk [vmem:[#allocation2 + $0x28] sm:$0xff] %vm1517_vm11, %v4020_v15  ;;  %v8530_v8 = vpop.f32.mrb[82].mxu0 }
 0x5cb   : > { %4148 = vst.msk [vmem:[#allocation2 + $0x18] sm:$0xff] %vm1517_vm11, %v4140_v40  ;;  %4146 = vst.msk [vmem:[#allocation2 + $0x8] sm:$0xff] %vm1517_vm11, %v4138_v58  ;;  %v4345_v45 = vpop.f32.mrb[83].mxu0 }
 0x5cd   : > { %v4135_v18 = vld [vmem:[#allocation2 + $0x30] sm:$0xff] }
 0x5ce   : > { %v4143_v10 = vadd.f32 %v8513_v26, %v4135_v18  ;;  %v4133_v24 = vld [vmem:[#allocation2 + $0x20] sm:$0xff]  ;;  %v8523_v13 = vpop.f32.mrb[84].mxu1 }
 0x5cf   : > { %v4141_v46 = vadd.f32 %v4133_v24, %v4114_v42  ;;  %v4136_v12 = vld [vmem:[#allocation2 + $0x38] sm:$0xff]  ;;  %v4236_v37 = vpop.f32.mrb[85].mxu1 }
 0x5d0   : > { %v4253_v56 = vld [vmem:[#allocation2 + $0x10] sm:$0xff]  ;;  %4151 = vst.msk [vmem:[#allocation2 + $0x30] sm:$0xff] %vm1517_vm11, %v4143_v10  ;;  %v4144_v16 = vadd.f32 %v8514_v39, %v4136_v12  ;;  %v4251_v9 = vld [vmem:[#allocation2] sm:$0xff]  ;;  %v8524_v15 = vpop.f32.mrb[86].mxu1  ;;  %v8533_v40 = vpop.f32.mrb[84].mxu0 }
 0x5d1   : > { %v4134_v32 = vld [vmem:[#allocation2 + $0x28] sm:$0xff]  ;;  %v4261_v19 = vadd.f32 %v8519_v55, %v4253_v56  ;;  %4149 = vst.msk [vmem:[#allocation2 + $0x20] sm:$0xff] %vm1517_vm11, %v4141_v46  ;;  %v4259_v28 = vadd.f32 %v4251_v9, %v4220_v30  ;;  %v4239_v33 = vpop.f32.mrb[87].mxu1  ;;  %v4358_v58 = vpop.f32.mrb[85].mxu0 }
 0x5d2   : > { %v4142_v4 = vadd.f32 %v4134_v32, %v4117_v23  ;;  %v4254_v43 = vld [vmem:[#allocation2 + $0x18] sm:$0xff]  ;;  %4152 = vst.msk [vmem:[#allocation2 + $0x38] sm:$0xff] %vm1517_vm11, %v4144_v16  ;;  %v4252_v42 = vld [vmem:[#allocation2 + $0x8] sm:$0xff]  ;;  %v8534_v55 = vpop.f32.mrb[86].mxu0 }
 0x5d3   : > { %4269 = vst.msk [vmem:[#allocation2 + $0x10] sm:$0xff] %vm1517_vm11, %v4261_v19  ;;  %v4262_v26 = vadd.f32 %v8520_v36, %v4254_v43  ;;  %4267 = vst.msk [vmem:[#allocation2] sm:$0xff] %vm1517_vm11, %v4259_v28  ;;  %v4260_v39 = vadd.f32 %v4252_v42, %v4223_v29  ;;  %v4361_v23 = vpop.f32.mrb[87].mxu0 }
 0x5d4   : > { %4150 = vst.msk [vmem:[#allocation2 + $0x28] sm:$0xff] %vm1517_vm11, %v4142_v4 }
 0x5d5   : > { %4270 = vst.msk [vmem:[#allocation2 + $0x18] sm:$0xff] %vm1517_vm11, %v4262_v26  ;;  %4268 = vst.msk [vmem:[#allocation2 + $0x8] sm:$0xff] %vm1517_vm11, %v4260_v39 }
 0x5d7   : > { %v4257_v30 = vld [vmem:[#allocation2 + $0x30] sm:$0xff] }
 0x5d8   : > { %v4265_v18 = vadd.f32 %v8523_v13, %v4257_v30  ;;  %v4255_v10 = vld [vmem:[#allocation2 + $0x20] sm:$0xff] }
 0x5d9   : > { %v4263_v46 = vadd.f32 %v4255_v10, %v4236_v37  ;;  %v4258_v36 = vld [vmem:[#allocation2 + $0x38] sm:$0xff] }
 0x5da   : > { %v4375_v24 = vld [vmem:[#allocation2 + $0x10] sm:$0xff]  ;;  %v4373_v56 = vld [vmem:[#allocation2] sm:$0xff]  ;;  %4273 = vst.msk [vmem:[#allocation2 + $0x30] sm:$0xff] %vm1517_vm11, %v4265_v18  ;;  %v4266_v16 = vadd.f32 %v8524_v15, %v4258_v36 }
 0x5db   : > { %v4383_v12 = vadd.f32 %v8529_v11, %v4375_v24  ;;  %v4256_v32 = vld [vmem:[#allocation2 + $0x28] sm:$0xff]  ;;  %v4381_v19 = vadd.f32 %v4373_v56, %v4342_v27  ;;  %4271 = vst.msk [vmem:[#allocation2 + $0x20] sm:$0xff] %vm1517_vm11, %v4263_v46  ;;  %v7924_v11 = vld [vmem:[#allocation18] ss:$0 sm:$0xff] }
 0x5dc   : > { %v4376_v29 = vld [vmem:[#allocation2 + $0x18] sm:$0xff]  ;;  %v4264_v9 = vadd.f32 %v4256_v32, %v4239_v33  ;;  %v4374_v28 = vld [vmem:[#allocation2 + $0x8] sm:$0xff]  ;;  %4274 = vst.msk [vmem:[#allocation2 + $0x38] sm:$0xff] %vm1517_vm11, %v4266_v16 }
 0x5dd   : > { %4391 = vst.msk [vmem:[#allocation2 + $0x10] sm:$0xff] %vm1517_vm11, %v4383_v12  ;;  %v4384_v4 = vadd.f32 %v8530_v8, %v4376_v29  ;;  %4389 = vst.msk [vmem:[#allocation2] sm:$0xff] %vm1517_vm11, %v4381_v19  ;;  %v4382_v13 = vadd.f32 %v4374_v28, %v4345_v45 }
 0x5de   : > { %4272 = vst.msk [vmem:[#allocation2 + $0x28] sm:$0xff] %vm1517_vm11, %v4264_v9 }
 0x5df   : > { %4392 = vst.msk [vmem:[#allocation2 + $0x18] sm:$0xff] %vm1517_vm11, %v4384_v4  ;;  %4390 = vst.msk [vmem:[#allocation2 + $0x8] sm:$0xff] %vm1517_vm11, %v4382_v13 }
 0x5e1   : > { %v4379_v27 = vld [vmem:[#allocation2 + $0x30] sm:$0xff] }
 0x5e2   : > { %v4387_v37 = vadd.f32 %v8533_v40, %v4379_v27  ;;  %v4377_v43 = vld [vmem:[#allocation2 + $0x20] sm:$0xff] }
 0x5e3   : > { %v4385_v26 = vadd.f32 %v4377_v43, %v4358_v58  ;;  %v4380_v42 = vld [vmem:[#allocation2 + $0x38] sm:$0xff] }
 0x5e4   : > { %v4399_v15 = vld [vmem:[#allocation2 + $0x10] sm:$0xff]  ;;  %v4397_v33 = vld [vmem:[#allocation2] sm:$0xff]  ;;  %4395 = vst.msk [vmem:[#allocation2 + $0x30] sm:$0xff] %vm1517_vm11, %v4387_v37  ;;  %v4388_v39 = vadd.f32 %v8534_v55, %v4380_v42 }
 0x5e5   : > { %v4414_v8 = vadd.f32 %v7924_v11, %v4399_v15  ;;  %v4378_v30 = vld [vmem:[#allocation2 + $0x28] sm:$0xff]  ;;  %4393 = vst.msk [vmem:[#allocation2 + $0x20] sm:$0xff] %vm1517_vm11, %v4385_v26  ;;  %v4412_v10 = vadd.f32 %v7924_v11, %v4397_v33 }
 0x5e6   : > { %v4400_v45 = vld [vmem:[#allocation2 + $0x18] sm:$0xff]  ;;  %v4386_v18 = vadd.f32 %v4378_v30, %v4361_v23  ;;  %v4398_v36 = vld [vmem:[#allocation2 + $0x8] sm:$0xff]  ;;  %4396 = vst.msk [vmem:[#allocation2 + $0x38] sm:$0xff] %vm1517_vm11, %v4388_v39 }
 0x5e7   : > { %v11202_v24 = vmax.f32 %v4414_v8, 0.0  ;;  %v4415_v46 = vadd.f32 %v7924_v11, %v4400_v45  ;;  %v4413_v40 = vadd.f32 %v7924_v11, %v4398_v36  ;;  %v11206_v58 = vmax.f32 %v4412_v10, 0.0 }
 0x5e8   : > { %4394 = vst.msk [vmem:[#allocation2 + $0x28] sm:$0xff] %vm1517_vm11, %v4386_v18 }
 0x5e9   : > { %v11208_v12 = vmax.f32 %v4415_v46, 0.0  ;;  %v11210_v55 = vmax.f32 %v4413_v40, 0.0  ;;  %v4430_v56 = vrot.slane %v11202_v24, 5  ;;  %v4551_v23 = vrot.slane %v11202_v24, 6 }
 0x5ea   : > { %v4428_v29 = vrot.slane %v11206_v58, 5  ;;  %v4549_v13 = vrot.slane %v11206_v58, 6  ;;  %v4687_v18 = vrot.slane %v11206_v58, 7 }
 0x5eb   : > { %v4431_v16 = vrot.slane %v11208_v12, 5  ;;  %v4552_v32 = vrot.slane %v11208_v12, 6  ;;  %v4403_v19 = vld [vmem:[#allocation2 + $0x30] sm:$0xff]  ;;  %v4429_v9 = vrot.slane %v11210_v55, 5  ;;  %v4550_v4 = vrot.slane %v11210_v55, 6 }
 0x5ec   : > { %v4401_v28 = vld [vmem:[#allocation2 + $0x20] sm:$0xff]  ;;  %v4418_v8 = vadd.f32 %v7924_v11, %v4403_v19 }
 0x5ed   : > { %v4440_v27 = vsel %vm12684_vm1, %v4430_v56, %v4431_v16  ;;  %v4561_v37 = vsel %vm1611_vm3, %v4551_v23, %v4552_v32  ;;  %v4404_v43 = vld [vmem:[#allocation2 + $0x38] sm:$0xff]  ;;  %v4441_v15 = vsel %vm12685_vm0, %v4429_v9, %v4430_v56  ;;  %v4442_v26 = vsel %vm12686_vm15, %v4428_v29, %v4429_v9 }
 0x5ee   : > { %v4562_v42 = vsel %vm1611_vm3, %v4550_v4, %v4551_v23  ;;  %v4419_v39 = vadd.f32 %v7924_v11, %v4404_v43  ;;  %v4563_v30 = vsel %vm1611_vm3, %v4549_v13, %v4550_v4  ;;  %v4446_v45 = vsel %vm12687_vm4, %v4441_v15, 0.0  ;;  %v12691_v23 = vld [vmem:[#allocation61_spill] sm:$0xff]  ;;  %vm12695_vm4 = vmmov %vm12685_vm0 }
 0x5ef   : > { %v4402_v33 = vld [vmem:[#allocation2 + $0x28] sm:$0xff]  ;;  %v4447_v10 = vsel %vm12688_vm5, %v4440_v27, 0.0  ;;  %v4567_v46 = vsel %vm12689_vm12, %v4562_v42, 0.0  ;;  %v4568_v36 = vsel %vm12690_vm9, %v4561_v37, 0.0  ;;  %v4416_v40 = vadd.f32 %v7924_v11, %v4401_v28  ;;  %vm12696_vm5 = vmmov %vm12685_vm0 }
 0x5f0   : > { %v11241_v56 = vmax.f32 %v4419_v39, 0.0  ;;  %vm12692_vm1 = vcmp.ge.s32.totalorder %v12691_v23, 0  ;;  %v4417_v9 = vadd.f32 %v7924_v11, %v4402_v33  ;;  %v4566_v43 = vsel %vm930_vm7, %v4563_v30, 0.0 }
 0x5f1   : > { %v4445_v19 = vsel %vm12692_vm1, %v4442_v26, 0.0  ;;  %v4453_v15 = vpack.c.bf16 %v4447_v10, %v4446_v45  ;;  %v11248_v27 = vmax.f32 %v4416_v40, 0.0  ;;  %v11250_v25 = vmax.f32 %v4418_v8, 0.0  ;;  %vm12699_vm1 = vmmov %vm12685_vm0 }
 0x5f2   : > { %v4435_v42 = vrot.slane %v11241_v56, 5  ;;  %v4556_v28 = vrot.slane %v11241_v56, 6  ;;  %v4574_v37 = vpack.c.bf16 %v4568_v36, %v4567_v46  ;;  %v11254_v39 = vmax.f32 %v4417_v9, 0.0  ;;  %v12693_v36 = vld [vmem:[#allocation64_spill] sm:$0xff] }
 0x5f3   : > { %v4432_v26 = vrot.slane %v11248_v27, 5  ;;  %v4553_v11 = vrot.slane %v11248_v27, 6  ;;  %v4434_v33 = vrot.slane %v11250_v25, 5  ;;  %vm12694_vm15 = vcmp.ge.s32.totalorder %v12693_v36, 0 }
 0x5f4   : > { %v4443_v45 = vsel %vm12685_vm0, %v4435_v42, %v4428_v29  ;;  %v4564_v8 = vsel %vm1611_vm3, %v4556_v28, %v4549_v13  ;;  %v4433_v10 = vrot.slane %v11254_v39, 5  ;;  %v4554_v46 = vrot.slane %v11254_v39, 6 }
 0x5f5   : > { %v4444_v40 = vsel %vm12694_vm15, %v4443_v45, 0.0  ;;  %v4565_v9 = vsel %vm929_vm6, %v4564_v8, 0.0  ;;  %v4439_v4 = vsel %vm12695_vm4, %v4431_v16, %v4432_v26  ;;  %v4560_v30 = vsel %vm1611_vm3, %v4552_v32, %v4553_v11 }
 0x5f6   : > { %v4452_v29 = vpack.c.bf16 %v4445_v19, %v4444_v40  ;;  %v4573_v62 = vpack.c.bf16 %v4566_v43, %v4565_v9  ;;  %v4438_v13 = vsel %vm12696_vm5, %v4432_v26, %v4433_v10  ;;  %v4555_v23 = vrot.slane %v11250_v25, 6  ;;  %v11293_v26 = vld [vmem:[#allocation19 + $0x20] sm:$0xff]  }
 0x5f7   : > { %vm12697_vm12 = vcmp.ge.s32.totalorder %v10386_v53, 0  ;;  %vm12698_vm9 = vcmp.ge.s32.totalorder %v10389_v54, 0  ;;  %v4559_v8 = vsel %vm1611_vm3, %v4553_v11, %v4554_v46  ;;  %v4569_v16 = vsel %vm933_vm10, %v4560_v30, 0.0  ;;  %v11295_v11 = vld [vmem:[#allocation19 + $0x28] sm:$0xff]  }
 0x5f8   : > { %v4448_v36 = vsel %vm12697_vm12, %v4439_v4, 0.0  ;;  %v4449_v45 = vsel %vm12698_vm9, %v4438_v13, 0.0  ;;  %8537 = vmatprep.mubr.msk.bf16.mxu1 %vm1517_vm11, %v4452_v29  ;;  %8547 = vmatprep.mubr.msk.bf16.mxu0 %vm1517_vm11, %v4573_v62  ;;  %v4570_v19 = vsel %vm934_vm13, %v4559_v8, 0.0  ;;  %v4436_v4 = vsel %vm12699_vm1, %v4434_v33, %v4435_v42  ;;  %v12705_v13 = vld [vmem:[#allocation62_spill] sm:$0xff] }
 0x5f9   : > { %v4454_v32 = vpack.c.bf16 %v4449_v45, %v4448_v36  ;;  %v4437_v43 = vsel %vm12685_vm0, %v4433_v10, %v4434_v33  ;;  %8538 = vmatmul.mubr.msk.bf16.vlgmr.msra.gmra.mrb[88].mxu1 %vm1517_vm11, %v4453_v15  ;;  %8548 = vmatmul.mubr.msk.bf16.vlgmr.msra.gmra.mrb[88].mxu0 %vm1517_vm11, %v4574_v37  ;;  %v4575_v30 = vpack.c.bf16 %v4570_v19, %v4569_v16  ;;  %v12700_v42 = vrot.slane %v11241_v56, 7 }
 0x5fa   : > { %v4557_v62 = vsel %vm1611_vm3, %v4555_v23, %v4556_v28  ;;  %v4558_v36 = vsel %vm1611_vm3, %v4554_v46, %v4555_v23  ;;  %8556 = vmatpush3.bf16.msra.mxu1 %v11082_v34  ;;  %v12701_v15 = vrot.slane %v11210_v55, 7  ;;  %8566 = vmatpush3.bf16.msra.mxu0 %v11091_v38  ;;  %v4690_v23 = vrot.slane %v11208_v12, 7 }
 0x5fb   : > { %8541 = vmatprep.mubr.msk.bf16.mxu1 %vm1517_vm11, %v4454_v32  ;;  %v4702_v33 = vsel %vm1766_vm2, %v12700_v42, %v4687_v18  ;;  %8551 = vmatprep.mubr.msk.bf16.mxu0 %vm1517_vm11, %v4575_v30  ;;  %vm12702_vm15 = vcmp.ge.s32.totalorder %v10406_v60, 0  ;;  %vm12703_vm4 = vcmp.ge.s32.totalorder %v10416_v63, 0  ;;  %v4571_v10 = vsel %vm935_vm8, %v4558_v36, 0.0 }
 0x5fc   : > { %v4701_v37 = vsel %vm1766_vm2, %v4687_v18, %v12701_v15  ;;  %v4450_v28 = vsel %vm12702_vm15, %v4437_v43, 0.0  ;;  %v4451_v34 = vsel %vm12703_vm4, %v4436_v4, 0.0  ;;  %v4572_v46 = vsel %vm936_vm14, %v4557_v62, 0.0  ;;  %8575 = vmatprep.subr.bf16.mxu1 %v11293_v26  ;;  %8585 = vmatprep.subr.bf16.mxu0 %v11295_v11 }
 0x5fd   : > { %vm12704_vm5 = vcmp.ge.s32.totalorder %v10374_v48, 0  ;;  %v4689_v18 = vrot.slane %v11202_v24, 7  ;;  %v4692_v40 = vrot.slane %v11254_v39, 7  ;;  %v4455_v9 = vpack.c.bf16 %v4451_v34, %v4450_v28 }
 0x5fe   : > { %v4703_v38 = vsel %vm12704_vm5, %v4702_v33, 0.0  ;;  %v4576_v29 = vpack.c.bf16 %v4572_v46, %v4571_v10  ;;  %vm12706_vm12 = vcmp.ge.s32.totalorder %v12705_v13, 0  ;;  %v4825_v8 = vpack.c.bf16 %v11210_v55, %v11206_v58 }
 0x5ff   : > { %v4704_v45 = vsel %vm12706_vm12, %v4701_v37, 0.0  ;;  %v12707_v16 = vmov %v12701_v15  ;;  %v4699_v4 = vsel %vm1766_vm2, %v4689_v18, %v4690_v23  ;;  %v4691_v43 = vrot.slane %v11248_v27, 7 }
 0x600   : > { %v4700_v32 = vsel %vm1766_vm2, %v12707_v16, %v4689_v18  ;;  %v4711_v19 = vpack.c.bf16 %v4704_v45, %v4703_v38  ;;  %vm12708_vm9 = vcmp.ge.s32.totalorder %v10257_v14, 0  ;;  %vm12709_vm1 = vcmp.ge.s32.totalorder %v10383_v52, 0  ;;  %v11370_v16 = vld [vmem:[#allocation19 + $0x30] sm:$0xff]  }
 0x601   : > { %8542 = vmatmul.mubr.msk.bf16.gmra.mrb[92].mxu1 %vm1517_vm11, %v4455_v9  ;;  %8552 = vmatmul.mubr.msk.bf16.gmra.mrb[92].mxu0 %vm1517_vm11, %v4576_v29  ;;  %v4697_v30 = vsel %vm1766_vm2, %v4691_v43, %v4692_v40  ;;  %v4705_v62 = vsel %vm12708_vm9, %v4700_v32, 0.0  ;;  %v4706_v36 = vsel %vm12709_vm1, %v4699_v4, 0.0  ;;  %v4698_v42 = vsel %vm1766_vm2, %v4690_v23, %v4691_v43 }
 0x602   : > { %8557 = vmatprep.mubr.msk.bf16.mxu1 %vm1517_vm11, %v4711_v19  ;;  %8567 = vmatprep.mubr.msk.bf16.mxu0 %vm1517_vm11, %v4825_v8  ;;  %vm12710_vm0 = vcmp.ge.s32.totalorder %v10403_v59, 0  ;;  %v4940_v15 = vrot.slane %v11210_v55, 1  ;;  %v4712_v37 = vpack.c.bf16 %v4706_v36, %v4705_v62  ;;  %v4826_v28 = vpack.c.bf16 %v11208_v12, %v11202_v24 }
 0x603   : > { %v4708_v33 = vsel %vm12710_vm0, %v4697_v30, 0.0  ;;  %v4693_v34 = vrot.slane %v11250_v25, 7  ;;  %v5078_v10 = vrot.slane %v11210_v55, 2  ;;  %vm12711_vm15 = vcmp.ge.s32.totalorder %v10398_v57, 0 }
 0x604   : > { %v4707_v46 = vsel %vm12711_vm15, %v4698_v42, 0.0  ;;  %v4827_v38 = vpack.c.bf16 %v11254_v39, %v11248_v27  ;;  %v12503_v23 = vrot.slane %v11206_v58, 1  ;;  %v4941_v18 = vrot.slane %v11202_v24, 1 }
 0x605   : > { %v4713_v9 = vpack.c.bf16 %v4708_v33, %v4707_v46  ;;  %v4696_v29 = vsel %vm1766_vm2, %v4692_v40, %v4693_v34  ;;  %v12502_v45 = vrot.slane %v11206_v58, 2  ;;  %v5079_v8 = vrot.slane %v11202_v24, 2 }
 0x606   : > { %v12712_v32 = vrot.slane %v11241_v56, 7  ;;  %vm12713_vm4 = vcmp.lt.s32.totalorder %v10244_v1, 7  ;;  %vm12715_vm12 = vcmp.lt.s32.totalorder %v10244_v1, 6  ;;  %vm12717_vm1 = vcmp.ge.s32.totalorder %v10419_v0, 0 }
 0x607   : > { %v4952_v4 = vsel %vm12713_vm4, %v4940_v15, %v4941_v18  ;;  %vm12714_vm5 = vmmov %vm12713_vm4  ;;  %v5090_v43 = vsel %vm12715_vm12, %v5078_v10, %v5079_v8  ;;  %v4709_v62 = vsel %vm12717_vm1, %v4696_v29, 0.0  ;;  %vm12718_vm0 = vcmp.ge.s32.totalorder %v10422_v2, 0 }
 0x608   : > { %v4695_v19 = vsel %vm1766_vm2, %v4693_v34, %v12712_v32  ;;  %v4953_v40 = vsel %vm12714_vm5, %v12503_v23, %v4940_v15  ;;  %vm12716_vm9 = vmmov %vm12715_vm12  ;;  %vm12719_vm15 = vcmp.lt.s32.totalorder %v10425_v3, 8  ;;  %vm12720_vm4 = vcmp.lt.s32.totalorder %v10431_v5, 8 }
 0x609   : > { %8558 = vmatmul.mubr.msk.bf16.vlgmr.msra.gmra.mrb[96].mxu1 %vm1517_vm11, %v4712_v37  ;;  %8568 = vmatmul.mubr.msk.bf16.vlgmr.msra.gmra.mrb[96].mxu0 %vm1517_vm11, %v4826_v28  ;;  %v5091_v30 = vsel %vm12716_vm9, %v12502_v45, %v5078_v10  ;;  %v4710_v36 = vsel %vm12718_vm0, %v4695_v19, 0.0  ;;  %v4955_v42 = vsel %vm12719_vm15, %v4953_v40, 0.0  ;;  %v4956_v33 = vsel %vm12720_vm4, %v4952_v4, 0.0 }
 0x60a   : > { %8561 = vmatprep.mubr.msk.bf16.mxu1 %vm1517_vm11, %v4713_v9  ;;  %8571 = vmatprep.mubr.msk.bf16.mxu0 %vm1517_vm11, %v4827_v38  ;;  %v4943_v15 = vrot.slane %v11248_v27, 1  ;;  %vm12721_vm5 = vcmp.lt.s32.totalorder %v10789_v35, 8  ;;  %vm12722_vm12 = vcmp.lt.s32.totalorder %v10778_v41, 8  ;;  %v4944_v28 = vrot.slane %v11254_v39, 1 }
 0x60b   : > { %8576 = vmatpush3.bf16.msra.mxu1 %v11293_v26  ;;  %8586 = vmatpush3.bf16.msra.mxu0 %v11295_v11  ;;  %v5093_v26 = vsel %vm12721_vm5, %v5091_v30, 0.0  ;;  %v5094_v37 = vsel %vm12722_vm12, %v5090_v43, 0.0  ;;  %v5081_v11 = vrot.slane %v11248_v27, 2  ;;  %v4942_v34 = vrot.slane %v11208_v12, 1 }
 0x60c   : > { %8595 = vmatprep.subr.bf16.mxu1 %v11370_v16  ;;  %v5082_v10 = vrot.slane %v11254_v39, 2  ;;  %v4714_v46 = vpack.c.bf16 %v4710_v36, %v4709_v62  ;;  %v4828_v38 = vpack.c.bf16 %v11241_v56, %v11250_v25  ;;  %v5080_v9 = vrot.slane %v11208_v12, 2 }
 0x60d   : > { %v4945_v29 = vrot.slane %v11250_v25, 1  ;;  %v4963_v32 = vpack.c.bf16 %v4956_v33, %v4955_v42  ;;  %v5101_v19 = vpack.c.bf16 %v5094_v37, %v5093_v26  ;;  %vm12723_vm9 = vcmp.lt.s32.totalorder %v10244_v1, 7 }
 0x60e   : > { %v4950_v4 = vsel %vm12723_vm9, %v4942_v34, %v4943_v15  ;;  %v5083_v40 = vrot.slane %v11250_v25, 2  ;;  %vm12724_vm1 = vcmp.lt.s32.totalorder %v10244_v1, 6  ;;  %vm12725_vm0 = vmmov %vm12723_vm9 }
 0x60f   : > { %v5088_v43 = vsel %vm12724_vm1, %v5080_v9, %v5081_v11  ;;  %v4948_v30 = vsel %vm12725_vm0, %v4944_v28, %v4945_v29  ;;  %vm12726_vm15 = vmmov %vm12725_vm0 }
 0x610   : > { %v4949_v62 = vsel %vm12726_vm15, %v4943_v15, %v4944_v28  ;;  %vm12727_vm4 = vmmov %vm12724_vm1  ;;  %vm12733_vm15 = vcmp.lt.s32.totalorder %v10459_v22, 8 }
 0x611   : > { %8562 = vmatmul.mubr.msk.bf16.gmra.mrb[100].mxu1 %vm1517_vm11, %v4714_v46  ;;  %8572 = vmatmul.mubr.msk.bf16.gmra.mrb[100].mxu0 %vm1517_vm11, %v4828_v38  ;;  %v5086_v36 = vsel %vm12727_vm4, %v5082_v10, %v5083_v40  ;;  %vm12728_vm5 = vmmov %vm12724_vm1  ;;  %v4959_v28 = vsel %vm12733_vm15, %v4949_v62, 0.0  ;;  %v12734_v46 = vld [vmem:[#allocation69_spill] sm:$0xff]  ;;  %v5216_v62 = vrot.slane %v11210_v55, 3 }
 0x612   : > { %8577 = vmatprep.mubr.msk.bf16.mxu1 %vm1517_vm11, %v4963_v32  ;;  %8587 = vmatprep.mubr.msk.bf16.mxu0 %vm1517_vm11, %v5101_v19  ;;  %v5087_v42 = vsel %vm12728_vm5, %v5081_v11, %v5082_v10  ;;  %vm12729_vm12 = vmmov %vm12725_vm0  ;;  %vm12732_vm0 = vcmp.lt.s32.totalorder %v10817_v47, 8  ;;  %vm12735_vm4 = vcmp.lt.s32.totalorder %v12734_v46, 8  ;;  %v4946_v11 = vrot.slane %v11241_v56, 1  ;;  %v12736_v10 = vld [vmem:[#allocation76_spill] sm:$0xff]  ;;  %v12740_v32 = vld [vmem:[#allocation67_spill] sm:$0xff] }
 0x613   : > { %v4951_v33 = vsel %vm12729_vm12, %v4941_v18, %v4942_v34  ;;  %vm12730_vm9 = vmmov %vm12724_vm1  ;;  %vm12731_vm1 = vcmp.lt.s32.totalorder %v10450_v17, 8  ;;  %v5096_v15 = vsel %vm12732_vm0, %v5088_v43, 0.0  ;;  %v4960_v38 = vsel %vm12735_vm4, %v4948_v30, 0.0  ;;  %v12738_v34 = vld [vmem:[#allocation77_spill] sm:$0xff] }
 0x614   : > { %v5089_v26 = vsel %vm12730_vm9, %v5079_v8, %v5080_v9  ;;  %v4958_v37 = vsel %vm12731_vm1, %v4950_v4, 0.0  ;;  %vm12737_vm5 = vcmp.lt.s32.totalorder %v12736_v10, 8  ;;  %vm12739_vm12 = vcmp.lt.s32.totalorder %v12738_v34, 8  ;;  %v12742_v4 = vld [vmem:[#allocation65_spill] sm:$0xff] }
 0x615   : > { %v5097_v18 = vsel %vm12737_vm5, %v5087_v42, 0.0  ;;  %v5098_v8 = vsel %vm12739_vm12, %v5086_v36, 0.0  ;;  %v5084_v9 = vrot.slane %v11241_v56, 2  ;;  %vm12741_vm9 = vcmp.lt.s32.totalorder %v12740_v32, 8 }
 0x616   : > { %v4957_v19 = vsel %vm12741_vm9, %v4951_v33, 0.0  ;;  %vm12743_vm1 = vcmp.lt.s32.totalorder %v12742_v4, 8  ;;  %v4965_v23 = vpack.c.bf16 %v4960_v38, %v4959_v28  ;;  %v5103_v47 = vpack.c.bf16 %v5098_v8, %v5097_v18  ;;  %v12754_v28 = vld [vmem:[#allocation70_spill] sm:$0xff]  ;;  %v12760_v18 = vld [vmem:[#allocation71_spill] sm:$0xff] }
 0x617   : > { %v5095_v43 = vsel %vm12743_vm1, %v5089_v26, 0.0  ;;  %v4964_v45 = vpack.c.bf16 %v4958_v37, %v4957_v19  ;;  %vm12744_vm0 = vcmp.lt.s32.totalorder %v10244_v1, 7  ;;  %v5215_v34 = vrot.slane %v11206_v58, 3  ;;  %v12756_v38 = vld [vmem:[#allocation78_spill] sm:$0xff] }
 0x618   : > { %v5102_v30 = vpack.c.bf16 %v5096_v15, %v5095_v43  ;;  %v4947_v42 = vsel %vm12744_vm0, %v4945_v29, %v4946_v11  ;;  %v5217_v36 = vrot.slane %v11202_v24, 3  ;;  %v12745_v33 = vrot.slane %v11206_v58, 1  ;;  %vm12746_vm15 = vmmov %vm12744_vm0  ;;  %v12752_v15 = vld [vmem:[#allocation72_spill] sm:$0xff] }
 0x619   : > { %8578 = vmatmul.mubr.msk.bf16.vlgmr.msra.gmra.mrb[104].mxu1 %vm1517_vm11, %v4964_v45  ;;  %vm12747_vm4 = vcmp.lt.s32.totalorder %v10244_v1, 6  ;;  %v12748_v37 = vrot.slane %v11206_v58, 2  ;;  %vm12750_vm12 = vcmp.lt.s32.totalorder %v10244_v1, 5  ;;  %vm12753_vm1 = vcmp.lt.s32.totalorder %v12752_v15, 8 }
 0x61a   : > { %8588 = vmatmul.mubr.msk.bf16.vlgmr.msra.gmra.mrb[104].mxu0 %vm1517_vm11, %v5102_v30  ;;  %v4954_v55 = vsel %vm12746_vm15, %v4946_v11, %v12745_v33  ;;  %v5085_v26 = vsel %vm12747_vm4, %v5083_v40, %v5084_v9  ;;  %vm12749_vm5 = vmmov %vm12747_vm4  ;;  %8581 = vmatprep.mubr.msk.bf16.mxu1 %vm1517_vm11, %v4965_v23  ;;  %v5228_v24 = vsel %vm12750_vm12, %v5216_v62, %v5217_v36  ;;  %v4961_v40 = vsel %vm12753_vm1, %v4947_v42, 0.0  ;;  %v12758_v23 = vld [vmem:[#allocation79_spill] sm:$0xff] }
 0x61b   : > { %v5092_v29 = vsel %vm12749_vm5, %v5084_v9, %v12748_v37  ;;  %8591 = vmatprep.mubr.msk.bf16.mxu0 %vm1517_vm11, %v5103_v47  ;;  %vm12751_vm9 = vmmov %vm12750_vm12  ;;  %8596 = vmatpush3.bf16.msra.mxu1 %v11370_v16  ;;  %vm12755_vm0 = vcmp.lt.s32.totalorder %v12754_v28, 8  ;;  %vm12757_vm15 = vcmp.lt.s32.totalorder %v12756_v38, 8  ;;  %vm12759_vm4 = vcmp.lt.s32.totalorder %v12758_v23, 8  ;;  %v12762_v9 = vld [vmem:[#allocation73_spill] sm:$0xff] }
 0x61c   : > { %v5229_v45 = vsel %vm12751_vm9, %v5215_v34, %v5216_v62  ;;  %v4962_v58 = vsel %vm12755_vm0, %v4954_v55, 0.0  ;;  %v5099_v11 = vsel %vm12757_vm15, %v5085_v26, 0.0  ;;  %v5100_v47 = vsel %vm12759_vm4, %v5092_v29, 0.0  ;;  %vm12764_vm0 = vmmov %vm12751_vm9  ;;  %v12767_v37 = vld [vmem:[#allocation57_spill] sm:$0xff] }
 0x61d   : > { %vm12761_vm5 = vcmp.lt.s32.totalorder %v12760_v18, 8  ;;  %vm12763_vm12 = vcmp.lt.s32.totalorder %v12762_v9, 8  ;;  %v5219_v16 = vrot.slane %v11248_v27, 3  ;;  %v5220_v43 = vrot.slane %v11254_v39, 3  ;;  %vm12765_vm15 = vmmov %vm12764_vm0 }
 0x61e   : > { %v5231_v8 = vsel %vm12761_vm5, %v5229_v45, 0.0  ;;  %v5232_v19 = vsel %vm12763_vm12, %v5228_v24, 0.0  ;;  %v4966_v62 = vpack.c.bf16 %v4962_v58, %v4961_v40  ;;  %v5104_v30 = vpack.c.bf16 %v5100_v47, %v5099_v11  ;;  %vm12766_vm4 = vmmov %vm12764_vm0  ;;  %v12769_v24 = vld [vmem:[#allocation58_spill] sm:$0xff]  ;;  %v12771_v40 = vld [vmem:[#allocation59_spill] sm:$0xff] }
 0x61f   : > { %v5218_v42 = vrot.slane %v11208_v12, 3  ;;  %v5239_v33 = vpack.c.bf16 %v5232_v19, %v5231_v8  ;;  %v5221_v55 = vrot.slane %v11250_v25, 3  ;;  %vm3531_vm1 = vcmask 519424   ;;  %v12773_v8 = vld [vmem:[#allocation74_spill] sm:$0xff] }
 0x620   : > { %v5225_v12 = vsel %vm12765_vm15, %v5219_v16, %v5220_v43  ;;  %vm12768_vm5 = vcmp.lt.s32.totalorder %v12767_v37, 8  ;;  %vm12770_vm12 = vcmp.lt.s32.totalorder %v12769_v24, 8  ;;  %v5222_v11 = vrot.slane %v11241_v56, 3  ;;  %vm12775_vm15 = vmmov %vm12766_vm4 }
 0x621   : > { %8582 = vmatmul.mubr.msk.bf16.gmra.mrb[108].mxu1 %vm1517_vm11, %v4966_v62  ;;  %v5226_v26 = vsel %vm12751_vm9, %v5218_v42, %v5219_v16  ;;  %v5224_v27 = vsel %vm12764_vm0, %v5220_v43, %v5221_v55  ;;  %v5227_v25 = vsel %vm12766_vm4, %v5217_v36, %v5218_v42  ;;  %v5235_v45 = vsel %vm12770_vm12, %v5225_v12, 0.0 }
 0x622   : > { %8592 = vmatmul.mubr.msk.bf16.gmra.mrb[108].mxu0 %vm1517_vm11, %v5104_v30  ;;  %8597 = vmatprep.mubr.msk.bf16.mxu1 %vm1517_vm11, %v5239_v33  ;;  %v5234_v29 = vsel %vm12768_vm5, %v5226_v26, 0.0  ;;  %vm12772_vm9 = vcmp.lt.s32.totalorder %v12771_v40, 8  ;;  %vm12774_vm0 = vcmp.lt.s32.totalorder %v12773_v8, 8  ;;  %v5223_v62 = vsel %vm12775_vm15, %v5221_v55, %v5222_v11  ;;  %v12776_v33 = vld [vmem:[#allocation63_spill] sm:$0xff] }
 0x623   : > { %8607 = vmatprep.mubr.bf16.mxu0 %v12635_v44  ;;  %v5236_v58 = vsel %vm12772_vm9, %v5224_v27, 0.0  ;;  %v5233_v36 = vsel %vm12774_vm0, %v5227_v25, 0.0  ;;  %v5230_v56 = vsel %vm12766_vm4, %v5222_v11, %v5215_v34  ;;  %vm12777_vm5 = vcmp.lt.s32.totalorder %v12776_v33, 8  ;;  %v12778_v27 = vld [vmem:[#allocation60_spill] sm:$0xff]  ;;  %v11547_v11 = vld [vmem:[#allocation22 + $0x18] sm:$0xff]  }
 0x624   : > { %v5240_v19 = vpack.c.bf16 %v5234_v29, %v5233_v36  ;;  %v5241_v43 = vpack.c.bf16 %v5236_v58, %v5235_v45  ;;  %v5237_v26 = vsel %vm12777_vm5, %v5223_v62, 0.0  ;;  %vm12779_vm12 = vcmp.lt.s32.totalorder %v12778_v27, 8  ;;  %v9030_v29 = vld [vmem:[#allocation22] sm:$0xff]   ;;  %v9031_v45 = vld [vmem:[#allocation22 + $0x8] sm:$0xff]   ;;  %v11544_v58 = vld [vmem:[#allocation22 + $0x10] sm:$0xff]  }
 0x625   : > { %v3512_v39 = vpop.permute.xlu1 %3511  ;;  %v5238_v12 = vsel %vm12779_vm12, %v5230_v56, 0.0  ;;  %8605 = vmatprep.subr.bf16.mxu0 %v9030_v29  ;;  %8615 = vmatprep.subr.bf16.mxu1 %v9031_v45  ;;  %vm12789_vm9 = vcmp.ge.s32.totalorder %v12705_v13, 0  ;;  %vm12791_vm0 = vcmp.lt.s32.totalorder %v10244_v1, 7  ;;  %vm12793_vm4 = vcmp.lt.s32.totalorder %v10431_v5, 8 }
 0x626   : > { %3534 = vst.msk [vmem:[%s10307_s26 + $0x8] sm:$0xf] %vm3531_vm1, %v3512_v39  ;;  %v5242_v55 = vpack.c.bf16 %v5238_v12, %v5237_v26  ;;  %8606 = vmatpush3.bf16.msra.mxu0 %v9030_v29  ;;  %vm12792_vm15 = vmmov %vm12791_vm0  ;;  %vm12794_vm5 = vcmp.ge.s32.totalorder %v10383_v52, 0 }
 0x627   : > { %8625 = vmatprep.subr.bf16.mxu0 %v11544_v58  ;;  %vm12795_vm12 = vmmov %vm12791_vm0 }
 0x629   : > { %v3514_v47 = vpop.permute.xlu0 %3513  ;;  %v3508_v16 = vpop.permute.xlu1 %3507  ;;  %8598 = vmatmul.mubr.msk.bf16.vlgmr.msra.gmra.mrb[112].mxu1 %vm1517_vm11, %v5240_v19 }
 0x62a   : > { %3535 = vst.msk [vmem:[%s10307_s26 + $0xc] sm:$0xf] %vm3531_vm1, %v3514_v47  ;;  %3532 = vst.msk [vmem:[%s10307_s26] sm:$0xf] %vm3531_vm1, %v3508_v16  ;;  %8601 = vmatprep.mubr.msk.bf16.mxu1 %vm1517_vm11, %v5241_v43  ;;  %8616 = vmatpush3.bf16.msra.mxu1 %v9031_v45 }
 0x62b   : > { %8635 = vmatprep.subr.bf16.mxu1 %v11547_v11 }
 0x62d   : > { %v3510_v30 = vpop.permute.xlu0 %3509  ;;  %v3520_v42 = vpop.permute.xlu1 %3519 }
 0x62e   : > { %3533 = vst.msk [vmem:[%s10307_s26 + $0x4] sm:$0xf] %vm3531_vm1, %v3510_v30  ;;  %3538 = vst.msk [vmem:[%s10307_s26 + $0x18] sm:$0xf] %vm3531_vm1, %v3520_v42 }
 0x631   : > { %v3522_v25 = vpop.permute.xlu0 %3521  ;;  %v3516_v34 = vpop.permute.xlu1 %3515  ;;  %8602 = vmatmul.mubr.msk.bf16.gmra.mrb[116].mxu1 %vm1517_vm11, %v5242_v55 }
 0x632   : > { %3539 = vst.msk [vmem:[%s10307_s26 + $0x1c] sm:$0xf] %vm3531_vm1, %v3522_v25  ;;  %3536 = vst.msk [vmem:[%s10307_s26 + $0x10] sm:$0xf] %vm3531_vm1, %v3516_v34  ;;  %8617 = vmatprep.mubr.bf16.mxu1 %v12635_v44 }
 0x635   : > { %v3518_v39 = vpop.permute.xlu0 %3517 }
 0x636   : > { %3537 = vst.msk [vmem:[%s10307_s26 + $0x14] sm:$0xf] %vm3531_vm1, %v3518_v39  ;;  %vm12788_vm1 = vcmp.ge.s32.totalorder %v10374_v48, 0 }
 0x6cc   : > { %v8539_v47 = vpop.f32.mrb[88].mxu1  ;;  %v8549_v36 = vpop.f32.mrb[88].mxu0 }
 0x6cd   : > { %4543 = vst.msk [vmem:[#allocation2 + $0x10] sm:$0xff] %vm1517_vm11, %v8539_v47  ;;  %v4510_v19 = vpop.f32.mrb[89].mxu1  ;;  %v4632_v16 = vpop.f32.mrb[89].mxu0 }
 0x6ce   : > { %4541 = vst.msk [vmem:[#allocation2] sm:$0xff] %vm1517_vm11, %v4510_v19  ;;  %v8540_v43 = vpop.f32.mrb[90].mxu1  ;;  %v8550_v62 = vpop.f32.mrb[90].mxu0 }
 0x6cf   : > { %4544 = vst.msk [vmem:[#allocation2 + $0x18] sm:$0xff] %vm1517_vm11, %v8540_v43  ;;  %v4513_v56 = vpop.f32.mrb[91].mxu1  ;;  %v4635_v30 = vpop.f32.mrb[91].mxu0 }
 0x6d0   : > { %4542 = vst.msk [vmem:[#allocation2 + $0x8] sm:$0xff] %vm1517_vm11, %v4513_v56 }
 0x6d4   : > { %v4665_v42 = vld [vmem:[#allocation2 + $0x10] sm:$0xff]  ;;  %v8543_v26 = vpop.f32.mrb[92].mxu1  ;;  %v8553_v12 = vpop.f32.mrb[92].mxu0 }
 0x6d5   : > { %v4673_v25 = vadd.f32 %v8549_v36, %v4665_v42  ;;  %v4663_v55 = vld [vmem:[#allocation2] sm:$0xff]  ;;  %4547 = vst.msk [vmem:[#allocation2 + $0x30] sm:$0xff] %vm1517_vm11, %v8543_v26  ;;  %v4526_v34 = vpop.f32.mrb[93].mxu1  ;;  %v4648_v39 = vpop.f32.mrb[93].mxu0 }
 0x6d6   : > { %v4671_v29 = vadd.f32 %v4663_v55, %v4632_v16  ;;  %v4666_v45 = vld [vmem:[#allocation2 + $0x18] sm:$0xff]  ;;  %4545 = vst.msk [vmem:[#allocation2 + $0x20] sm:$0xff] %vm1517_vm11, %v4526_v34  ;;  %v8544_v47 = vpop.f32.mrb[94].mxu1  ;;  %v8554_v19 = vpop.f32.mrb[94].mxu0 }
 0x6d7   : > { %4681 = vst.msk [vmem:[#allocation2 + $0x10] sm:$0xff] %vm1517_vm11, %v4673_v25  ;;  %v4674_v43 = vadd.f32 %v8550_v62, %v4666_v45  ;;  %v4664_v27 = vld [vmem:[#allocation2 + $0x8] sm:$0xff]  ;;  %4548 = vst.msk [vmem:[#allocation2 + $0x38] sm:$0xff] %vm1517_vm11, %v8544_v47  ;;  %v4529_v56 = vpop.f32.mrb[95].mxu1  ;;  %v4651_v33 = vpop.f32.mrb[95].mxu0 }
 0x6d8   : > { %4679 = vst.msk [vmem:[#allocation2] sm:$0xff] %vm1517_vm11, %v4671_v29  ;;  %v4672_v36 = vadd.f32 %v4664_v27, %v4635_v30  ;;  %4546 = vst.msk [vmem:[#allocation2 + $0x28] sm:$0xff] %vm1517_vm11, %v4529_v56 }
 0x6d9   : > { %4682 = vst.msk [vmem:[#allocation2 + $0x18] sm:$0xff] %vm1517_vm11, %v4674_v43 }
 0x6da   : > { %4680 = vst.msk [vmem:[#allocation2 + $0x8] sm:$0xff] %vm1517_vm11, %v4672_v36 }
 0x6dc   : > { %v4669_v16 = vld [vmem:[#allocation2 + $0x30] sm:$0xff]  ;;  %v8559_v42 = vpop.f32.mrb[96].mxu1  ;;  %v8569_v26 = vpop.f32.mrb[96].mxu0 }
 0x6dd   : > { %v4677_v55 = vadd.f32 %v8553_v12, %v4669_v16  ;;  %v4667_v25 = vld [vmem:[#allocation2 + $0x20] sm:$0xff]  ;;  %v4770_v62 = vpop.f32.mrb[97].mxu1  ;;  %v4884_v34 = vpop.f32.mrb[97].mxu0 }
 0x6de   : > { %v4675_v45 = vadd.f32 %v4667_v25, %v4648_v39  ;;  %v4670_v47 = vld [vmem:[#allocation2 + $0x38] sm:$0xff]  ;;  %v4803_v8 = vld [vmem:[#allocation2 + $0x10] sm:$0xff]  ;;  %v8560_v40 = vpop.f32.mrb[98].mxu1  ;;  %v8570_v24 = vpop.f32.mrb[98].mxu0 }
 0x6df   : > { %4685 = vst.msk [vmem:[#allocation2 + $0x30] sm:$0xff] %vm1517_vm11, %v4677_v55  ;;  %v4678_v27 = vadd.f32 %v8554_v19, %v4670_v47  ;;  %v4668_v30 = vld [vmem:[#allocation2 + $0x28] sm:$0xff]  ;;  %v4811_v29 = vadd.f32 %v8559_v42, %v4803_v8  ;;  %v4801_v43 = vld [vmem:[#allocation2] sm:$0xff]  ;;  %v4773_v56 = vpop.f32.mrb[99].mxu1  ;;  %v4887_v36 = vpop.f32.mrb[99].mxu0 }
 0x6e0   : > { %4683 = vst.msk [vmem:[#allocation2 + $0x20] sm:$0xff] %vm1517_vm11, %v4675_v45  ;;  %v4676_v37 = vadd.f32 %v4668_v30, %v4651_v33  ;;  %v4809_v12 = vadd.f32 %v4801_v43, %v4770_v62  ;;  %v4804_v16 = vld [vmem:[#allocation2 + $0x18] sm:$0xff] }
 0x6e1   : > { %4686 = vst.msk [vmem:[#allocation2 + $0x38] sm:$0xff] %vm1517_vm11, %v4678_v27  ;;  %4819 = vst.msk [vmem:[#allocation2 + $0x10] sm:$0xff] %vm1517_vm11, %v4811_v29  ;;  %v4812_v39 = vadd.f32 %v8560_v40, %v4804_v16  ;;  %v4802_v25 = vld [vmem:[#allocation2 + $0x8] sm:$0xff] }
 0x6e2   : > { %4684 = vst.msk [vmem:[#allocation2 + $0x28] sm:$0xff] %vm1517_vm11, %v4676_v37  ;;  %4817 = vst.msk [vmem:[#allocation2] sm:$0xff] %vm1517_vm11, %v4809_v12  ;;  %v4810_v19 = vadd.f32 %v4802_v25, %v4773_v56 }
 0x6e3   : > { %4820 = vst.msk [vmem:[#allocation2 + $0x18] sm:$0xff] %vm1517_vm11, %v4812_v39 }
 0x6e4   : > { %4818 = vst.msk [vmem:[#allocation2 + $0x8] sm:$0xff] %vm1517_vm11, %v4810_v19  ;;  %v8563_v8 = vpop.f32.mrb[100].mxu1  ;;  %v8573_v42 = vpop.f32.mrb[100].mxu0 }
 0x6e5   : > { %v4786_v33 = vpop.f32.mrb[101].mxu1  ;;  %v4900_v55 = vpop.f32.mrb[101].mxu0 }
 0x6e6   : > { %v4807_v62 = vld [vmem:[#allocation2 + $0x30] sm:$0xff]  ;;  %v8564_v45 = vpop.f32.mrb[102].mxu1  ;;  %v8574_v47 = vpop.f32.mrb[102].mxu0 }
 0x6e7   : > { %v4815_v27 = vadd.f32 %v8563_v8, %v4807_v62  ;;  %v4805_v30 = vld [vmem:[#allocation2 + $0x20] sm:$0xff]  ;;  %v4789_v40 = vpop.f32.mrb[103].mxu1  ;;  %v4903_v29 = vpop.f32.mrb[103].mxu0 }
 0x6e8   : > { %v4917_v43 = vld [vmem:[#allocation2 + $0x10] sm:$0xff]  ;;  %v4813_v37 = vadd.f32 %v4805_v30, %v4786_v33  ;;  %v4808_v16 = vld [vmem:[#allocation2 + $0x38] sm:$0xff] }
 0x6e9   : > { %v4925_v12 = vadd.f32 %v8569_v26, %v4917_v43  ;;  %v4915_v56 = vld [vmem:[#allocation2] sm:$0xff]  ;;  %4823 = vst.msk [vmem:[#allocation2 + $0x30] sm:$0xff] %vm1517_vm11, %v4815_v27  ;;  %v4816_v39 = vadd.f32 %v8564_v45, %v4808_v16  ;;  %v4806_v25 = vld [vmem:[#allocation2 + $0x28] sm:$0xff] }
 0x6ea   : > { %v4923_v19 = vadd.f32 %v4915_v56, %v4884_v34  ;;  %v4918_v9 = vld [vmem:[#allocation2 + $0x18] sm:$0xff]  ;;  %4821 = vst.msk [vmem:[#allocation2 + $0x20] sm:$0xff] %vm1517_vm11, %v4813_v37  ;;  %v4814_v18 = vadd.f32 %v4806_v25, %v4789_v40 }
 0x6eb   : > { %4933 = vst.msk [vmem:[#allocation2 + $0x10] sm:$0xff] %vm1517_vm11, %v4925_v12  ;;  %v4926_v8 = vadd.f32 %v8570_v24, %v4918_v9  ;;  %v4916_v62 = vld [vmem:[#allocation2 + $0x8] sm:$0xff]  ;;  %4824 = vst.msk [vmem:[#allocation2 + $0x38] sm:$0xff] %vm1517_vm11, %v4816_v39 }
 0x6ec   : > { %4931 = vst.msk [vmem:[#allocation2] sm:$0xff] %vm1517_vm11, %v4923_v19  ;;  %v4924_v33 = vadd.f32 %v4916_v62, %v4887_v36  ;;  %4822 = vst.msk [vmem:[#allocation2 + $0x28] sm:$0xff] %vm1517_vm11, %v4814_v18  ;;  %v8579_v26 = vpop.f32.mrb[104].mxu1 }
 0x6ed   : > { %v8589_v27 = vpop.f32.mrb[104].mxu0  ;;  %4934 = vst.msk [vmem:[#allocation2 + $0x18] sm:$0xff] %vm1517_vm11, %v4926_v8  ;;  %v5022_v34 = vpop.f32.mrb[105].mxu1 }
 0x6ee   : > { %v5160_v45 = vpop.f32.mrb[105].mxu0  ;;  %4932 = vst.msk [vmem:[#allocation2 + $0x8] sm:$0xff] %vm1517_vm11, %v4924_v33  ;;  %v8580_v30 = vpop.f32.mrb[106].mxu1 }
 0x6ef   : > { %v8590_v40 = vpop.f32.mrb[106].mxu0  ;;  %v5025_v43 = vpop.f32.mrb[107].mxu1 }
 0x6f0   : > { %v5163_v9 = vpop.f32.mrb[107].mxu0  ;;  %v4921_v24 = vld [vmem:[#allocation2 + $0x30] sm:$0xff] }
 0x6f1   : > { %v4929_v37 = vadd.f32 %v8573_v42, %v4921_v24  ;;  %v4919_v16 = vld [vmem:[#allocation2 + $0x20] sm:$0xff] }
 0x6f2   : > { %v4927_v12 = vadd.f32 %v4919_v16, %v4900_v55  ;;  %v4922_v56 = vld [vmem:[#allocation2 + $0x38] sm:$0xff]  ;;  %v5055_v36 = vld [vmem:[#allocation2 + $0x10] sm:$0xff] }
 0x6f3   : > { %4937 = vst.msk [vmem:[#allocation2 + $0x30] sm:$0xff] %vm1517_vm11, %v4929_v37  ;;  %v4930_v18 = vadd.f32 %v8574_v47, %v4922_v56  ;;  %v4920_v39 = vld [vmem:[#allocation2 + $0x28] sm:$0xff]  ;;  %v5063_v25 = vadd.f32 %v8579_v26, %v5055_v36  ;;  %v5053_v19 = vld [vmem:[#allocation2] sm:$0xff] }
 0x6f4   : > { %4935 = vst.msk [vmem:[#allocation2 + $0x20] sm:$0xff] %vm1517_vm11, %v4927_v12  ;;  %v4928_v8 = vadd.f32 %v4920_v39, %v4903_v29  ;;  %v5061_v62 = vadd.f32 %v5053_v19, %v5022_v34  ;;  %v5056_v33 = vld [vmem:[#allocation2 + $0x18] sm:$0xff]  ;;  %v8583_v23 = vpop.f32.mrb[108].mxu1 }
 0x6f5   : > { %v8593_v38 = vpop.f32.mrb[108].mxu0  ;;  %4938 = vst.msk [vmem:[#allocation2 + $0x38] sm:$0xff] %vm1517_vm11, %v4930_v18  ;;  %5071 = vst.msk [vmem:[#allocation2 + $0x10] sm:$0xff] %vm1517_vm11, %v5063_v25  ;;  %v5064_v42 = vadd.f32 %v8580_v30, %v5056_v33  ;;  %v5054_v55 = vld [vmem:[#allocation2 + $0x8] sm:$0xff]  ;;  %v5038_v24 = vpop.f32.mrb[109].mxu1 }
 0x6f6   : > { %v5176_v16 = vpop.f32.mrb[109].mxu0  ;;  %4936 = vst.msk [vmem:[#allocation2 + $0x28] sm:$0xff] %vm1517_vm11, %v4928_v8  ;;  %5069 = vst.msk [vmem:[#allocation2] sm:$0xff] %vm1517_vm11, %v5061_v62  ;;  %v5062_v47 = vadd.f32 %v5054_v55, %v5025_v43  ;;  %v8584_v26 = vpop.f32.mrb[110].mxu1 }
 0x6f7   : > { %v8594_v37 = vpop.f32.mrb[110].mxu0  ;;  %5072 = vst.msk [vmem:[#allocation2 + $0x18] sm:$0xff] %vm1517_vm11, %v5064_v42  ;;  %v5041_v29 = vpop.f32.mrb[111].mxu1 }
 0x6f8   : > { %v5179_v34 = vpop.f32.mrb[111].mxu0  ;;  %5070 = vst.msk [vmem:[#allocation2 + $0x8] sm:$0xff] %vm1517_vm11, %v5062_v47 }
 0x6fa   : > { %v5059_v12 = vld [vmem:[#allocation2 + $0x30] sm:$0xff] }
 0x6fb   : > { %v5067_v56 = vadd.f32 %v8583_v23, %v5059_v12  ;;  %v5057_v36 = vld [vmem:[#allocation2 + $0x20] sm:$0xff] }
 0x6fc   : > { %v5193_v30 = vld [vmem:[#allocation2 + $0x10] sm:$0xff]  ;;  %v5065_v18 = vadd.f32 %v5057_v36, %v5038_v24  ;;  %v5060_v39 = vld [vmem:[#allocation2 + $0x38] sm:$0xff]  ;;  %v8599_v25 = vpop.f32.mrb[112].mxu1 }
 0x6fd   : > { %v5201_v19 = vadd.f32 %v8589_v27, %v5193_v30  ;;  %v5191_v8 = vld [vmem:[#allocation2] sm:$0xff]  ;;  %5075 = vst.msk [vmem:[#allocation2 + $0x30] sm:$0xff] %vm1517_vm11, %v5067_v56  ;;  %v5068_v43 = vadd.f32 %v8584_v26, %v5060_v39  ;;  %v5058_v62 = vld [vmem:[#allocation2 + $0x28] sm:$0xff]  ;;  %v5298_v33 = vpop.f32.mrb[113].mxu1 }
 0x6fe   : > { %v5199_v55 = vadd.f32 %v5191_v8, %v5160_v45  ;;  %v5194_v42 = vld [vmem:[#allocation2 + $0x18] sm:$0xff]  ;;  %5073 = vst.msk [vmem:[#allocation2 + $0x20] sm:$0xff] %vm1517_vm11, %v5065_v18  ;;  %v5066_v4 = vadd.f32 %v5058_v62, %v5041_v29  ;;  %v8600_v47 = vpop.f32.mrb[114].mxu1 }
 0x6ff   : > { %5209 = vst.msk [vmem:[#allocation2 + $0x10] sm:$0xff] %vm1517_vm11, %v5201_v19  ;;  %v5202_v23 = vadd.f32 %v8590_v40, %v5194_v42  ;;  %v5192_v12 = vld [vmem:[#allocation2 + $0x8] sm:$0xff]  ;;  %5076 = vst.msk [vmem:[#allocation2 + $0x38] sm:$0xff] %vm1517_vm11, %v5068_v43  ;;  %v5301_v24 = vpop.f32.mrb[115].mxu1 }
 0x700   : > { %5207 = vst.msk [vmem:[#allocation2] sm:$0xff] %vm1517_vm11, %v5199_v55  ;;  %v5200_v27 = vadd.f32 %v5192_v12, %v5163_v9  ;;  %5074 = vst.msk [vmem:[#allocation2 + $0x28] sm:$0xff] %vm1517_vm11, %v5066_v4 }
 0x701   : > { %5210 = vst.msk [vmem:[#allocation2 + $0x18] sm:$0xff] %vm1517_vm11, %v5202_v23 }
 0x702   : > { %5208 = vst.msk [vmem:[#allocation2 + $0x8] sm:$0xff] %vm1517_vm11, %v5200_v27 }
 0x704   : > { %v5197_v45 = vld [vmem:[#allocation2 + $0x30] sm:$0xff]  ;;  %v8603_v26 = vpop.f32.mrb[116].mxu1 }
 0x705   : > { %v5205_v29 = vadd.f32 %v8593_v38, %v5197_v45  ;;  %v5195_v56 = vld [vmem:[#allocation2 + $0x20] sm:$0xff]  ;;  %v5314_v36 = vpop.f32.mrb[117].mxu1 }
 0x706   : > { %v5203_v30 = vadd.f32 %v5195_v56, %v5176_v16  ;;  %v5198_v40 = vld [vmem:[#allocation2 + $0x38] sm:$0xff]  ;;  %v5331_v18 = vld [vmem:[#allocation2 + $0x10] sm:$0xff]  ;;  %v8604_v39 = vpop.f32.mrb[118].mxu1 }
 0x707   : > { %5213 = vst.msk [vmem:[#allocation2 + $0x30] sm:$0xff] %vm1517_vm11, %v5205_v29  ;;  %v5206_v19 = vadd.f32 %v8594_v37, %v5198_v40  ;;  %v5196_v8 = vld [vmem:[#allocation2 + $0x28] sm:$0xff]  ;;  %v5339_v9 = vadd.f32 %v8599_v25, %v5331_v18  ;;  %v5329_v43 = vld [vmem:[#allocation2] sm:$0xff]  ;;  %v5317_v4 = vpop.f32.mrb[119].mxu1 }
 0x708   : > { %5211 = vst.msk [vmem:[#allocation2 + $0x20] sm:$0xff] %vm1517_vm11, %v5203_v30  ;;  %v5204_v62 = vadd.f32 %v5196_v8, %v5179_v34  ;;  %v5337_v55 = vadd.f32 %v5329_v43, %v5298_v33  ;;  %v5332_v42 = vld [vmem:[#allocation2 + $0x18] sm:$0xff]  ;;  %v12780_v43 = vmov 0.0  }
 0x709   : > { %5214 = vst.msk [vmem:[#allocation2 + $0x38] sm:$0xff] %vm1517_vm11, %v5206_v19  ;;  %5347 = vst.msk [vmem:[#allocation2 + $0x10] sm:$0xff] %vm1517_vm11, %v5339_v9  ;;  %v5340_v38 = vadd.f32 %v8600_v47, %v5332_v42  ;;  %v5330_v16 = vld [vmem:[#allocation2 + $0x8] sm:$0xff]  ;;  %v7960_v33 = vld [vmem:[#allocation21] ss:$0 sm:$0xff] }
 0x70a   : > { %5212 = vst.msk [vmem:[#allocation2 + $0x28] sm:$0xff] %vm1517_vm11, %v5204_v62  ;;  %5345 = vst.msk [vmem:[#allocation2] sm:$0xff] %vm1517_vm11, %v5337_v55  ;;  %v5338_v37 = vadd.f32 %v5330_v16, %v5301_v24  ;;  %v9035_v16 = vld [vmem:[#allocation22 + $0x28] sm:$0xff]  }
 0x70b   : > { %5348 = vst.msk [vmem:[#allocation2 + $0x18] sm:$0xff] %vm1517_vm11, %v5340_v38  ;;  %v9034_v38 = vld [vmem:[#allocation22 + $0x20] sm:$0xff]  }
 0x70c   : > { %5346 = vst.msk [vmem:[#allocation2 + $0x8] sm:$0xff] %vm1517_vm11, %v5338_v37 }
 0x70e   : > { %v5335_v25 = vld [vmem:[#allocation2 + $0x30] sm:$0xff] }
 0x70f   : > { %v5343_v23 = vadd.f32 %v8603_v26, %v5335_v25  ;;  %v5333_v34 = vld [vmem:[#allocation2 + $0x20] sm:$0xff] }
 0x710   : > { %v5341_v12 = vadd.f32 %v5333_v34, %v5314_v36  ;;  %v5336_v27 = vld [vmem:[#allocation2 + $0x38] sm:$0xff]  ;;  %v5355_v45 = vld [vmem:[#allocation2 + $0x10] sm:$0xff] }
 0x711   : > { %5351 = vst.msk [vmem:[#allocation2 + $0x30] sm:$0xff] %vm1517_vm11, %v5343_v23  ;;  %v5344_v47 = vadd.f32 %v8604_v39, %v5336_v27  ;;  %v5334_v29 = vld [vmem:[#allocation2 + $0x28] sm:$0xff]  ;;  %v5353_v56 = vld [vmem:[#allocation2] sm:$0xff]  ;;  %v5370_v40 = vadd.f32 %v7960_v33, %v5355_v45 }
 0x712   : > { %5349 = vst.msk [vmem:[#allocation2 + $0x20] sm:$0xff] %vm1517_vm11, %v5341_v12  ;;  %v5342_v30 = vadd.f32 %v5334_v29, %v5317_v4  ;;  %v5368_v24 = vadd.f32 %v7960_v33, %v5353_v56  ;;  %v5356_v18 = vld [vmem:[#allocation2 + $0x18] sm:$0xff] }
 0x713   : > { %5352 = vst.msk [vmem:[#allocation2 + $0x38] sm:$0xff] %vm1517_vm11, %v5344_v47  ;;  %v5354_v19 = vld [vmem:[#allocation2 + $0x8] sm:$0xff]  ;;  %v5371_v26 = vadd.f32 %v7960_v33, %v5356_v18  ;;  %v5378_v55 = vmax.f32 %v5370_v40, 0.0 }
 0x714   : > { %5350 = vst.msk [vmem:[#allocation2 + $0x28] sm:$0xff] %vm1517_vm11, %v5342_v30  ;;  %v5376_v36 = vmax.f32 %v5368_v24, 0.0  ;;  %v5369_v8 = vadd.f32 %v7960_v33, %v5354_v19  ;;  %v9036_v30 = vld [vmem:[#allocation22 + $0x30] sm:$0xff]  }
 0x715   : > { %v5379_v9 = vmax.f32 %v5371_v26, 0.0 }
 0x716   : > { %v5393_v62 = vpack.c.bf16 %v5376_v36, %v12780_v43  ;;  %v5377_v39 = vmax.f32 %v5369_v8, 0.0  ;;  %v9038_v8 = vld [vmem:[#allocation25 + $0x8] sm:$0xff]  }
 0x717   : > { %v5499_v37 = vpack.c.bf16 %v5379_v9, %v5378_v55 }
 0x718   : > { %8608 = vmatmul.mubr.msk.bf16.vlgmr.msra.gmra.mrb[112].mxu0 %vm1517_vm11, %v5393_v62  ;;  %v5394_v42 = vpack.c.bf16 %v5378_v55, %v5377_v39  ;;  %v5498_v4 = vpack.c.bf16 %v5377_v39, %v5376_v36  ;;  %v5359_v29 = vld [vmem:[#allocation2 + $0x30] sm:$0xff] }
 0x719   : > { %8626 = vmatpush3.bf16.msra.mxu0 %v11544_v58  ;;  %v5357_v25 = vld [vmem:[#allocation2 + $0x20] sm:$0xff]  ;;  %v9037_v36 = vld [vmem:[#allocation25] sm:$0xff]  }
 0x71a   : > { %8611 = vmatprep.mubr.msk.bf16.mxu0 %vm1517_vm11, %v5394_v42  ;;  %8618 = vmatmul.mubr.msk.bf16.vlgmr.msra.gmra.mrb[120].mxu1 %vm1517_vm11, %v5498_v4  ;;  %v5372_v23 = vadd.f32 %v7960_v33, %v5357_v25  ;;  %v5360_v56 = vld [vmem:[#allocation2 + $0x38] sm:$0xff] }
 0x71b   : > { %8621 = vmatprep.mubr.msk.bf16.mxu1 %vm1517_vm11, %v5499_v37  ;;  %v5358_v34 = vld [vmem:[#allocation2 + $0x28] sm:$0xff]  ;;  %8636 = vmatpush3.bf16.msra.mxu1 %v11547_v11  ;;  %v5374_v11 = vadd.f32 %v7960_v33, %v5359_v29  ;;  %v5375_v24 = vadd.f32 %v7960_v33, %v5360_v56 }
 0x71c   : > { %v5380_v12 = vmax.f32 %v5372_v23, 0.0  ;;  %v5373_v27 = vadd.f32 %v7960_v33, %v5358_v34  ;;  %8645 = vmatprep.subr.bf16.mxu0 %v9034_v38  ;;  %8655 = vmatprep.subr.bf16.mxu1 %v9035_v16  ;;  %v12782_v23 = vld [vmem:[#allocation53_spill] sm:$0xff] }
 0x71d   : > { %v5382_v40 = vmax.f32 %v5374_v11, 0.0  ;;  %v5383_v18 = vmax.f32 %v5375_v24, 0.0  ;;  %v12505_v34 = vrot.slane %v12782_v23, 7  ;;  %v12785_v11 = vld [vmem:[#allocation52_spill] sm:$0xff] }
 0x71e   : > { %v5395_v45 = vpack.c.bf16 %v5380_v12, %v5379_v9  ;;  %v5381_v47 = vmax.f32 %v5373_v27, 0.0  ;;  %v11636_v9 = vld [vmem:[#allocation25 + $0x10] sm:$0xff]   ;;  %v12507_v24 = vrot.slane %v12785_v11, 1 }
 0x71f   : > { %v5736_v26 = vpack.c.bf16 %v5383_v18, %v5382_v40  ;;  %v5858_v33 = vpack.c.bf16 %v12780_v43, %v5383_v18  ;;  %v11638_v43 = vld [vmem:[#allocation25 + $0x18] sm:$0xff]  }
 0x720   : > { %8612 = vmatmul.mubr.msk.bf16.gmra.mrb[116].mxu0 %vm1517_vm11, %v5395_v45  ;;  %v5500_v58 = vpack.c.bf16 %v5381_v47, %v5380_v12  ;;  %v5622_v19 = vpack.c.bf16 %v5382_v40, %v5381_v47  ;;  %v12783_v12 = vld [vmem:[#allocation51_spill] sm:$0xff] }
 0x721   : > { %8627 = vmatprep.mubr.msk.bf16.mxu0 %vm1517_vm11, %v5393_v62  ;;  %v12508_v27 = vrot.slane %v12783_v12, 7 }
 0x722   : > { %8622 = vmatmul.mubr.msk.bf16.gmra.mrb[124].mxu1 %vm1517_vm11, %v5500_v58 }
 0x723   : > { %8637 = vmatprep.mubr.msk.bf16.mxu1 %vm1517_vm11, %v5498_v4 }
 0x728   : > { %8628 = vmatmul.mubr.msk.bf16.vlgmr.msra.gmra.mrb[120].mxu0 %vm1517_vm11, %v5394_v42 }
 0x729   : > { %8631 = vmatprep.mubr.msk.bf16.mxu0 %vm1517_vm11, %v5395_v45  ;;  %8646 = vmatpush3.bf16.msra.mxu0 %v9034_v38 }
 0x72a   : > { %8638 = vmatmul.mubr.msk.bf16.vlgmr.msra.gmra.mrb[128].mxu1 %vm1517_vm11, %v5499_v37  ;;  %8665 = vmatprep.subr.bf16.mxu0 %v9036_v30 }
 0x72b   : > { %8641 = vmatprep.mubr.msk.bf16.mxu1 %vm1517_vm11, %v5500_v58  ;;  %8656 = vmatpush3.bf16.msra.mxu1 %v9035_v16 }
 0x72c   : > { %8675 = vmatprep.subr.bf16.mxu1 %v9037_v36 }
 0x730   : > { %8632 = vmatmul.mubr.msk.bf16.gmra.mrb[124].mxu0 %vm1517_vm11, %v5622_v19 }
 0x731   : > { %8647 = vmatprep.mubr.msk.bf16.mxu0 %vm1517_vm11, %v5394_v42 }
 0x732   : > { %8642 = vmatmul.mubr.msk.bf16.gmra.mrb[132].mxu1 %vm1517_vm11, %v5736_v26 }
 0x733   : > { %8657 = vmatprep.mubr.msk.bf16.mxu1 %vm1517_vm11, %v5499_v37  ;;  %v12781_v37 = vld [vmem:[#allocation48_spill] sm:$0xff] }
 0x734   : > { %v7289_v25 = vrot.slane %v12781_v37, 7  ;;  %v12506_v56 = vrot.slane %v12781_v37, 1 }
 0x738   : > { %8648 = vmatmul.mubr.msk.bf16.vlgmr.msra.gmra.mrb[128].mxu0 %vm1517_vm11, %v5395_v45 }
 0x739   : > { %8651 = vmatprep.mubr.msk.bf16.mxu0 %vm1517_vm11, %v5622_v19  ;;  %8666 = vmatpush3.bf16.msra.mxu0 %v9036_v30  ;;  %v7324_v30 = vrot.slane %v12783_v12, 1 }
 0x73a   : > { %8658 = vmatmul.mubr.msk.bf16.vlgmr.msra.gmra.mrb[136].mxu1 %vm1517_vm11, %v5500_v58  ;;  %8685 = vmatprep.subr.bf16.mxu0 %v9038_v8 }
 0x73b   : > { %8661 = vmatprep.mubr.msk.bf16.mxu1 %vm1517_vm11, %v5736_v26  ;;  %8676 = vmatpush3.bf16.msra.mxu1 %v9037_v36 }
 0x73c   : > { %8695 = vmatprep.subr.bf16.mxu1 %v11636_v9 }
 0x740   : > { %8652 = vmatmul.mubr.msk.bf16.gmra.mrb[132].mxu0 %vm1517_vm11, %v5858_v33 }
 0x741   : > { %8667 = vmatprep.mubr.msk.bf16.mxu0 %vm1517_vm11, %v5395_v45  ;;  %v12784_v45 = vld [vmem:[#allocation50_spill] sm:$0xff] }
 0x742   : > { %8662 = vmatmul.mubr.bf16.gmra.mrb[140].mxu1 %v12635_v44  ;;  %v7323_v47 = vrot.slane %v12784_v45, 1 }
 0x748   : > { %8668 = vmatmul.mubr.msk.bf16.vlgmr.msra.gmra.mrb[136].mxu0 %vm1517_vm11, %v5622_v19 }
 0x749   : > { %8671 = vmatprep.mubr.msk.bf16.mxu0 %vm1517_vm11, %v5858_v33  ;;  %8686 = vmatpush3.bf16.msra.mxu0 %v9038_v8 }
 0x74a   : > { %8705 = vmatprep.subr.bf16.mxu0 %v11638_v43 }
 0x750   : > { %8672 = vmatmul.mubr.bf16.gmra.mrb[140].mxu0 %v12635_v44 }
 0x7eb   : > { %v8609_v62 = vpop.f32.mrb[112].mxu0 }
 0x7ec   : > { %5483 = vst.msk [vmem:[#allocation2 + $0x10] sm:$0xff] %vm1517_vm11, %v8609_v62  ;;  %v5450_v39 = vpop.f32.mrb[113].mxu0  ;;  %v12786_v62 = vld [vmem:[#allocation49_spill] sm:$0xff] }
 0x7ed   : > { %5481 = vst.msk [vmem:[#allocation2] sm:$0xff] %vm1517_vm11, %v5450_v39  ;;  %v8610_v44 = vpop.f32.mrb[114].mxu0  ;;  %v8619_v55 = vpop.f32.mrb[120].mxu1  ;;  %v12787_v39 = vrot.slane %v12786_v62, 7 }
 0x7ee   : > { %5484 = vst.msk [vmem:[#allocation2 + $0x18] sm:$0xff] %vm1517_vm11, %v8610_v44  ;;  %v5453_v42 = vpop.f32.mrb[115].mxu0  ;;  %v5556_v4 = vpop.f32.mrb[121].mxu1 }
 0x7ef   : > { %5482 = vst.msk [vmem:[#allocation2 + $0x8] sm:$0xff] %vm1517_vm11, %v5453_v42  ;;  %v8620_v38 = vpop.f32.mrb[122].mxu1  ;;  %v7303_v44 = vsel %vm1766_vm2, %v7289_v25, %v12787_v39  ;;  %v7322_v42 = vrot.slane %v12786_v62, 1 }
 0x7f0   : > { %v5559_v16 = vpop.f32.mrb[123].mxu1  ;;  %v7306_v39 = vsel %vm12789_vm9, %v7303_v44, 0.0  ;;  %vm12798_vm9 = vmmov %vm12791_vm0 }
 0x7f1   : > { %v7334_v44 = vsel %vm12791_vm0, %v7322_v42, %v7323_v47  ;;  %vm12800_vm0 = vcmp.lt.s32.totalorder %v12740_v32, 8 }
 0x7f3   : > { %v5589_v58 = vld [vmem:[#allocation2 + $0x10] sm:$0xff]  ;;  %v8613_v29 = vpop.f32.mrb[116].mxu0 }
 0x7f4   : > { %v5597_v40 = vadd.f32 %v8619_v55, %v5589_v58  ;;  %v5587_v18 = vld [vmem:[#allocation2] sm:$0xff]  ;;  %5487 = vst.msk [vmem:[#allocation2 + $0x30] sm:$0xff] %vm1517_vm11, %v8613_v29  ;;  %v5466_v19 = vpop.f32.mrb[117].mxu0  ;;  %v7304_v55 = vsel %vm1766_vm2, %v12505_v34, %v7289_v25  ;;  %v12790_v25 = vrot.slane %v12784_v45, 7  ;;  %v7335_v45 = vsel %vm12792_vm15, %v12506_v56, %v7322_v42 }
 0x7f5   : > { %v5595_v26 = vadd.f32 %v5587_v18, %v5556_v4  ;;  %v5590_v33 = vld [vmem:[#allocation2 + $0x18] sm:$0xff]  ;;  %5485 = vst.msk [vmem:[#allocation2 + $0x20] sm:$0xff] %vm1517_vm11, %v5466_v19  ;;  %v8614_v36 = vpop.f32.mrb[118].mxu0  ;;  %v8623_v8 = vpop.f32.mrb[124].mxu1  ;;  %v7305_v19 = vsel %vm12788_vm1, %v7304_v55, 0.0  ;;  %vm12796_vm1 = vcmp.lt.s32.totalorder %v10425_v3, 8 }
 0x7f6   : > { %5605 = vst.msk [vmem:[#allocation2 + $0x10] sm:$0xff] %vm1517_vm11, %v5597_v40  ;;  %v5598_v4 = vadd.f32 %v8620_v38, %v5590_v33  ;;  %v5588_v58 = vld [vmem:[#allocation2 + $0x8] sm:$0xff]  ;;  %5488 = vst.msk [vmem:[#allocation2 + $0x38] sm:$0xff] %vm1517_vm11, %v8614_v36  ;;  %v5469_v29 = vpop.f32.mrb[119].mxu0  ;;  %v5572_v18 = vpop.f32.mrb[125].mxu1  ;;  %v7301_v34 = vsel %vm1766_vm2, %v12790_v25, %v12508_v27  ;;  %v7313_v33 = vadd.f32 %v7305_v19, %v12781_v37  ;;  %vm12801_vm15 = vcmp.lt.s32.totalorder %v10450_v17, 8 }
 0x7f7   : > { %5603 = vst.msk [vmem:[#allocation2] sm:$0xff] %vm1517_vm11, %v5595_v26  ;;  %v5596_v38 = vadd.f32 %v5588_v58, %v5559_v16  ;;  %5486 = vst.msk [vmem:[#allocation2 + $0x28] sm:$0xff] %vm1517_vm11, %v5469_v29  ;;  %v8624_v40 = vpop.f32.mrb[126].mxu1  ;;  %v7314_v36 = vadd.f32 %v7306_v39, %v12786_v62  ;;  %v7338_v16 = vsel %vm12793_vm4, %v7334_v44, 0.0  ;;  %v7308_v26 = vsel %vm12794_vm5, %v7301_v34, 0.0  ;;  %v12802_v44 = vld [vmem:[#allocation56_spill] sm:$0xff] }
 0x7f8   : > { %5606 = vst.msk [vmem:[#allocation2 + $0x18] sm:$0xff] %vm1517_vm11, %v5598_v4  ;;  %v5575_v55 = vpop.f32.mrb[127].mxu1  ;;  %v7332_v62 = vsel %vm12795_vm12, %v7324_v30, %v12507_v24  ;;  %v7337_v4 = vsel %vm12796_vm1, %v7335_v45, 0.0  ;;  %v7316_v42 = vadd.f32 %v7308_v26, %v12783_v12  ;;  %v7333_v29 = vsel %vm12798_vm9, %v7323_v47, %v7324_v30  ;;  %v12805_v45 = vld [vmem:[#allocation55_spill] sm:$0xff]  ;;  %vm12810_vm12 = vmmov %vm12798_vm9 }
 0x7f9   : > { %5604 = vst.msk [vmem:[#allocation2 + $0x8] sm:$0xff] %vm1517_vm11, %v5596_v38  ;;  %v11698_v58 = vadd.f32 %v7338_v16, %v7314_v36  ;;  %v11703_v19 = vadd.f32 %v7337_v4, %v7313_v33  ;;  %v7339_v34 = vsel %vm12800_vm0, %v7333_v29, 0.0  ;;  %v7340_v39 = vsel %vm12801_vm15, %v7332_v62, 0.0  ;;  %vm12812_vm1 = vmmov %vm12798_vm9 }
 0x7fa   : > { %v11710_v56 = vadd.f32 %v7339_v34, %v12802_v44  ;;  %v11712_v36 = vadd.f32 %v7340_v39, %v7316_v42  ;;  %v7295_v16 = vrot.slane %v12805_v45, 7  ;;  %v7293_v42 = vrot.slane %v12785_v11, 7  ;;  %v12806_v39 = vld [vmem:[#allocation54_spill] sm:$0xff] }
 0x7fb   : > { %12797 = vst [vmem:[#allocation62_spill] sm:$0xff] %v11698_v58  ;;  %12799 = vst [vmem:[#allocation69_spill] sm:$0xff] %v11703_v19  ;;  %v5593_v25 = vld [vmem:[#allocation2 + $0x30] sm:$0xff]  ;;  %v8629_v38 = vpop.f32.mrb[120].mxu0  ;;  %v7294_v44 = vrot.slane %v12806_v39, 7  ;;  %v7327_v19 = vrot.slane %v12805_v45, 1 }
 0x7fc   : > { %12803 = vst [vmem:[#allocation72_spill] sm:$0xff] %v11710_v56  ;;  %12804 = vst [vmem:[#allocation70_spill] sm:$0xff] %v11712_v36  ;;  %v5601_v26 = vadd.f32 %v8623_v8, %v5593_v25  ;;  %v5591_v24 = vld [vmem:[#allocation2 + $0x20] sm:$0xff]  ;;  %v5678_v47 = vpop.f32.mrb[121].mxu0  ;;  %vm12808_vm4 = vcmp.ge.s32.totalorder %v10398_v57, 0  ;;  %vm12809_vm5 = vcmp.ge.s32.totalorder %v10403_v59, 0 }
 0x7fd   : > { %v5599_v33 = vadd.f32 %v5591_v24, %v5572_v18  ;;  %v5594_v4 = vld [vmem:[#allocation2 + $0x38] sm:$0xff]  ;;  %v5711_v29 = vld [vmem:[#allocation2 + $0x10] sm:$0xff]  ;;  %v8630_v27 = vpop.f32.mrb[122].mxu0  ;;  %v11717_v62 = vpop.f32.mrb[128].mxu1  ;;  %v7326_v18 = vrot.slane %v12806_v39, 1  ;;  %vm12813_vm9 = vcmp.lt.s32.totalorder %v10459_v22, 8 }
 0x7fe   : > { %5609 = vst.msk [vmem:[#allocation2 + $0x30] sm:$0xff] %vm1517_vm11, %v5601_v26  ;;  %v5602_v8 = vadd.f32 %v8624_v40, %v5594_v4  ;;  %v5592_v25 = vld [vmem:[#allocation2 + $0x28] sm:$0xff]  ;;  %v5719_v32 = vadd.f32 %v8629_v38, %v5711_v29  ;;  %v5709_v10 = vld [vmem:[#allocation2] sm:$0xff]  ;;  %v5681_v30 = vpop.f32.mrb[123].mxu0  ;;  %v11724_v24 = vpop.f32.mrb[129].mxu1  ;;  %v7299_v26 = vsel %vm1766_vm2, %v7293_v42, %v7294_v44  ;;  %v12807_v40 = vrot.slane %v12783_v12, 7 }
 0x7ff   : > { %5607 = vst.msk [vmem:[#allocation2 + $0x20] sm:$0xff] %vm1517_vm11, %v5599_v33  ;;  %v5600_v34 = vadd.f32 %v5592_v25, %v5575_v55  ;;  %v5717_v56 = vadd.f32 %v5709_v10, %v5678_v47  ;;  %v5712_v36 = vld [vmem:[#allocation2 + $0x18] sm:$0xff]  ;;  %v8640_v58 = vpop.f32.mrb[130].mxu1  ;;  %v7310_v55 = vsel %vm12809_vm5, %v7299_v26, 0.0  ;;  %v7330_v47 = vsel %vm12810_vm12, %v7326_v18, %v7327_v19  ;;  %vm12818_vm5 = vmmov %vm12812_vm1 }
 0x800   : > { %v7300_v38 = vsel %vm1766_vm2, %v12807_v40, %v7293_v42  ;;  %5610 = vst.msk [vmem:[#allocation2 + $0x38] sm:$0xff] %vm1517_vm11, %v5602_v8  ;;  %5727 = vst.msk [vmem:[#allocation2 + $0x10] sm:$0xff] %vm1517_vm11, %v5719_v32  ;;  %v5720_v4 = vadd.f32 %v8630_v27, %v5712_v36  ;;  %v5710_v29 = vld [vmem:[#allocation2 + $0x8] sm:$0xff]  ;;  %v5795_v17 = vpop.f32.mrb[131].mxu1  ;;  %v7318_v32 = vadd.f32 %v7310_v55, %v12806_v39  ;;  %v12811_v27 = vrot.slane %v12785_v11, 1 }
 0x801   : > { %v7309_v10 = vsel %vm12808_vm4, %v7300_v38, 0.0  ;;  %5608 = vst.msk [vmem:[#allocation2 + $0x28] sm:$0xff] %vm1517_vm11, %v5600_v34  ;;  %5725 = vst.msk [vmem:[#allocation2] sm:$0xff] %vm1517_vm11, %v5717_v56  ;;  %v5718_v12 = vadd.f32 %v5710_v29, %v5681_v30  ;;  %vm12814_vm0 = vcmp.lt.s32.totalorder %v12734_v46, 8  ;;  %v12815_v56 = vrot.slane %v12782_v23, 7 }
 0x802   : > { %v7317_v33 = vadd.f32 %v7309_v10, %v12785_v11  ;;  %v7331_v36 = vsel %vm12812_vm1, %v12811_v27, %v7326_v18  ;;  %5728 = vst.msk [vmem:[#allocation2 + $0x18] sm:$0xff] %vm1517_vm11, %v5720_v4  ;;  %v7342_v34 = vsel %vm12814_vm0, %v7330_v47, 0.0  ;;  %v7298_v39 = vsel %vm1766_vm2, %v7294_v44, %v7295_v16  ;;  %vm12820_vm12 = vmmov %vm12812_vm1 }
 0x803   : > { %v7341_v42 = vsel %vm12813_vm9, %v7331_v36, 0.0  ;;  %v7297_v30 = vsel %vm1766_vm2, %v7295_v16, %v12815_v56  ;;  %5726 = vst.msk [vmem:[#allocation2 + $0x8] sm:$0xff] %vm1517_vm11, %v5718_v12  ;;  %v8633_v11 = vpop.f32.mrb[124].mxu0  ;;  %v11765_v25 = vadd.f32 %v7342_v34, %v7318_v32  ;;  %vm12816_vm15 = vcmp.ge.s32.totalorder %v10419_v0, 0 }
 0x804   : > { %v11763_v8 = vadd.f32 %v7341_v42, %v7317_v33  ;;  %v7311_v18 = vsel %vm12816_vm15, %v7298_v39, 0.0  ;;  %vm12817_vm4 = vcmp.ge.s32.totalorder %v10422_v2, 0  ;;  %v5694_v40 = vpop.f32.mrb[125].mxu0  ;;  %v7328_v16 = vrot.slane %v12782_v23, 1 }
 0x805   : > { %v7312_v26 = vsel %vm12817_vm4, %v7297_v30, 0.0  ;;  %v7319_v38 = vadd.f32 %v7311_v18, %v12805_v45  ;;  %v5715_v44 = vld [vmem:[#allocation2 + $0x30] sm:$0xff]  ;;  %v8634_v29 = vpop.f32.mrb[126].mxu0  ;;  %v8643_v10 = vpop.f32.mrb[132].mxu1  ;;  %v12819_v36 = vrot.slane %v12781_v37, 1  ;;  %vm12821_vm1 = vcmp.lt.s32.totalorder %v12752_v15, 8 }
 0x806   : > { %v7320_v4 = vadd.f32 %v7312_v26, %v12782_v23  ;;  %v5723_v47 = vadd.f32 %v8633_v11, %v5715_v44  ;;  %v5713_v12 = vld [vmem:[#allocation2 + $0x20] sm:$0xff]  ;;  %v5697_v33 = vpop.f32.mrb[127].mxu0  ;;  %v5808_v32 = vpop.f32.mrb[133].mxu1  ;;  %v7329_v27 = vsel %vm12818_vm5, %v7327_v19, %v7328_v16  ;;  %vm12822_vm9 = vcmp.lt.s32.totalorder %v12754_v28, 8 }
 0x807   : > { %v7336_v45 = vsel %vm12820_vm12, %v7328_v16, %v12819_v36  ;;  %v5825_v42 = vld [vmem:[#allocation2 + $0x10] sm:$0xff]  ;;  %v5721_v23 = vadd.f32 %v5713_v12, %v5694_v40  ;;  %v5716_v34 = vld [vmem:[#allocation2 + $0x38] sm:$0xff]  ;;  %v8644_v56 = vpop.f32.mrb[134].mxu1  ;;  %v7343_v30 = vsel %vm12821_vm1, %v7329_v27, 0.0  ;;  %vm12825_vm0 = vcmp.lt.s32.totalorder %v10244_v1, 3 }
 0x808   : > { %v7344_v39 = vsel %vm12822_vm9, %v7336_v45, 0.0  ;;  %v5833_v11 = vadd.f32 %v11717_v62, %v5825_v42  ;;  %v5823_v18 = vld [vmem:[#allocation2] sm:$0xff]  ;;  %5731 = vst.msk [vmem:[#allocation2 + $0x30] sm:$0xff] %vm1517_vm11, %v5723_v47  ;;  %v5724_v19 = vadd.f32 %v8634_v29, %v5716_v34  ;;  %v5714_v37 = vld [vmem:[#allocation2 + $0x28] sm:$0xff]  ;;  %v5811_v26 = vpop.f32.mrb[135].mxu1  ;;  %v11788_v44 = vadd.f32 %v7343_v30, %v7319_v38  ;;  %vm12826_vm15 = vmmov %vm12825_vm0 }
 0x809   : > { %v11790_v16 = vadd.f32 %v7344_v39, %v7320_v4  ;;  %v5831_v40 = vadd.f32 %v5823_v18, %v11724_v24  ;;  %v5826_v12 = vld [vmem:[#allocation2 + $0x18] sm:$0xff]  ;;  %5729 = vst.msk [vmem:[#allocation2 + $0x20] sm:$0xff] %vm1517_vm11, %v5721_v23  ;;  %v5722_v27 = vadd.f32 %v5714_v37, %v5697_v33  ;;  %vm12827_vm4 = vmmov %vm12825_vm0  ;;  %vm12828_vm5 = vcmp.ge.s32.totalorder %v10377_v49, 0 }
 0x80a   : > { %12823 = vst [vmem:[#allocation48_spill] sm:$0xff] %v11788_v44  ;;  %5841 = vst.msk [vmem:[#allocation2 + $0x10] sm:$0xff] %vm1517_vm11, %v5833_v11  ;;  %v5834_v36 = vadd.f32 %v8640_v58, %v5826_v12  ;;  %v5824_v62 = vld [vmem:[#allocation2 + $0x8] sm:$0xff]  ;;  %vm12829_vm12 = vcmp.ge.s32.totalorder %v10380_v51, 0  ;;  %vm12830_vm1 = vcmp.ge.s32.totalorder %v10434_v6, 0  ;;  %vm12831_vm9 = vcmp.ge.s32.totalorder %v10437_v7, 0 }
 0x80b   : > { %12824 = vst [vmem:[#allocation53_spill] sm:$0xff] %v11790_v16  ;;  %5732 = vst.msk [vmem:[#allocation2 + $0x38] sm:$0xff] %vm1517_vm11, %v5724_v19  ;;  %v5832_v38 = vadd.f32 %v5824_v62, %v5795_v17  ;;  %v8649_v4 = vpop.f32.mrb[128].mxu0 }
 0x80c   : > { %5839 = vst.msk [vmem:[#allocation2] sm:$0xff] %vm1517_vm11, %v5831_v40  ;;  %5730 = vst.msk [vmem:[#allocation2 + $0x28] sm:$0xff] %vm1517_vm11, %v5722_v27  ;;  %v5914_v24 = vpop.f32.mrb[129].mxu0 }
 0x80d   : > { %5842 = vst.msk [vmem:[#allocation2 + $0x18] sm:$0xff] %vm1517_vm11, %v5834_v36  ;;  %5840 = vst.msk [vmem:[#allocation2 + $0x8] sm:$0xff] %vm1517_vm11, %v5832_v38  ;;  %v8650_v47 = vpop.f32.mrb[130].mxu0  ;;  %v8659_v33 = vpop.f32.mrb[136].mxu1 }
 0x80e   : > { %v5917_v58 = vpop.f32.mrb[131].mxu0  ;;  %v6036_v45 = vpop.f32.mrb[137].mxu1 }
 0x80f   : > { %v5829_v42 = vld [vmem:[#allocation2 + $0x30] sm:$0xff]  ;;  %v8660_v23 = vpop.f32.mrb[138].mxu1 }
 0x810   : > { %v5837_v34 = vadd.f32 %v8643_v10, %v5829_v42  ;;  %v5827_v30 = vld [vmem:[#allocation2 + $0x20] sm:$0xff]  ;;  %v6039_v39 = vpop.f32.mrb[139].mxu1 }
 0x811   : > { %v5835_v11 = vadd.f32 %v5827_v30, %v5808_v32  ;;  %v5947_v17 = vld [vmem:[#allocation2 + $0x10] sm:$0xff] }
 0x812   : > { %v5830_v18 = vld [vmem:[#allocation2 + $0x38] sm:$0xff]  ;;  %5845 = vst.msk [vmem:[#allocation2 + $0x30] sm:$0xff] %vm1517_vm11, %v5837_v34  ;;  %v5955_v40 = vadd.f32 %v8649_v4, %v5947_v17 }
 0x813   : > { %v5838_v19 = vadd.f32 %v8644_v56, %v5830_v18  ;;  %v5828_v37 = vld [vmem:[#allocation2 + $0x28] sm:$0xff]  ;;  %v5945_v12 = vld [vmem:[#allocation2] sm:$0xff]  ;;  %5843 = vst.msk [vmem:[#allocation2 + $0x20] sm:$0xff] %vm1517_vm11, %v5835_v11  ;;  %v8653_v38 = vpop.f32.mrb[132].mxu0 }
 0x814   : > { %v5836_v27 = vadd.f32 %v5828_v37, %v5811_v26  ;;  %v5953_v36 = vadd.f32 %v5945_v12, %v5914_v24  ;;  %v5948_v62 = vld [vmem:[#allocation2 + $0x18] sm:$0xff]  ;;  %5963 = vst.msk [vmem:[#allocation2 + $0x10] sm:$0xff] %vm1517_vm11, %v5955_v40  ;;  %v5946_v32 = vld [vmem:[#allocation2 + $0x8] sm:$0xff]  ;;  %v5930_v42 = vpop.f32.mrb[133].mxu0 }
 0x815   : > { %5846 = vst.msk [vmem:[#allocation2 + $0x38] sm:$0xff] %vm1517_vm11, %v5838_v19  ;;  %v5956_v10 = vadd.f32 %v8650_v47, %v5948_v62  ;;  %v5954_v56 = vadd.f32 %v5946_v32, %v5917_v58  ;;  %v8654_v4 = vpop.f32.mrb[134].mxu0  ;;  %v8663_v34 = vpop.f32.mrb[140].mxu1 }
 0x816   : > { %5844 = vst.msk [vmem:[#allocation2 + $0x28] sm:$0xff] %vm1517_vm11, %v5836_v27  ;;  %5961 = vst.msk [vmem:[#allocation2] sm:$0xff] %vm1517_vm11, %v5953_v36  ;;  %v5933_v26 = vpop.f32.mrb[135].mxu0  ;;  %v6052_v24 = vpop.f32.mrb[141].mxu1 }
 0x817   : > { %5964 = vst.msk [vmem:[#allocation2 + $0x18] sm:$0xff] %vm1517_vm11, %v5956_v10  ;;  %5962 = vst.msk [vmem:[#allocation2 + $0x8] sm:$0xff] %vm1517_vm11, %v5954_v56  ;;  %v8664_v30 = vpop.f32.mrb[142].mxu1 }
 0x818   : > { %v6055_v11 = vpop.f32.mrb[143].mxu1 }
 0x819   : > { %v5951_v18 = vld [vmem:[#allocation2 + $0x30] sm:$0xff] }
 0x81a   : > { %v5959_v17 = vadd.f32 %v8653_v38, %v5951_v18  ;;  %v5949_v47 = vld [vmem:[#allocation2 + $0x20] sm:$0xff] }
 0x81b   : > { %v6069_v19 = vld [vmem:[#allocation2 + $0x10] sm:$0xff]  ;;  %v5957_v37 = vadd.f32 %v5949_v47, %v5930_v42  ;;  %v8669_v12 = vpop.f32.mrb[136].mxu0 }
 0x81c   : > { %v5952_v40 = vld [vmem:[#allocation2 + $0x38] sm:$0xff]  ;;  %v6077_v27 = vadd.f32 %v8659_v33, %v6069_v19  ;;  %5967 = vst.msk [vmem:[#allocation2 + $0x30] sm:$0xff] %vm1517_vm11, %v5959_v17  ;;  %v6158_v10 = vpop.f32.mrb[137].mxu0 }
 0x81d   : > { %v6067_v36 = vld [vmem:[#allocation2] sm:$0xff]  ;;  %v5960_v58 = vadd.f32 %v8654_v4, %v5952_v40  ;;  %v5950_v62 = vld [vmem:[#allocation2 + $0x28] sm:$0xff]  ;;  %5965 = vst.msk [vmem:[#allocation2 + $0x20] sm:$0xff] %vm1517_vm11, %v5957_v37  ;;  %v8670_v55 = vpop.f32.mrb[138].mxu0 }
 0x81e   : > { %v6075_v32 = vadd.f32 %v6067_v36, %v6036_v45  ;;  %v6070_v29 = vld [vmem:[#allocation2 + $0x18] sm:$0xff]  ;;  %v5958_v56 = vadd.f32 %v5950_v62, %v5933_v26  ;;  %6085 = vst.msk [vmem:[#allocation2 + $0x10] sm:$0xff] %vm1517_vm11, %v6077_v27  ;;  %v6068_v18 = vld [vmem:[#allocation2 + $0x8] sm:$0xff]  ;;  %v6161_v42 = vpop.f32.mrb[139].mxu0 }
 0x81f   : > { %v6078_v38 = vadd.f32 %v8660_v23, %v6070_v29  ;;  %5968 = vst.msk [vmem:[#allocation2 + $0x38] sm:$0xff] %vm1517_vm11, %v5960_v58  ;;  %v6076_v33 = vadd.f32 %v6068_v18, %v6039_v39 }
 0x820   : > { %6083 = vst.msk [vmem:[#allocation2] sm:$0xff] %vm1517_vm11, %v6075_v32  ;;  %5966 = vst.msk [vmem:[#allocation2 + $0x28] sm:$0xff] %vm1517_vm11, %v5958_v56 }
 0x821   : > { %6086 = vst.msk [vmem:[#allocation2 + $0x18] sm:$0xff] %vm1517_vm11, %v6078_v38  ;;  %6084 = vst.msk [vmem:[#allocation2 + $0x8] sm:$0xff] %vm1517_vm11, %v6076_v33 }
 0x823   : > { %v6073_v45 = vld [vmem:[#allocation2 + $0x30] sm:$0xff]  ;;  %v8673_v4 = vpop.f32.mrb[140].mxu0 }
 0x824   : > { %v6081_v26 = vadd.f32 %v8663_v34, %v6073_v45  ;;  %v6071_v17 = vld [vmem:[#allocation2 + $0x20] sm:$0xff]  ;;  %v6174_v47 = vpop.f32.mrb[141].mxu0 }
 0x825   : > { %v6191_v19 = vld [vmem:[#allocation2 + $0x10] sm:$0xff]  ;;  %v6079_v29 = vadd.f32 %v6071_v17, %v6052_v24  ;;  %v8674_v37 = vpop.f32.mrb[142].mxu0 }
 0x826   : > { %v6074_v23 = vld [vmem:[#allocation2 + $0x38] sm:$0xff]  ;;  %v6199_v40 = vadd.f32 %v8669_v12, %v6191_v19  ;;  %6089 = vst.msk [vmem:[#allocation2 + $0x30] sm:$0xff] %vm1517_vm11, %v6081_v26  ;;  %v6177_v58 = vpop.f32.mrb[143].mxu0 }
 0x827   : > { %v6189_v27 = vld [vmem:[#allocation2] sm:$0xff]  ;;  %v6082_v39 = vadd.f32 %v8664_v30, %v6074_v23  ;;  %v6072_v36 = vld [vmem:[#allocation2 + $0x28] sm:$0xff]  ;;  %6087 = vst.msk [vmem:[#allocation2 + $0x20] sm:$0xff] %vm1517_vm11, %v6079_v29  ;;  %v7992_v30 = vld [vmem:[#allocation24] ss:$0 sm:$0xff] }
 0x828   : > { %v6197_v62 = vadd.f32 %v6189_v27, %v6158_v10  ;;  %v6192_v32 = vld [vmem:[#allocation2 + $0x18] sm:$0xff]  ;;  %v6080_v56 = vadd.f32 %v6072_v36, %v6055_v11  ;;  %6207 = vst.msk [vmem:[#allocation2 + $0x10] sm:$0xff] %vm1517_vm11, %v6199_v40  ;;  %v6190_v38 = vld [vmem:[#allocation2 + $0x8] sm:$0xff] }
 0x829   : > { %v6200_v34 = vadd.f32 %v8670_v55, %v6192_v32  ;;  %6090 = vst.msk [vmem:[#allocation2 + $0x38] sm:$0xff] %vm1517_vm11, %v6082_v39  ;;  %v6198_v24 = vadd.f32 %v6190_v38, %v6161_v42 }
 0x82a   : > { %6205 = vst.msk [vmem:[#allocation2] sm:$0xff] %vm1517_vm11, %v6197_v62  ;;  %6088 = vst.msk [vmem:[#allocation2 + $0x28] sm:$0xff] %vm1517_vm11, %v6080_v56 }
 0x82b   : > { %6208 = vst.msk [vmem:[#allocation2 + $0x18] sm:$0xff] %vm1517_vm11, %v6200_v34  ;;  %6206 = vst.msk [vmem:[#allocation2 + $0x8] sm:$0xff] %vm1517_vm11, %v6198_v24 }
 0x82d   : > { %v6195_v12 = vld [vmem:[#allocation2 + $0x30] sm:$0xff] }
 0x82e   : > { %v6203_v10 = vadd.f32 %v8673_v4, %v6195_v12  ;;  %v6193_v18 = vld [vmem:[#allocation2 + $0x20] sm:$0xff] }
 0x82f   : > { %v6215_v11 = vld [vmem:[#allocation2 + $0x10] sm:$0xff]  ;;  %v6201_v33 = vadd.f32 %v6193_v18, %v6174_v47 }
 0x830   : > { %v6196_v45 = vld [vmem:[#allocation2 + $0x38] sm:$0xff]  ;;  %v6230_v55 = vadd.f32 %v7992_v30, %v6215_v11  ;;  %6211 = vst.msk [vmem:[#allocation2 + $0x30] sm:$0xff] %vm1517_vm11, %v6203_v10 }
 0x831   : > { %v6213_v26 = vld [vmem:[#allocation2] sm:$0xff]  ;;  %v6204_v17 = vadd.f32 %v8674_v37, %v6196_v45  ;;  %v6194_v19 = vld [vmem:[#allocation2 + $0x28] sm:$0xff]  ;;  %6209 = vst.msk [vmem:[#allocation2 + $0x20] sm:$0xff] %vm1517_vm11, %v6201_v33 }
 0x832   : > { %v6216_v42 = vld [vmem:[#allocation2 + $0x18] sm:$0xff]  ;;  %v6202_v29 = vadd.f32 %v6194_v19, %v6177_v58  ;;  %v6228_v23 = vadd.f32 %v7992_v30, %v6213_v26  ;;  %v11828_v40 = vmax.f32 %v6230_v55, 0.0  ;;  %v6214_v39 = vld [vmem:[#allocation2 + $0x8] sm:$0xff] }
 0x833   : > { %v6231_v27 = vadd.f32 %v7992_v30, %v6216_v42  ;;  %6212 = vst.msk [vmem:[#allocation2 + $0x38] sm:$0xff] %vm1517_vm11, %v6204_v17  ;;  %v6229_v4 = vadd.f32 %v7992_v30, %v6214_v39 }
 0x834   : > { %6210 = vst.msk [vmem:[#allocation2 + $0x28] sm:$0xff] %vm1517_vm11, %v6202_v29  ;;  %v11832_v47 = vmax.f32 %v6228_v23, 0.0  ;;  %v6246_v62 = vrot.slane %v11828_v40, 5  ;;  %v6367_v58 = vrot.slane %v11828_v40, 6 }
 0x835   : > { %v11834_v36 = vmax.f32 %v6231_v27, 0.0  ;;  %v11836_v37 = vmax.f32 %v6229_v4, 0.0 }
 0x836   : > { %v6244_v38 = vrot.slane %v11832_v47, 5  ;;  %v6365_v18 = vrot.slane %v11832_v47, 6  ;;  %v6503_v39 = vrot.slane %v11832_v47, 7 }
 0x837   : > { %v6247_v32 = vrot.slane %v11834_v36, 5  ;;  %v6368_v56 = vrot.slane %v11834_v36, 6  ;;  %v6219_v34 = vld [vmem:[#allocation2 + $0x30] sm:$0xff]  ;;  %v6245_v24 = vrot.slane %v11836_v37, 5  ;;  %v6366_v12 = vrot.slane %v11836_v37, 6 }
 0x838   : > { %v6217_v10 = vld [vmem:[#allocation2 + $0x20] sm:$0xff]  ;;  %v6234_v19 = vadd.f32 %v7992_v30, %v6219_v34  ;;  %v6641_v50 = vpack.c.bf16 %v11836_v37, %v11832_v47 }
 0x839   : > { %v6256_v11 = vsel %vm12825_vm0, %v6246_v62, %v6247_v32  ;;  %v6377_v33 = vsel %vm1611_vm3, %v6367_v58, %v6368_v56  ;;  %v6257_v55 = vsel %vm12826_vm15, %v6245_v24, %v6246_v62  ;;  %v6258_v26 = vsel %vm12827_vm4, %v6244_v38, %v6245_v24 }
 0x83a   : > { %v6220_v45 = vld [vmem:[#allocation2 + $0x38] sm:$0xff]  ;;  %v6378_v17 = vsel %vm1611_vm3, %v6366_v12, %v6367_v58  ;;  %v6379_v23 = vsel %vm1611_vm3, %v6365_v18, %v6366_v12  ;;  %v6262_v27 = vsel %vm12828_vm5, %v6257_v55, 0.0  ;;  %v6263_v4 = vsel %vm12829_vm12, %v6256_v11, 0.0  ;;  %vm12838_vm5 = vmmov %vm12827_vm4 }
 0x83b   : > { %v6218_v42 = vld [vmem:[#allocation2 + $0x28] sm:$0xff]  ;;  %v6235_v29 = vadd.f32 %v7992_v30, %v6220_v45  ;;  %v6383_v62 = vsel %vm12830_vm1, %v6378_v17, 0.0  ;;  %v6384_v58 = vsel %vm12831_vm9, %v6377_v33, 0.0  ;;  %v6232_v34 = vadd.f32 %v7992_v30, %v6217_v10  ;;  %vm12842_vm9 = vmmov %vm12827_vm4 }
 0x83c   : > { %v12832_v45 = vld [vmem:[#allocation61_spill] sm:$0xff]  ;;  %v6233_v44 = vadd.f32 %v7992_v30, %v6218_v42  ;;  %v6382_v16 = vsel %vm930_vm7, %v6379_v23, 0.0  ;;  %v6269_v51 = vpack.c.bf16 %v6263_v4, %v6262_v27  ;;  %v11876_v6 = vmax.f32 %v6234_v19, 0.0  ;;  %vm12835_vm7 = vmmov %vm12827_vm4 }
 0x83d   : > { %v11867_v24 = vmax.f32 %v6235_v29, 0.0  ;;  %vm12833_vm0 = vcmp.ge.s32.totalorder %v12832_v45, 0  ;;  %v11874_v11 = vmax.f32 %v6232_v34, 0.0  ;;  %v6390_v33 = vpack.c.bf16 %v6384_v58, %v6383_v62 }
 0x83e   : > { %v6261_v12 = vsel %vm12833_vm0, %v6258_v26, 0.0  ;;  %v11880_v17 = vmax.f32 %v6233_v44, 0.0  ;;  %v6250_v42 = vrot.slane %v11876_v6, 5  ;;  %v12836_v44 = vld [vmem:[#allocation64_spill] sm:$0xff]  ;;  %v6371_v49 = vrot.slane %v11876_v6, 6 }
 0x83f   : > { %v6251_v7 = vrot.slane %v11867_v24, 5  ;;  %v6372_v10 = vrot.slane %v11867_v24, 6  ;;  %v6248_v26 = vrot.slane %v11874_v11, 5  ;;  %v6369_v30 = vrot.slane %v11874_v11, 6 }
 0x840   : > { %v6510_v29 = vrot.slane %v11867_v24, 7  ;;  %v6249_v27 = vrot.slane %v11880_v17, 5  ;;  %v6370_v4 = vrot.slane %v11880_v17, 6  ;;  %vm12837_vm15 = vcmp.ge.s32.totalorder %v12836_v44, 0 }
 0x841   : > { %v6259_v23 = vsel %vm12835_vm7, %v6251_v7, %v6244_v38  ;;  %v6380_v19 = vsel %vm1611_vm3, %v6372_v10, %v6365_v18  ;;  %v6255_v34 = vsel %vm12827_vm4, %v6247_v32, %v6248_v26  ;;  %v6376_v45 = vsel %vm1611_vm3, %v6368_v56, %v6369_v30 }
 0x842   : > { %v6260_v62 = vsel %vm12837_vm15, %v6259_v23, 0.0  ;;  %v6381_v58 = vsel %vm929_vm6, %v6380_v19, 0.0  ;;  %v6254_v18 = vsel %vm12838_vm5, %v6248_v26, %v6249_v27  ;;  %vm12839_vm12 = vcmp.ge.s32.totalorder %v10386_v53, 0  ;;  %vm12841_vm6 = vmmov %vm12827_vm4  ;;  %v11921_v26 = vld [vmem:[#allocation25 + $0x28] sm:$0xff]  }
 0x843   : > { %v6268_v38 = vpack.c.bf16 %v6261_v12, %v6260_v62  ;;  %v6389_v55 = vpack.c.bf16 %v6382_v16, %v6381_v58  ;;  %v6264_v44 = vsel %vm12839_vm12, %v6255_v34, 0.0  ;;  %vm12840_vm1 = vcmp.ge.s32.totalorder %v10389_v54, 0  ;;  %v11919_v12 = vld [vmem:[#allocation25 + $0x20] sm:$0xff]  }
 0x844   : > { %v6265_v61 = vsel %vm12840_vm1, %v6254_v18, 0.0  ;;  %v6375_v23 = vsel %vm1611_vm3, %v6369_v30, %v6370_v4  ;;  %v6385_v32 = vsel %vm933_vm10, %v6376_v45, 0.0  ;;  %v6252_v53 = vsel %vm12841_vm6, %v6250_v42, %v6251_v7 }
 0x845   : > { %8677 = vmatprep.mubr.msk.bf16.mxu1 %vm1517_vm11, %v6268_v38  ;;  %8687 = vmatprep.mubr.msk.bf16.mxu0 %vm1517_vm11, %v6389_v55  ;;  %v6270_v16 = vpack.c.bf16 %v6265_v61, %v6264_v44  ;;  %v6386_v56 = vsel %vm934_vm13, %v6375_v23, 0.0  ;;  %v6253_v54 = vsel %vm12842_vm9, %v6249_v27, %v6250_v42  ;;  %v6373_v30 = vsel %vm1611_vm3, %v6371_v49, %v6372_v10 }
 0x846   : > { %8678 = vmatmul.mubr.msk.bf16.vlgmr.msra.gmra.mrb[144].mxu1 %vm1517_vm11, %v6269_v51  ;;  %8688 = vmatmul.mubr.msk.bf16.vlgmr.msra.gmra.mrb[144].mxu0 %vm1517_vm11, %v6390_v33  ;;  %v6391_v20 = vpack.c.bf16 %v6386_v56, %v6385_v32  ;;  %v6374_v21 = vsel %vm1611_vm3, %v6370_v4, %v6371_v49  ;;  %v6518_v7 = vsel %vm1766_vm2, %v6510_v29, %v6503_v39  ;;  %v12843_v51 = vrot.slane %v11836_v37, 7 }
 0x847   : > { %8681 = vmatprep.mubr.msk.bf16.mxu1 %vm1517_vm11, %v6270_v16  ;;  %8696 = vmatpush3.bf16.msra.mxu1 %v11636_v9  ;;  %v6506_v49 = vrot.slane %v11834_v36, 7  ;;  %vm12844_vm13 = vcmp.ge.s32.totalorder %v10406_v60, 0  ;;  %vm12845_vm3 = vcmp.ge.s32.totalorder %v10416_v63, 0  ;;  %v6387_v42 = vsel %vm935_vm8, %v6374_v21, 0.0  ;;  %v11996_v21 = vld [vmem:[#allocation28] sm:$0xff]  }
 0x848   : > { %8691 = vmatprep.mubr.msk.bf16.mxu0 %vm1517_vm11, %v6391_v20  ;;  %8706 = vmatpush3.bf16.msra.mxu0 %v11638_v43  ;;  %v6517_v10 = vsel %vm1766_vm2, %v6503_v39, %v12843_v51  ;;  %v6266_v33 = vsel %vm12844_vm13, %v6253_v54, 0.0  ;;  %v6267_v9 = vsel %vm12845_vm3, %v6252_v53, 0.0  ;;  %v6388_v19 = vsel %vm936_vm14, %v6373_v30, 0.0 }
 0x849   : > { %8715 = vmatprep.subr.bf16.mxu1 %v11919_v12  ;;  %8725 = vmatprep.subr.bf16.mxu0 %v11921_v26  ;;  %vm12846_vm10 = vcmp.ge.s32.totalorder %v10374_v48, 0  ;;  %v6505_v39 = vrot.slane %v11828_v40, 7  ;;  %v6508_v60 = vrot.slane %v11880_v17, 7  ;;  %v6271_v27 = vpack.c.bf16 %v6267_v9, %v6266_v33 }
 0x84a   : > { %v6519_v43 = vsel %vm12846_vm10, %v6518_v7, 0.0  ;;  %v6392_v63 = vpack.c.bf16 %v6388_v19, %v6387_v42  ;;  %vm12847_vm0 = vcmp.ge.s32.totalorder %v12705_v13, 0  ;;  %v12848_v4 = vmov %v12843_v51  ;;  %v11998_v7 = vld [vmem:[#allocation25 + $0x30] sm:$0xff]  }
 0x84b   : > { %v6520_v31 = vsel %vm12847_vm0, %v6517_v10, 0.0  ;;  %v6516_v62 = vsel %vm1766_vm2, %v12848_v4, %v6505_v39  ;;  %v6515_v48 = vsel %vm1766_vm2, %v6505_v39, %v6506_v49  ;;  %v6507_v34 = vrot.slane %v11874_v11, 7 }
 0x84c   : > { %v6527_v58 = vpack.c.bf16 %v6520_v31, %v6519_v43  ;;  %vm12849_vm8 = vcmp.ge.s32.totalorder %v10257_v14, 0  ;;  %vm12850_vm14 = vcmp.ge.s32.totalorder %v10383_v52, 0  ;;  %vm12851_vm7 = vcmp.ge.s32.totalorder %v10403_v59, 0 }
 0x84d   : > { %v6513_v13 = vsel %vm1766_vm2, %v6507_v34, %v6508_v60  ;;  %v6521_v45 = vsel %vm12849_vm8, %v6516_v62, 0.0  ;;  %v6522_v38 = vsel %vm12850_vm14, %v6515_v48, 0.0  ;;  %v6514_v55 = vsel %vm1766_vm2, %v6506_v49, %v6507_v34 }
 0x84e   : > { %8682 = vmatmul.mubr.msk.bf16.gmra.mrb[148].mxu1 %vm1517_vm11, %v6271_v27  ;;  %8692 = vmatmul.mubr.msk.bf16.gmra.mrb[148].mxu0 %vm1517_vm11, %v6392_v63  ;;  %v6524_v18 = vsel %vm12851_vm7, %v6513_v13, 0.0  ;;  %v6756_v44 = vrot.slane %v11836_v37, 1  ;;  %v6528_v61 = vpack.c.bf16 %v6522_v38, %v6521_v45  ;;  %v6642_v23 = vpack.c.bf16 %v11834_v36, %v11828_v40  ;;  %v12871_v38 = vld [vmem:[#allocation68_spill] sm:$0xff] }
 0x84f   : > { %8697 = vmatprep.mubr.msk.bf16.mxu1 %vm1517_vm11, %v6527_v58  ;;  %8707 = vmatprep.mubr.msk.bf16.mxu0 %vm1517_vm11, %v6641_v50  ;;  %v6509_v32 = vrot.slane %v11876_v6, 7  ;;  %v6894_v14 = vrot.slane %v11836_v37, 2  ;;  %vm12852_vm15 = vcmp.ge.s32.totalorder %v10398_v57, 0  ;;  %v6643_v16 = vpack.c.bf16 %v11880_v17, %v11874_v11 }
 0x850   : > { %v6523_v52 = vsel %vm12852_vm15, %v6514_v55, 0.0  ;;  %v6755_v56 = vrot.slane %v11832_v47, 1  ;;  %v6757_v59 = vrot.slane %v11828_v40, 1  ;;  %v6893_v20 = vrot.slane %v11832_v47, 2 }
 0x851   : > { %v6529_v53 = vpack.c.bf16 %v6524_v18, %v6523_v52  ;;  %v6512_v54 = vsel %vm1766_vm2, %v6508_v60, %v6509_v32  ;;  %v6895_v30 = vrot.slane %v11828_v40, 2  ;;  %v6511_v57 = vsel %vm1766_vm2, %v6509_v32, %v6510_v29  ;;  %v12873_v18 = vld [vmem:[#allocation75_spill] sm:$0xff] }
 0x852   : > { %vm12853_vm4 = vcmp.lt.s32.totalorder %v10244_v1, 7  ;;  %vm12855_vm12 = vcmp.lt.s32.totalorder %v10244_v1, 6  ;;  %vm12857_vm2 = vcmp.ge.s32.totalorder %v10419_v0, 0  ;;  %vm12858_vm6 = vcmp.ge.s32.totalorder %v10422_v2, 0 }
 0x853   : > { %v6768_v51 = vsel %vm12853_vm4, %v6756_v44, %v6757_v59  ;;  %vm12854_vm5 = vmmov %vm12853_vm4  ;;  %v6906_v49 = vsel %vm12855_vm12, %v6894_v14, %v6895_v30  ;;  %v6525_v33 = vsel %vm12857_vm2, %v6512_v54, 0.0  ;;  %v6526_v9 = vsel %vm12858_vm6, %v6511_v57, 0.0  ;;  %v12881_v54 = vld [vmem:[#allocation67_spill] sm:$0xff]  ;;  %v12883_v57 = vld [vmem:[#allocation65_spill] sm:$0xff] }
 0x854   : > { %v6769_v10 = vsel %vm12854_vm5, %v6755_v56, %v6756_v44  ;;  %vm12856_vm1 = vmmov %vm12855_vm12  ;;  %vm12859_vm9 = vcmp.lt.s32.totalorder %v10425_v3, 8  ;;  %vm12860_vm13 = vcmp.lt.s32.totalorder %v10431_v5, 8  ;;  %v6759_v43 = vrot.slane %v11874_v11, 1 }
 0x855   : > { %v6907_v29 = vsel %vm12856_vm1, %v6893_v20, %v6894_v14  ;;  %v6771_v42 = vsel %vm12859_vm9, %v6769_v10, 0.0  ;;  %v6772_v19 = vsel %vm12860_vm13, %v6768_v51, 0.0  ;;  %vm12861_vm3 = vcmp.lt.s32.totalorder %v10789_v35, 8  ;;  %vm12863_vm0 = vmmov %vm12853_vm4  ;;  %v12877_v14 = vld [vmem:[#allocation76_spill] sm:$0xff] }
 0x856   : > { %8698 = vmatmul.mubr.msk.bf16.vlgmr.msra.gmra.mrb[152].mxu1 %vm1517_vm11, %v6528_v61  ;;  %8708 = vmatmul.mubr.msk.bf16.vlgmr.msra.gmra.mrb[152].mxu0 %vm1517_vm11, %v6642_v23  ;;  %vm12862_vm10 = vcmp.lt.s32.totalorder %v10778_v41, 8  ;;  %v6897_v2 = vrot.slane %v11874_v11, 2  ;;  %v6760_v3 = vrot.slane %v11880_v17, 1  ;;  %v6898_v5 = vrot.slane %v11880_v17, 2  ;;  %vm12864_vm8 = vmmov %vm12856_vm1 }
 0x857   : > { %8701 = vmatprep.mubr.msk.bf16.mxu1 %vm1517_vm11, %v6529_v53  ;;  %8711 = vmatprep.mubr.msk.bf16.mxu0 %vm1517_vm11, %v6643_v16  ;;  %v6910_v0 = vsel %vm12862_vm10, %v6906_v49, 0.0  ;;  %v6530_v39 = vpack.c.bf16 %v6526_v9, %v6525_v33  ;;  %v6644_v60 = vpack.c.bf16 %v11867_v24, %v11876_v6  ;;  %v6896_v27 = vrot.slane %v11834_v36, 2  ;;  %vm12865_vm14 = vmmov %vm12863_vm0  ;;  %v12879_v16 = vld [vmem:[#allocation77_spill] sm:$0xff] }
 0x858   : > { %8716 = vmatpush3.bf16.msra.mxu1 %v11919_v12  ;;  %8726 = vmatpush3.bf16.msra.mxu0 %v11921_v26  ;;  %v6909_v12 = vsel %vm12861_vm3, %v6907_v29, 0.0  ;;  %v6758_v26 = vrot.slane %v11834_v36, 1  ;;  %v6761_v35 = vrot.slane %v11876_v6, 1  ;;  %v6779_v63 = vpack.c.bf16 %v6772_v19, %v6771_v42  ;;  %vm12866_vm7 = vmmov %vm12863_vm0  ;;  %v9045_v19 = vld [vmem:[#allocation28 + $0x8] sm:$0xff]  }
 0x859   : > { %8745 = vmatprep.subr.bf16.mxu0 %v11996_v21  ;;  %8735 = vmatprep.subr.bf16.mxu1 %v11998_v7  ;;  %v6917_v31 = vpack.c.bf16 %v6910_v0, %v6909_v12  ;;  %v6899_v50 = vrot.slane %v11876_v6, 2  ;;  %v6904_v4 = vsel %vm12864_vm8, %v6896_v27, %v6897_v2  ;;  %v6765_v58 = vsel %vm12866_vm7, %v6759_v43, %v6760_v3  ;;  %vm12867_vm15 = vmmov %vm12856_vm1 }
 0x85a   : > { %v6766_v41 = vsel %vm12863_vm0, %v6758_v26, %v6759_v43  ;;  %v6764_v62 = vsel %vm12865_vm14, %v6760_v3, %v6761_v35  ;;  %vm12868_vm4 = vmmov %vm12856_vm1  ;;  %vm12874_vm2 = vcmp.lt.s32.totalorder %v12873_v18, 8  ;;  %vm12875_vm6 = vcmp.lt.s32.totalorder %v10459_v22, 8  ;;  %v12895_v3 = vld [vmem:[#allocation79_spill] sm:$0xff] }
 0x85b   : > { %v6902_v48 = vsel %vm12867_vm15, %v6898_v5, %v6899_v50  ;;  %v6903_v34 = vsel %vm12868_vm4, %v6897_v2, %v6898_v5  ;;  %vm12869_vm5 = vmmov %vm12863_vm0  ;;  %v6912_v44 = vsel %vm12874_vm2, %v6904_v4, 0.0  ;;  %v6775_v61 = vsel %vm12875_vm6, %v6765_v58, 0.0  ;;  %v12897_v5 = vld [vmem:[#allocation71_spill] sm:$0xff] }
 0x85c   : > { %v6767_v13 = vsel %vm12869_vm5, %v6757_v59, %v6758_v26  ;;  %vm12870_vm12 = vmmov %vm12856_vm1  ;;  %vm12872_vm1 = vcmp.lt.s32.totalorder %v12871_v38, 8  ;;  %vm12876_vm9 = vcmp.lt.s32.totalorder %v12734_v46, 8  ;;  %v6762_v32 = vrot.slane %v11867_v24, 1 }
 0x85d   : > { %v6905_v45 = vsel %vm12870_vm12, %v6895_v30, %v6896_v27  ;;  %v6774_v55 = vsel %vm12872_vm1, %v6766_v41, 0.0  ;;  %v6776_v23 = vsel %vm12876_vm9, %v6764_v62, 0.0  ;;  %vm12878_vm13 = vcmp.lt.s32.totalorder %v12877_v14, 8  ;;  %vm12885_vm8 = vmmov %vm12869_vm5  ;;  %v12909_v62 = vld [vmem:[#allocation57_spill] sm:$0xff] }
 0x85e   : > { %8702 = vmatmul.mubr.msk.bf16.gmra.mrb[156].mxu1 %vm1517_vm11, %v6530_v39  ;;  %8712 = vmatmul.mubr.msk.bf16.gmra.mrb[156].mxu0 %vm1517_vm11, %v6644_v60  ;;  %v6913_v52 = vsel %vm12878_vm13, %v6903_v34, 0.0  ;;  %vm12880_vm3 = vcmp.lt.s32.totalorder %v12879_v16, 8  ;;  %v6900_v53 = vrot.slane %v11867_v24, 2  ;;  %vm12882_vm10 = vcmp.lt.s32.totalorder %v12881_v54, 8  ;;  %vm12886_vm14 = vmmov %vm12869_vm5  ;;  %v12899_v60 = vld [vmem:[#allocation73_spill] sm:$0xff]  ;;  %v12927_v54 = vld [vmem:[#allocation60_spill] sm:$0xff] }
 0x85f   : > { %8717 = vmatprep.mubr.msk.bf16.mxu1 %vm1517_vm11, %v6779_v63  ;;  %8727 = vmatprep.mubr.msk.bf16.mxu0 %vm1517_vm11, %v6917_v31  ;;  %v6914_v59 = vsel %vm12880_vm3, %v6902_v48, 0.0  ;;  %v6773_v30 = vsel %vm12882_vm10, %v6767_v13, 0.0  ;;  %vm12884_vm0 = vcmp.lt.s32.totalorder %v12883_v57, 8  ;;  %v7032_v51 = vrot.slane %v11836_v37, 3  ;;  %vm12887_vm7 = vmmov %vm12868_vm4  ;;  %v12911_v48 = vld [vmem:[#allocation58_spill] sm:$0xff]  ;;  %v12913_v13 = vld [vmem:[#allocation59_spill] sm:$0xff] }
 0x860   : > { %v6911_v22 = vsel %vm12884_vm0, %v6905_v45, 0.0  ;;  %v6780_v46 = vpack.c.bf16 %v6774_v55, %v6773_v30  ;;  %v6781_v49 = vpack.c.bf16 %v6776_v23, %v6775_v61  ;;  %v6919_v29 = vpack.c.bf16 %v6914_v59, %v6913_v52  ;;  %vm12888_vm15 = vmmov %vm12868_vm4  ;;  %v12915_v55 = vld [vmem:[#allocation74_spill] sm:$0xff]  ;;  %v12925_v59 = vld [vmem:[#allocation63_spill] sm:$0xff] }
 0x861   : > { %v6918_v10 = vpack.c.bf16 %v6912_v44, %v6911_v22  ;;  %v6763_v33 = vsel %vm12885_vm8, %v6761_v35, %v6762_v32  ;;  %v7031_v9 = vrot.slane %v11832_v47, 3  ;;  %v7033_v42 = vrot.slane %v11828_v40, 3  ;;  %v12917_v23 = vld [vmem:[#allocation70_spill] sm:$0xff]  ;;  %v12929_v22 = vld [vmem:[#allocation53_spill] sm:$0xff] }
 0x862   : > { %v6770_v37 = vsel %vm12886_vm14, %v6762_v32, %v6755_v56  ;;  %v6901_v43 = vsel %vm12887_vm7, %v6899_v50, %v6900_v53  ;;  %v6908_v12 = vsel %vm12888_vm15, %v6900_v53, %v6893_v20  ;;  %vm12889_vm4 = vcmp.lt.s32.totalorder %v10244_v1, 5  ;;  %v12893_v20 = vld [vmem:[#allocation78_spill] sm:$0xff]  ;;  %v12903_v50 = vld [vmem:[#allocation69_spill] sm:$0xff]  ;;  %v12918_v32 = vld [vmem:[#allocation72_spill] sm:$0xff] }
 0x863   : > { %v7044_v40 = vsel %vm12889_vm4, %v7032_v51, %v7033_v42  ;;  %vm12890_vm5 = vmmov %vm12889_vm4  ;;  %vm12891_vm12 = vcmp.lt.s32.totalorder %v12752_v15, 8  ;;  %vm12892_vm1 = vcmp.lt.s32.totalorder %v12754_v28, 8  ;;  %vm12894_vm2 = vcmp.lt.s32.totalorder %v12893_v20, 8 }
 0x864   : > { %v7045_v0 = vsel %vm12890_vm5, %v7031_v9, %v7032_v51  ;;  %v6777_v47 = vsel %vm12891_vm12, %v6763_v33, 0.0  ;;  %v6778_v56 = vsel %vm12892_vm1, %v6770_v37, 0.0  ;;  %v6915_v2 = vsel %vm12894_vm2, %v6901_v43, 0.0  ;;  %vm12901_vm3 = vmmov %vm12889_vm4  ;;  %v12930_v51 = vld [vmem:[#allocation48_spill] sm:$0xff] }
 0x865   : > { %vm12896_vm6 = vcmp.lt.s32.totalorder %v12895_v3, 8  ;;  %vm12898_vm9 = vcmp.lt.s32.totalorder %v12897_v5, 8  ;;  %vm12900_vm13 = vcmp.lt.s32.totalorder %v12899_v60, 8  ;;  %v7036_v15 = vrot.slane %v11880_v17, 3  ;;  %vm12906_vm0 = vmmov %vm12901_vm3 }
 0x866   : > { %8718 = vmatmul.mubr.msk.bf16.vlgmr.msra.gmra.mrb[160].mxu1 %vm1517_vm11, %v6780_v46  ;;  %8728 = vmatmul.mubr.msk.bf16.vlgmr.msra.gmra.mrb[160].mxu0 %vm1517_vm11, %v6918_v10  ;;  %v6916_v26 = vsel %vm12896_vm6, %v6908_v12, 0.0  ;;  %v7047_v39 = vsel %vm12898_vm9, %v7045_v0, 0.0  ;;  %v6782_v27 = vpack.c.bf16 %v6778_v56, %v6777_v47  ;;  %v7034_v35 = vrot.slane %v11834_v36, 3  ;;  %vm12907_vm8 = vmmov %vm12906_vm0 }
 0x867   : > { %8721 = vmatprep.mubr.msk.bf16.mxu1 %vm1517_vm11, %v6781_v49  ;;  %8731 = vmatprep.mubr.msk.bf16.mxu0 %vm1517_vm11, %v6919_v29  ;;  %v6920_v28 = vpack.c.bf16 %v6916_v26, %v6915_v2  ;;  %v7037_v31 = vrot.slane %v11876_v6, 3  ;;  %vm12905_vm10 = vcmask 261120   ;;  %vm12908_vm14 = vmmov %vm12906_vm0  ;;  %vm12910_vm7 = vcmp.lt.s32.totalorder %v12909_v62, 8 }
 0x868   : > { %8746 = vmatpush3.bf16.msra.mxu0 %v11996_v21  ;;  %8736 = vmatpush3.bf16.msra.mxu1 %v11998_v7  ;;  %v7048_v21 = vsel %vm12900_vm13, %v7044_v40, 0.0  ;;  %v7035_v7 = vrot.slane %v11874_v11, 3  ;;  %v12902_v11 = vld [vmem:[#allocation62_spill] sm:$0xff]  ;;  %v7043_v4 = vsel %vm12908_vm14, %v7033_v42, %v7034_v35  ;;  %vm12912_vm15 = vcmp.lt.s32.totalorder %v12911_v48, 8  ;;  %vm12920_vm12 = vmmov %vm12905_vm10 }
 0x869   : > { %8747 = vmatprep.subr.bf16.mxu0 %v9045_v19  ;;  %v7055_v63 = vpack.c.bf16 %v7048_v21, %v7047_v39  ;;  %v12904_v17 = vpack.c.bf16 %v12902_v11, %v12903_v50  ;;  %v7040_v36 = vsel %vm12906_vm0, %v7036_v15, %v7037_v31  ;;  %vm12914_vm4 = vcmp.lt.s32.totalorder %v12913_v13, 8  ;;  %vm12921_vm1 = vmmov %vm12906_vm0 }
 0x86a   : > { %v7042_v41 = vsel %vm12901_vm3, %v7034_v35, %v7035_v7  ;;  %v7041_v6 = vsel %vm12907_vm8, %v7035_v7, %v7036_v15  ;;  %v7052_v45 = vsel %vm12914_vm4, %v7040_v36, 0.0  ;;  %v7038_v38 = vrot.slane %v11867_v24, 3  ;;  %vm12922_vm2 = vmmov %vm12906_vm0 }
 0x86b   : > { %v7050_v58 = vsel %vm12910_vm7, %v7042_v41, 0.0  ;;  %v7051_v34 = vsel %vm12912_vm15, %v7041_v6, 0.0  ;;  %vm12916_vm5 = vcmp.lt.s32.totalorder %v12915_v55, 8  ;;  %v12919_v14 = vpack.c.bf16 %v12917_v23, %v12918_v32  ;;  %vm12924_vm6 = vmmov %vm12905_vm10 }
 0x86c   : > { %8748 = vmatpush3.bf16.msra.mxu0 %v9045_v19  ;;  %v7049_v18 = vsel %vm12916_vm5, %v7043_v4, 0.0  ;;  %v7057_v61 = vpack.c.bf16 %v7052_v45, %v7051_v34  ;;  %v7039_v52 = vsel %vm12921_vm1, %v7037_v31, %v7038_v38  ;;  %v7046_v16 = vsel %vm12922_vm2, %v7038_v38, %v7031_v9  ;;  %vm12932_vm3 = vmmov %vm12924_vm6 }
 0x86d   : > { %v7056_v44 = vpack.c.bf16 %v7050_v58, %v7049_v18  ;;  %v12923_v24 = vpack.c.bf16 %v11765_v25, %v11763_v8  ;;  %vm12926_vm9 = vcmp.lt.s32.totalorder %v12925_v59, 8  ;;  %vm12928_vm13 = vcmp.lt.s32.totalorder %v12927_v54, 8  ;;  %vm12934_vm0 = vmmov %vm12932_vm3 }
 0x86e   : > { %8722 = vmatmul.mubr.msk.bf16.gmra.mrb[164].mxu1 %vm1517_vm11, %v6782_v27  ;;  %8732 = vmatmul.mubr.msk.bf16.gmra.mrb[164].mxu0 %vm1517_vm11, %v6920_v28  ;;  %v7053_v53 = vsel %vm12926_vm9, %v7039_v52, 0.0  ;;  %v7054_v30 = vsel %vm12928_vm13, %v7046_v16, 0.0  ;;  %v12931_v1 = vpack.c.bf16 %v12929_v22, %v12930_v51  ;;  %vm12935_vm8 = vmmov %vm12934_vm0 }
 0x86f   : > { %8737 = vmatprep.mubr.msk.bf16.mxu1 %vm1517_vm11, %v7055_v63  ;;  %8749 = vmatprep.mubr.msk.bf16.mxu0 %vm12905_vm10, %v12904_v17  ;;  %v7058_v57 = vpack.c.bf16 %v7054_v30, %v7053_v53  ;;  %vm12933_vm10 = vmmov %vm12932_vm3 }
 0x870   : > { %vm12937_vm14 = vmmov %vm12934_vm0 }
 0x871   : > { %vm12938_vm7 = vmmov %vm12934_vm0 }
 0x872   : > { %vm12939_vm15 = vmmov %vm12934_vm0 }
 0x873   : > { %vm12940_vm4 = vmmov %vm12934_vm0 }
 0x874   : > { %vm12941_vm5 = vmmov %vm12934_vm0 }
 0x875   : > { %vm12943_vm1 = vmmov %vm12934_vm0 }
 0x876   : > { %8738 = vmatmul.mubr.msk.bf16.vlgmr.msra.gmra.mrb[168].mxu1 %vm1517_vm11, %v7056_v44  ;;  %8750 = vmatmul.mubr.msk.bf16.vlgmr.msra.gmra.mrb[168].mxu0 %vm12920_vm12, %v12919_v14  ;;  %vm12942_vm12 = vmmov %vm12934_vm0 }
 0x877   : > { %8741 = vmatprep.mubr.msk.bf16.mxu1 %vm1517_vm11, %v7057_v61  ;;  %8753 = vmatprep.mubr.msk.bf16.mxu0 %vm12924_vm6, %v12923_v24  ;;  %vm12944_vm2 = vmmov %vm12934_vm0 }
 0x878   : > { %vm12945_vm6 = vmmov %vm12934_vm0 }
 0x879   : > { %vm12946_vm9 = vmmov %vm12934_vm0 }
 0x87a   : > { %vm12947_vm13 = vmmov %vm12934_vm0 }
 0x87e   : > { %8742 = vmatmul.mubr.msk.bf16.gmra.mrb[172].mxu1 %vm1517_vm11, %v7058_v57  ;;  %8754 = vmatmul.mubr.msk.bf16.gmra.mrb[172].mxu0 %vm12932_vm3, %v12931_v1  ;;  %vm12936_vm11 = vmmov %vm12934_vm0 }
 0x87f   : > { %vm12948_vm3 = vmmov %vm12934_vm0 }
 0x919   : > { %v8679_v46 = vpop.f32.mrb[144].mxu1  ;;  %v8689_v10 = vpop.f32.mrb[144].mxu0 }
 0x91a   : > { %6359 = vst.msk [vmem:[#allocation3 + $0x10] sm:$0xff] %vm12933_vm10, %v8679_v46  ;;  %v6326_v8 = vpop.f32.mrb[145].mxu1  ;;  %v6448_v25 = vpop.f32.mrb[145].mxu0  ;;  %vm12949_vm10 = vmmov %vm12934_vm0 }
 0x91b   : > { %6357 = vst.msk [vmem:[#allocation3] sm:$0xff] %vm12934_vm0, %v6326_v8  ;;  %v8680_v49 = vpop.f32.mrb[146].mxu1  ;;  %v8690_v29 = vpop.f32.mrb[146].mxu0 }
 0x91c   : > { %6360 = vst.msk [vmem:[#allocation3 + $0x18] sm:$0xff] %vm12935_vm8, %v8680_v49  ;;  %v6329_v33 = vpop.f32.mrb[147].mxu1  ;;  %v6451_v9 = vpop.f32.mrb[147].mxu0  ;;  %vm12950_vm8 = vmmov %vm12934_vm0 }
 0x91d   : > { %6358 = vst.msk [vmem:[#allocation3 + $0x8] sm:$0xff] %vm12936_vm11, %v6329_v33  ;;  %vm12951_vm11 = vmmov %vm12934_vm0 }
 0x921   : > { %v6481_v42 = vld [vmem:[#allocation3 + $0x10] sm:$0xff]  ;;  %v8683_v19 = vpop.f32.mrb[148].mxu1  ;;  %v8693_v37 = vpop.f32.mrb[148].mxu0 }
 0x922   : > { %v6489_v43 = vadd.f32 %v8689_v10, %v6481_v42  ;;  %v6479_v12 = vld [vmem:[#allocation3] sm:$0xff]  ;;  %6363 = vst.msk [vmem:[#allocation3 + $0x30] sm:$0xff] %vm12937_vm14, %v8683_v19  ;;  %v6342_v40 = vpop.f32.mrb[149].mxu1  ;;  %v6464_v0 = vpop.f32.mrb[149].mxu0  ;;  %vm12952_vm14 = vmmov %vm12934_vm0 }
 0x923   : > { %v6487_v47 = vadd.f32 %v6479_v12, %v6448_v25  ;;  %v6482_v56 = vld [vmem:[#allocation3 + $0x18] sm:$0xff]  ;;  %6361 = vst.msk [vmem:[#allocation3 + $0x20] sm:$0xff] %vm12938_vm7, %v6342_v40  ;;  %v8684_v20 = vpop.f32.mrb[150].mxu1  ;;  %v8694_v2 = vpop.f32.mrb[150].mxu0  ;;  %vm12953_vm7 = vmmov %vm12934_vm0 }
 0x924   : > { %6497 = vst.msk [vmem:[#allocation3 + $0x10] sm:$0xff] %vm12939_vm15, %v6489_v43  ;;  %v6490_v3 = vadd.f32 %v8690_v29, %v6482_v56  ;;  %v6480_v26 = vld [vmem:[#allocation3 + $0x8] sm:$0xff]  ;;  %v6345_v5 = vpop.f32.mrb[151].mxu1  ;;  %v6467_v39 = vpop.f32.mrb[151].mxu0  ;;  %vm12954_vm15 = vmmov %vm12934_vm0 }
 0x925   : > { %6364 = vst.msk [vmem:[#allocation3 + $0x38] sm:$0xff] %vm12940_vm4, %v8684_v20  ;;  %v6488_v60 = vadd.f32 %v6480_v26, %v6451_v9  ;;  %vm12955_vm4 = vmmov %vm12934_vm0 }
 0x926   : > { %6495 = vst.msk [vmem:[#allocation3] sm:$0xff] %vm12941_vm5, %v6487_v47  ;;  %vm12956_vm5 = vmmov %vm12934_vm0 }
 0x927   : > { %6362 = vst.msk [vmem:[#allocation3 + $0x28] sm:$0xff] %vm12942_vm12, %v6345_v5  ;;  %vm12957_vm12 = vmmov %vm12934_vm0 }
 0x928   : > { %6498 = vst.msk [vmem:[#allocation3 + $0x18] sm:$0xff] %vm12943_vm1, %v6490_v3  ;;  %vm12958_vm1 = vmmov %vm12934_vm0 }
 0x929   : > { %6496 = vst.msk [vmem:[#allocation3 + $0x8] sm:$0xff] %vm12944_vm2, %v6488_v60  ;;  %v6485_v21 = vld [vmem:[#allocation3 + $0x30] sm:$0xff]  ;;  %v8699_v7 = vpop.f32.mrb[152].mxu1  ;;  %v8709_v15 = vpop.f32.mrb[152].mxu0  ;;  %vm12959_vm2 = vmmov %vm12934_vm0 }
 0x92a   : > { %v6493_v27 = vadd.f32 %v8693_v37, %v6485_v21  ;;  %v6483_v28 = vld [vmem:[#allocation3 + $0x20] sm:$0xff]  ;;  %v6586_v35 = vpop.f32.mrb[153].mxu1  ;;  %v6700_v63 = vpop.f32.mrb[153].mxu0 }
 0x92b   : > { %v6491_v31 = vadd.f32 %v6483_v28, %v6464_v0  ;;  %v6619_v11 = vld [vmem:[#allocation3 + $0x10] sm:$0xff]  ;;  %v8700_v50 = vpop.f32.mrb[154].mxu1  ;;  %v8710_v17 = vpop.f32.mrb[154].mxu0 }
 0x92c   : > { %v6486_v41 = vld [vmem:[#allocation3 + $0x38] sm:$0xff]  ;;  %6501 = vst.msk [vmem:[#allocation3 + $0x30] sm:$0xff] %vm12945_vm6, %v6493_v27  ;;  %v6627_v4 = vadd.f32 %v8699_v7, %v6619_v11  ;;  %v6589_v58 = vpop.f32.mrb[155].mxu1  ;;  %v6703_v48 = vpop.f32.mrb[155].mxu0  ;;  %vm12960_vm6 = vmmov %vm12934_vm0 }
 0x92d   : > { %v6494_v36 = vadd.f32 %v8694_v2, %v6486_v41  ;;  %v6617_v62 = vld [vmem:[#allocation3] sm:$0xff]  ;;  %6499 = vst.msk [vmem:[#allocation3 + $0x20] sm:$0xff] %vm12946_vm9, %v6491_v31  ;;  %vm12961_vm9 = vmmov %vm12934_vm0 }
 0x92e   : > { %v6484_v6 = vld [vmem:[#allocation3 + $0x28] sm:$0xff]  ;;  %v6625_v13 = vadd.f32 %v6617_v62, %v6586_v35  ;;  %6635 = vst.msk [vmem:[#allocation3 + $0x10] sm:$0xff] %vm12948_vm3, %v6627_v4  ;;  %vm12963_vm3 = vmmov %vm12934_vm0 }
 0x92f   : > { %v6492_v34 = vadd.f32 %v6484_v6, %v6467_v39  ;;  %v6620_v45 = vld [vmem:[#allocation3 + $0x18] sm:$0xff]  ;;  %6502 = vst.msk [vmem:[#allocation3 + $0x38] sm:$0xff] %vm12947_vm13, %v6494_v36  ;;  %vm12962_vm13 = vmmov %vm12934_vm0 }
 0x930   : > { %v6628_v38 = vadd.f32 %v8700_v50, %v6620_v45  ;;  %v6618_v55 = vld [vmem:[#allocation3 + $0x8] sm:$0xff]  ;;  %6633 = vst.msk [vmem:[#allocation3] sm:$0xff] %vm12934_vm0, %v6625_v13 }
 0x931   : > { %6500 = vst.msk [vmem:[#allocation3 + $0x28] sm:$0xff] %vm12949_vm10, %v6492_v34  ;;  %v6626_v18 = vadd.f32 %v6618_v55, %v6589_v58  ;;  %v8703_v44 = vpop.f32.mrb[156].mxu1  ;;  %v8713_v61 = vpop.f32.mrb[156].mxu0  ;;  %vm12964_vm10 = vmmov %vm12934_vm0 }
 0x932   : > { %6636 = vst.msk [vmem:[#allocation3 + $0x18] sm:$0xff] %vm12950_vm8, %v6628_v38  ;;  %v6602_v23 = vpop.f32.mrb[157].mxu1  ;;  %v6716_v32 = vpop.f32.mrb[157].mxu0  ;;  %vm12965_vm8 = vmmov %vm12934_vm0 }
 0x933   : > { %6634 = vst.msk [vmem:[#allocation3 + $0x8] sm:$0xff] %vm12951_vm11, %v6626_v18  ;;  %v6623_v14 = vld [vmem:[#allocation3 + $0x30] sm:$0xff]  ;;  %v8704_v52 = vpop.f32.mrb[158].mxu1  ;;  %v8714_v16 = vpop.f32.mrb[158].mxu0  ;;  %vm12966_vm11 = vmmov %vm12934_vm0 }
 0x934   : > { %v6631_v24 = vadd.f32 %v8703_v44, %v6623_v14  ;;  %v6621_v59 = vld [vmem:[#allocation3 + $0x20] sm:$0xff]  ;;  %v6605_v53 = vpop.f32.mrb[159].mxu1  ;;  %v6719_v54 = vpop.f32.mrb[159].mxu0 }
 0x935   : > { %v6733_v30 = vld [vmem:[#allocation3 + $0x10] sm:$0xff]  ;;  %v6629_v57 = vadd.f32 %v6621_v59, %v6602_v23 }
 0x936   : > { %v6624_v22 = vld [vmem:[#allocation3 + $0x38] sm:$0xff]  ;;  %v6741_v51 = vadd.f32 %v8709_v15, %v6733_v30  ;;  %6639 = vst.msk [vmem:[#allocation3 + $0x30] sm:$0xff] %vm12952_vm14, %v6631_v24  ;;  %vm12967_vm14 = vmmov %vm12934_vm0 }
 0x937   : > { %v6731_v1 = vld [vmem:[#allocation3] sm:$0xff]  ;;  %v6632_v46 = vadd.f32 %v8704_v52, %v6624_v22  ;;  %6637 = vst.msk [vmem:[#allocation3 + $0x20] sm:$0xff] %vm12953_vm7, %v6629_v57  ;;  %vm12968_vm7 = vmmov %vm12934_vm0 }
 0x938   : > { %v6622_v10 = vld [vmem:[#allocation3 + $0x28] sm:$0xff]  ;;  %v6739_v8 = vadd.f32 %v6731_v1, %v6700_v63  ;;  %6749 = vst.msk [vmem:[#allocation3 + $0x10] sm:$0xff] %vm12954_vm15, %v6741_v51  ;;  %vm12969_vm15 = vmmov %vm12934_vm0 }
 0x939   : > { %v6734_v25 = vld [vmem:[#allocation3 + $0x18] sm:$0xff]  ;;  %v6630_v49 = vadd.f32 %v6622_v10, %v6605_v53  ;;  %6640 = vst.msk [vmem:[#allocation3 + $0x38] sm:$0xff] %vm12955_vm4, %v6632_v46  ;;  %v8719_v42 = vpop.f32.mrb[160].mxu1  ;;  %v8729_v19 = vpop.f32.mrb[160].mxu0  ;;  %vm12970_vm4 = vmmov %vm12934_vm0 }
 0x93a   : > { %v6742_v29 = vadd.f32 %v8710_v17, %v6734_v25  ;;  %v6732_v33 = vld [vmem:[#allocation3 + $0x8] sm:$0xff]  ;;  %6747 = vst.msk [vmem:[#allocation3] sm:$0xff] %vm12956_vm5, %v6739_v8  ;;  %v6838_v37 = vpop.f32.mrb[161].mxu1  ;;  %v6976_v43 = vpop.f32.mrb[161].mxu0  ;;  %vm12971_vm5 = vmmov %vm12934_vm0 }
 0x93b   : > { %v6740_v9 = vadd.f32 %v6732_v33, %v6703_v48  ;;  %6638 = vst.msk [vmem:[#allocation3 + $0x28] sm:$0xff] %vm12957_vm12, %v6630_v49  ;;  %v8720_v12 = vpop.f32.mrb[162].mxu1  ;;  %v8730_v40 = vpop.f32.mrb[162].mxu0  ;;  %v12218_v48 = vld [vmem:[#allocation30] ss:$0 sm:$0xff]  ;;  %vm12972_vm12 = vmmov %vm12934_vm0 }
 0x93c   : > { %6750 = vst.msk [vmem:[#allocation3 + $0x18] sm:$0xff] %vm12958_vm1, %v6742_v29  ;;  %v6841_v0 = vpop.f32.mrb[163].mxu1  ;;  %v12200_v47 = vpop.f32.mrb[163].mxu0  ;;  %vm12973_vm1 = vmmov %vm12934_vm0 }
 0x93d   : > { %6748 = vst.msk [vmem:[#allocation3 + $0x8] sm:$0xff] %vm12959_vm2, %v6740_v9  ;;  %v6737_v56 = vld [vmem:[#allocation3 + $0x30] sm:$0xff]  ;;  %vm12974_vm2 = vmmov %vm12934_vm0 }
 0x93e   : > { %v6745_v20 = vadd.f32 %v8713_v61, %v6737_v56  ;;  %v6735_v2 = vld [vmem:[#allocation3 + $0x20] sm:$0xff] }
 0x93f   : > { %v6743_v3 = vadd.f32 %v6735_v2, %v6716_v32  ;;  %v6871_v5 = vld [vmem:[#allocation3 + $0x10] sm:$0xff] }
 0x940   : > { %v6738_v26 = vld [vmem:[#allocation3 + $0x38] sm:$0xff]  ;;  %6753 = vst.msk [vmem:[#allocation3 + $0x30] sm:$0xff] %vm12960_vm6, %v6745_v20  ;;  %v6879_v21 = vadd.f32 %v8719_v42, %v6871_v5  ;;  %vm12975_vm6 = vmmov %vm12934_vm0 }
 0x941   : > { %v6746_v39 = vadd.f32 %v8714_v16, %v6738_v26  ;;  %v6869_v7 = vld [vmem:[#allocation3] sm:$0xff]  ;;  %6751 = vst.msk [vmem:[#allocation3 + $0x20] sm:$0xff] %vm12961_vm9, %v6743_v3  ;;  %v8723_v35 = vpop.f32.mrb[164].mxu1  ;;  %v12204_v63 = vpop.f32.mrb[164].mxu0  ;;  %vm12976_vm9 = vmmov %vm12934_vm0 }
 0x942   : > { %v6736_v60 = vld [vmem:[#allocation3 + $0x28] sm:$0xff]  ;;  %v6877_v27 = vadd.f32 %v6869_v7, %v6838_v37  ;;  %6887 = vst.msk [vmem:[#allocation3 + $0x10] sm:$0xff] %vm12963_vm3, %v6879_v21  ;;  %v6854_v11 = vpop.f32.mrb[165].mxu1  ;;  %v12208_v50 = vpop.f32.mrb[165].mxu0  ;;  %vm12978_vm3 = vmmov %vm12934_vm0 }
 0x943   : > { %v6744_v15 = vadd.f32 %v6736_v60, %v6719_v54  ;;  %v6872_v28 = vld [vmem:[#allocation3 + $0x18] sm:$0xff]  ;;  %6754 = vst.msk [vmem:[#allocation3 + $0x38] sm:$0xff] %vm12962_vm13, %v6746_v39  ;;  %v8724_v36 = vpop.f32.mrb[166].mxu1  ;;  %v12212_v6 = vpop.f32.mrb[166].mxu0  ;;  %vm12977_vm13 = vmmov %vm12934_vm0 }
 0x944   : > { %v6880_v31 = vadd.f32 %v8720_v12, %v6872_v28  ;;  %v6870_v41 = vld [vmem:[#allocation3 + $0x8] sm:$0xff]  ;;  %6885 = vst.msk [vmem:[#allocation3] sm:$0xff] %vm12934_vm0, %v6877_v27  ;;  %v6857_v4 = vpop.f32.mrb[167].mxu1  ;;  %v12215_v62 = vpop.f32.mrb[167].mxu0 }
 0x945   : > { %6752 = vst.msk [vmem:[#allocation3 + $0x28] sm:$0xff] %vm12964_vm10, %v6744_v15  ;;  %v6878_v17 = vadd.f32 %v6870_v41, %v6841_v0  ;;  %vm12979_vm10 = vmmov %vm12934_vm0 }
 0x946   : > { %6888 = vst.msk [vmem:[#allocation3 + $0x18] sm:$0xff] %vm12965_vm8, %v6880_v31  ;;  %vm12980_vm8 = vmmov %vm12934_vm0 }
 0x947   : > { %6886 = vst.msk [vmem:[#allocation3 + $0x8] sm:$0xff] %vm12966_vm11, %v6878_v17  ;;  %v6875_v58 = vld [vmem:[#allocation3 + $0x30] sm:$0xff]  ;;  %vm12981_vm11 = vmmov %vm12934_vm0 }
 0x948   : > { %v6883_v34 = vadd.f32 %v8723_v35, %v6875_v58  ;;  %v6873_v13 = vld [vmem:[#allocation3 + $0x20] sm:$0xff] }
 0x949   : > { %v7009_v45 = vld [vmem:[#allocation3 + $0x10] sm:$0xff]  ;;  %v6881_v38 = vadd.f32 %v6873_v13, %v6854_v11  ;;  %v8739_v18 = vpop.f32.mrb[168].mxu1  ;;  %v8751_v44 = vpop.f32.mrb[168].mxu0 }
 0x94a   : > { %v6876_v55 = vld [vmem:[#allocation3 + $0x38] sm:$0xff]  ;;  %v7017_v61 = vadd.f32 %v8729_v19, %v7009_v45  ;;  %6891 = vst.msk [vmem:[#allocation3 + $0x30] sm:$0xff] %vm12967_vm14, %v6883_v34  ;;  %v7114_v52 = vpop.f32.mrb[169].mxu1  ;;  %v7435_v16 = vadd.f32 %v8751_v44, %v12218_v48  ;;  %v7426_v24 = vpop.f32.mrb[169].mxu0  ;;  %vm12982_vm14 = vmmov %vm12934_vm0 }
 0x94b   : > { %v7007_v23 = vld [vmem:[#allocation3] sm:$0xff]  ;;  %v6884_v32 = vadd.f32 %v8724_v36, %v6876_v55  ;;  %6889 = vst.msk [vmem:[#allocation3 + $0x20] sm:$0xff] %vm12968_vm7, %v6881_v38  ;;  %v8740_v30 = vpop.f32.mrb[170].mxu1  ;;  %v7427_v57 = vadd.f32 %v12218_v48, %v7426_v24  ;;  %v8752_v22 = vpop.f32.mrb[170].mxu0  ;;  %v8028_v38 = vld [vmem:[#allocation27] ss:$0 sm:$0xff]  ;;  %vm12983_vm7 = vmmov %vm12934_vm0 }
 0x94c   : > { %v6874_v14 = vld [vmem:[#allocation3 + $0x28] sm:$0xff]  ;;  %v7015_v59 = vadd.f32 %v7007_v23, %v6976_v43  ;;  %7025 = vst.msk [vmem:[#allocation3 + $0x10] sm:$0xff] %vm12969_vm15, %v7017_v61  ;;  %v7459_v46 = vmax.f32 %v7435_v16, 0.0  ;;  %v7117_v10 = vpop.f32.mrb[171].mxu1  ;;  %v7438_v8 = vadd.f32 %v8752_v22, %v12218_v48  ;;  %v7429_v25 = vpop.f32.mrb[171].mxu0  ;;  %vm12984_vm15 = vmmov %vm12934_vm0 }
 0x94d   : > { %v7010_v53 = vld [vmem:[#allocation3 + $0x18] sm:$0xff]  ;;  %v6882_v54 = vadd.f32 %v6874_v14, %v6857_v4  ;;  %6892 = vst.msk [vmem:[#allocation3 + $0x38] sm:$0xff] %vm12970_vm4, %v6884_v32  ;;  %v7457_v29 = vmax.f32 %v7427_v57, 0.0  ;;  %v7430_v33 = vadd.f32 %v12218_v48, %v7429_v25  ;;  %vm12985_vm4 = vmmov %vm12934_vm0 }
 0x94e   : > { %v7018_v51 = vadd.f32 %v8730_v40, %v7010_v53  ;;  %v7008_v1 = vld [vmem:[#allocation3 + $0x8] sm:$0xff]  ;;  %7023 = vst.msk [vmem:[#allocation3] sm:$0xff] %vm12971_vm5, %v7015_v59  ;;  %v8084_v9 = vpack.c.bf16 %v7459_v46, %v7459_v46  ;;  %v7460_v42 = vmax.f32 %v7438_v8, 0.0  ;;  %vm7248_vm5 = vcmask 781824  }
 0x94f   : > { %v7016_v49 = vadd.f32 %v7008_v1, %v12200_v47  ;;  %6890 = vst.msk [vmem:[#allocation3 + $0x28] sm:$0xff] %vm12972_vm12, %v6882_v54  ;;  %v7458_v19 = vmax.f32 %v7430_v33, 0.0  ;;  %v8082_v37 = vpack.c.bf16 %v7457_v29, %v7457_v29  ;;  %vm7513_vm12 = vcmask 1044224  }
 0x950   : > { %7026 = vst.msk [vmem:[#allocation3 + $0x18] sm:$0xff] %vm12973_vm1, %v7018_v51  ;;  %v8085_v43 = vpack.c.bf16 %v7460_v42, %v7460_v42  ;;  %7493 = vrot.lane.b32.xlu1 %v8084_v9, %s9645_s4 }
 0x951   : > { %7024 = vst.msk [vmem:[#allocation3 + $0x8] sm:$0xff] %vm12974_vm2, %v7016_v49  ;;  %v7013_v12 = vld [vmem:[#allocation3 + $0x30] sm:$0xff]  ;;  %v8743_v40 = vpop.f32.mrb[172].mxu1  ;;  %v12234_v0 = vpop.f32.mrb[172].mxu0  ;;  %v8083_v20 = vpack.c.bf16 %v7458_v19, %v7458_v19 }
 0x952   : > { %v7021_v47 = vadd.f32 %v12204_v63, %v7013_v12  ;;  %v7011_v56 = vld [vmem:[#allocation3 + $0x20] sm:$0xff]  ;;  %v7130_v2 = vpop.f32.mrb[173].mxu1  ;;  %7495 = vrot.lane.b32.xlu0 %v8085_v43, %s9645_s4  ;;  %v7442_v3 = vpop.f32.mrb[173].mxu0 }
 0x953   : > { %v7019_v26 = vadd.f32 %v7011_v56, %v12208_v50  ;;  %v7147_v39 = vld [vmem:[#allocation3 + $0x10] sm:$0xff]  ;;  %v8744_v60 = vpop.f32.mrb[174].mxu1  ;;  %v7443_v21 = vadd.f32 %v12218_v48, %v7442_v3  ;;  %v12240_v7 = vpop.f32.mrb[174].mxu0 }
 0x954   : > { %v7014_v5 = vld [vmem:[#allocation3 + $0x38] sm:$0xff]  ;;  %7029 = vst.msk [vmem:[#allocation3 + $0x30] sm:$0xff] %vm12975_vm6, %v7021_v47  ;;  %v7155_v28 = vadd.f32 %v8739_v18, %v7147_v39  ;;  %v7133_v63 = vpop.f32.mrb[175].mxu1  ;;  %7489 = vrot.lane.b32.xlu1 %v8082_v37, %s9645_s4  ;;  %v7445_v31 = vpop.f32.mrb[175].mxu0  ;;  %v7451_v47 = vadd.f32 %v12234_v0, %v12218_v48  ;;  %v7454_v3 = vadd.f32 %v12240_v7, %v12218_v48 }
 0x955   : > { %v7022_v15 = vadd.f32 %v12212_v6, %v7014_v5  ;;  %v7145_v35 = vld [vmem:[#allocation3] sm:$0xff]  ;;  %7027 = vst.msk [vmem:[#allocation3 + $0x20] sm:$0xff] %vm12976_vm9, %v7019_v26  ;;  %v7461_v17 = vmax.f32 %v7443_v21, 0.0  ;;  %v7446_v36 = vadd.f32 %v12218_v48, %v7445_v31 }
 0x956   : > { %v7012_v27 = vld [vmem:[#allocation3 + $0x28] sm:$0xff]  ;;  %v7153_v11 = vadd.f32 %v7145_v35, %v7114_v52  ;;  %7163 = vst.msk [vmem:[#allocation3 + $0x10] sm:$0xff] %vm12978_vm3, %v7155_v28  ;;  %7491 = vrot.lane.b32.xlu0 %v8083_v20, %s9645_s4  ;;  %v7463_v39 = vmax.f32 %v7451_v47, 0.0  ;;  %v7464_v21 = vmax.f32 %v7454_v3, 0.0 }
 0x957   : > { %v7020_v41 = vadd.f32 %v7012_v27, %v12215_v62  ;;  %v7148_v50 = vld [vmem:[#allocation3 + $0x18] sm:$0xff]  ;;  %7030 = vst.msk [vmem:[#allocation3 + $0x38] sm:$0xff] %vm12977_vm13, %v7022_v15  ;;  %v8086_v34 = vpack.c.bf16 %v7461_v17, %v7461_v17  ;;  %v7462_v62 = vmax.f32 %v7446_v36, 0.0 }
 0x958   : > { %v7156_v6 = vadd.f32 %v8740_v30, %v7148_v50  ;;  %v7146_v4 = vld [vmem:[#allocation3 + $0x8] sm:$0xff]  ;;  %7161 = vst.msk [vmem:[#allocation3] sm:$0xff] %vm12934_vm0, %v7153_v11  ;;  %v8088_v15 = vpack.c.bf16 %v7463_v39, %v7463_v39  ;;  %v8089_v27 = vpack.c.bf16 %v7464_v21, %v7464_v21 }
 0x959   : > { %7028 = vst.msk [vmem:[#allocation3 + $0x28] sm:$0xff] %vm12979_vm10, %v7020_v41  ;;  %v7154_v58 = vadd.f32 %v7146_v4, %v7117_v10  ;;  %v8087_v13 = vpack.c.bf16 %v7462_v62, %v7462_v62  ;;  %7497 = vrot.lane.b32.xlu1 %v8086_v34, %s9645_s4 }
 0x95a   : > { %7164 = vst.msk [vmem:[#allocation3 + $0x18] sm:$0xff] %vm12980_vm8, %v7156_v6 }
 0x95b   : > { %7162 = vst.msk [vmem:[#allocation3 + $0x8] sm:$0xff] %vm12981_vm11, %v7154_v58  ;;  %v7151_v45 = vld [vmem:[#allocation3 + $0x30] sm:$0xff]  ;;  %7499 = vrot.lane.b32.xlu0 %v8087_v13, %s9645_s4 }
 0x95c   : > { %v7159_v55 = vadd.f32 %v8743_v40, %v7151_v45  ;;  %v7149_v18 = vld [vmem:[#allocation3 + $0x20] sm:$0xff] }
 0x95d   : > { %v7157_v44 = vadd.f32 %v7149_v18, %v7130_v2  ;;  %v7171_v23 = vld [vmem:[#allocation3 + $0x10] sm:$0xff] }
 0x95e   : > { %v7152_v61 = vld [vmem:[#allocation3 + $0x38] sm:$0xff]  ;;  %7167 = vst.msk [vmem:[#allocation3 + $0x30] sm:$0xff] %vm12982_vm14, %v7159_v55  ;;  %v7186_v52 = vadd.f32 %v8028_v38, %v7171_v23 }
 0x95f   : > { %v7160_v32 = vadd.f32 %v8744_v60, %v7152_v61  ;;  %v7169_v16 = vld [vmem:[#allocation3] sm:$0xff]  ;;  %7165 = vst.msk [vmem:[#allocation3 + $0x20] sm:$0xff] %vm12983_vm7, %v7157_v44 }
 0x960   : > { %v7150_v14 = vld [vmem:[#allocation3 + $0x28] sm:$0xff]  ;;  %v7184_v53 = vadd.f32 %v8028_v38, %v7169_v16  ;;  %v7194_v54 = vmax.f32 %v7186_v52, 0.0 }
 0x961   : > { %v7158_v24 = vadd.f32 %v7150_v14, %v7133_v63  ;;  %v7172_v59 = vld [vmem:[#allocation3 + $0x18] sm:$0xff]  ;;  %7168 = vst.msk [vmem:[#allocation3 + $0x38] sm:$0xff] %vm12984_vm15, %v7160_v32 }
 0x962   : > { %v7187_v30 = vadd.f32 %v8028_v38, %v7172_v59  ;;  %v7170_v57 = vld [vmem:[#allocation3 + $0x8] sm:$0xff]  ;;  %v8076_v51 = vpack.c.bf16 %v7194_v54, %v7194_v54  ;;  %v7192_v46 = vmax.f32 %v7184_v53, 0.0 }
 0x963   : > { %7166 = vst.msk [vmem:[#allocation3 + $0x28] sm:$0xff] %vm12985_vm4, %v7158_v24  ;;  %v7185_v22 = vadd.f32 %v8028_v38, %v7170_v57 }
 0x964   : > { %v7195_v1 = vmax.f32 %v7187_v30, 0.0  ;;  %7228 = vrot.lane.b32.xlu1 %v8076_v51, %s9650_s18  ;;  %v8074_v49 = vpack.c.bf16 %v7192_v46, %v7192_v46 }
 0x965   : > { %v7193_v8 = vmax.f32 %v7185_v22, 0.0  ;;  %v7175_v25 = vld [vmem:[#allocation3 + $0x30] sm:$0xff] }
 0x966   : > { %v8077_v10 = vpack.c.bf16 %v7195_v1, %v7195_v1  ;;  %v7190_v29 = vadd.f32 %v8028_v38, %v7175_v25  ;;  %v7173_v33 = vld [vmem:[#allocation3 + $0x20] sm:$0xff] }
 0x967   : > { %v7188_v42 = vadd.f32 %v8028_v38, %v7173_v33  ;;  %v8075_v19 = vpack.c.bf16 %v7193_v8, %v7193_v8 }
 0x968   : > { %7230 = vrot.lane.b32.xlu0 %v8077_v10, %s9650_s18  ;;  %v7176_v9 = vld [vmem:[#allocation3 + $0x38] sm:$0xff]  ;;  %7224 = vrot.lane.b32.xlu1 %v8074_v49, %s9650_s18  ;;  %v7198_v37 = vmax.f32 %v7190_v29, 0.0 }
 0x969   : > { %v7191_v43 = vadd.f32 %v8028_v38, %v7176_v9  ;;  %v7196_v2 = vmax.f32 %v7188_v42, 0.0 }
 0x96a   : > { %v7174_v12 = vld [vmem:[#allocation3 + $0x28] sm:$0xff]  ;;  %v8080_v56 = vpack.c.bf16 %v7198_v37, %v7198_v37 }
 0x96b   : > { %v7189_v40 = vadd.f32 %v8028_v38, %v7174_v12  ;;  %v7199_v20 = vmax.f32 %v7191_v43, 0.0  ;;  %v8078_v60 = vpack.c.bf16 %v7196_v2, %v7196_v2 }
 0x96c   : > { %7226 = vrot.lane.b32.xlu0 %v8075_v19, %s9650_s18  ;;  %7236 = vrot.lane.b32.xlu1 %v8080_v56, %s9650_s18 }
 0x96d   : > { %v8081_v26 = vpack.c.bf16 %v7199_v20, %v7199_v20  ;;  %v7197_v5 = vmax.f32 %v7189_v40, 0.0 }
 0x96f   : > { %v8079_v0 = vpack.c.bf16 %v7197_v5, %v7197_v5 }
 0x970   : > { %7238 = vrot.lane.b32.xlu0 %v8081_v26, %s9650_s18  ;;  %7232 = vrot.lane.b32.xlu1 %v8078_v60, %s9650_s18 }
 0x974   : > { %7234 = vrot.lane.b32.xlu0 %v8079_v0, %s9650_s18  ;;  %7501 = vrot.lane.b32.xlu1 %v8088_v15, %s9645_s4 }
 0x978   : > { %7503 = vrot.lane.b32.xlu0 %v8089_v27, %s9645_s4  ;;  %s9524_s4 = scalar_lea.vmem %s12312_s17, 512 }
 0x979   : > { %p9525_p11 = scmp.ne.s32.totalorder %s12312_s17, %s9524_s4  ;;  %p9532_p9 = scmp.lt.s32.totalorder %s9530_s24, %s9524_s4 }
 0x97b   : > { %p9526_p5 = pnand %p9525_p11, %p12987_p3  ;;  %p9533_p12 = por %p9532_p9, %p9531_p6 }
 0x97d   : > { %p9527_p7 = pneg %p9526_p5 }
 0x97f   : > { %p9534_p1 = pnand %p9533_p12, %p9527_p7 }
 0x9c2   : > { %v7494_v48 = vpop.permute.xlu1 %7493 }
 0x9c4   : > { %v7496_v7 = vpop.permute.xlu0 %7495 }
 0x9c6   : > { %v7490_v28 = vpop.permute.xlu1 %7489 }
 0x9c8   : > { %v7492_v35 = vpop.permute.xlu0 %7491 }
 0x9cb   : > { %v7498_v63 = vpop.permute.xlu1 %7497 }
 0x9cd   : > { %v7500_v31 = vpop.permute.xlu0 %7499 }
 0x9d6   : > { %v7229_v41 = vpop.permute.xlu1 %7228 }
 0x9d7   : > { %7251 = vst.msk [vmem:[%s10307_s26 + $0x8] sm:$0xf] %vm7248_vm5, %v7229_v41 }
 0x9d8   : > { %7516 = vst.msk [vmem:[%s10307_s26 + $0x8] sm:$0xf] %vm7513_vm12, %v7494_v48 }
 0x9da   : > { %v7231_v11 = vpop.permute.xlu0 %7230  ;;  %v7225_v50 = vpop.permute.xlu1 %7224 }
 0x9db   : > { %7252 = vst.msk [vmem:[%s10307_s26 + $0xc] sm:$0xf] %vm7248_vm5, %v7231_v11  ;;  %7249 = vst.msk [vmem:[%s10307_s26] sm:$0xf] %vm7248_vm5, %v7225_v50 }
 0x9dc   : > { %7517 = vst.msk [vmem:[%s10307_s26 + $0xc] sm:$0xf] %vm7513_vm12, %v7496_v7  ;;  %7514 = vst.msk [vmem:[%s10307_s26] sm:$0xf] %vm7513_vm12, %v7490_v28 }
 0x9de   : > { %v7227_v17 = vpop.permute.xlu0 %7226  ;;  %v7237_v36 = vpop.permute.xlu1 %7236 }
 0x9df   : > { %7250 = vst.msk [vmem:[%s10307_s26 + $0x4] sm:$0xf] %vm7248_vm5, %v7227_v17  ;;  %7255 = vst.msk [vmem:[%s10307_s26 + $0x18] sm:$0xf] %vm7248_vm5, %v7237_v36 }
 0x9e0   : > { %7515 = vst.msk [vmem:[%s10307_s26 + $0x4] sm:$0xf] %vm7513_vm12, %v7492_v35 }
 0x9e2   : > { %v7239_v6 = vpop.permute.xlu0 %7238  ;;  %v7233_v4 = vpop.permute.xlu1 %7232 }
 0x9e3   : > { %7256 = vst.msk [vmem:[%s10307_s26 + $0x1c] sm:$0xf] %vm7248_vm5, %v7239_v6  ;;  %7253 = vst.msk [vmem:[%s10307_s26 + $0x10] sm:$0xf] %vm7248_vm5, %v7233_v4 }
 0x9e4   : > { %7518 = vst.msk [vmem:[%s10307_s26 + $0x10] sm:$0xf] %vm7513_vm12, %v7498_v63 }
 0x9e6   : > { %v7235_v58 = vpop.permute.xlu0 %7234  ;;  %v7502_v34 = vpop.permute.xlu1 %7501 }
 0x9e7   : > { %7254 = vst.msk [vmem:[%s10307_s26 + $0x14] sm:$0xf] %vm7248_vm5, %v7235_v58 }
 0x9e8   : > { %7519 = vst.msk [vmem:[%s10307_s26 + $0x14] sm:$0xf] %vm7513_vm12, %v7500_v31  ;;  %7520 = vst.msk [vmem:[%s10307_s26 + $0x18] sm:$0xf] %vm7513_vm12, %v7502_v34 }
 0x9ea   : > { %v7504_v62 = vpop.permute.xlu0 %7503 }
 0x9eb   : > { %7521 = vst.msk [vmem:[%s10307_s26 + $0x1c] sm:$0xf] %vm7513_vm12, %v7504_v62 }
 0x9ec   : > { %9537 = shalt.err (!%p9534_p1)
}
 0x9ed   : > { %s9538_s26 = scalar_lea.hbm %s12308_s2, 512  ;;  %s9542_s0 = scalar_lea.hbm %s12986_s21, 1024 }
 0x9ee   : > { %p9539_p13 = scmp.ne.s32.totalorder %s12308_s2, %s9538_s26  ;;  %p9543_p8 = scmp.lt.u32.totalorder %s12308_s2, %s12986_s21 }
 0x9ef   : > { %p9544_p4 = scmp.lt.u32.totalorder %s9542_s0, %s9538_s26  ;;  %p9546_p11 = scmp.lt.u32.totalorder %s9538_s26, %s12308_s2 }
 0x9f0   : > { %p9540_p0 = pnand %p9539_p13, %p12987_p3 }
 0x9f1   : > { %p9545_p10 = por %p9544_p4, %p9543_p8 }
 0x9f2   : > { %p9541_p2 = pneg %p9540_p0 }
 0x9f3   : > { %p9547_p5 = por %p9546_p11, %p9545_p10 }
 0x9f5   : > { %p9548_p7 = pnand %p9547_p5, %p9541_p2 }
 0x9f7   : > { %9551 = shalt.err (!%p9548_p7)
}
 0x9f8   : > { %s9652_s4 = smov 4   ;;  %s12988_s24 = scalar_lea.sflag [#allocation6], %s10202_s29 }
 0x9f9   : > { %8823 = dma.vmem_to_hbm [thread:$0]  (%p12987_p3), %s12312_s17, 512, %s12308_s2, %s12988_s24, %s9650_s18, %s9650_s18, %s9652_s4  }
 0x9fa PF: > { %s12989_s30 = sld [smem:[#allocation42_spill]]  ;;  %s12990_s3 = sld [smem:[#allocation45_spill]] }
 0x9fb   : > { %p12991_p6 = scmp.ne.s32.totalorder %s12547_s16, 0 }
 0xa00   : > { %s7551_s25 = sand.u32 1, %s12989_s30   ;;  %p12992_p9 = scmp.ge.s32.totalorder %s12990_s3, 2 }
 0xa01   : > { %s7552_s26 = scalar_lea.sflag [#allocation6], %s7551_s25 }
 0xa02   : > { %p8879_p12 = pnand %p12992_p9, %p12991_p6 }
 0xa04   : > { %9605 = dma.done.wait (!%p8879_p12), %s7552_s26, 512  }
 0xa05   : > { %9607 = vsyncadd (!%p8879_p12), %s7552_s26, 4294966784  ;;  %s12993_s24 = sld [smem:[#allocation43_spill]]  ;;  %s12994_s25 = sld [smem:[#allocation44_spill]] }
 0xa06   : > { %p38_p1 = scmp.ge.s32.totalorder %s10123_s1, 4   ;;  %s12995_s26 = smov %s10134_s20 }
 0xa07   : > { %s12996_s27 = smov %s10123_s1 }
 0xa08   :  { %40 = sbr.rel (!%p38_p1) target bundleno = 21 (0x15), region = 233 }
 0xa0f   :  { %7557 = vsyncpa [#allocation5], 1 }
 0xa10   :  { %7559 = vsyncpa [#allocation5 + $0x1], 1 }
 0xa11   :  { %7560 = vsyncpa [#allocation8], 1 }
 0xa12   :  { %7561 = vsyncpa [#allocation11], 1 }
 0xa13   :  { %7562 = vsyncpa [#allocation14], 1 }
 0xa14   :  { %7563 = vsyncpa [#allocation17], 1 }
 0xa15   :  { %7564 = vsyncpa [#allocation20], 1 }
 0xa16   :  { %7565 = vsyncpa [#allocation23], 1 }
 0xa17   :  { %7566 = vsyncpa [#allocation26], 1 }
 0xa18   :  { %7567 = vsyncpa [#allocation29], 1 }
 0xa19   :  { %7568 = vsyncpa [#allocation6], 1 }
 0xa1a   :  { %7570 = vsyncpa [#allocation6 + $0x1], 1 }

</bundles_post_ra>
